<compile_context>
chip_gen: v7x
topology: tpu7x:2x2x1
jax: 0.10.0
libtpu: 0.0.40
codegen_flags: <defaults>
</compile_context>

<pallas_src>
import functools

import jax
import jax.numpy as jnp
from jax.experimental import pallas as pl
from jax.experimental.pallas import tpu as pltpu

F32 = jnp.float32


def _full_spec(shape):
    nd = len(shape)
    return pl.BlockSpec(shape, lambda n: (0,) * nd)


# -------------------------------------------------------------------------------------
# Fused kernel: one image pair per grid step, everything resident in VMEM.
#
# x_ref block is (1, 2*HW, C): rows [0, HW) = x1_b, rows [HW, 2*HW) = x2_b (NHWC
# flattened).  All 1x1 convs / elementwise ops are per-position, so both branches share
# every matmul (M = 2*HW).  Only the 3x3-conv halos and the per-image reductions
# (channel-attention global mean, SA pooling conv) are handled per image.
# -------------------------------------------------------------------------------------
def _fused_kernel(H, W,
                  x_ref,
                  w1_ref, b1_ref, w2_ref, b2_ref, wsa_ref,
                  wca1_ref, bca1_ref, wca2_ref, bca2_ref,
                  wcat_ref, bcat_ref, wtail_ref, btail_ref,
                  wd1_ref, s1_ref, t1_ref,
                  wd2_ref, s2_ref, t2_ref,
                  wd3_ref, s3_ref, t3_ref,
                  o_ref,
                  pad_ref, patch_ref):
    HW = H * W
    C = x_ref.shape[-1]
    Co = o_ref.shape[-1]
    CM = pad_ref.shape[-1]

    x = x_ref[0]                                                  # (2*HW, C) f32

    # Zero the halo rows of the padded scratch once per step (all later stages only
    # rewrite the centre rows, so the halo stays zero for every conv).  Unconditional
    # (not pl.when(step==0)): scratch is per-core under megacore sharding.
    zhalo = jnp.zeros((W + 1, CM), F32)
    for i in range(2):
        pad_ref[i, :W + 1, :] = zhalo
        pad_ref[i, W + 1 + HW:, :] = zhalo

    # Horizontal-halo masks, built once per step (tap ox=-1 invalid at w==0, ox=+1 at
    # w==W-1); applied as a single broadcast multiply per edge tap.
    wcol = jax.lax.broadcasted_iota(jnp.int32, (HW, 1), 0) % W
    mask_l = (wcol > 0).astype(F32)
    mask_r = (wcol < W - 1).astype(F32)

    def fill_patch(cin):
        """im2col of both images from pad_ref into patch_ref[:, :9*cin].

        Tap k = 3*dy+dx of flattened row r is pad[(W+1) + r + oy*W + ox]: vertical OOB
        lands in the zero halo rows, horizontal wrap is killed by the column masks.
        Taps are packed lane-dense so the 3x3 conv is ONE (2*HW, 9*cin) matmul.
        """
        for i in range(2):
            xp = pad_ref[i, :, 0:cin]                             # (HWP, cin)
            k = 0
            for oy in (-1, 0, 1):
                for ox in (-1, 0, 1):
                    start = (W + 1) + oy * W + ox
                    tap = xp[start:start + HW, :]
                    if ox == -1:
                        tap = tap * mask_l
                    elif ox == 1:
                        tap = tap * mask_r
                    patch_ref[i * HW:(i + 1) * HW, k * cin:(k + 1) * cin] = tap
                    k += 1

    # ---- RRG / DAB body: conv1x1 -> ReLU -> conv1x1 ---------------------------------
    h = jnp.maximum(jnp.dot(x, w1_ref[...], preferred_element_type=F32) + b1_ref[...], 0.0)
    res = jnp.dot(h, w2_ref[...], preferred_element_type=F32) + b2_ref[...]

    # ---- Spatial attention: channel pool -> 3x3 conv (2->1) -> sigmoid -> scale -----
    pool = jnp.concatenate([jnp.max(res, axis=-1, keepdims=True),
                            jnp.mean(res, axis=-1, keepdims=True)], axis=-1)   # (2*HW, 2)
    pad_ref[0, W + 1:W + 1 + HW, 0:2] = pool[:HW]
    pad_ref[1, W + 1:W + 1 + HW, 0:2] = pool[HW:]
    fill_patch(2)                                                  # patch[:, :18]
    # 2-input-channel 3x3 conv as VPU multiply + 18-lane reduce (not a 1-lane MXU dot).
    att = jnp.sum(patch_ref[:, 0:18] * wsa_ref[...], axis=-1, keepdims=True)   # (2*HW, 1)
    sa = res * jax.nn.sigmoid(att)

    # ---- Channel attention (per-image global average pool -> squeeze/excite) --------
    g = jnp.concatenate([jnp.mean(res[:HW], axis=0, keepdims=True),
                         jnp.mean(res[HW:], axis=0, keepdims=True)], axis=0)   # (2, C)
    z = jnp.maximum(jnp.dot(g, wca1_ref[...], preferred_element_type=F32) + bca1_ref[...], 0.0)
    s = jax.nn.sigmoid(jnp.dot(z, wca2_ref[...], preferred_element_type=F32) + bca2_ref[...])
    ca_scale = jnp.concatenate([jnp.broadcast_to(s[0:1, :], (HW, C)),
                                jnp.broadcast_to(s[1:2, :], (HW, C))], axis=0)  # (2*HW, C)
    ca = res * ca_scale

    # ---- conv1x1 over cat([sa, ca]) as a single K=2C matmul + DAB / RRG residuals ---
    cat = jnp.concatenate([sa, ca], axis=-1)                      # (2*HW, 2C)
    dab = jnp.dot(cat, wcat_ref[...], preferred_element_type=F32) + bcat_ref[...] + x
    rrg = jnp.dot(dab, wtail_ref[...], preferred_element_type=F32) + btail_ref[...] + x

    # ---- Differentiation_path: 3 x (conv3x3 + folded BN + ReLU), both branches ------
    def dp_stage(act, cin, w_ref, sc_ref, sh_ref):
        pad_ref[0, W + 1:W + 1 + HW, 0:cin] = act[:HW]
        pad_ref[1, W + 1:W + 1 + HW, 0:cin] = act[HW:]
        fill_patch(cin)
        y = jnp.dot(patch_ref[:, 0:9 * cin], w_ref[...], preferred_element_type=F32)
        return jnp.maximum(y * sc_ref[...] + sh_ref[...], 0.0)

    a = dp_stage(rrg, C, wd1_ref, s1_ref, t1_ref)
    a = dp_stage(a, Co, wd2_ref, s2_ref, t2_ref)
    a = dp_stage(a, Co, wd3_ref, s3_ref, t3_ref)

    # ---- dx = |dp(rrg(x1)) - dp(rrg(x2))| --------------------------------------------
    o_ref[0] = jnp.abs(a[:HW] - a[HW:])


# -------------------------------------------------------------------------------------
# Parameters (random init; BN folded in eval mode).
# -------------------------------------------------------------------------------------
def init_params(key, c_in, c_out, reduction=16):
    cr = max(c_in // reduction, 1)
    ks = jax.random.split(key, 16)

    def w(k, shape, s=0.2):
        return jax.random.normal(k, shape, F32) * s

    p = {}
    p['w_body1'] = w(ks[0], (c_in, c_in));     p['b_body1'] = w(ks[1], (1, c_in), 0.05)
    p['w_body2'] = w(ks[2], (c_in, c_in));     p['b_body2'] = w(ks[3], (1, c_in), 0.05)
    p['w_sa'] = w(ks[4], (1, 18))              # torch (1, 2, 3, 3), bias=False
    p['w_ca1'] = w(ks[5], (c_in, cr));         p['b_ca1'] = w(ks[6], (1, cr), 0.05)
    p['w_ca2'] = w(ks[7], (cr, c_in));         p['b_ca2'] = w(ks[8], (1, c_in), 0.05)
    p['w_cat'] = w(ks[9], (2 * c_in, c_in))    # torch conv1x1(2C -> C); rows [SA | CA]
    p['b_cat'] = w(ks[10], (1, c_in), 0.05)
    p['w_tail'] = w(ks[11], (c_in, c_in));     p['b_tail'] = w(ks[12], (1, c_in), 0.05)

    # Differentiation_path: 3 x (conv3x3 + BN + ReLU), BN folded (eval mode).
    chans = [(c_in, c_out), (c_out, c_out), (c_out, c_out)]
    for i, (ci, co) in enumerate(chans, start=1):
        k0, k1, k2, k3, k4, k5 = jax.random.split(ks[12 + i], 6)
        wconv = jax.random.normal(k0, (9 * ci, co), F32) * 0.1
        bconv = 0.05 * jax.random.normal(k1, (co,), F32)
        gamma = 1.0 + 0.1 * jax.random.normal(k2, (co,), F32)
        beta = 0.05 * jax.random.normal(k3, (co,), F32)
        mean = 0.05 * jax.random.normal(k4, (co,), F32)
        var = 1.0 + 0.1 * jax.random.uniform(k5, (co,), F32)
        scale = gamma / jnp.sqrt(var + 1e-5)
        shift = beta + (bconv - mean) * scale
        p[f'w_dp{i}'] = wconv
        p[f'dp_scale{i}'] = scale.reshape(1, co)
        p[f'dp_shift{i}'] = shift.reshape(1, co)
    return p


# -------------------------------------------------------------------------------------
# Forward: dx = |dp(rrg(x1)) - dp(rrg(x2))|   (one fused pallas_call, grid over B pairs)
# -------------------------------------------------------------------------------------
def differentiation_module(x1_nchw, x2_nchw, p):
    B, C, H, W = x1_nchw.shape
    HW = H * W
    Co = p['w_dp1'].shape[-1]
    HWP = HW + 2 * (W + 1)
    CM = max(C, Co)

    # NCHW -> (B, HW, C); stack the two branches of each pair along the row axis so a
    # single grid step feeds both branches to every matmul (M = 2*HW) and the final
    # |dx1 - dx2| never leaves VMEM.
    def to_rows(x):
        return jnp.transpose(x, (0, 2, 3, 1)).astype(F32).reshape(B, HW, C)
    x_pair = jnp.concatenate([to_rows(x1_nchw), to_rows(x2_nchw)], axis=1)   # (B, 2*HW, C)

    weights = (p['w_body1'], p['b_body1'], p['w_body2'], p['b_body2'], p['w_sa'],
               p['w_ca1'], p['b_ca1'], p['w_ca2'], p['b_ca2'],
               p['w_cat'], p['b_cat'], p['w_tail'], p['b_tail'],
               p['w_dp1'], p['dp_scale1'], p['dp_shift1'],
               p['w_dp2'], p['dp_scale2'], p['dp_shift2'],
               p['w_dp3'], p['dp_scale3'], p['dp_shift3'])

    d = pl.pallas_call(
        functools.partial(_fused_kernel, H, W),
        grid=(B,),
        in_specs=([pl.BlockSpec((1, 2 * HW, C), lambda n: (n, 0, 0))]
                  + [_full_spec(a.shape) for a in weights]),
        out_specs=pl.BlockSpec((1, HW, Co), lambda n: (n, 0, 0)),
        out_shape=jax.ShapeDtypeStruct((B, HW, Co), F32),
        scratch_shapes=[pltpu.VMEM((2, HWP, CM), F32),          # per-image row-padded act
                        pltpu.VMEM((2 * HW, 9 * CM), F32)],     # shared im2col patch
        compiler_params=pltpu.CompilerParams(
            dimension_semantics=("parallel",)),                  # default VMEM limit is ample here
    )(x_pair, *weights)

    return jnp.transpose(d.reshape(B, H, W, Co), (0, 3, 1, 2))   # back to NCHW


if __name__ == "__main__":
    B, C_IN, C_OUT, H, W = 2, 16, 16, 8, 8
    k1, k2 = jax.random.split(jax.random.PRNGKey(0))
    x1 = jax.random.normal(k1, (B, C_IN, H, W), F32)
    x2 = jax.random.normal(k2, (B, C_IN, H, W), F32)
    params = init_params(jax.random.PRNGKey(1), C_IN, C_OUT)

    fwd = jax.jit(lambda a, b: differentiation_module(a, b, params))
    out = fwd(x1, x2)
    jax.block_until_ready(out)
    assert out.shape == (B, C_OUT, H, W), out.shape
    assert bool(jnp.all(jnp.isfinite(out)))
    print("KERNEL_OK")
</pallas_src>

<mosaic_0001>
module attributes {stable_mosaic.version = 11 : i64} {
  func.func @_fused_kernel(%arg0: i32, %arg1: memref<1x128x16xf32, #tpu.memory_space<vmem>>, %arg2: memref<16x16xf32, #tpu.memory_space<vmem>>, %arg3: memref<1x16xf32, #tpu.memory_space<vmem>>, %arg4: memref<16x16xf32, #tpu.memory_space<vmem>>, %arg5: memref<1x16xf32, #tpu.memory_space<vmem>>, %arg6: memref<1x18xf32, #tpu.memory_space<vmem>>, %arg7: memref<16x1xf32, #tpu.memory_space<vmem>>, %arg8: memref<1x1xf32, #tpu.memory_space<vmem>>, %arg9: memref<1x16xf32, #tpu.memory_space<vmem>>, %arg10: memref<1x16xf32, #tpu.memory_space<vmem>>, %arg11: memref<32x16xf32, #tpu.memory_space<vmem>>, %arg12: memref<1x16xf32, #tpu.memory_space<vmem>>, %arg13: memref<16x16xf32, #tpu.memory_space<vmem>>, %arg14: memref<1x16xf32, #tpu.memory_space<vmem>>, %arg15: memref<144x16xf32, #tpu.memory_space<vmem>>, %arg16: memref<1x16xf32, #tpu.memory_space<vmem>>, %arg17: memref<1x16xf32, #tpu.memory_space<vmem>>, %arg18: memref<144x16xf32, #tpu.memory_space<vmem>>, %arg19: memref<1x16xf32, #tpu.memory_space<vmem>>, %arg20: memref<1x16xf32, #tpu.memory_space<vmem>>, %arg21: memref<144x16xf32, #tpu.memory_space<vmem>>, %arg22: memref<1x16xf32, #tpu.memory_space<vmem>>, %arg23: memref<1x16xf32, #tpu.memory_space<vmem>>, %arg24: memref<1x64x16xf32, #tpu.memory_space<vmem>>, %arg25: memref<2x82x16xf32, #tpu.memory_space<vmem>>, %arg26: memref<128x144xf32, #tpu.memory_space<vmem>>) attributes {dimension_semantics = [#tpu.dimension_semantics<parallel>], iteration_bounds = array<i64: 2>, scalar_prefetch = 0 : i64, scratch_operands = 2 : i64, tpu.core_type = #tpu.core_type<tc>, window_params = [{transform_indices = @transform_0, window_bounds = array<i64: 1, 128, 16>}, {pipeline_mode = #tpu.pipeline_mode<synchronous>, transform_indices = @transform_1, window_bounds = array<i64: 16, 16>}, {pipeline_mode = #tpu.pipeline_mode<synchronous>, transform_indices = @transform_2, window_bounds = array<i64: 1, 16>}, {pipeline_mode = #tpu.pipeline_mode<synchronous>, transform_indices = @transform_3, window_bounds = array<i64: 16, 16>}, {pipeline_mode = #tpu.pipeline_mode<synchronous>, transform_indices = @transform_4, window_bounds = array<i64: 1, 16>}, {pipeline_mode = #tpu.pipeline_mode<synchronous>, transform_indices = @transform_5, window_bounds = array<i64: 1, 18>}, {pipeline_mode = #tpu.pipeline_mode<synchronous>, transform_indices = @transform_6, window_bounds = array<i64: 16, 1>}, {pipeline_mode = #tpu.pipeline_mode<synchronous>, transform_indices = @transform_7, window_bounds = array<i64: 1, 1>}, {pipeline_mode = #tpu.pipeline_mode<synchronous>, transform_indices = @transform_8, window_bounds = array<i64: 1, 16>}, {pipeline_mode = #tpu.pipeline_mode<synchronous>, transform_indices = @transform_9, window_bounds = array<i64: 1, 16>}, {pipeline_mode = #tpu.pipeline_mode<synchronous>, transform_indices = @transform_10, window_bounds = array<i64: 32, 16>}, {pipeline_mode = #tpu.pipeline_mode<synchronous>, transform_indices = @transform_11, window_bounds = array<i64: 1, 16>}, {pipeline_mode = #tpu.pipeline_mode<synchronous>, transform_indices = @transform_12, window_bounds = array<i64: 16, 16>}, {pipeline_mode = #tpu.pipeline_mode<synchronous>, transform_indices = @transform_13, window_bounds = array<i64: 1, 16>}, {pipeline_mode = #tpu.pipeline_mode<synchronous>, transform_indices = @transform_14, window_bounds = array<i64: 144, 16>}, {pipeline_mode = #tpu.pipeline_mode<synchronous>, transform_indices = @transform_15, window_bounds = array<i64: 1, 16>}, {pipeline_mode = #tpu.pipeline_mode<synchronous>, transform_indices = @transform_16, window_bounds = array<i64: 1, 16>}, {pipeline_mode = #tpu.pipeline_mode<synchronous>, transform_indices = @transform_17, window_bounds = array<i64: 144, 16>}, {pipeline_mode = #tpu.pipeline_mode<synchronous>, transform_indices = @transform_18, window_bounds = array<i64: 1, 16>}, {pipeline_mode = #tpu.pipeline_mode<synchronous>, transform_indices = @transform_19, window_bounds = array<i64: 1, 16>}, {pipeline_mode = #tpu.pipeline_mode<synchronous>, transform_indices = @transform_20, window_bounds = array<i64: 144, 16>}, {pipeline_mode = #tpu.pipeline_mode<synchronous>, transform_indices = @transform_21, window_bounds = array<i64: 1, 16>}, {pipeline_mode = #tpu.pipeline_mode<synchronous>, transform_indices = @transform_22, window_bounds = array<i64: 1, 16>}, {transform_indices = @transform_23, window_bounds = array<i64: 1, 64, 16>}]} {
    %c0 = arith.constant 0 : index
    %c0_0 = arith.constant 0 : index
    %c0_1 = arith.constant 0 : index
    %0 = vector.load %arg1[%c0, %c0_0, %c0_1] : memref<1x128x16xf32, #tpu.memory_space<vmem>>, vector<1x128x16xf32>
    %1 = vector.shape_cast %0 : vector<1x128x16xf32> to vector<128x16xf32>
    %cst = arith.constant 0.000000e+00 : f32
    %2 = vector.broadcast %cst : f32 to vector<9x16xf32>
    %c0_2 = arith.constant 0 : index
    %c0_3 = arith.constant 0 : index
    %c0_4 = arith.constant 0 : index
    %3 = vector.load %arg25[%c0_2, %c0_3, %c0_4] : memref<2x82x16xf32, #tpu.memory_space<vmem>>, vector<1x9x16xf32>
    %4 = vector.shape_cast %3 : vector<1x9x16xf32> to vector<9x16xf32>
    %5 = vector.shape_cast %2 : vector<9x16xf32> to vector<1x9x16xf32>
    tpu.vector_store %arg25[%c0_2, %c0_3, %c0_4], %5 {strides = array<i32>} : memref<2x82x16xf32, #tpu.memory_space<vmem>>, vector<1x9x16xf32>,
    %c0_5 = arith.constant 0 : index
    %c73 = arith.constant 73 : index
    %c0_6 = arith.constant 0 : index
    %6 = vector.load %arg25[%c0_5, %c73, %c0_6] : memref<2x82x16xf32, #tpu.memory_space<vmem>>, vector<1x9x16xf32>
    %7 = vector.shape_cast %6 : vector<1x9x16xf32> to vector<9x16xf32>
    %8 = vector.shape_cast %2 : vector<9x16xf32> to vector<1x9x16xf32>
    tpu.vector_store %arg25[%c0_5, %c73, %c0_6], %8 {strides = array<i32>} : memref<2x82x16xf32, #tpu.memory_space<vmem>>, vector<1x9x16xf32>,
    %c1 = arith.constant 1 : index
    %c0_7 = arith.constant 0 : index
    %c0_8 = arith.constant 0 : index
    %9 = vector.load %arg25[%c1, %c0_7, %c0_8] : memref<2x82x16xf32, #tpu.memory_space<vmem>>, vector<1x9x16xf32>
    %10 = vector.shape_cast %9 : vector<1x9x16xf32> to vector<9x16xf32>
    %11 = vector.shape_cast %2 : vector<9x16xf32> to vector<1x9x16xf32>
    tpu.vector_store %arg25[%c1, %c0_7, %c0_8], %11 {strides = array<i32>} : memref<2x82x16xf32, #tpu.memory_space<vmem>>, vector<1x9x16xf32>,
    %c1_9 = arith.constant 1 : index
    %c73_10 = arith.constant 73 : index
    %c0_11 = arith.constant 0 : index
    %12 = vector.load %arg25[%c1_9, %c73_10, %c0_11] : memref<2x82x16xf32, #tpu.memory_space<vmem>>, vector<1x9x16xf32>
    %13 = vector.shape_cast %12 : vector<1x9x16xf32> to vector<9x16xf32>
    %14 = vector.shape_cast %2 : vector<9x16xf32> to vector<1x9x16xf32>
    tpu.vector_store %arg25[%c1_9, %c73_10, %c0_11], %14 {strides = array<i32>} : memref<2x82x16xf32, #tpu.memory_space<vmem>>, vector<1x9x16xf32>,
    %15 = tpu.iota {dimensions = array<i32: 0>} : vector<64x1xi32>
    %c8_i32 = arith.constant 8 : i32
    %c0_i32 = arith.constant 0 : i32
    %16 = arith.cmpi eq, %c8_i32, %c0_i32 : i32
    %c1_i32 = arith.constant 1 : i32
    %17 = arith.select %16, %c1_i32, %c8_i32 : i32
    %18 = vector.broadcast %17 : i32 to vector<64x1xi32>
    %19 = arith.remsi %15, %18 : vector<64x1xi32>
    %c0_i32_12 = arith.constant 0 : i32
    %20 = vector.broadcast %c0_i32_12 : i32 to vector<64x1xi32>
    %21 = arith.cmpi ne, %19, %20 : vector<64x1xi32>
    %c0_i32_13 = arith.constant 0 : i32
    %22 = vector.broadcast %c0_i32_13 : i32 to vector<64x1xi32>
    %23 = arith.cmpi slt, %19, %22 : vector<64x1xi32>
    %c0_i32_14 = arith.constant 0 : i32
    %24 = arith.cmpi slt, %17, %c0_i32_14 : i32
    %25 = vector.broadcast %24 : i1 to vector<64x1xi1>
    %26 = vector.broadcast %25 : vector<64x1xi1> to vector<64x1xi1>
    %27 = arith.xori %23, %26 : vector<64x1xi1>
    %28 = arith.andi %27, %21 : vector<64x1xi1>
    %29 = vector.broadcast %17 : i32 to vector<64x1xi32>
    %30 = arith.addi %19, %29 : vector<64x1xi32>
    %31 = arith.select %28, %30, %19 : vector<64x1xi1>, vector<64x1xi32>
    %c0_i32_15 = arith.constant 0 : i32
    %32 = vector.broadcast %c0_i32_15 : i32 to vector<64x1xi32>
    %33 = arith.cmpi sgt, %31, %32 : vector<64x1xi32>
    %34 = arith.extui %33 : vector<64x1xi1> to vector<64x1xi32>
    %35 = arith.sitofp %34 : vector<64x1xi32> to vector<64x1xf32>
    %c7_i32 = arith.constant 7 : i32
    %36 = vector.broadcast %c7_i32 : i32 to vector<64x1xi32>
    %37 = arith.cmpi slt, %31, %36 : vector<64x1xi32>
    %38 = arith.extui %37 : vector<64x1xi1> to vector<64x1xi32>
    %39 = arith.sitofp %38 : vector<64x1xi32> to vector<64x1xf32>
    %c0_16 = arith.constant 0 : index
    %c0_17 = arith.constant 0 : index
    %40 = vector.load %arg2[%c0_16, %c0_17] : memref<16x16xf32, #tpu.memory_space<vmem>>, vector<16x16xf32>
    %cst_18 = arith.constant dense<0.000000e+00> : vector<128x16xf32>
    %41 = tpu.matmul %1, %40, %cst_18 {dimension_numbers = #tpu.dot_dimension_numbers<[1], [0], [0], [1], [0, 0, 1, 1], [], []>} : vector<128x16xf32>, vector<16x16xf32>, vector<128x16xf32> -> vector<128x16xf32>
    %c0_19 = arith.constant 0 : index
    %c0_20 = arith.constant 0 : index
    %42 = vector.load %arg3[%c0_19, %c0_20] : memref<1x16xf32, #tpu.memory_space<vmem>>, vector<1x16xf32>
    %43 = vector.broadcast %42 : vector<1x16xf32> to vector<128x16xf32>
    %44 = arith.addf %41, %43 : vector<128x16xf32>
    %cst_21 = arith.constant 0.000000e+00 : f32
    %45 = vector.broadcast %cst_21 : f32 to vector<128x16xf32>
    %46 = arith.maximumf %44, %45 : vector<128x16xf32>
    %c0_22 = arith.constant 0 : index
    %c0_23 = arith.constant 0 : index
    %47 = vector.load %arg4[%c0_22, %c0_23] : memref<16x16xf32, #tpu.memory_space<vmem>>, vector<16x16xf32>
    %cst_24 = arith.constant dense<0.000000e+00> : vector<128x16xf32>
    %48 = tpu.matmul %46, %47, %cst_24 {dimension_numbers = #tpu.dot_dimension_numbers<[1], [0], [0], [1], [0, 0, 1, 1], [], []>} : vector<128x16xf32>, vector<16x16xf32>, vector<128x16xf32> -> vector<128x16xf32>
    %c0_25 = arith.constant 0 : index
    %c0_26 = arith.constant 0 : index
    %49 = vector.load %arg5[%c0_25, %c0_26] : memref<1x16xf32, #tpu.memory_space<vmem>>, vector<1x16xf32>
    %50 = vector.broadcast %49 : vector<1x16xf32> to vector<128x16xf32>
    %51 = arith.addf %48, %50 : vector<128x16xf32>
    %cst_27 = arith.constant dense<0xFF800000> : vector<128xf32>
    %52 = vector.multi_reduction <maximumf>, %51, %cst_27 [1] : vector<128x16xf32> to vector<128xf32>
    %53 = vector.shape_cast %52 : vector<128xf32> to vector<128x1xf32>
    %cst_28 = arith.constant dense<0.000000e+00> : vector<128xf32>
    %54 = vector.multi_reduction <add>, %51, %cst_28 [1] : vector<128x16xf32> to vector<128xf32>
    %55 = vector.shape_cast %54 : vector<128xf32> to vector<128x1xf32>
    %cst_29 = arith.constant 1.600000e+01 : f32
    %56 = vector.broadcast %cst_29 : f32 to vector<128x1xf32>
    %57 = arith.divf %55, %56 : vector<128x1xf32>
    %58 = tpu.concatenate %53, %57 in 1 : vector<128x1xf32>, vector<128x1xf32> -> vector<128x2xf32>
    %59 = vector.extract_strided_slice %58 {offsets = [0, 0], sizes = [64, 2], strides = [1, 1]} : vector<128x2xf32> to vector<64x2xf32>
    %c0_30 = arith.constant 0 : index
    %c9 = arith.constant 9 : index
    %c0_31 = arith.constant 0 : index
    %60 = vector.load %arg25[%c0_30, %c9, %c0_31] : memref<2x82x16xf32, #tpu.memory_space<vmem>>, vector<1x64x2xf32>
    %61 = vector.shape_cast %60 : vector<1x64x2xf32> to vector<64x2xf32>
    %62 = vector.shape_cast %59 : vector<64x2xf32> to vector<1x64x2xf32>
    tpu.vector_store %arg25[%c0_30, %c9, %c0_31], %62 {strides = array<i32>} : memref<2x82x16xf32, #tpu.memory_space<vmem>>, vector<1x64x2xf32>,
    %63 = vector.extract_strided_slice %58 {offsets = [64, 0], sizes = [64, 2], strides = [1, 1]} : vector<128x2xf32> to vector<64x2xf32>
    %c1_32 = arith.constant 1 : index
    %c9_33 = arith.constant 9 : index
    %c0_34 = arith.constant 0 : index
    %64 = vector.load %arg25[%c1_32, %c9_33, %c0_34] : memref<2x82x16xf32, #tpu.memory_space<vmem>>, vector<1x64x2xf32>
    %65 = vector.shape_cast %64 : vector<1x64x2xf32> to vector<64x2xf32>
    %66 = vector.shape_cast %63 : vector<64x2xf32> to vector<1x64x2xf32>
    tpu.vector_store %arg25[%c1_32, %c9_33, %c0_34], %66 {strides = array<i32>} : memref<2x82x16xf32, #tpu.memory_space<vmem>>, vector<1x64x2xf32>,
    %c0_35 = arith.constant 0 : index
    %c0_36 = arith.constant 0 : index
    %c0_37 = arith.constant 0 : index
    %67 = vector.load %arg25[%c0_35, %c0_36, %c0_37] : memref<2x82x16xf32, #tpu.memory_space<vmem>>, vector<1x82x2xf32>
    %68 = vector.shape_cast %67 : vector<1x82x2xf32> to vector<82x2xf32>
    %69 = vector.extract_strided_slice %68 {offsets = [0, 0], sizes = [64, 2], strides = [1, 1]} : vector<82x2xf32> to vector<64x2xf32>
    %70 = vector.broadcast %35 : vector<64x1xf32> to vector<64x2xf32>
    %71 = arith.mulf %69, %70 : vector<64x2xf32>
    %c0_38 = arith.constant 0 : index
    %c0_39 = arith.constant 0 : index
    %72 = vector.load %arg26[%c0_38, %c0_39] : memref<128x144xf32, #tpu.memory_space<vmem>>, vector<64x2xf32>
    tpu.vector_store %arg26[%c0_38, %c0_39], %71 {strides = array<i32>} : memref<128x144xf32, #tpu.memory_space<vmem>>, vector<64x2xf32>,
    %73 = vector.extract_strided_slice %68 {offsets = [1, 0], sizes = [64, 2], strides = [1, 1]} : vector<82x2xf32> to vector<64x2xf32>
    %c0_40 = arith.constant 0 : index
    %c2 = arith.constant 2 : index
    %74 = vector.load %arg26[%c0_40, %c2] : memref<128x144xf32, #tpu.memory_space<vmem>>, vector<64x2xf32>
    tpu.vector_store %arg26[%c0_40, %c2], %73 {strides = array<i32>} : memref<128x144xf32, #tpu.memory_space<vmem>>, vector<64x2xf32>,
    %75 = vector.extract_strided_slice %68 {offsets = [2, 0], sizes = [64, 2], strides = [1, 1]} : vector<82x2xf32> to vector<64x2xf32>
    %76 = vector.broadcast %39 : vector<64x1xf32> to vector<64x2xf32>
    %77 = arith.mulf %75, %76 : vector<64x2xf32>
    %c0_41 = arith.constant 0 : index
    %c4 = arith.constant 4 : index
    %78 = vector.load %arg26[%c0_41, %c4] : memref<128x144xf32, #tpu.memory_space<vmem>>, vector<64x2xf32>
    tpu.vector_store %arg26[%c0_41, %c4], %77 {strides = array<i32>} : memref<128x144xf32, #tpu.memory_space<vmem>>, vector<64x2xf32>,
    %79 = vector.extract_strided_slice %68 {offsets = [8, 0], sizes = [64, 2], strides = [1, 1]} : vector<82x2xf32> to vector<64x2xf32>
    %80 = vector.broadcast %35 : vector<64x1xf32> to vector<64x2xf32>
    %81 = arith.mulf %79, %80 : vector<64x2xf32>
    %c0_42 = arith.constant 0 : index
    %c6 = arith.constant 6 : index
    %82 = vector.load %arg26[%c0_42, %c6] : memref<128x144xf32, #tpu.memory_space<vmem>>, vector<64x2xf32>
    tpu.vector_store %arg26[%c0_42, %c6], %81 {strides = array<i32>} : memref<128x144xf32, #tpu.memory_space<vmem>>, vector<64x2xf32>,
    %83 = vector.extract_strided_slice %68 {offsets = [9, 0], sizes = [64, 2], strides = [1, 1]} : vector<82x2xf32> to vector<64x2xf32>
    %c0_43 = arith.constant 0 : index
    %c8 = arith.constant 8 : index
    %84 = vector.load %arg26[%c0_43, %c8] : memref<128x144xf32, #tpu.memory_space<vmem>>, vector<64x2xf32>
    tpu.vector_store %arg26[%c0_43, %c8], %83 {strides = array<i32>} : memref<128x144xf32, #tpu.memory_space<vmem>>, vector<64x2xf32>,
    %85 = vector.extract_strided_slice %68 {offsets = [10, 0], sizes = [64, 2], strides = [1, 1]} : vector<82x2xf32> to vector<64x2xf32>
    %86 = vector.broadcast %39 : vector<64x1xf32> to vector<64x2xf32>
    %87 = arith.mulf %85, %86 : vector<64x2xf32>
    %c0_44 = arith.constant 0 : index
    %c10 = arith.constant 10 : index
    %88 = vector.load %arg26[%c0_44, %c10] : memref<128x144xf32, #tpu.memory_space<vmem>>, vector<64x2xf32>
    tpu.vector_store %arg26[%c0_44, %c10], %87 {strides = array<i32>} : memref<128x144xf32, #tpu.memory_space<vmem>>, vector<64x2xf32>,
    %89 = vector.extract_strided_slice %68 {offsets = [16, 0], sizes = [64, 2], strides = [1, 1]} : vector<82x2xf32> to vector<64x2xf32>
    %90 = vector.broadcast %35 : vector<64x1xf32> to vector<64x2xf32>
    %91 = arith.mulf %89, %90 : vector<64x2xf32>
    %c0_45 = arith.constant 0 : index
    %c12 = arith.constant 12 : index
    %92 = vector.load %arg26[%c0_45, %c12] : memref<128x144xf32, #tpu.memory_space<vmem>>, vector<64x2xf32>
    tpu.vector_store %arg26[%c0_45, %c12], %91 {strides = array<i32>} : memref<128x144xf32, #tpu.memory_space<vmem>>, vector<64x2xf32>,
    %93 = vector.extract_strided_slice %68 {offsets = [17, 0], sizes = [64, 2], strides = [1, 1]} : vector<82x2xf32> to vector<64x2xf32>
    %c0_46 = arith.constant 0 : index
    %c14 = arith.constant 14 : index
    %94 = vector.load %arg26[%c0_46, %c14] : memref<128x144xf32, #tpu.memory_space<vmem>>, vector<64x2xf32>
    tpu.vector_store %arg26[%c0_46, %c14], %93 {strides = array<i32>} : memref<128x144xf32, #tpu.memory_space<vmem>>, vector<64x2xf32>,
    %95 = vector.extract_strided_slice %68 {offsets = [18, 0], sizes = [64, 2], strides = [1, 1]} : vector<82x2xf32> to vector<64x2xf32>
    %96 = vector.broadcast %39 : vector<64x1xf32> to vector<64x2xf32>
    %97 = arith.mulf %95, %96 : vector<64x2xf32>
    %c0_47 = arith.constant 0 : index
    %c16 = arith.constant 16 : index
    %98 = vector.load %arg26[%c0_47, %c16] : memref<128x144xf32, #tpu.memory_space<vmem>>, vector<64x2xf32>
    tpu.vector_store %arg26[%c0_47, %c16], %97 {strides = array<i32>} : memref<128x144xf32, #tpu.memory_space<vmem>>, vector<64x2xf32>,
    %c1_48 = arith.constant 1 : index
    %c0_49 = arith.constant 0 : index
    %c0_50 = arith.constant 0 : index
    %99 = vector.load %arg25[%c1_48, %c0_49, %c0_50] : memref<2x82x16xf32, #tpu.memory_space<vmem>>, vector<1x82x2xf32>
    %100 = vector.shape_cast %99 : vector<1x82x2xf32> to vector<82x2xf32>
    %101 = vector.extract_strided_slice %100 {offsets = [0, 0], sizes = [64, 2], strides = [1, 1]} : vector<82x2xf32> to vector<64x2xf32>
    %102 = vector.broadcast %35 : vector<64x1xf32> to vector<64x2xf32>
    %103 = arith.mulf %101, %102 : vector<64x2xf32>
    %c64 = arith.constant 64 : index
    %c0_51 = arith.constant 0 : index
    %104 = vector.load %arg26[%c64, %c0_51] : memref<128x144xf32, #tpu.memory_space<vmem>>, vector<64x2xf32>
    tpu.vector_store %arg26[%c64, %c0_51], %103 {strides = array<i32>} : memref<128x144xf32, #tpu.memory_space<vmem>>, vector<64x2xf32>,
    %105 = vector.extract_strided_slice %100 {offsets = [1, 0], sizes = [64, 2], strides = [1, 1]} : vector<82x2xf32> to vector<64x2xf32>
    %c64_52 = arith.constant 64 : index
    %c2_53 = arith.constant 2 : index
    %106 = vector.load %arg26[%c64_52, %c2_53] : memref<128x144xf32, #tpu.memory_space<vmem>>, vector<64x2xf32>
    tpu.vector_store %arg26[%c64_52, %c2_53], %105 {strides = array<i32>} : memref<128x144xf32, #tpu.memory_space<vmem>>, vector<64x2xf32>,
    %107 = vector.extract_strided_slice %100 {offsets = [2, 0], sizes = [64, 2], strides = [1, 1]} : vector<82x2xf32> to vector<64x2xf32>
    %108 = vector.broadcast %39 : vector<64x1xf32> to vector<64x2xf32>
    %109 = arith.mulf %107, %108 : vector<64x2xf32>
    %c64_54 = arith.constant 64 : index
    %c4_55 = arith.constant 4 : index
    %110 = vector.load %arg26[%c64_54, %c4_55] : memref<128x144xf32, #tpu.memory_space<vmem>>, vector<64x2xf32>
    tpu.vector_store %arg26[%c64_54, %c4_55], %109 {strides = array<i32>} : memref<128x144xf32, #tpu.memory_space<vmem>>, vector<64x2xf32>,
    %111 = vector.extract_strided_slice %100 {offsets = [8, 0], sizes = [64, 2], strides = [1, 1]} : vector<82x2xf32> to vector<64x2xf32>
    %112 = vector.broadcast %35 : vector<64x1xf32> to vector<64x2xf32>
    %113 = arith.mulf %111, %112 : vector<64x2xf32>
    %c64_56 = arith.constant 64 : index
    %c6_57 = arith.constant 6 : index
    %114 = vector.load %arg26[%c64_56, %c6_57] : memref<128x144xf32, #tpu.memory_space<vmem>>, vector<64x2xf32>
    tpu.vector_store %arg26[%c64_56, %c6_57], %113 {strides = array<i32>} : memref<128x144xf32, #tpu.memory_space<vmem>>, vector<64x2xf32>,
    %115 = vector.extract_strided_slice %100 {offsets = [9, 0], sizes = [64, 2], strides = [1, 1]} : vector<82x2xf32> to vector<64x2xf32>
    %c64_58 = arith.constant 64 : index
    %c8_59 = arith.constant 8 : index
    %116 = vector.load %arg26[%c64_58, %c8_59] : memref<128x144xf32, #tpu.memory_space<vmem>>, vector<64x2xf32>
    tpu.vector_store %arg26[%c64_58, %c8_59], %115 {strides = array<i32>} : memref<128x144xf32, #tpu.memory_space<vmem>>, vector<64x2xf32>,
    %117 = vector.extract_strided_slice %100 {offsets = [10, 0], sizes = [64, 2], strides = [1, 1]} : vector<82x2xf32> to vector<64x2xf32>
    %118 = vector.broadcast %39 : vector<64x1xf32> to vector<64x2xf32>
    %119 = arith.mulf %117, %118 : vector<64x2xf32>
    %c64_60 = arith.constant 64 : index
    %c10_61 = arith.constant 10 : index
    %120 = vector.load %arg26[%c64_60, %c10_61] : memref<128x144xf32, #tpu.memory_space<vmem>>, vector<64x2xf32>
    tpu.vector_store %arg26[%c64_60, %c10_61], %119 {strides = array<i32>} : memref<128x144xf32, #tpu.memory_space<vmem>>, vector<64x2xf32>,
    %121 = vector.extract_strided_slice %100 {offsets = [16, 0], sizes = [64, 2], strides = [1, 1]} : vector<82x2xf32> to vector<64x2xf32>
    %122 = vector.broadcast %35 : vector<64x1xf32> to vector<64x2xf32>
    %123 = arith.mulf %121, %122 : vector<64x2xf32>
    %c64_62 = arith.constant 64 : index
    %c12_63 = arith.constant 12 : index
    %124 = vector.load %arg26[%c64_62, %c12_63] : memref<128x144xf32, #tpu.memory_space<vmem>>, vector<64x2xf32>
    tpu.vector_store %arg26[%c64_62, %c12_63], %123 {strides = array<i32>} : memref<128x144xf32, #tpu.memory_space<vmem>>, vector<64x2xf32>,
    %125 = vector.extract_strided_slice %100 {offsets = [17, 0], sizes = [64, 2], strides = [1, 1]} : vector<82x2xf32> to vector<64x2xf32>
    %c64_64 = arith.constant 64 : index
    %c14_65 = arith.constant 14 : index
    %126 = vector.load %arg26[%c64_64, %c14_65] : memref<128x144xf32, #tpu.memory_space<vmem>>, vector<64x2xf32>
    tpu.vector_store %arg26[%c64_64, %c14_65], %125 {strides = array<i32>} : memref<128x144xf32, #tpu.memory_space<vmem>>, vector<64x2xf32>,
    %127 = vector.extract_strided_slice %100 {offsets = [18, 0], sizes = [64, 2], strides = [1, 1]} : vector<82x2xf32> to vector<64x2xf32>
    %128 = vector.broadcast %39 : vector<64x1xf32> to vector<64x2xf32>
    %129 = arith.mulf %127, %128 : vector<64x2xf32>
    %c64_66 = arith.constant 64 : index
    %c16_67 = arith.constant 16 : index
    %130 = vector.load %arg26[%c64_66, %c16_67] : memref<128x144xf32, #tpu.memory_space<vmem>>, vector<64x2xf32>
    tpu.vector_store %arg26[%c64_66, %c16_67], %129 {strides = array<i32>} : memref<128x144xf32, #tpu.memory_space<vmem>>, vector<64x2xf32>,
    %c0_68 = arith.constant 0 : index
    %c0_69 = arith.constant 0 : index
    %131 = vector.load %arg26[%c0_68, %c0_69] : memref<128x144xf32, #tpu.memory_space<vmem>>, vector<128x18xf32>
    %c0_70 = arith.constant 0 : index
    %c0_71 = arith.constant 0 : index
    %132 = vector.load %arg6[%c0_70, %c0_71] : memref<1x18xf32, #tpu.memory_space<vmem>>, vector<1x18xf32>
    %133 = vector.broadcast %132 : vector<1x18xf32> to vector<128x18xf32>
    %134 = arith.mulf %131, %133 : vector<128x18xf32>
    %cst_72 = arith.constant dense<0.000000e+00> : vector<128xf32>
    %135 = vector.multi_reduction <add>, %134, %cst_72 [1] : vector<128x18xf32> to vector<128xf32>
    %136 = vector.shape_cast %135 : vector<128xf32> to vector<128x1xf32>
    %137 = arith.negf %136 : vector<128x1xf32>
    %138 = math.exp %137 : vector<128x1xf32>
    %cst_73 = arith.constant 1.000000e+00 : f32
    %139 = vector.broadcast %cst_73 : f32 to vector<128x1xf32>
    %140 = arith.addf %139, %138 : vector<128x1xf32>
    %141 = arith.divf %139, %140 : vector<128x1xf32>
    %142 = vector.broadcast %141 : vector<128x1xf32> to vector<128x16xf32>
    %143 = arith.mulf %51, %142 : vector<128x16xf32>
    %144 = vector.extract_strided_slice %51 {offsets = [0, 0], sizes = [64, 16], strides = [1, 1]} : vector<128x16xf32> to vector<64x16xf32>
    %cst_74 = arith.constant dense<0.000000e+00> : vector<16xf32>
    %145 = vector.multi_reduction <add>, %144, %cst_74 [0] : vector<64x16xf32> to vector<16xf32>
    %146 = vector.shape_cast %145 : vector<16xf32> to vector<1x16xf32>
    %cst_75 = arith.constant 6.400000e+01 : f32
    %147 = vector.broadcast %cst_75 : f32 to vector<1x16xf32>
    %148 = arith.divf %146, %147 : vector<1x16xf32>
    %149 = vector.extract_strided_slice %51 {offsets = [64, 0], sizes = [64, 16], strides = [1, 1]} : vector<128x16xf32> to vector<64x16xf32>
    %cst_76 = arith.constant dense<0.000000e+00> : vector<16xf32>
    %150 = vector.multi_reduction <add>, %149, %cst_76 [0] : vector<64x16xf32> to vector<16xf32>
    %151 = vector.shape_cast %150 : vector<16xf32> to vector<1x16xf32>
    %cst_77 = arith.constant 6.400000e+01 : f32
    %152 = vector.broadcast %cst_77 : f32 to vector<1x16xf32>
    %153 = arith.divf %151, %152 : vector<1x16xf32>
    %154 = tpu.concatenate %148, %153 in 0 : vector<1x16xf32>, vector<1x16xf32> -> vector<2x16xf32>
    %c0_78 = arith.constant 0 : index
    %c0_79 = arith.constant 0 : index
    %155 = vector.load %arg7[%c0_78, %c0_79] : memref<16x1xf32, #tpu.memory_space<vmem>>, vector<16x1xf32>
    %cst_80 = arith.constant dense<0.000000e+00> : vector<2x1xf32>
    %156 = tpu.matmul %154, %155, %cst_80 {dimension_numbers = #tpu.dot_dimension_numbers<[1], [0], [0], [1], [0, 0, 1, 1], [], []>} : vector<2x16xf32>, vector<16x1xf32>, vector<2x1xf32> -> vector<2x1xf32>
    %c0_81 = arith.constant 0 : index
    %c0_82 = arith.constant 0 : index
    %157 = vector.load %arg8[%c0_81, %c0_82] : memref<1x1xf32, #tpu.memory_space<vmem>>, vector<1x1xf32>
    %158 = vector.broadcast %157 : vector<1x1xf32> to vector<2x1xf32>
    %159 = arith.addf %156, %158 : vector<2x1xf32>
    %cst_83 = arith.constant 0.000000e+00 : f32
    %160 = vector.broadcast %cst_83 : f32 to vector<2x1xf32>
    %161 = arith.maximumf %159, %160 : vector<2x1xf32>
    %c0_84 = arith.constant 0 : index
    %c0_85 = arith.constant 0 : index
    %162 = vector.load %arg9[%c0_84, %c0_85] : memref<1x16xf32, #tpu.memory_space<vmem>>, vector<1x16xf32>
    %cst_86 = arith.constant dense<0.000000e+00> : vector<2x16xf32>
    %163 = tpu.matmul %161, %162, %cst_86 {dimension_numbers = #tpu.dot_dimension_numbers<[1], [0], [0], [1], [0, 0, 1, 1], [], []>} : vector<2x1xf32>, vector<1x16xf32>, vector<2x16xf32> -> vector<2x16xf32>
    %c0_87 = arith.constant 0 : index
    %c0_88 = arith.constant 0 : index
    %164 = vector.load %arg10[%c0_87, %c0_88] : memref<1x16xf32, #tpu.memory_space<vmem>>, vector<1x16xf32>
    %165 = vector.broadcast %164 : vector<1x16xf32> to vector<2x16xf32>
    %166 = arith.addf %163, %165 : vector<2x16xf32>
    %167 = arith.negf %166 : vector<2x16xf32>
    %168 = math.exp %167 : vector<2x16xf32>
    %cst_89 = arith.constant 1.000000e+00 : f32
    %169 = vector.broadcast %cst_89 : f32 to vector<2x16xf32>
    %170 = arith.addf %169, %168 : vector<2x16xf32>
    %171 = arith.divf %169, %170 : vector<2x16xf32>
    %172 = vector.extract_strided_slice %171 {offsets = [0, 0], sizes = [1, 16], strides = [1, 1]} : vector<2x16xf32> to vector<1x16xf32>
    %173 = vector.shape_cast %172 : vector<1x16xf32> to vector<1x16xf32>
    %174 = vector.broadcast %173 : vector<1x16xf32> to vector<64x16xf32>
    %175 = vector.extract_strided_slice %171 {offsets = [1, 0], sizes = [1, 16], strides = [1, 1]} : vector<2x16xf32> to vector<1x16xf32>
    %176 = vector.shape_cast %175 : vector<1x16xf32> to vector<1x16xf32>
    %177 = vector.broadcast %176 : vector<1x16xf32> to vector<64x16xf32>
    %178 = tpu.concatenate %174, %177 in 0 : vector<64x16xf32>, vector<64x16xf32> -> vector<128x16xf32>
    %179 = arith.mulf %51, %178 : vector<128x16xf32>
    %180 = tpu.concatenate %143, %179 in 1 : vector<128x16xf32>, vector<128x16xf32> -> vector<128x32xf32>
    %c0_90 = arith.constant 0 : index
    %c0_91 = arith.constant 0 : index
    %181 = vector.load %arg11[%c0_90, %c0_91] : memref<32x16xf32, #tpu.memory_space<vmem>>, vector<32x16xf32>
    %cst_92 = arith.constant dense<0.000000e+00> : vector<128x16xf32>
    %182 = tpu.matmul %180, %181, %cst_92 {dimension_numbers = #tpu.dot_dimension_numbers<[1], [0], [0], [1], [0, 0, 1, 1], [], []>} : vector<128x32xf32>, vector<32x16xf32>, vector<128x16xf32> -> vector<128x16xf32>
    %c0_93 = arith.constant 0 : index
    %c0_94 = arith.constant 0 : index
    %183 = vector.load %arg12[%c0_93, %c0_94] : memref<1x16xf32, #tpu.memory_space<vmem>>, vector<1x16xf32>
    %184 = vector.broadcast %183 : vector<1x16xf32> to vector<128x16xf32>
    %185 = arith.addf %182, %184 : vector<128x16xf32>
    %186 = arith.addf %185, %1 : vector<128x16xf32>
    %c0_95 = arith.constant 0 : index
    %c0_96 = arith.constant 0 : index
    %187 = vector.load %arg13[%c0_95, %c0_96] : memref<16x16xf32, #tpu.memory_space<vmem>>, vector<16x16xf32>
    %cst_97 = arith.constant dense<0.000000e+00> : vector<128x16xf32>
    %188 = tpu.matmul %186, %187, %cst_97 {dimension_numbers = #tpu.dot_dimension_numbers<[1], [0], [0], [1], [0, 0, 1, 1], [], []>} : vector<128x16xf32>, vector<16x16xf32>, vector<128x16xf32> -> vector<128x16xf32>
    %c0_98 = arith.constant 0 : index
    %c0_99 = arith.constant 0 : index
    %189 = vector.load %arg14[%c0_98, %c0_99] : memref<1x16xf32, #tpu.memory_space<vmem>>, vector<1x16xf32>
    %190 = vector.broadcast %189 : vector<1x16xf32> to vector<128x16xf32>
    %191 = arith.addf %188, %190 : vector<128x16xf32>
    %192 = arith.addf %191, %1 : vector<128x16xf32>
    %193 = vector.extract_strided_slice %192 {offsets = [0, 0], sizes = [64, 16], strides = [1, 1]} : vector<128x16xf32> to vector<64x16xf32>
    %c0_100 = arith.constant 0 : index
    %c9_101 = arith.constant 9 : index
    %c0_102 = arith.constant 0 : index
    %194 = vector.load %arg25[%c0_100, %c9_101, %c0_102] : memref<2x82x16xf32, #tpu.memory_space<vmem>>, vector<1x64x16xf32>
    %195 = vector.shape_cast %194 : vector<1x64x16xf32> to vector<64x16xf32>
    %196 = vector.shape_cast %193 : vector<64x16xf32> to vector<1x64x16xf32>
    tpu.vector_store %arg25[%c0_100, %c9_101, %c0_102], %196 {strides = array<i32>} : memref<2x82x16xf32, #tpu.memory_space<vmem>>, vector<1x64x16xf32>,
    %197 = vector.extract_strided_slice %192 {offsets = [64, 0], sizes = [64, 16], strides = [1, 1]} : vector<128x16xf32> to vector<64x16xf32>
    %c1_103 = arith.constant 1 : index
    %c9_104 = arith.constant 9 : index
    %c0_105 = arith.constant 0 : index
    %198 = vector.load %arg25[%c1_103, %c9_104, %c0_105] : memref<2x82x16xf32, #tpu.memory_space<vmem>>, vector<1x64x16xf32>
    %199 = vector.shape_cast %198 : vector<1x64x16xf32> to vector<64x16xf32>
    %200 = vector.shape_cast %197 : vector<64x16xf32> to vector<1x64x16xf32>
    tpu.vector_store %arg25[%c1_103, %c9_104, %c0_105], %200 {strides = array<i32>} : memref<2x82x16xf32, #tpu.memory_space<vmem>>, vector<1x64x16xf32>,
    %c0_106 = arith.constant 0 : index
    %c0_107 = arith.constant 0 : index
    %c0_108 = arith.constant 0 : index
    %201 = vector.load %arg25[%c0_106, %c0_107, %c0_108] : memref<2x82x16xf32, #tpu.memory_space<vmem>>, vector<1x82x16xf32>
    %202 = vector.shape_cast %201 : vector<1x82x16xf32> to vector<82x16xf32>
    %203 = vector.extract_strided_slice %202 {offsets = [0, 0], sizes = [64, 16], strides = [1, 1]} : vector<82x16xf32> to vector<64x16xf32>
    %204 = vector.broadcast %35 : vector<64x1xf32> to vector<64x16xf32>
    %205 = arith.mulf %203, %204 : vector<64x16xf32>
    %c0_109 = arith.constant 0 : index
    %c0_110 = arith.constant 0 : index
    %206 = vector.load %arg26[%c0_109, %c0_110] : memref<128x144xf32, #tpu.memory_space<vmem>>, vector<64x16xf32>
    tpu.vector_store %arg26[%c0_109, %c0_110], %205 {strides = array<i32>} : memref<128x144xf32, #tpu.memory_space<vmem>>, vector<64x16xf32>,
    %207 = vector.extract_strided_slice %202 {offsets = [1, 0], sizes = [64, 16], strides = [1, 1]} : vector<82x16xf32> to vector<64x16xf32>
    %c0_111 = arith.constant 0 : index
    %c16_112 = arith.constant 16 : index
    %208 = vector.load %arg26[%c0_111, %c16_112] : memref<128x144xf32, #tpu.memory_space<vmem>>, vector<64x16xf32>
    tpu.vector_store %arg26[%c0_111, %c16_112], %207 {strides = array<i32>} : memref<128x144xf32, #tpu.memory_space<vmem>>, vector<64x16xf32>,
    %209 = vector.extract_strided_slice %202 {offsets = [2, 0], sizes = [64, 16], strides = [1, 1]} : vector<82x16xf32> to vector<64x16xf32>
    %210 = vector.broadcast %39 : vector<64x1xf32> to vector<64x16xf32>
    %211 = arith.mulf %209, %210 : vector<64x16xf32>
    %c0_113 = arith.constant 0 : index
    %c32 = arith.constant 32 : index
    %212 = vector.load %arg26[%c0_113, %c32] : memref<128x144xf32, #tpu.memory_space<vmem>>, vector<64x16xf32>
    tpu.vector_store %arg26[%c0_113, %c32], %211 {strides = array<i32>} : memref<128x144xf32, #tpu.memory_space<vmem>>, vector<64x16xf32>,
    %213 = vector.extract_strided_slice %202 {offsets = [8, 0], sizes = [64, 16], strides = [1, 1]} : vector<82x16xf32> to vector<64x16xf32>
    %214 = vector.broadcast %35 : vector<64x1xf32> to vector<64x16xf32>
    %215 = arith.mulf %213, %214 : vector<64x16xf32>
    %c0_114 = arith.constant 0 : index
    %c48 = arith.constant 48 : index
    %216 = vector.load %arg26[%c0_114, %c48] : memref<128x144xf32, #tpu.memory_space<vmem>>, vector<64x16xf32>
    tpu.vector_store %arg26[%c0_114, %c48], %215 {strides = array<i32>} : memref<128x144xf32, #tpu.memory_space<vmem>>, vector<64x16xf32>,
    %217 = vector.extract_strided_slice %202 {offsets = [9, 0], sizes = [64, 16], strides = [1, 1]} : vector<82x16xf32> to vector<64x16xf32>
    %c0_115 = arith.constant 0 : index
    %c64_116 = arith.constant 64 : index
    %218 = vector.load %arg26[%c0_115, %c64_116] : memref<128x144xf32, #tpu.memory_space<vmem>>, vector<64x16xf32>
    tpu.vector_store %arg26[%c0_115, %c64_116], %217 {strides = array<i32>} : memref<128x144xf32, #tpu.memory_space<vmem>>, vector<64x16xf32>,
    %219 = vector.extract_strided_slice %202 {offsets = [10, 0], sizes = [64, 16], strides = [1, 1]} : vector<82x16xf32> to vector<64x16xf32>
    %220 = vector.broadcast %39 : vector<64x1xf32> to vector<64x16xf32>
    %221 = arith.mulf %219, %220 : vector<64x16xf32>
    %c0_117 = arith.constant 0 : index
    %c80 = arith.constant 80 : index
    %222 = vector.load %arg26[%c0_117, %c80] : memref<128x144xf32, #tpu.memory_space<vmem>>, vector<64x16xf32>
    tpu.vector_store %arg26[%c0_117, %c80], %221 {strides = array<i32>} : memref<128x144xf32, #tpu.memory_space<vmem>>, vector<64x16xf32>,
    %223 = vector.extract_strided_slice %202 {offsets = [16, 0], sizes = [64, 16], strides = [1, 1]} : vector<82x16xf32> to vector<64x16xf32>
    %224 = vector.broadcast %35 : vector<64x1xf32> to vector<64x16xf32>
    %225 = arith.mulf %223, %224 : vector<64x16xf32>
    %c0_118 = arith.constant 0 : index
    %c96 = arith.constant 96 : index
    %226 = vector.load %arg26[%c0_118, %c96] : memref<128x144xf32, #tpu.memory_space<vmem>>, vector<64x16xf32>
    tpu.vector_store %arg26[%c0_118, %c96], %225 {strides = array<i32>} : memref<128x144xf32, #tpu.memory_space<vmem>>, vector<64x16xf32>,
    %227 = vector.extract_strided_slice %202 {offsets = [17, 0], sizes = [64, 16], strides = [1, 1]} : vector<82x16xf32> to vector<64x16xf32>
    %c0_119 = arith.constant 0 : index
    %c112 = arith.constant 112 : index
    %228 = vector.load %arg26[%c0_119, %c112] : memref<128x144xf32, #tpu.memory_space<vmem>>, vector<64x16xf32>
    tpu.vector_store %arg26[%c0_119, %c112], %227 {strides = array<i32>} : memref<128x144xf32, #tpu.memory_space<vmem>>, vector<64x16xf32>,
    %229 = vector.extract_strided_slice %202 {offsets = [18, 0], sizes = [64, 16], strides = [1, 1]} : vector<82x16xf32> to vector<64x16xf32>
    %230 = vector.broadcast %39 : vector<64x1xf32> to vector<64x16xf32>
    %231 = arith.mulf %229, %230 : vector<64x16xf32>
    %c0_120 = arith.constant 0 : index
    %c128 = arith.constant 128 : index
    %232 = vector.load %arg26[%c0_120, %c128] : memref<128x144xf32, #tpu.memory_space<vmem>>, vector<64x16xf32>
    tpu.vector_store %arg26[%c0_120, %c128], %231 {strides = array<i32>} : memref<128x144xf32, #tpu.memory_space<vmem>>, vector<64x16xf32>,
    %c1_121 = arith.constant 1 : index
    %c0_122 = arith.constant 0 : index
    %c0_123 = arith.constant 0 : index
    %233 = vector.load %arg25[%c1_121, %c0_122, %c0_123] : memref<2x82x16xf32, #tpu.memory_space<vmem>>, vector<1x82x16xf32>
    %234 = vector.shape_cast %233 : vector<1x82x16xf32> to vector<82x16xf32>
    %235 = vector.extract_strided_slice %234 {offsets = [0, 0], sizes = [64, 16], strides = [1, 1]} : vector<82x16xf32> to vector<64x16xf32>
    %236 = vector.broadcast %35 : vector<64x1xf32> to vector<64x16xf32>
    %237 = arith.mulf %235, %236 : vector<64x16xf32>
    %c64_124 = arith.constant 64 : index
    %c0_125 = arith.constant 0 : index
    %238 = vector.load %arg26[%c64_124, %c0_125] : memref<128x144xf32, #tpu.memory_space<vmem>>, vector<64x16xf32>
    tpu.vector_store %arg26[%c64_124, %c0_125], %237 {strides = array<i32>} : memref<128x144xf32, #tpu.memory_space<vmem>>, vector<64x16xf32>,
    %239 = vector.extract_strided_slice %234 {offsets = [1, 0], sizes = [64, 16], strides = [1, 1]} : vector<82x16xf32> to vector<64x16xf32>
    %c64_126 = arith.constant 64 : index
    %c16_127 = arith.constant 16 : index
    %240 = vector.load %arg26[%c64_126, %c16_127] : memref<128x144xf32, #tpu.memory_space<vmem>>, vector<64x16xf32>
    tpu.vector_store %arg26[%c64_126, %c16_127], %239 {strides = array<i32>} : memref<128x144xf32, #tpu.memory_space<vmem>>, vector<64x16xf32>,
    %241 = vector.extract_strided_slice %234 {offsets = [2, 0], sizes = [64, 16], strides = [1, 1]} : vector<82x16xf32> to vector<64x16xf32>
    %242 = vector.broadcast %39 : vector<64x1xf32> to vector<64x16xf32>
    %243 = arith.mulf %241, %242 : vector<64x16xf32>
    %c64_128 = arith.constant 64 : index
    %c32_129 = arith.constant 32 : index
    %244 = vector.load %arg26[%c64_128, %c32_129] : memref<128x144xf32, #tpu.memory_space<vmem>>, vector<64x16xf32>
    tpu.vector_store %arg26[%c64_128, %c32_129], %243 {strides = array<i32>} : memref<128x144xf32, #tpu.memory_space<vmem>>, vector<64x16xf32>,
    %245 = vector.extract_strided_slice %234 {offsets = [8, 0], sizes = [64, 16], strides = [1, 1]} : vector<82x16xf32> to vector<64x16xf32>
    %246 = vector.broadcast %35 : vector<64x1xf32> to vector<64x16xf32>
    %247 = arith.mulf %245, %246 : vector<64x16xf32>
    %c64_130 = arith.constant 64 : index
    %c48_131 = arith.constant 48 : index
    %248 = vector.load %arg26[%c64_130, %c48_131] : memref<128x144xf32, #tpu.memory_space<vmem>>, vector<64x16xf32>
    tpu.vector_store %arg26[%c64_130, %c48_131], %247 {strides = array<i32>} : memref<128x144xf32, #tpu.memory_space<vmem>>, vector<64x16xf32>,
    %249 = vector.extract_strided_slice %234 {offsets = [9, 0], sizes = [64, 16], strides = [1, 1]} : vector<82x16xf32> to vector<64x16xf32>
    %c64_132 = arith.constant 64 : index
    %c64_133 = arith.constant 64 : index
    %250 = vector.load %arg26[%c64_132, %c64_133] : memref<128x144xf32, #tpu.memory_space<vmem>>, vector<64x16xf32>
    tpu.vector_store %arg26[%c64_132, %c64_133], %249 {strides = array<i32>} : memref<128x144xf32, #tpu.memory_space<vmem>>, vector<64x16xf32>,
    %251 = vector.extract_strided_slice %234 {offsets = [10, 0], sizes = [64, 16], strides = [1, 1]} : vector<82x16xf32> to vector<64x16xf32>
    %252 = vector.broadcast %39 : vector<64x1xf32> to vector<64x16xf32>
    %253 = arith.mulf %251, %252 : vector<64x16xf32>
    %c64_134 = arith.constant 64 : index
    %c80_135 = arith.constant 80 : index
    %254 = vector.load %arg26[%c64_134, %c80_135] : memref<128x144xf32, #tpu.memory_space<vmem>>, vector<64x16xf32>
    tpu.vector_store %arg26[%c64_134, %c80_135], %253 {strides = array<i32>} : memref<128x144xf32, #tpu.memory_space<vmem>>, vector<64x16xf32>,
    %255 = vector.extract_strided_slice %234 {offsets = [16, 0], sizes = [64, 16], strides = [1, 1]} : vector<82x16xf32> to vector<64x16xf32>
    %256 = vector.broadcast %35 : vector<64x1xf32> to vector<64x16xf32>
    %257 = arith.mulf %255, %256 : vector<64x16xf32>
    %c64_136 = arith.constant 64 : index
    %c96_137 = arith.constant 96 : index
    %258 = vector.load %arg26[%c64_136, %c96_137] : memref<128x144xf32, #tpu.memory_space<vmem>>, vector<64x16xf32>
    tpu.vector_store %arg26[%c64_136, %c96_137], %257 {strides = array<i32>} : memref<128x144xf32, #tpu.memory_space<vmem>>, vector<64x16xf32>,
    %259 = vector.extract_strided_slice %234 {offsets = [17, 0], sizes = [64, 16], strides = [1, 1]} : vector<82x16xf32> to vector<64x16xf32>
    %c64_138 = arith.constant 64 : index
    %c112_139 = arith.constant 112 : index
    %260 = vector.load %arg26[%c64_138, %c112_139] : memref<128x144xf32, #tpu.memory_space<vmem>>, vector<64x16xf32>
    tpu.vector_store %arg26[%c64_138, %c112_139], %259 {strides = array<i32>} : memref<128x144xf32, #tpu.memory_space<vmem>>, vector<64x16xf32>,
    %261 = vector.extract_strided_slice %234 {offsets = [18, 0], sizes = [64, 16], strides = [1, 1]} : vector<82x16xf32> to vector<64x16xf32>
    %262 = vector.broadcast %39 : vector<64x1xf32> to vector<64x16xf32>
    %263 = arith.mulf %261, %262 : vector<64x16xf32>
    %c64_140 = arith.constant 64 : index
    %c128_141 = arith.constant 128 : index
    %264 = vector.load %arg26[%c64_140, %c128_141] : memref<128x144xf32, #tpu.memory_space<vmem>>, vector<64x16xf32>
    tpu.vector_store %arg26[%c64_140, %c128_141], %263 {strides = array<i32>} : memref<128x144xf32, #tpu.memory_space<vmem>>, vector<64x16xf32>,
    %c0_142 = arith.constant 0 : index
    %c0_143 = arith.constant 0 : index
    %265 = vector.load %arg26[%c0_142, %c0_143] : memref<128x144xf32, #tpu.memory_space<vmem>>, vector<128x144xf32>
    %c0_144 = arith.constant 0 : index
    %c0_145 = arith.constant 0 : index
    %266 = vector.load %arg15[%c0_144, %c0_145] : memref<144x16xf32, #tpu.memory_space<vmem>>, vector<144x16xf32>
    %cst_146 = arith.constant dense<0.000000e+00> : vector<128x16xf32>
    %267 = tpu.matmul %265, %266, %cst_146 {dimension_numbers = #tpu.dot_dimension_numbers<[1], [0], [0], [1], [0, 0, 1, 1], [], []>} : vector<128x144xf32>, vector<144x16xf32>, vector<128x16xf32> -> vector<128x16xf32>
    %c0_147 = arith.constant 0 : index
    %c0_148 = arith.constant 0 : index
    %268 = vector.load %arg16[%c0_147, %c0_148] : memref<1x16xf32, #tpu.memory_space<vmem>>, vector<1x16xf32>
    %269 = vector.broadcast %268 : vector<1x16xf32> to vector<128x16xf32>
    %270 = arith.mulf %267, %269 : vector<128x16xf32>
    %c0_149 = arith.constant 0 : index
    %c0_150 = arith.constant 0 : index
    %271 = vector.load %arg17[%c0_149, %c0_150] : memref<1x16xf32, #tpu.memory_space<vmem>>, vector<1x16xf32>
    %272 = vector.broadcast %271 : vector<1x16xf32> to vector<128x16xf32>
    %273 = arith.addf %270, %272 : vector<128x16xf32>
    %cst_151 = arith.constant 0.000000e+00 : f32
    %274 = vector.broadcast %cst_151 : f32 to vector<128x16xf32>
    %275 = arith.maximumf %273, %274 : vector<128x16xf32>
    %276 = vector.extract_strided_slice %275 {offsets = [0, 0], sizes = [64, 16], strides = [1, 1]} : vector<128x16xf32> to vector<64x16xf32>
    %c0_152 = arith.constant 0 : index
    %c9_153 = arith.constant 9 : index
    %c0_154 = arith.constant 0 : index
    %277 = vector.load %arg25[%c0_152, %c9_153, %c0_154] : memref<2x82x16xf32, #tpu.memory_space<vmem>>, vector<1x64x16xf32>
    %278 = vector.shape_cast %277 : vector<1x64x16xf32> to vector<64x16xf32>
    %279 = vector.shape_cast %276 : vector<64x16xf32> to vector<1x64x16xf32>
    tpu.vector_store %arg25[%c0_152, %c9_153, %c0_154], %279 {strides = array<i32>} : memref<2x82x16xf32, #tpu.memory_space<vmem>>, vector<1x64x16xf32>,
    %280 = vector.extract_strided_slice %275 {offsets = [64, 0], sizes = [64, 16], strides = [1, 1]} : vector<128x16xf32> to vector<64x16xf32>
    %c1_155 = arith.constant 1 : index
    %c9_156 = arith.constant 9 : index
    %c0_157 = arith.constant 0 : index
    %281 = vector.load %arg25[%c1_155, %c9_156, %c0_157] : memref<2x82x16xf32, #tpu.memory_space<vmem>>, vector<1x64x16xf32>
    %282 = vector.shape_cast %281 : vector<1x64x16xf32> to vector<64x16xf32>
    %283 = vector.shape_cast %280 : vector<64x16xf32> to vector<1x64x16xf32>
    tpu.vector_store %arg25[%c1_155, %c9_156, %c0_157], %283 {strides = array<i32>} : memref<2x82x16xf32, #tpu.memory_space<vmem>>, vector<1x64x16xf32>,
    %c0_158 = arith.constant 0 : index
    %c0_159 = arith.constant 0 : index
    %c0_160 = arith.constant 0 : index
    %284 = vector.load %arg25[%c0_158, %c0_159, %c0_160] : memref<2x82x16xf32, #tpu.memory_space<vmem>>, vector<1x82x16xf32>
    %285 = vector.shape_cast %284 : vector<1x82x16xf32> to vector<82x16xf32>
    %286 = vector.extract_strided_slice %285 {offsets = [0, 0], sizes = [64, 16], strides = [1, 1]} : vector<82x16xf32> to vector<64x16xf32>
    %287 = vector.broadcast %35 : vector<64x1xf32> to vector<64x16xf32>
    %288 = arith.mulf %286, %287 : vector<64x16xf32>
    %c0_161 = arith.constant 0 : index
    %c0_162 = arith.constant 0 : index
    %289 = vector.load %arg26[%c0_161, %c0_162] : memref<128x144xf32, #tpu.memory_space<vmem>>, vector<64x16xf32>
    tpu.vector_store %arg26[%c0_161, %c0_162], %288 {strides = array<i32>} : memref<128x144xf32, #tpu.memory_space<vmem>>, vector<64x16xf32>,
    %290 = vector.extract_strided_slice %285 {offsets = [1, 0], sizes = [64, 16], strides = [1, 1]} : vector<82x16xf32> to vector<64x16xf32>
    %c0_163 = arith.constant 0 : index
    %c16_164 = arith.constant 16 : index
    %291 = vector.load %arg26[%c0_163, %c16_164] : memref<128x144xf32, #tpu.memory_space<vmem>>, vector<64x16xf32>
    tpu.vector_store %arg26[%c0_163, %c16_164], %290 {strides = array<i32>} : memref<128x144xf32, #tpu.memory_space<vmem>>, vector<64x16xf32>,
    %292 = vector.extract_strided_slice %285 {offsets = [2, 0], sizes = [64, 16], strides = [1, 1]} : vector<82x16xf32> to vector<64x16xf32>
    %293 = vector.broadcast %39 : vector<64x1xf32> to vector<64x16xf32>
    %294 = arith.mulf %292, %293 : vector<64x16xf32>
    %c0_165 = arith.constant 0 : index
    %c32_166 = arith.constant 32 : index
    %295 = vector.load %arg26[%c0_165, %c32_166] : memref<128x144xf32, #tpu.memory_space<vmem>>, vector<64x16xf32>
    tpu.vector_store %arg26[%c0_165, %c32_166], %294 {strides = array<i32>} : memref<128x144xf32, #tpu.memory_space<vmem>>, vector<64x16xf32>,
    %296 = vector.extract_strided_slice %285 {offsets = [8, 0], sizes = [64, 16], strides = [1, 1]} : vector<82x16xf32> to vector<64x16xf32>
    %297 = vector.broadcast %35 : vector<64x1xf32> to vector<64x16xf32>
    %298 = arith.mulf %296, %297 : vector<64x16xf32>
    %c0_167 = arith.constant 0 : index
    %c48_168 = arith.constant 48 : index
    %299 = vector.load %arg26[%c0_167, %c48_168] : memref<128x144xf32, #tpu.memory_space<vmem>>, vector<64x16xf32>
    tpu.vector_store %arg26[%c0_167, %c48_168], %298 {strides = array<i32>} : memref<128x144xf32, #tpu.memory_space<vmem>>, vector<64x16xf32>,
    %300 = vector.extract_strided_slice %285 {offsets = [9, 0], sizes = [64, 16], strides = [1, 1]} : vector<82x16xf32> to vector<64x16xf32>
    %c0_169 = arith.constant 0 : index
    %c64_170 = arith.constant 64 : index
    %301 = vector.load %arg26[%c0_169, %c64_170] : memref<128x144xf32, #tpu.memory_space<vmem>>, vector<64x16xf32>
    tpu.vector_store %arg26[%c0_169, %c64_170], %300 {strides = array<i32>} : memref<128x144xf32, #tpu.memory_space<vmem>>, vector<64x16xf32>,
    %302 = vector.extract_strided_slice %285 {offsets = [10, 0], sizes = [64, 16], strides = [1, 1]} : vector<82x16xf32> to vector<64x16xf32>
    %303 = vector.broadcast %39 : vector<64x1xf32> to vector<64x16xf32>
    %304 = arith.mulf %302, %303 : vector<64x16xf32>
    %c0_171 = arith.constant 0 : index
    %c80_172 = arith.constant 80 : index
    %305 = vector.load %arg26[%c0_171, %c80_172] : memref<128x144xf32, #tpu.memory_space<vmem>>, vector<64x16xf32>
    tpu.vector_store %arg26[%c0_171, %c80_172], %304 {strides = array<i32>} : memref<128x144xf32, #tpu.memory_space<vmem>>, vector<64x16xf32>,
    %306 = vector.extract_strided_slice %285 {offsets = [16, 0], sizes = [64, 16], strides = [1, 1]} : vector<82x16xf32> to vector<64x16xf32>
    %307 = vector.broadcast %35 : vector<64x1xf32> to vector<64x16xf32>
    %308 = arith.mulf %306, %307 : vector<64x16xf32>
    %c0_173 = arith.constant 0 : index
    %c96_174 = arith.constant 96 : index
    %309 = vector.load %arg26[%c0_173, %c96_174] : memref<128x144xf32, #tpu.memory_space<vmem>>, vector<64x16xf32>
    tpu.vector_store %arg26[%c0_173, %c96_174], %308 {strides = array<i32>} : memref<128x144xf32, #tpu.memory_space<vmem>>, vector<64x16xf32>,
    %310 = vector.extract_strided_slice %285 {offsets = [17, 0], sizes = [64, 16], strides = [1, 1]} : vector<82x16xf32> to vector<64x16xf32>
    %c0_175 = arith.constant 0 : index
    %c112_176 = arith.constant 112 : index
    %311 = vector.load %arg26[%c0_175, %c112_176] : memref<128x144xf32, #tpu.memory_space<vmem>>, vector<64x16xf32>
    tpu.vector_store %arg26[%c0_175, %c112_176], %310 {strides = array<i32>} : memref<128x144xf32, #tpu.memory_space<vmem>>, vector<64x16xf32>,
    %312 = vector.extract_strided_slice %285 {offsets = [18, 0], sizes = [64, 16], strides = [1, 1]} : vector<82x16xf32> to vector<64x16xf32>
    %313 = vector.broadcast %39 : vector<64x1xf32> to vector<64x16xf32>
    %314 = arith.mulf %312, %313 : vector<64x16xf32>
    %c0_177 = arith.constant 0 : index
    %c128_178 = arith.constant 128 : index
    %315 = vector.load %arg26[%c0_177, %c128_178] : memref<128x144xf32, #tpu.memory_space<vmem>>, vector<64x16xf32>
    tpu.vector_store %arg26[%c0_177, %c128_178], %314 {strides = array<i32>} : memref<128x144xf32, #tpu.memory_space<vmem>>, vector<64x16xf32>,
    %c1_179 = arith.constant 1 : index
    %c0_180 = arith.constant 0 : index
    %c0_181 = arith.constant 0 : index
    %316 = vector.load %arg25[%c1_179, %c0_180, %c0_181] : memref<2x82x16xf32, #tpu.memory_space<vmem>>, vector<1x82x16xf32>
    %317 = vector.shape_cast %316 : vector<1x82x16xf32> to vector<82x16xf32>
    %318 = vector.extract_strided_slice %317 {offsets = [0, 0], sizes = [64, 16], strides = [1, 1]} : vector<82x16xf32> to vector<64x16xf32>
    %319 = vector.broadcast %35 : vector<64x1xf32> to vector<64x16xf32>
    %320 = arith.mulf %318, %319 : vector<64x16xf32>
    %c64_182 = arith.constant 64 : index
    %c0_183 = arith.constant 0 : index
    %321 = vector.load %arg26[%c64_182, %c0_183] : memref<128x144xf32, #tpu.memory_space<vmem>>, vector<64x16xf32>
    tpu.vector_store %arg26[%c64_182, %c0_183], %320 {strides = array<i32>} : memref<128x144xf32, #tpu.memory_space<vmem>>, vector<64x16xf32>,
    %322 = vector.extract_strided_slice %317 {offsets = [1, 0], sizes = [64, 16], strides = [1, 1]} : vector<82x16xf32> to vector<64x16xf32>
    %c64_184 = arith.constant 64 : index
    %c16_185 = arith.constant 16 : index
    %323 = vector.load %arg26[%c64_184, %c16_185] : memref<128x144xf32, #tpu.memory_space<vmem>>, vector<64x16xf32>
    tpu.vector_store %arg26[%c64_184, %c16_185], %322 {strides = array<i32>} : memref<128x144xf32, #tpu.memory_space<vmem>>, vector<64x16xf32>,
    %324 = vector.extract_strided_slice %317 {offsets = [2, 0], sizes = [64, 16], strides = [1, 1]} : vector<82x16xf32> to vector<64x16xf32>
    %325 = vector.broadcast %39 : vector<64x1xf32> to vector<64x16xf32>
    %326 = arith.mulf %324, %325 : vector<64x16xf32>
    %c64_186 = arith.constant 64 : index
    %c32_187 = arith.constant 32 : index
    %327 = vector.load %arg26[%c64_186, %c32_187] : memref<128x144xf32, #tpu.memory_space<vmem>>, vector<64x16xf32>
    tpu.vector_store %arg26[%c64_186, %c32_187], %326 {strides = array<i32>} : memref<128x144xf32, #tpu.memory_space<vmem>>, vector<64x16xf32>,
    %328 = vector.extract_strided_slice %317 {offsets = [8, 0], sizes = [64, 16], strides = [1, 1]} : vector<82x16xf32> to vector<64x16xf32>
    %329 = vector.broadcast %35 : vector<64x1xf32> to vector<64x16xf32>
    %330 = arith.mulf %328, %329 : vector<64x16xf32>
    %c64_188 = arith.constant 64 : index
    %c48_189 = arith.constant 48 : index
    %331 = vector.load %arg26[%c64_188, %c48_189] : memref<128x144xf32, #tpu.memory_space<vmem>>, vector<64x16xf32>
    tpu.vector_store %arg26[%c64_188, %c48_189], %330 {strides = array<i32>} : memref<128x144xf32, #tpu.memory_space<vmem>>, vector<64x16xf32>,
    %332 = vector.extract_strided_slice %317 {offsets = [9, 0], sizes = [64, 16], strides = [1, 1]} : vector<82x16xf32> to vector<64x16xf32>
    %c64_190 = arith.constant 64 : index
    %c64_191 = arith.constant 64 : index
    %333 = vector.load %arg26[%c64_190, %c64_191] : memref<128x144xf32, #tpu.memory_space<vmem>>, vector<64x16xf32>
    tpu.vector_store %arg26[%c64_190, %c64_191], %332 {strides = array<i32>} : memref<128x144xf32, #tpu.memory_space<vmem>>, vector<64x16xf32>,
    %334 = vector.extract_strided_slice %317 {offsets = [10, 0], sizes = [64, 16], strides = [1, 1]} : vector<82x16xf32> to vector<64x16xf32>
    %335 = vector.broadcast %39 : vector<64x1xf32> to vector<64x16xf32>
    %336 = arith.mulf %334, %335 : vector<64x16xf32>
    %c64_192 = arith.constant 64 : index
    %c80_193 = arith.constant 80 : index
    %337 = vector.load %arg26[%c64_192, %c80_193] : memref<128x144xf32, #tpu.memory_space<vmem>>, vector<64x16xf32>
    tpu.vector_store %arg26[%c64_192, %c80_193], %336 {strides = array<i32>} : memref<128x144xf32, #tpu.memory_space<vmem>>, vector<64x16xf32>,
    %338 = vector.extract_strided_slice %317 {offsets = [16, 0], sizes = [64, 16], strides = [1, 1]} : vector<82x16xf32> to vector<64x16xf32>
    %339 = vector.broadcast %35 : vector<64x1xf32> to vector<64x16xf32>
    %340 = arith.mulf %338, %339 : vector<64x16xf32>
    %c64_194 = arith.constant 64 : index
    %c96_195 = arith.constant 96 : index
    %341 = vector.load %arg26[%c64_194, %c96_195] : memref<128x144xf32, #tpu.memory_space<vmem>>, vector<64x16xf32>
    tpu.vector_store %arg26[%c64_194, %c96_195], %340 {strides = array<i32>} : memref<128x144xf32, #tpu.memory_space<vmem>>, vector<64x16xf32>,
    %342 = vector.extract_strided_slice %317 {offsets = [17, 0], sizes = [64, 16], strides = [1, 1]} : vector<82x16xf32> to vector<64x16xf32>
    %c64_196 = arith.constant 64 : index
    %c112_197 = arith.constant 112 : index
    %343 = vector.load %arg26[%c64_196, %c112_197] : memref<128x144xf32, #tpu.memory_space<vmem>>, vector<64x16xf32>
    tpu.vector_store %arg26[%c64_196, %c112_197], %342 {strides = array<i32>} : memref<128x144xf32, #tpu.memory_space<vmem>>, vector<64x16xf32>,
    %344 = vector.extract_strided_slice %317 {offsets = [18, 0], sizes = [64, 16], strides = [1, 1]} : vector<82x16xf32> to vector<64x16xf32>
    %345 = vector.broadcast %39 : vector<64x1xf32> to vector<64x16xf32>
    %346 = arith.mulf %344, %345 : vector<64x16xf32>
    %c64_198 = arith.constant 64 : index
    %c128_199 = arith.constant 128 : index
    %347 = vector.load %arg26[%c64_198, %c128_199] : memref<128x144xf32, #tpu.memory_space<vmem>>, vector<64x16xf32>
    tpu.vector_store %arg26[%c64_198, %c128_199], %346 {strides = array<i32>} : memref<128x144xf32, #tpu.memory_space<vmem>>, vector<64x16xf32>,
    %c0_200 = arith.constant 0 : index
    %c0_201 = arith.constant 0 : index
    %348 = vector.load %arg26[%c0_200, %c0_201] : memref<128x144xf32, #tpu.memory_space<vmem>>, vector<128x144xf32>
    %c0_202 = arith.constant 0 : index
    %c0_203 = arith.constant 0 : index
    %349 = vector.load %arg18[%c0_202, %c0_203] : memref<144x16xf32, #tpu.memory_space<vmem>>, vector<144x16xf32>
    %cst_204 = arith.constant dense<0.000000e+00> : vector<128x16xf32>
    %350 = tpu.matmul %348, %349, %cst_204 {dimension_numbers = #tpu.dot_dimension_numbers<[1], [0], [0], [1], [0, 0, 1, 1], [], []>} : vector<128x144xf32>, vector<144x16xf32>, vector<128x16xf32> -> vector<128x16xf32>
    %c0_205 = arith.constant 0 : index
    %c0_206 = arith.constant 0 : index
    %351 = vector.load %arg19[%c0_205, %c0_206] : memref<1x16xf32, #tpu.memory_space<vmem>>, vector<1x16xf32>
    %352 = vector.broadcast %351 : vector<1x16xf32> to vector<128x16xf32>
    %353 = arith.mulf %350, %352 : vector<128x16xf32>
    %c0_207 = arith.constant 0 : index
    %c0_208 = arith.constant 0 : index
    %354 = vector.load %arg20[%c0_207, %c0_208] : memref<1x16xf32, #tpu.memory_space<vmem>>, vector<1x16xf32>
    %355 = vector.broadcast %354 : vector<1x16xf32> to vector<128x16xf32>
    %356 = arith.addf %353, %355 : vector<128x16xf32>
    %cst_209 = arith.constant 0.000000e+00 : f32
    %357 = vector.broadcast %cst_209 : f32 to vector<128x16xf32>
    %358 = arith.maximumf %356, %357 : vector<128x16xf32>
    %359 = vector.extract_strided_slice %358 {offsets = [0, 0], sizes = [64, 16], strides = [1, 1]} : vector<128x16xf32> to vector<64x16xf32>
    %c0_210 = arith.constant 0 : index
    %c9_211 = arith.constant 9 : index
    %c0_212 = arith.constant 0 : index
    %360 = vector.load %arg25[%c0_210, %c9_211, %c0_212] : memref<2x82x16xf32, #tpu.memory_space<vmem>>, vector<1x64x16xf32>
    %361 = vector.shape_cast %360 : vector<1x64x16xf32> to vector<64x16xf32>
    %362 = vector.shape_cast %359 : vector<64x16xf32> to vector<1x64x16xf32>
    tpu.vector_store %arg25[%c0_210, %c9_211, %c0_212], %362 {strides = array<i32>} : memref<2x82x16xf32, #tpu.memory_space<vmem>>, vector<1x64x16xf32>,
    %363 = vector.extract_strided_slice %358 {offsets = [64, 0], sizes = [64, 16], strides = [1, 1]} : vector<128x16xf32> to vector<64x16xf32>
    %c1_213 = arith.constant 1 : index
    %c9_214 = arith.constant 9 : index
    %c0_215 = arith.constant 0 : index
    %364 = vector.load %arg25[%c1_213, %c9_214, %c0_215] : memref<2x82x16xf32, #tpu.memory_space<vmem>>, vector<1x64x16xf32>
    %365 = vector.shape_cast %364 : vector<1x64x16xf32> to vector<64x16xf32>
    %366 = vector.shape_cast %363 : vector<64x16xf32> to vector<1x64x16xf32>
    tpu.vector_store %arg25[%c1_213, %c9_214, %c0_215], %366 {strides = array<i32>} : memref<2x82x16xf32, #tpu.memory_space<vmem>>, vector<1x64x16xf32>,
    %c0_216 = arith.constant 0 : index
    %c0_217 = arith.constant 0 : index
    %c0_218 = arith.constant 0 : index
    %367 = vector.load %arg25[%c0_216, %c0_217, %c0_218] : memref<2x82x16xf32, #tpu.memory_space<vmem>>, vector<1x82x16xf32>
    %368 = vector.shape_cast %367 : vector<1x82x16xf32> to vector<82x16xf32>
    %369 = vector.extract_strided_slice %368 {offsets = [0, 0], sizes = [64, 16], strides = [1, 1]} : vector<82x16xf32> to vector<64x16xf32>
    %370 = vector.broadcast %35 : vector<64x1xf32> to vector<64x16xf32>
    %371 = arith.mulf %369, %370 : vector<64x16xf32>
    %c0_219 = arith.constant 0 : index
    %c0_220 = arith.constant 0 : index
    %372 = vector.load %arg26[%c0_219, %c0_220] : memref<128x144xf32, #tpu.memory_space<vmem>>, vector<64x16xf32>
    tpu.vector_store %arg26[%c0_219, %c0_220], %371 {strides = array<i32>} : memref<128x144xf32, #tpu.memory_space<vmem>>, vector<64x16xf32>,
    %373 = vector.extract_strided_slice %368 {offsets = [1, 0], sizes = [64, 16], strides = [1, 1]} : vector<82x16xf32> to vector<64x16xf32>
    %c0_221 = arith.constant 0 : index
    %c16_222 = arith.constant 16 : index
    %374 = vector.load %arg26[%c0_221, %c16_222] : memref<128x144xf32, #tpu.memory_space<vmem>>, vector<64x16xf32>
    tpu.vector_store %arg26[%c0_221, %c16_222], %373 {strides = array<i32>} : memref<128x144xf32, #tpu.memory_space<vmem>>, vector<64x16xf32>,
    %375 = vector.extract_strided_slice %368 {offsets = [2, 0], sizes = [64, 16], strides = [1, 1]} : vector<82x16xf32> to vector<64x16xf32>
    %376 = vector.broadcast %39 : vector<64x1xf32> to vector<64x16xf32>
    %377 = arith.mulf %375, %376 : vector<64x16xf32>
    %c0_223 = arith.constant 0 : index
    %c32_224 = arith.constant 32 : index
    %378 = vector.load %arg26[%c0_223, %c32_224] : memref<128x144xf32, #tpu.memory_space<vmem>>, vector<64x16xf32>
    tpu.vector_store %arg26[%c0_223, %c32_224], %377 {strides = array<i32>} : memref<128x144xf32, #tpu.memory_space<vmem>>, vector<64x16xf32>,
    %379 = vector.extract_strided_slice %368 {offsets = [8, 0], sizes = [64, 16], strides = [1, 1]} : vector<82x16xf32> to vector<64x16xf32>
    %380 = vector.broadcast %35 : vector<64x1xf32> to vector<64x16xf32>
    %381 = arith.mulf %379, %380 : vector<64x16xf32>
    %c0_225 = arith.constant 0 : index
    %c48_226 = arith.constant 48 : index
    %382 = vector.load %arg26[%c0_225, %c48_226] : memref<128x144xf32, #tpu.memory_space<vmem>>, vector<64x16xf32>
    tpu.vector_store %arg26[%c0_225, %c48_226], %381 {strides = array<i32>} : memref<128x144xf32, #tpu.memory_space<vmem>>, vector<64x16xf32>,
    %383 = vector.extract_strided_slice %368 {offsets = [9, 0], sizes = [64, 16], strides = [1, 1]} : vector<82x16xf32> to vector<64x16xf32>
    %c0_227 = arith.constant 0 : index
    %c64_228 = arith.constant 64 : index
    %384 = vector.load %arg26[%c0_227, %c64_228] : memref<128x144xf32, #tpu.memory_space<vmem>>, vector<64x16xf32>
    tpu.vector_store %arg26[%c0_227, %c64_228], %383 {strides = array<i32>} : memref<128x144xf32, #tpu.memory_space<vmem>>, vector<64x16xf32>,
    %385 = vector.extract_strided_slice %368 {offsets = [10, 0], sizes = [64, 16], strides = [1, 1]} : vector<82x16xf32> to vector<64x16xf32>
    %386 = vector.broadcast %39 : vector<64x1xf32> to vector<64x16xf32>
    %387 = arith.mulf %385, %386 : vector<64x16xf32>
    %c0_229 = arith.constant 0 : index
    %c80_230 = arith.constant 80 : index
    %388 = vector.load %arg26[%c0_229, %c80_230] : memref<128x144xf32, #tpu.memory_space<vmem>>, vector<64x16xf32>
    tpu.vector_store %arg26[%c0_229, %c80_230], %387 {strides = array<i32>} : memref<128x144xf32, #tpu.memory_space<vmem>>, vector<64x16xf32>,
    %389 = vector.extract_strided_slice %368 {offsets = [16, 0], sizes = [64, 16], strides = [1, 1]} : vector<82x16xf32> to vector<64x16xf32>
    %390 = vector.broadcast %35 : vector<64x1xf32> to vector<64x16xf32>
    %391 = arith.mulf %389, %390 : vector<64x16xf32>
    %c0_231 = arith.constant 0 : index
    %c96_232 = arith.constant 96 : index
    %392 = vector.load %arg26[%c0_231, %c96_232] : memref<128x144xf32, #tpu.memory_space<vmem>>, vector<64x16xf32>
    tpu.vector_store %arg26[%c0_231, %c96_232], %391 {strides = array<i32>} : memref<128x144xf32, #tpu.memory_space<vmem>>, vector<64x16xf32>,
    %393 = vector.extract_strided_slice %368 {offsets = [17, 0], sizes = [64, 16], strides = [1, 1]} : vector<82x16xf32> to vector<64x16xf32>
    %c0_233 = arith.constant 0 : index
    %c112_234 = arith.constant 112 : index
    %394 = vector.load %arg26[%c0_233, %c112_234] : memref<128x144xf32, #tpu.memory_space<vmem>>, vector<64x16xf32>
    tpu.vector_store %arg26[%c0_233, %c112_234], %393 {strides = array<i32>} : memref<128x144xf32, #tpu.memory_space<vmem>>, vector<64x16xf32>,
    %395 = vector.extract_strided_slice %368 {offsets = [18, 0], sizes = [64, 16], strides = [1, 1]} : vector<82x16xf32> to vector<64x16xf32>
    %396 = vector.broadcast %39 : vector<64x1xf32> to vector<64x16xf32>
    %397 = arith.mulf %395, %396 : vector<64x16xf32>
    %c0_235 = arith.constant 0 : index
    %c128_236 = arith.constant 128 : index
    %398 = vector.load %arg26[%c0_235, %c128_236] : memref<128x144xf32, #tpu.memory_space<vmem>>, vector<64x16xf32>
    tpu.vector_store %arg26[%c0_235, %c128_236], %397 {strides = array<i32>} : memref<128x144xf32, #tpu.memory_space<vmem>>, vector<64x16xf32>,
    %c1_237 = arith.constant 1 : index
    %c0_238 = arith.constant 0 : index
    %c0_239 = arith.constant 0 : index
    %399 = vector.load %arg25[%c1_237, %c0_238, %c0_239] : memref<2x82x16xf32, #tpu.memory_space<vmem>>, vector<1x82x16xf32>
    %400 = vector.shape_cast %399 : vector<1x82x16xf32> to vector<82x16xf32>
    %401 = vector.extract_strided_slice %400 {offsets = [0, 0], sizes = [64, 16], strides = [1, 1]} : vector<82x16xf32> to vector<64x16xf32>
    %402 = vector.broadcast %35 : vector<64x1xf32> to vector<64x16xf32>
    %403 = arith.mulf %401, %402 : vector<64x16xf32>
    %c64_240 = arith.constant 64 : index
    %c0_241 = arith.constant 0 : index
    %404 = vector.load %arg26[%c64_240, %c0_241] : memref<128x144xf32, #tpu.memory_space<vmem>>, vector<64x16xf32>
    tpu.vector_store %arg26[%c64_240, %c0_241], %403 {strides = array<i32>} : memref<128x144xf32, #tpu.memory_space<vmem>>, vector<64x16xf32>,
    %405 = vector.extract_strided_slice %400 {offsets = [1, 0], sizes = [64, 16], strides = [1, 1]} : vector<82x16xf32> to vector<64x16xf32>
    %c64_242 = arith.constant 64 : index
    %c16_243 = arith.constant 16 : index
    %406 = vector.load %arg26[%c64_242, %c16_243] : memref<128x144xf32, #tpu.memory_space<vmem>>, vector<64x16xf32>
    tpu.vector_store %arg26[%c64_242, %c16_243], %405 {strides = array<i32>} : memref<128x144xf32, #tpu.memory_space<vmem>>, vector<64x16xf32>,
    %407 = vector.extract_strided_slice %400 {offsets = [2, 0], sizes = [64, 16], strides = [1, 1]} : vector<82x16xf32> to vector<64x16xf32>
    %408 = vector.broadcast %39 : vector<64x1xf32> to vector<64x16xf32>
    %409 = arith.mulf %407, %408 : vector<64x16xf32>
    %c64_244 = arith.constant 64 : index
    %c32_245 = arith.constant 32 : index
    %410 = vector.load %arg26[%c64_244, %c32_245] : memref<128x144xf32, #tpu.memory_space<vmem>>, vector<64x16xf32>
    tpu.vector_store %arg26[%c64_244, %c32_245], %409 {strides = array<i32>} : memref<128x144xf32, #tpu.memory_space<vmem>>, vector<64x16xf32>,
    %411 = vector.extract_strided_slice %400 {offsets = [8, 0], sizes = [64, 16], strides = [1, 1]} : vector<82x16xf32> to vector<64x16xf32>
    %412 = vector.broadcast %35 : vector<64x1xf32> to vector<64x16xf32>
    %413 = arith.mulf %411, %412 : vector<64x16xf32>
    %c64_246 = arith.constant 64 : index
    %c48_247 = arith.constant 48 : index
    %414 = vector.load %arg26[%c64_246, %c48_247] : memref<128x144xf32, #tpu.memory_space<vmem>>, vector<64x16xf32>
    tpu.vector_store %arg26[%c64_246, %c48_247], %413 {strides = array<i32>} : memref<128x144xf32, #tpu.memory_space<vmem>>, vector<64x16xf32>,
    %415 = vector.extract_strided_slice %400 {offsets = [9, 0], sizes = [64, 16], strides = [1, 1]} : vector<82x16xf32> to vector<64x16xf32>
    %c64_248 = arith.constant 64 : index
    %c64_249 = arith.constant 64 : index
    %416 = vector.load %arg26[%c64_248, %c64_249] : memref<128x144xf32, #tpu.memory_space<vmem>>, vector<64x16xf32>
    tpu.vector_store %arg26[%c64_248, %c64_249], %415 {strides = array<i32>} : memref<128x144xf32, #tpu.memory_space<vmem>>, vector<64x16xf32>,
    %417 = vector.extract_strided_slice %400 {offsets = [10, 0], sizes = [64, 16], strides = [1, 1]} : vector<82x16xf32> to vector<64x16xf32>
    %418 = vector.broadcast %39 : vector<64x1xf32> to vector<64x16xf32>
    %419 = arith.mulf %417, %418 : vector<64x16xf32>
    %c64_250 = arith.constant 64 : index
    %c80_251 = arith.constant 80 : index
    %420 = vector.load %arg26[%c64_250, %c80_251] : memref<128x144xf32, #tpu.memory_space<vmem>>, vector<64x16xf32>
    tpu.vector_store %arg26[%c64_250, %c80_251], %419 {strides = array<i32>} : memref<128x144xf32, #tpu.memory_space<vmem>>, vector<64x16xf32>,
    %421 = vector.extract_strided_slice %400 {offsets = [16, 0], sizes = [64, 16], strides = [1, 1]} : vector<82x16xf32> to vector<64x16xf32>
    %422 = vector.broadcast %35 : vector<64x1xf32> to vector<64x16xf32>
    %423 = arith.mulf %421, %422 : vector<64x16xf32>
    %c64_252 = arith.constant 64 : index
    %c96_253 = arith.constant 96 : index
    %424 = vector.load %arg26[%c64_252, %c96_253] : memref<128x144xf32, #tpu.memory_space<vmem>>, vector<64x16xf32>
    tpu.vector_store %arg26[%c64_252, %c96_253], %423 {strides = array<i32>} : memref<128x144xf32, #tpu.memory_space<vmem>>, vector<64x16xf32>,
    %425 = vector.extract_strided_slice %400 {offsets = [17, 0], sizes = [64, 16], strides = [1, 1]} : vector<82x16xf32> to vector<64x16xf32>
    %c64_254 = arith.constant 64 : index
    %c112_255 = arith.constant 112 : index
    %426 = vector.load %arg26[%c64_254, %c112_255] : memref<128x144xf32, #tpu.memory_space<vmem>>, vector<64x16xf32>
    tpu.vector_store %arg26[%c64_254, %c112_255], %425 {strides = array<i32>} : memref<128x144xf32, #tpu.memory_space<vmem>>, vector<64x16xf32>,
    %427 = vector.extract_strided_slice %400 {offsets = [18, 0], sizes = [64, 16], strides = [1, 1]} : vector<82x16xf32> to vector<64x16xf32>
    %428 = vector.broadcast %39 : vector<64x1xf32> to vector<64x16xf32>
    %429 = arith.mulf %427, %428 : vector<64x16xf32>
    %c64_256 = arith.constant 64 : index
    %c128_257 = arith.constant 128 : index
    %430 = vector.load %arg26[%c64_256, %c128_257] : memref<128x144xf32, #tpu.memory_space<vmem>>, vector<64x16xf32>
    tpu.vector_store %arg26[%c64_256, %c128_257], %429 {strides = array<i32>} : memref<128x144xf32, #tpu.memory_space<vmem>>, vector<64x16xf32>,
    %c0_258 = arith.constant 0 : index
    %c0_259 = arith.constant 0 : index
    %431 = vector.load %arg26[%c0_258, %c0_259] : memref<128x144xf32, #tpu.memory_space<vmem>>, vector<128x144xf32>
    %c0_260 = arith.constant 0 : index
    %c0_261 = arith.constant 0 : index
    %432 = vector.load %arg21[%c0_260, %c0_261] : memref<144x16xf32, #tpu.memory_space<vmem>>, vector<144x16xf32>
    %cst_262 = arith.constant dense<0.000000e+00> : vector<128x16xf32>
    %433 = tpu.matmul %431, %432, %cst_262 {dimension_numbers = #tpu.dot_dimension_numbers<[1], [0], [0], [1], [0, 0, 1, 1], [], []>} : vector<128x144xf32>, vector<144x16xf32>, vector<128x16xf32> -> vector<128x16xf32>
    %c0_263 = arith.constant 0 : index
    %c0_264 = arith.constant 0 : index
    %434 = vector.load %arg22[%c0_263, %c0_264] : memref<1x16xf32, #tpu.memory_space<vmem>>, vector<1x16xf32>
    %435 = vector.broadcast %434 : vector<1x16xf32> to vector<128x16xf32>
    %436 = arith.mulf %433, %435 : vector<128x16xf32>
    %c0_265 = arith.constant 0 : index
    %c0_266 = arith.constant 0 : index
    %437 = vector.load %arg23[%c0_265, %c0_266] : memref<1x16xf32, #tpu.memory_space<vmem>>, vector<1x16xf32>
    %438 = vector.broadcast %437 : vector<1x16xf32> to vector<128x16xf32>
    %439 = arith.addf %436, %438 : vector<128x16xf32>
    %cst_267 = arith.constant 0.000000e+00 : f32
    %440 = vector.broadcast %cst_267 : f32 to vector<128x16xf32>
    %441 = arith.maximumf %439, %440 : vector<128x16xf32>
    %442 = vector.extract_strided_slice %441 {offsets = [0, 0], sizes = [64, 16], strides = [1, 1]} : vector<128x16xf32> to vector<64x16xf32>
    %443 = vector.extract_strided_slice %441 {offsets = [64, 0], sizes = [64, 16], strides = [1, 1]} : vector<128x16xf32> to vector<64x16xf32>
    %444 = arith.subf %442, %443 : vector<64x16xf32>
    %445 = math.absf %444 : vector<64x16xf32>
    %c0_268 = arith.constant 0 : index
    %c0_269 = arith.constant 0 : index
    %c0_270 = arith.constant 0 : index
    %446 = vector.load %arg24[%c0_268, %c0_269, %c0_270] : memref<1x64x16xf32, #tpu.memory_space<vmem>>, vector<1x64x16xf32>
    %447 = vector.shape_cast %446 : vector<1x64x16xf32> to vector<64x16xf32>
    %448 = vector.shape_cast %445 : vector<64x16xf32> to vector<1x64x16xf32>
    tpu.vector_store %arg24[%c0_268, %c0_269, %c0_270], %448 {strides = array<i32>} : memref<1x64x16xf32, #tpu.memory_space<vmem>>, vector<1x64x16xf32>,
    return
  }
  func.func @transform_0(%arg0: i32) -> (i32, i32, i32) {
    %c0_i32 = arith.constant 0 : i32
    %c0_i32_0 = arith.constant 0 : i32
    %c0_i32_1 = arith.constant 0 : i32
    return %arg0, %c0_i32, %c0_i32_0 : i32, i32, i32
  }
  func.func @transform_1(%arg0: i32) -> (i32, i32) {
    %c0_i32 = arith.constant 0 : i32
    %c0_i32_0 = arith.constant 0 : i32
    %c0_i32_1 = arith.constant 0 : i32
    return %c0_i32, %c0_i32_0 : i32, i32
  }
  func.func @transform_2(%arg0: i32) -> (i32, i32) {
    %c0_i32 = arith.constant 0 : i32
    %c0_i32_0 = arith.constant 0 : i32
    %c0_i32_1 = arith.constant 0 : i32
    return %c0_i32, %c0_i32_0 : i32, i32
  }
  func.func @transform_3(%arg0: i32) -> (i32, i32) {
    %c0_i32 = arith.constant 0 : i32
    %c0_i32_0 = arith.constant 0 : i32
    %c0_i32_1 = arith.constant 0 : i32
    return %c0_i32, %c0_i32_0 : i32, i32
  }
  func.func @transform_4(%arg0: i32) -> (i32, i32) {
    %c0_i32 = arith.constant 0 : i32
    %c0_i32_0 = arith.constant 0 : i32
    %c0_i32_1 = arith.constant 0 : i32
    return %c0_i32, %c0_i32_0 : i32, i32
  }
  func.func @transform_5(%arg0: i32) -> (i32, i32) {
    %c0_i32 = arith.constant 0 : i32
    %c0_i32_0 = arith.constant 0 : i32
    %c0_i32_1 = arith.constant 0 : i32
    return %c0_i32, %c0_i32_0 : i32, i32
  }
  func.func @transform_6(%arg0: i32) -> (i32, i32) {
    %c0_i32 = arith.constant 0 : i32
    %c0_i32_0 = arith.constant 0 : i32
    %c0_i32_1 = arith.constant 0 : i32
    return %c0_i32, %c0_i32_0 : i32, i32
  }
  func.func @transform_7(%arg0: i32) -> (i32, i32) {
    %c0_i32 = arith.constant 0 : i32
    %c0_i32_0 = arith.constant 0 : i32
    %c0_i32_1 = arith.constant 0 : i32
    return %c0_i32, %c0_i32_0 : i32, i32
  }
  func.func @transform_8(%arg0: i32) -> (i32, i32) {
    %c0_i32 = arith.constant 0 : i32
    %c0_i32_0 = arith.constant 0 : i32
    %c0_i32_1 = arith.constant 0 : i32
    return %c0_i32, %c0_i32_0 : i32, i32
  }
  func.func @transform_9(%arg0: i32) -> (i32, i32) {
    %c0_i32 = arith.constant 0 : i32
    %c0_i32_0 = arith.constant 0 : i32
    %c0_i32_1 = arith.constant 0 : i32
    return %c0_i32, %c0_i32_0 : i32, i32
  }
  func.func @transform_10(%arg0: i32) -> (i32, i32) {
    %c0_i32 = arith.constant 0 : i32
    %c0_i32_0 = arith.constant 0 : i32
    %c0_i32_1 = arith.constant 0 : i32
    return %c0_i32, %c0_i32_0 : i32, i32
  }
  func.func @transform_11(%arg0: i32) -> (i32, i32) {
    %c0_i32 = arith.constant 0 : i32
    %c0_i32_0 = arith.constant 0 : i32
    %c0_i32_1 = arith.constant 0 : i32
    return %c0_i32, %c0_i32_0 : i32, i32
  }
  func.func @transform_12(%arg0: i32) -> (i32, i32) {
    %c0_i32 = arith.constant 0 : i32
    %c0_i32_0 = arith.constant 0 : i32
    %c0_i32_1 = arith.constant 0 : i32
    return %c0_i32, %c0_i32_0 : i32, i32
  }
  func.func @transform_13(%arg0: i32) -> (i32, i32) {
    %c0_i32 = arith.constant 0 : i32
    %c0_i32_0 = arith.constant 0 : i32
    %c0_i32_1 = arith.constant 0 : i32
    return %c0_i32, %c0_i32_0 : i32, i32
  }
  func.func @transform_14(%arg0: i32) -> (i32, i32) {
    %c0_i32 = arith.constant 0 : i32
    %c0_i32_0 = arith.constant 0 : i32
    %c0_i32_1 = arith.constant 0 : i32
    return %c0_i32, %c0_i32_0 : i32, i32
  }
  func.func @transform_15(%arg0: i32) -> (i32, i32) {
    %c0_i32 = arith.constant 0 : i32
    %c0_i32_0 = arith.constant 0 : i32
    %c0_i32_1 = arith.constant 0 : i32
    return %c0_i32, %c0_i32_0 : i32, i32
  }
  func.func @transform_16(%arg0: i32) -> (i32, i32) {
    %c0_i32 = arith.constant 0 : i32
    %c0_i32_0 = arith.constant 0 : i32
    %c0_i32_1 = arith.constant 0 : i32
    return %c0_i32, %c0_i32_0 : i32, i32
  }
  func.func @transform_17(%arg0: i32) -> (i32, i32) {
    %c0_i32 = arith.constant 0 : i32
    %c0_i32_0 = arith.constant 0 : i32
    %c0_i32_1 = arith.constant 0 : i32
    return %c0_i32, %c0_i32_0 : i32, i32
  }
  func.func @transform_18(%arg0: i32) -> (i32, i32) {
    %c0_i32 = arith.constant 0 : i32
    %c0_i32_0 = arith.constant 0 : i32
    %c0_i32_1 = arith.constant 0 : i32
    return %c0_i32, %c0_i32_0 : i32, i32
  }
  func.func @transform_19(%arg0: i32) -> (i32, i32) {
    %c0_i32 = arith.constant 0 : i32
    %c0_i32_0 = arith.constant 0 : i32
    %c0_i32_1 = arith.constant 0 : i32
    return %c0_i32, %c0_i32_0 : i32, i32
  }
  func.func @transform_20(%arg0: i32) -> (i32, i32) {
    %c0_i32 = arith.constant 0 : i32
    %c0_i32_0 = arith.constant 0 : i32
    %c0_i32_1 = arith.constant 0 : i32
    return %c0_i32, %c0_i32_0 : i32, i32
  }
  func.func @transform_21(%arg0: i32) -> (i32, i32) {
    %c0_i32 = arith.constant 0 : i32
    %c0_i32_0 = arith.constant 0 : i32
    %c0_i32_1 = arith.constant 0 : i32
    return %c0_i32, %c0_i32_0 : i32, i32
  }
  func.func @transform_22(%arg0: i32) -> (i32, i32) {
    %c0_i32 = arith.constant 0 : i32
    %c0_i32_0 = arith.constant 0 : i32
    %c0_i32_1 = arith.constant 0 : i32
    return %c0_i32, %c0_i32_0 : i32, i32
  }
  func.func @transform_23(%arg0: i32) -> (i32, i32, i32) {
    %c0_i32 = arith.constant 0 : i32
    %c0_i32_0 = arith.constant 0 : i32
    %c0_i32_1 = arith.constant 0 : i32
    return %arg0, %c0_i32, %c0_i32_0 : i32, i32, i32
  }
}

</mosaic_0001>

<bundles_post_ra>
// kernel: _lambda_.1
= control target key start
LH: loop header
LB: loop body
LE: loop exit
PB: predicated region body
PF: predicated region fallthrough
CT: control target
= control target key end

     0   :  { %s11936_s0 = inlined_call_operand.vmem [shape: f32[2,128,16], index: 0, kind: input, shape index: {}]   ;;  %s11937_s1 = inlined_call_operand.hbm [shape: f32[16,16], index: 1, kind: input, shape index: {}]   ;;  %s11938_s2 = inlined_call_operand.vmem [shape: f32[1,16], index: 2, kind: input, shape index: {}]   ;;  %s11939_s3 = inlined_call_operand.vmem [shape: f32[16,16], index: 3, kind: input, shape index: {}]   ;;  %s11940_s4 = inlined_call_operand.vmem [shape: f32[1,16], index: 4, kind: input, shape index: {}]   ;;  %s11941_s5 = inlined_call_operand.vmem [shape: f32[1,18], index: 5, kind: input, shape index: {}]   ;;  %s11942_s6 = inlined_call_operand.vmem [shape: f32[16,1], index: 6, kind: input, shape index: {}]   ;;  %s11943_s7 = inlined_call_operand.<no memory space> [shape: f32[1,1], index: 7, kind: input, shape index: {}]   ;;  %s11944_s8 = inlined_call_operand.vmem [shape: f32[1,16], index: 8, kind: input, shape index: {}]   ;;  %s11945_s9 = inlined_call_operand.vmem [shape: f32[1,16], index: 9, kind: input, shape index: {}]   ;;  %s11946_s10 = inlined_call_operand.vmem [shape: f32[32,16], index: 10, kind: input, shape index: {}]   ;;  %s11947_s11 = inlined_call_operand.vmem [shape: f32[1,16], index: 11, kind: input, shape index: {}]   ;;  %s11948_s12 = inlined_call_operand.vmem [shape: f32[16,16], index: 12, kind: input, shape index: {}]   ;;  %s11949_s13 = inlined_call_operand.vmem [shape: f32[1,16], index: 13, kind: input, shape index: {}]   ;;  %s11950_s14 = inlined_call_operand.vmem [shape: f32[144,16], index: 14, kind: input, shape index: {}]   ;;  %s11951_s15 = inlined_call_operand.vmem [shape: f32[1,16], index: 15, kind: input, shape index: {}]   ;;  %s11952_s16 = inlined_call_operand.vmem [shape: f32[1,16], index: 16, kind: input, shape index: {}]   ;;  %s11953_s17 = inlined_call_operand.vmem [shape: f32[144,16], index: 17, kind: input, shape index: {}]   ;;  %s11954_s18 = inlined_call_operand.vmem [shape: f32[1,16], index: 18, kind: input, shape index: {}]   ;;  %s11955_s19 = inlined_call_operand.vmem [shape: f32[1,16], index: 19, kind: input, shape index: {}]   ;;  %s11956_s20 = inlined_call_operand.vmem [shape: f32[144,16], index: 20, kind: input, shape index: {}]   ;;  %s11957_s21 = inlined_call_operand.vmem [shape: f32[1,16], index: 21, kind: input, shape index: {}]   ;;  %s11958_s22 = inlined_call_operand.vmem [shape: f32[1,16], index: 22, kind: input, shape index: {}]   ;;  %s11959_s23 = inlined_call_operand.hbm [shape: f32[2,64,16], index: 23, kind: output, shape index: {}]  }
   0x1   :  { %11996 = sst [smem:[#allocation17_spill]] %s11936_s0 }
   0x2   :  { %11997 = sst [smem:[#allocation18_spill]] %s11937_s1 }
   0x3   :  { %11998 = sst [smem:[#allocation19_spill]] %s11938_s2 }
   0x4   :  { %11999 = sst [smem:[#allocation20_spill]] %s11939_s3 }
   0x5   :  { %12000 = sst [smem:[#allocation21_spill]] %s11940_s4 }
   0x6   :  { %12001 = sst [smem:[#allocation22_spill]] %s11941_s5 }
   0x7   :  { %12002 = sst [smem:[#allocation23_spill]] %s11942_s6 }
   0x8   :  { %12003 = sst [smem:[#allocation24_spill]] %s11943_s7 }
   0x9   :  { %12004 = sst [smem:[#allocation25_spill]] %s11944_s8  ;;  %s12010_s24 = sld [smem:[#allocation24_spill]] }
   0xa   :  { %12005 = sst [smem:[#allocation26_spill]] %s11945_s9 }
   0xb   :  { %12006 = sst [smem:[#allocation27_spill]] %s11946_s10 }
   0xc   :  { %12007 = sst [smem:[#allocation28_spill]] %s11947_s11 }
   0xd   :  { %12008 = sst [smem:[#allocation29_spill]] %s11948_s12 }
   0xe   :  { %12009 = sst [smem:[#allocation30_spill]] %s11959_s23 }
   0xf   :  { %v28_v0 = vstv %s12010_s24 }
  0x10   :  { %29 = vst [vmem:[#allocation4] sm:$0x1] %v28_v0 }
  0x11   :  { %30 = vsyncpa [#allocation6], 0 }
  0x12   :  { %31 = vsyncpa [#allocation7], 0 }
  0x13   :  { %33 = vsyncpa [#allocation7 + $0x1], 0  ;;  %s7950_s25 = smov 0   ;;  %s7952_s5 = smov 0  }
  0x14   :  { %s7954_s1 = smov 0   ;;  %s7956_s26 = smov 0  }
  0x15 LB: > { %12011 = sst [smem:[#allocation11_spill]] %s7791_s25  ;;  %s7971_s2 = sadd.s32 4294967295, %s7803_s26   ;;  %s7803_s26 = sphi %s7956_s26, %s12065_s26   ;;  %s7799_s1 = sphi %s7954_s1, %s12067_s1   ;;  %s7795_s5 = sphi %s7952_s5, %s12069_s5   ;;  %s7791_s25 = sphi %s7950_s25, %s12068_s25  }
  0x16   : > { %12012 = sst [smem:[#allocation12_spill]] %s7799_s1  ;;  %s7065_s6 = sadd.s32 4294967294, %s7803_s26  }
  0x17   : > { %12013 = sst [smem:[#allocation13_spill]] %s7803_s26  ;;  %s7975_s27 = sadd.s32 1, %s7803_s26  }
  0x18   : > { %12014 = sst [smem:[#allocation14_spill]] %s7975_s27  ;;  %s534_s7 = sadd.s32 1, %s7799_s1 }
  0x19   : > { %s531_s28 = ssub.s32 %s7803_s26, %s7975_s27  ;;  %p544_p0 = scmp.ne.s32.totalorder %s7799_s1, %s7795_s5 }
  0x1a   : > { %p532_p1 = scmp.eq.s32.totalorder %s531_s28, 0  ;;  %p545_p2 = scmp.eq.s32.totalorder %s7971_s2, 1 }
  0x1b   : > { %p550_p3 = scmp.ne.s32.totalorder %s7795_s5, %s7791_s25  ;;  %p551_p4 = scmp.eq.s32.totalorder %s7065_s6, 1 }
  0x1c   : > { %s7986_s29 = scalar_select %p532_p1, %s7799_s1, %s534_s7  }
  0x1d   : > { %p7988_p5 = por %p545_p2, %p544_p0  ;;  %p7992_p6 = por %p551_p4, %p550_p3 }
  0x1e   : > { %12015 = sst [smem:[#allocation15_spill]] %s7986_s29  ;;  %p7066_p7 = scmp.ge.s32.totalorder %s7803_s26, 1 }
  0x1f   : > { %s12016_s3 = scalar_select %p7988_p5, 1, 0 }
  0x20   : > { %s12017_s0 = scalar_select %p7992_p6, 1, 0 }
  0x21   : > { %p558_p8 = scmp.lt.s32.totalorder %s7803_s26, 3  ;;  %p11969_p9 = scmp.eq.s32.totalorder %s7971_s2, 0 }
  0x22   : > { %12018 = sst [smem:[#allocation16_spill]] %s12017_s0  ;;  %s7805_s30 = smov [#allocation5]  }
  0x23   : > { %p7999_p10 = pnand %p7066_p7, %p558_p8  ;;  %s570_s24 = sshll.u32 %s7805_s30, 4  ;;  %s571_s24 = int_to_ptr.vmem [resolvable:$true] %s570_s24 }
  0x24   : > { %s12021_s29 = sld [smem:[#allocation18_spill]] }
  0x25   : > { %s12019_s4 = scalar_select %p7999_p10, 1, 0 }
  0x26   : > { %p7559_p11 = pneg %p7999_p10 }
  0x28   : > { %p8007_p12 = pnand %p11969_p9, %p7559_p11 }
  0x2a   : > { %s7709_s1 = scalar_lea.hbm %s12021_s29, 256  ;;  %p7711_p0 = pneg %p8007_p12 }
  0x2b   : > { %p7710_p13 = scmp.ne.s32.totalorder %s12021_s29, %s7709_s1  ;;  %p7716_p3 = scmp.lt.u32.totalorder %s7709_s1, %s12021_s29 }
  0x2d   : > { %p7712_p1 = pnand %p7711_p0, %p7710_p13 }
  0x2f   : > { %p7713_p2 = pneg %p7712_p1 }
  0x31   : > { %p7718_p4 = pnand %p7716_p3, %p7713_p2 }
  0x33   : > { %7721 = shalt.err (!%p7718_p4)
}
  0x34   : > { %s7722_s26 = scalar_lea.vmem %s571_s24, 256  ;;  %p7730_p9 = scmp.lt.s32.totalorder %s571_s24, %s571_s24 }
  0x35   : > { %p7723_p7 = scmp.ne.s32.totalorder %s571_s24, %s7722_s26  ;;  %p7731_p6 = scmp.lt.s32.totalorder %s7722_s26, %s7722_s26 }
  0x37   : > { %p7725_p8 = pnand %p7723_p7, %p7711_p0  ;;  %p7732_p5 = por %p7731_p6, %p7730_p9 }
  0x39   : > { %p7726_p11 = pneg %p7725_p8 }
  0x3b   : > { %p7733_p10 = pnand %p7732_p5, %p7726_p11 }
  0x3d   : > { %7736 = shalt.err (!%p7733_p10)
}
  0x3e   : > { %s7806_s27 = smov 128   ;;  %s7807_s0 = smov 8  }
  0x3f   : > { %7562 = dma.hbm_to_vmem [thread:$0]  (!%p8007_p12), %s12021_s29, 256, %s571_s24, [#allocation6], %s7806_s27, %s7806_s27, %s7807_s0  }
  0x40   : > { %p12022_p13 = scmp.ne.s32.totalorder %s12019_s4, 0 }
  0x41   : > { %p12023_p1 = scmp.eq.s32.totalorder (!%p12022_p13), %s7971_s2, 0 }
  0x42   : > { %657 = sbr.rel (%p12022_p13) target bundleno = 3026 (0xbd2), region = 112 }
  0x49   : > { %7782 = dma.done.wait (%p12023_p1), [#allocation6], 256   ;;  %p12024_p0 = pmov %p12023_p1 }
  0x4a   : > { %p721_p5 = scmp.lt.s32.totalorder %s7971_s2, 1  ;;  %s12025_s30 = sld [smem:[#allocation17_spill]]  ;;  %vm742_vm0 = vcmask 130048   ;;  %v906_v1 = vld [vmem:[#allocation5] sm:$0xff]  ;;  %v907_v2 = vld [vmem:[#allocation5 + $0x8] sm:$0xff]  ;;  %vm7809_vm1 = vmmov 0  }
  0x4b   : > { %7784 = vsyncadd (%p12024_p0), [#allocation6], 4294967040  ;;  %v7449_v4 = vpack.c.bf16 %v907_v2, %v906_v1  ;;  %s12026_s27 = sld [smem:[#allocation20_spill]]  ;;  %s12029_s28 = sld [smem:[#allocation21_spill]]  ;;  %vm744_vm2 = vcmask 122880   ;;  %vm2649_vm4 = vcmask 1040384  }
  0x4c   : > { %s722_s25 = scalar_select %p721_p5, %s7971_s2, 1  ;;  %vm1456_vm5 = vcmask 15360   ;;  %vm1439_vm6 = vcmask 7168   ;;  %vm1568_vm11 = vcmask 1041408   ;;  %vm1509_vm13 = vcmask 1046528  }
  0x4d   : > { %7450 = vmatprep.subr.bf16.mxu0 %v7449_v4  ;;  %s12030_s8 = sld [smem:[#allocation25_spill]]  ;;  %s7811_s26 = smov 6   ;;  %vm1611_vm14 = vcmask 1045504  }
  0x4e   : > { %s7240_s1 = sshll.u32 %s722_s25, 7  ;;  %7452 = vmatpush3.bf16.msra.mxu0 %v7449_v4  ;;  %s7812_s6 = smov 12  }
  0x4f   : > { %s7813_s4 = smov 2   ;;  %s7814_s24 = smov 4  }
  0x50   : > { %s8038_s23 = scalar_lea.vmem %s12025_s30, %s7240_s1  ;;  %s12027_s1 = sld [smem:[#allocation19_spill]] }
  0x51   : > { %v726_v3 = vld [vmem:[%s8038_s23] sm:$0xff]  ;;  %v727_v5 = vld [vmem:[%s8038_s23 + $0x8] sm:$0xff]  ;;  %v728_v6 = vld [vmem:[%s8038_s23 + $0x10] sm:$0xff]  ;;  %s12028_s30 = sld [smem:[#allocation23_spill]]  ;;  %s11981_s0 = smov 8  }
  0x52   : > { %7325 = vmatprep.mubr.msk.f32.mxu0 %vm742_vm0, %v726_v3  ;;  %v1124_v7 = vld [vmem:[%s12026_s27] sm:$0xff]  ;;  %v1125_v8 = vld [vmem:[%s12026_s27 + $0x8] sm:$0xff]  ;;  %v729_v10 = vld [vmem:[%s8038_s23 + $0x18] sm:$0xff]  ;;  %s7816_s7 = smov 10   ;;  %s11990_s25 = smov 16  }
  0x53   : > { %7326 = vmatmul.mubr.msk.f32.vlgmr.msra.gmra.mrb[0].mxu0 %vm742_vm0, %v727_v5  ;;  %v7453_v9 = vpack.c.bf16 %v1125_v8, %v1124_v7  ;;  %v730_v11 = vld [vmem:[%s8038_s23 + $0x20] sm:$0xff]  ;;  %v731_v12 = vld [vmem:[%s8038_s23 + $0x28] sm:$0xff]  ;;  %v732_v13 = vld [vmem:[%s8038_s23 + $0x30] sm:$0xff]  ;;  %s12046_s9 = sld [smem:[#allocation26_spill]]  ;;  %s12047_s10 = sld [smem:[#allocation27_spill]] }
  0x54   : > { %7328 = vmatprep.mubr.msk.f32.mxu0 %vm742_vm0, %v728_v6  ;;  %v733_v14 = vld [vmem:[%s8038_s23 + $0x38] sm:$0xff]  ;;  %v734_v15 = vld [vmem:[%s8038_s23 + $0x40] sm:$0xff]  ;;  %v735_v16 = vld [vmem:[%s8038_s23 + $0x48] sm:$0xff]  ;;  %s12049_s12 = sld [smem:[#allocation29_spill]]  ;;  %s12050_s11 = sld [smem:[#allocation28_spill]] }
  0x55   : > { %7454 = vmatprep.subr.bf16.mxu0 %v7453_v9  ;;  %v736_v17 = vld [vmem:[%s8038_s23 + $0x50] sm:$0xff]  ;;  %v737_v18 = vld [vmem:[%s8038_s23 + $0x58] sm:$0xff]  ;;  %v738_v19 = vld [vmem:[%s8038_s23 + $0x60] sm:$0xff]  ;;  %p12059_p9 = scmp.ne.s32.totalorder %s12016_s3, 0 }
  0x56   : > { %7456 = vmatpush3.bf16.msra.mxu0 %v7453_v9  ;;  %v739_v20 = vld [vmem:[%s8038_s23 + $0x68] sm:$0xff]  ;;  %v740_v21 = vld [vmem:[%s8038_s23 + $0x70] sm:$0xff]  ;;  %v741_v22 = vld [vmem:[%s8038_s23 + $0x78] sm:$0xff] }
  0x57   : > { %7329 = vmatmul.mubr.msk.f32.gmra.mrb[2].mxu0 %vm742_vm0, %v729_v10  ;;  %v7090_v23 = vld [vmem:[%s12027_s1] ss:$0 sm:$0xff]  ;;  %v2652_v9 = vld [vmem:[%s12028_s30 + $0x8] sm:$0xff]  ;;  %v11973_v10 = vmov 0.0|0.0   ;;  %s11984_s1 = smov 112  }
  0x58   : > { %7331 = vmatprep.mubr.msk.f32.mxu0 %vm742_vm0, %v730_v11  ;;  %v2651_v8 = vld [vmem:[%s12028_s30] sm:$0xff]  ;;  %7457 = vmatprep.subr.bf16.mxu0 %v11973_v10 }
  0x59   : > { %v7458_v11 = vpack.c.bf16 %v2652_v9, %v2651_v8 }
  0x5b   : > { %7332 = vmatmul.mubr.msk.f32.gmra.mrb[4].mxu0 %vm742_vm0, %v731_v12  ;;  %v11975_v12 = vmov 0.0  }
  0x5c   : > { %7334 = vmatprep.mubr.msk.f32.mxu0 %vm742_vm0, %v732_v13  ;;  %743 = vst.msk [vmem:[#allocation2] sm:$0xff] %vm742_vm0, %v11975_v12  ;;  %746 = vst.msk [vmem:[#allocation2 + $0x49] sm:$0xff] %vm742_vm0, %v11975_v12  ;;  %7384 = vmatprep.subr.mxu1 %v11975_v12  ;;  %v8118_v13 = vld [vmem:[%s12029_s28] ss:$0 sm:$0xff]  ;;  %s7817_s28 = smov 14  }
  0x5d   : > { %749 = vst.msk [vmem:[#allocation2 + $0x58] sm:$0xff] %vm742_vm0, %v11975_v12  ;;  %751 = vst.msk [vmem:[#allocation2 + $0xa1] sm:$0xff] %vm742_vm0, %v11975_v12  ;;  %7386 = vmatprep.mubr.msk.f32.mxu1 %vm7809_vm1, %v11975_v12 }
  0x5e   : > { %745 = vst.msk [vmem:[#allocation2 + $0x8] sm:$0x1] %vm744_vm2, %v11975_v12  ;;  %747 = vst.msk [vmem:[#allocation2 + $0x51] sm:$0x1] %vm744_vm2, %v11975_v12 }
  0x5f   : > { %7335 = vmatmul.mubr.msk.f32.gmra.mrb[6].mxu0 %vm742_vm0, %v733_v14  ;;  %750 = vst.msk [vmem:[#allocation2 + $0x60] sm:$0x1] %vm744_vm2, %v11975_v12  ;;  %752 = vst.msk [vmem:[#allocation2 + $0xa9] sm:$0x1] %vm744_vm2, %v11975_v12 }
  0x60   : > { %7337 = vmatprep.mubr.msk.f32.mxu0 %vm742_vm0, %v734_v15 }
  0x63   : > { %7338 = vmatmul.mubr.msk.f32.gmra.mrb[8].mxu0 %vm742_vm0, %v735_v16 }
  0x64   : > { %7340 = vmatprep.mubr.msk.f32.mxu0 %vm742_vm0, %v736_v17 }
  0x67   : > { %7341 = vmatmul.mubr.msk.f32.gmra.mrb[10].mxu0 %vm742_vm0, %v737_v18 }
  0x68   : > { %7343 = vmatprep.mubr.msk.f32.mxu0 %vm742_vm0, %v738_v19 }
  0x6b   : > { %7344 = vmatmul.mubr.msk.f32.gmra.mrb[12].mxu0 %vm742_vm0, %v739_v20 }
  0x6c   : > { %7346 = vmatprep.mubr.msk.f32.mxu0 %vm742_vm0, %v740_v21 }
  0x6f   : > { %7347 = vmatmul.mubr.msk.f32.gmra.mrb[14].mxu0 %vm742_vm0, %v741_v22 }
 0x126   : > { %v7327_v24 = vpop.f32.mrb[0].mxu0 }
 0x127   : > { %v1035_v25 = vadd.f32 %v7327_v24, %v7090_v23  ;;  %v1029_v26 = vpop.f32.mrb[1].mxu0 }
 0x128   : > { %v1030_v27 = vadd.f32 %v7090_v23, %v1029_v26 }
 0x129   : > { %v1109_v30 = vmax.f32 %v1035_v25, 0.0 }
 0x12a   : > { %v1108_v28 = vmax.f32 %v1030_v27, 0.0  ;;  %v7330_v29 = vpop.f32.mrb[2].mxu0 }
 0x12b   : > { %v1045_v31 = vadd.f32 %v7330_v29, %v7090_v23  ;;  %v1039_v32 = vpop.f32.mrb[3].mxu0 }
 0x12c   : > { %v1040_v33 = vadd.f32 %v7090_v23, %v1039_v32  ;;  %7353 = vmatprep.mubr.msk.f32.mxu0 %vm742_vm0, %v1108_v28 }
 0x12d   : > { %v1111_v34 = vmax.f32 %v1045_v31, 0.0  ;;  %7354 = vmatmul.mubr.msk.f32.vlgmr.msra.gmra.mrb[16].mxu0 %vm742_vm0, %v1109_v30 }
 0x12e   : > { %v1110_v35 = vmax.f32 %v1040_v33, 0.0  ;;  %v7333_v36 = vpop.f32.mrb[4].mxu0  ;;  %7459 = vmatpush3.bf16.msra.mxu0 %v7458_v11 }
 0x12f   : > { %v1055_v37 = vadd.f32 %v7333_v36, %v7090_v23  ;;  %v1049_v38 = vpop.f32.mrb[5].mxu0 }
 0x130   : > { %v1050_v39 = vadd.f32 %v7090_v23, %v1049_v38  ;;  %7356 = vmatprep.mubr.msk.f32.mxu0 %vm742_vm0, %v1110_v35 }
 0x131   : > { %v1113_v40 = vmax.f32 %v1055_v37, 0.0  ;;  %7357 = vmatmul.mubr.msk.f32.gmra.mrb[18].mxu0 %vm742_vm0, %v1111_v34 }
 0x132   : > { %v1112_v41 = vmax.f32 %v1050_v39, 0.0  ;;  %v7336_v42 = vpop.f32.mrb[6].mxu0 }
 0x133   : > { %v1065_v43 = vadd.f32 %v7336_v42, %v7090_v23  ;;  %v1059_v44 = vpop.f32.mrb[7].mxu0 }
 0x134   : > { %v1060_v45 = vadd.f32 %v7090_v23, %v1059_v44  ;;  %7359 = vmatprep.mubr.msk.f32.mxu0 %vm742_vm0, %v1112_v41 }
 0x135   : > { %v1115_v46 = vmax.f32 %v1065_v43, 0.0  ;;  %7360 = vmatmul.mubr.msk.f32.gmra.mrb[20].mxu0 %vm742_vm0, %v1113_v40 }
 0x136   : > { %v1114_v47 = vmax.f32 %v1060_v45, 0.0  ;;  %v7339_v48 = vpop.f32.mrb[8].mxu0 }
 0x137   : > { %v1075_v49 = vadd.f32 %v7339_v48, %v7090_v23  ;;  %v1069_v50 = vpop.f32.mrb[9].mxu0 }
 0x138   : > { %v1070_v51 = vadd.f32 %v7090_v23, %v1069_v50  ;;  %7362 = vmatprep.mubr.msk.f32.mxu0 %vm742_vm0, %v1114_v47 }
 0x139   : > { %v1117_v52 = vmax.f32 %v1075_v49, 0.0  ;;  %7363 = vmatmul.mubr.msk.f32.gmra.mrb[22].mxu0 %vm742_vm0, %v1115_v46 }
 0x13a   : > { %v1116_v53 = vmax.f32 %v1070_v51, 0.0  ;;  %v7342_v54 = vpop.f32.mrb[10].mxu0 }
 0x13b   : > { %v1085_v55 = vadd.f32 %v7342_v54, %v7090_v23  ;;  %v1079_v56 = vpop.f32.mrb[11].mxu0 }
 0x13c   : > { %v1080_v57 = vadd.f32 %v7090_v23, %v1079_v56  ;;  %7365 = vmatprep.mubr.msk.f32.mxu0 %vm742_vm0, %v1116_v53 }
 0x13d   : > { %v1119_v58 = vmax.f32 %v1085_v55, 0.0  ;;  %7366 = vmatmul.mubr.msk.f32.gmra.mrb[24].mxu0 %vm742_vm0, %v1117_v52 }
 0x13e   : > { %v1118_v59 = vmax.f32 %v1080_v57, 0.0  ;;  %v7345_v60 = vpop.f32.mrb[12].mxu0 }
 0x13f   : > { %v1095_v61 = vadd.f32 %v7345_v60, %v7090_v23  ;;  %v1089_v62 = vpop.f32.mrb[13].mxu0 }
 0x140   : > { %v1090_v63 = vadd.f32 %v7090_v23, %v1089_v62  ;;  %7368 = vmatprep.mubr.msk.f32.mxu0 %vm742_vm0, %v1118_v59 }
 0x141   : > { %v1121_v0 = vmax.f32 %v1095_v61, 0.0  ;;  %7369 = vmatmul.mubr.msk.f32.gmra.mrb[26].mxu0 %vm742_vm0, %v1119_v58 }
 0x142   : > { %v1120_v1 = vmax.f32 %v1090_v63, 0.0  ;;  %v7348_v2 = vpop.f32.mrb[14].mxu0 }
 0x143   : > { %v1105_v3 = vadd.f32 %v7348_v2, %v7090_v23  ;;  %v1099_v4 = vpop.f32.mrb[15].mxu0 }
 0x144   : > { %v1100_v5 = vadd.f32 %v7090_v23, %v1099_v4  ;;  %7371 = vmatprep.mubr.msk.f32.mxu0 %vm742_vm0, %v1120_v1 }
 0x145   : > { %v1123_v6 = vmax.f32 %v1105_v3, 0.0  ;;  %7372 = vmatmul.mubr.msk.f32.gmra.mrb[28].mxu0 %vm742_vm0, %v1121_v0 }
 0x146   : > { %v1122_v7 = vmax.f32 %v1100_v5, 0.0 }
 0x148   : > { %7374 = vmatprep.mubr.msk.f32.mxu0 %vm742_vm0, %v1122_v7 }
 0x149   : > { %7375 = vmatmul.mubr.msk.f32.gmra.mrb[30].mxu0 %vm742_vm0, %v1123_v6 }
 0x14a   : > { %7381 = vmatprep.mubr.msk.f32.mxu0 %vm7809_vm1, %v11975_v12 }
 0x200   : > { %v7355_v14 = vpop.f32.mrb[16].mxu0 }
 0x201   : > { %v8121_v15 = vadd.f32 %v7355_v14, %v8118_v13  ;;  %v1247_v16 = vpop.f32.mrb[17].mxu0 }
 0x202   : > { %v8124_v17 = vadd.f32 %v8118_v13, %v1247_v16 }
 0x203   : > { %v1377_v18 = vsel %vm742_vm0, %v8121_v15, 0.0  ;;  %v1329_v19 = vsel %vm742_vm0, %v8121_v15, -inf }
 0x204   : > { %1378 = vadd.xlane.f32.xlu0 %v1377_v18  ;;  %1330 = vmax.xlane.f32.xlu1 %v1329_v19  ;;  %v7358_v20 = vpop.f32.mrb[18].mxu0  ;;  %v1374_v21 = vsel %vm742_vm0, %v8124_v17, 0.0  ;;  %v1326_v26 = vsel %vm742_vm0, %v8124_v17, -inf }
 0x205   : > { %v8133_v22 = vadd.f32 %v7358_v20, %v8118_v13  ;;  %v1257_v23 = vpop.f32.mrb[19].mxu0  ;;  %v2620_v25 = vadd.f32 %v1377_v18, %v1374_v21 }
 0x206   : > { %v8136_v24 = vadd.f32 %v8118_v13, %v1257_v23 }
 0x207   : > { %v1383_v28 = vsel %vm742_vm0, %v8133_v22, 0.0  ;;  %v1335_v32 = vsel %vm742_vm0, %v8133_v22, -inf }
 0x208   : > { %v7361_v27 = vpop.f32.mrb[20].mxu0  ;;  %1375 = vadd.xlane.f32.xlu0 %v1374_v21  ;;  %1327 = vmax.xlane.f32.xlu1 %v1326_v26  ;;  %v1380_v29 = vsel %vm742_vm0, %v8136_v24, 0.0  ;;  %v1332_v40 = vsel %vm742_vm0, %v8136_v24, -inf }
 0x209   : > { %v8145_v30 = vadd.f32 %v7361_v27, %v8118_v13  ;;  %v1267_v31 = vpop.f32.mrb[21].mxu0  ;;  %v2621_v33 = vadd.f32 %v2620_v25, %v1380_v29 }
 0x20a   : > { %v8150_v34 = vadd.f32 %v8118_v13, %v1267_v31  ;;  %v753_v31 = vlaneseq }
 0x20b   : > { %v2622_v35 = vadd.f32 %v2621_v33, %v1383_v28  ;;  %v1389_v37 = vsel %vm742_vm0, %v8145_v30, 0.0  ;;  %v1341_v49 = vsel %vm742_vm0, %v8145_v30, -inf }
 0x20c   : > { %v7364_v36 = vpop.f32.mrb[22].mxu0  ;;  %1384 = vadd.xlane.f32.xlu0 %v1383_v28  ;;  %1336 = vmax.xlane.f32.xlu1 %v1335_v32  ;;  %v1386_v38 = vsel %vm742_vm0, %v8150_v34, 0.0  ;;  %v1338_v58 = vsel %vm742_vm0, %v8150_v34, -inf }
 0x20d   : > { %v1277_v39 = vpop.f32.mrb[23].mxu0  ;;  %v2623_v41 = vadd.f32 %v2622_v35, %v1386_v38  ;;  %v8159_v42 = vadd.f32 %v7364_v36, %v8118_v13 }
 0x20e   : > { %v8162_v43 = vadd.f32 %v8118_v13, %v1277_v39 }
 0x20f   : > { %v2624_v44 = vadd.f32 %v2623_v41, %v1389_v37  ;;  %v1395_v52 = vsel %vm742_vm0, %v8159_v42, 0.0  ;;  %v1347_v3 = vsel %vm742_vm0, %v8159_v42, -inf }
 0x210   : > { %1381 = vadd.xlane.f32.xlu0 %v1380_v29  ;;  %v7367_v45 = vpop.f32.mrb[24].mxu0  ;;  %1333 = vmax.xlane.f32.xlu1 %v1332_v40  ;;  %v1392_v46 = vsel %vm742_vm0, %v8162_v43, 0.0  ;;  %v1344_v19 = vsel %vm742_vm0, %v8162_v43, -inf }
 0x211   : > { %v8167_v47 = vadd.f32 %v7367_v45, %v8118_v13  ;;  %v1287_v48 = vpop.f32.mrb[25].mxu0  ;;  %v2625_v50 = vadd.f32 %v2624_v44, %v1392_v46 }
 0x212   : > { %v8172_v51 = vadd.f32 %v8118_v13, %v1287_v48 }
 0x213   : > { %v1401_v53 = vsel %vm742_vm0, %v8167_v47, 0.0  ;;  %v2626_v59 = vadd.f32 %v2625_v50, %v1395_v52  ;;  %v1353_v33 = vsel %vm742_vm0, %v8167_v47, -inf }
 0x214   : > { %v7370_v54 = vpop.f32.mrb[26].mxu0  ;;  %1390 = vadd.xlane.f32.xlu0 %v1389_v37  ;;  %1342 = vmax.xlane.f32.xlu1 %v1341_v49  ;;  %v1398_v55 = vsel %vm742_vm0, %v8172_v51, 0.0  ;;  %v8224_v37 = vshrl.u32 %v753_v31, 7 }
 0x215   : > { %v8181_v56 = vadd.f32 %v7370_v54, %v8118_v13  ;;  %v1297_v57 = vpop.f32.mrb[27].mxu0  ;;  %v2635_v60 = vadd.f32 %v1401_v53, %v1398_v55  ;;  %v2627_v4 = vrot.slane %v2626_v59, 4 }
 0x216   : > { %v8186_v61 = vadd.f32 %v8118_v13, %v1297_v57  ;;  %v766_v41 = vand.u32 7, %v8224_v37 }
 0x217   : > { %v1407_v0 = vsel %vm742_vm0, %v8181_v56, 0.0  ;;  %v2628_v18 = vadd.f32 %v2627_v4, %v2626_v59  ;;  %v1359_v40 = vsel %vm742_vm0, %v8181_v56, -inf }
 0x218   : > { %v7373_v62 = vpop.f32.mrb[28].mxu0  ;;  %1387 = vadd.xlane.f32.xlu0 %v1386_v38  ;;  %1339 = vmax.xlane.f32.xlu1 %v1338_v58  ;;  %v1404_v63 = vsel %vm742_vm0, %v8186_v61, 0.0  ;;  %vm858_vm3 = vcmp.gt.s32.totalorder %v766_v41, 0  ;;  %v1356_v48 = vsel %vm742_vm0, %v8186_v61, -inf  ;;  %vm882_vm8 = vcmp.lt.s32.totalorder %v766_v41, 7 }
 0x219   : > { %v8193_v1 = vadd.f32 %v7373_v62, %v8118_v13  ;;  %v1307_v2 = vpop.f32.mrb[29].mxu0  ;;  %v2636_v5 = vadd.f32 %v2635_v60, %v1404_v63  ;;  %v2629_v27 = vrot.slane %v2628_v18, 2  ;;  %v8232_v50 = vsel %vm858_vm3, 1.0, %v11975_v12 }
 0x21a   : > { %v8202_v6 = vadd.f32 %v8118_v13, %v1307_v2  ;;  %v756_v2 = vadd.s32 16, %v8224_v37 }
 0x21b   : > { %v2637_v7 = vadd.f32 %v2636_v5, %v1407_v0  ;;  %v1413_v11 = vsel %vm742_vm0, %v8193_v1, 0.0  ;;  %v2630_v32 = vadd.f32 %v2629_v27, %v2628_v18  ;;  %v1365_v57 = vsel %vm742_vm0, %v8193_v1, -inf }
 0x21c   : > { %v7376_v8 = vpop.f32.mrb[30].mxu0  ;;  %1396 = vadd.xlane.f32.xlu0 %v1395_v52  ;;  %1348 = vmax.xlane.f32.xlu1 %v1347_v3  ;;  %v1410_v9 = vsel %vm742_vm0, %v8202_v6, 0.0  ;;  %v8234_v52 = vld [vmem:[#allocation2] sm:$0xff]  ;;  %v1362_v59 = vsel %vm742_vm0, %v8202_v6, -inf }
 0x21d   : > { %v8209_v14 = vadd.f32 %v7376_v8, %v8118_v13  ;;  %v1317_v16 = vpop.f32.mrb[31].mxu0  ;;  %v2638_v20 = vadd.f32 %v2637_v7, %v1410_v9  ;;  %v2631_v38 = vrot.slane %v2630_v32, 1  ;;  %v780_v8 = vand.u32 7, %v756_v2 }
 0x21e   : > { %v8214_v21 = vadd.f32 %v8118_v13, %v1317_v16  ;;  %v1350_v13 = vsel %vm742_vm0, %v8172_v51, -inf }
 0x21f   : > { %v2639_v23 = vadd.f32 %v2638_v20, %v1413_v11  ;;  %v1419_v25 = vsel %vm742_vm0, %v8209_v14, 0.0  ;;  %v2632_v45 = vadd.f32 %v2631_v38, %v2630_v32  ;;  %v1371_v60 = vsel %vm742_vm0, %v8209_v14, -inf }
 0x220   : > { %1393 = vadd.xlane.f32.xlu0 %v1392_v46  ;;  %1345 = vmax.xlane.f32.xlu1 %v1344_v19  ;;  %v1416_v26 = vsel %vm742_vm0, %v8214_v21, 0.0  ;;  %v1368_v62 = vsel %vm742_vm0, %v8214_v21, -inf  ;;  %vm884_vm9 = vcmp.lt.s32.totalorder %v780_v8, 7  ;;  %vm8282_vm12 = vcmp.gt.s32.totalorder %v780_v8, 0 }
 0x221   : > { %v2640_v28 = vadd.f32 %v2639_v23, %v1416_v26  ;;  %v2634_v54 = vmul.f32 0.015625, %v2632_v45  ;;  %v7082_v23 = vsel %vm882_vm8, 1.0, %v11975_v12  ;;  %v8280_v45 = vadd.s32 24, %v8224_v37 }
 0x222   : > { %v8264_v31 = vrot.slane %v7082_v23, 6 }
 0x223   : > { %v2641_v29 = vadd.f32 %v2640_v28, %v1419_v25  ;;  %v8262_v28 = vsel %vm884_vm9, 1.0, %v11975_v12 }
 0x224   : > { %1399 = vadd.xlane.f32.xlu0 %v1398_v55  ;;  %1402 = vadd.xlane.f32.xlu1 %v1401_v53  ;;  %v1484_v53 = vmul.f32 %v8232_v50, %v8234_v52 }
 0x225   : > { %v2642_v35 = vrot.slane %v2641_v29, 4 }
 0x226   : > { %1492 = vst.msk [vmem:[#allocation3] sm:$0xff] %vm1456_vm5, %v1484_v53 }
 0x227   : > { %v2643_v36 = vadd.f32 %v2642_v35, %v2641_v29  ;;  %v1572_v35 = vrot.slane %v8262_v28, 6 }
 0x228   : > { %1351 = vmax.xlane.f32.xlu0 %v1350_v13  ;;  %1354 = vmax.xlane.f32.xlu1 %v1353_v33 }
 0x229   : > { %v2644_v39 = vrot.slane %v2643_v36, 2 }
 0x22b   : > { %v2645_v44 = vadd.f32 %v2644_v39, %v2643_v36 }
 0x22c   : > { %1408 = vadd.xlane.f32.xlu0 %v1407_v0  ;;  %1360 = vmax.xlane.f32.xlu1 %v1359_v40  ;;  %v755_v0 = vadd.s32 8, %v8224_v37 }
 0x22d   : > { %v2646_v46 = vrot.slane %v2645_v44, 1 }
 0x22e   : > { %v773_v5 = vand.u32 7, %v755_v0  ;;  %v8307_v0 = vadd.s32 32, %v8224_v37 }
 0x22f   : > { %v2647_v49 = vadd.f32 %v2646_v46, %v2645_v44 }
 0x230   : > { %1405 = vadd.xlane.f32.xlu0 %v1404_v63  ;;  %1357 = vmax.xlane.f32.xlu1 %v1356_v48  ;;  %v2734_v63 = vld [vmem:[%s12030_s8] sm:$0x1]  ;;  %vm883_vm7 = vcmp.lt.s32.totalorder %v773_v5, 7  ;;  %vm859_vm10 = vcmp.gt.s32.totalorder %v773_v5, 0  ;;  %v794_v23 = vand.u32 7, %v8307_v0  ;;  %s12056_s8 = smov 48  }
 0x231   : > { %v2648_v55 = vmul.f32 0.015625, %v2647_v49  ;;  %7385 = vmatpush3.msk.msra.mxu1 %vm2649_vm4, %v2734_v63  ;;  %v7083_v20 = vsel %vm883_vm7, 1.0, %v11975_v12  ;;  %v8270_v38 = vsel %vm859_vm10, 1.0, %v11975_v12  ;;  %v8304_v63 = vsel %vm8282_vm12, 1.0, %v11975_v12 }
 0x232   : > { %v1570_v29 = vrot.slane %v7083_v20, 6  ;;  %vm8342_vm1 = vcmp.gt.s32.totalorder %v794_v23, 0  ;;  %vm886_vm3 = vcmp.lt.s32.totalorder %v794_v23, 7 }
 0x233   : > { %v2650_v58 = vsel %vm2649_vm4, %v2634_v54, %v2648_v55  ;;  %v1593_v55 = vmul.f32 %v8264_v31, %v8234_v52  ;;  %v8423_v0 = vsel %vm886_vm3, 1.0, %v11975_v12  ;;  %vm1891_vm3 = vcmask 130160  }
 0x234   : > { %7382 = vmatmul.mubr.msk.f32.vlgmr.msra.gmra.mrb[32].mxu0 %vm742_vm0, %v2650_v58  ;;  %1414 = vadd.xlane.f32.xlu0 %v1413_v11  ;;  %v8274_v39 = vsel %vm1568_vm11, %v8264_v31, %v1570_v29 }
 0x235   : > { %1366 = vmax.xlane.f32.xlu1 %v1365_v57  ;;  %v8295_v57 = vsel %vm1568_vm11, %v1570_v29, %v1572_v35 }
 0x238   : > { %1411 = vadd.xlane.f32.xlu0 %v1410_v9 }
 0x239   : > { %1363 = vmax.xlane.f32.xlu1 %v1362_v59 }
 0x23c   : > { %1420 = vadd.xlane.f32.xlu0 %v1419_v25 }
 0x23d   : > { %1372 = vmax.xlane.f32.xlu1 %v1371_v60 }
 0x240   : > { %1417 = vadd.xlane.f32.xlu0 %v1416_v26 }
 0x241   : > { %1369 = vmax.xlane.f32.xlu1 %v1368_v62 }
 0x291   : > { %v1379_v3 = vpop.xlane.xlu0 %1378  ;;  %v1331_v4 = vpop.xlane.xlu1 %1330 }
 0x292   : > { %v1424_v7 = vmul.f32 0.0625, %v1379_v3  ;;  %v1510_v3 = vrot.slane %v8234_v52, 1 }
 0x294   : > { %v1441_v9 = vsel %vm1439_vm6, %v1331_v4, %v1424_v7  ;;  %v787_v4 = vand.u32 7, %v8280_v45 }
 0x295   : > { %1458 = vst.msk [vmem:[#allocation2 + $0x11] sm:$0xff] %vm1456_vm5, %v1441_v9  ;;  %v1376_v11 = vpop.xlane.xlu0 %1375  ;;  %v1328_v16 = vpop.xlane.xlu1 %1327  ;;  %v1612_v9 = vrot.slane %v1593_v55, 2 }
 0x296   : > { %v1423_v18 = vmul.f32 0.0625, %v1376_v11  ;;  %vm8332_vm15 = vcmp.gt.s32.totalorder %v787_v4, 0  ;;  %vm885_vm2 = vcmp.lt.s32.totalorder %v787_v4, 7 }
 0x298   : > { %v1440_v19 = vsel %vm1439_vm6, %v1328_v16, %v1423_v18 }
 0x299   : > { %1457 = vst.msk [vmem:[#allocation2 + $0x9] sm:$0xff] %vm1456_vm5, %v1440_v19  ;;  %v1385_v25 = vpop.xlane.xlu0 %1384  ;;  %v1337_v26 = vpop.xlane.xlu1 %1336 }
 0x29a   : > { %v1426_v27 = vmul.f32 0.0625, %v1385_v25 }
 0x29c   : > { %v1443_v32 = vsel %vm1439_vm6, %v1337_v26, %v1426_v27 }
 0x29d   : > { %1460 = vst.msk [vmem:[#allocation2 + $0x21] sm:$0xff] %vm1456_vm5, %v1443_v32  ;;  %v1382_v13 = vpop.xlane.xlu0 %1381  ;;  %v1334_v33 = vpop.xlane.xlu1 %1333 }
 0x29e   : > { %v1425_v36 = vmul.f32 0.0625, %v1382_v13 }
 0x2a0   : > { %v8276_v40 = vld [vmem:[#allocation2 + $0x10] sm:$0xff]  ;;  %v1442_v41 = vsel %vm1439_vm6, %v1334_v33, %v1425_v36  ;;  %v1474_v44 = vld [vmem:[#allocation2 + $0x8] sm:$0xff] }
 0x2a1   : > { %1459 = vst.msk [vmem:[#allocation2 + $0x19] sm:$0xff] %vm1456_vm5, %v1442_v41  ;;  %v1391_v48 = vpop.xlane.xlu0 %1390  ;;  %v1663_v49 = vmul.f32 %v8270_v38, %v8276_v40  ;;  %v1662_v53 = vmul.f32 %v8232_v50, %v1474_v44  ;;  %v1343_v54 = vpop.xlane.xlu1 %1342  ;;  %v1511_v59 = vrot.slane %v1474_v44, 1  ;;  %v1513_v60 = vrot.slane %v8276_v40, 1 }
 0x2a2   : > { %v1428_v58 = vmul.f32 0.0625, %v1391_v48  ;;  %v1594_v62 = vmul.f32 %v8274_v39, %v1474_v44  ;;  %v1815_v7 = vmul.f32 %v8232_v50, %v8276_v40  ;;  %v8317_v11 = vmul.f32 %v8295_v57, %v8276_v40 }
 0x2a3   : > { %1680 = vrot.lane.b32.xlu1 %v1663_v49, %s7811_s26  ;;  %1678 = vrot.lane.b32.xlu0 %v1662_v53, %s7811_s26  ;;  %v1485_v16 = vmul.f32 %v8270_v38, %v1474_v44  ;;  %v1514_v52 = vsel %vm1509_vm13, %v1511_v59, %v1513_v60  ;;  %v1486_v20 = vmul.f32 %v8304_v63, %v8276_v40 }
 0x2a4   : > { %v1445_v2 = vsel %vm1439_vm6, %v1343_v54, %v1428_v58  ;;  %v1613_v19 = vrot.slane %v1594_v62, 2  ;;  %v1512_v27 = vsel %vm1509_vm13, %v1510_v3, %v1511_v59  ;;  %v1747_v13 = vmul.f32 %v8264_v31, %v1474_v44 }
 0x2a5   : > { %1462 = vst.msk [vmem:[#allocation2 + $0x31] sm:$0xff] %vm1456_vm5, %v1445_v2  ;;  %v1388_v5 = vpop.xlane.xlu0 %1387  ;;  %v1340_v8 = vpop.xlane.xlu1 %1339  ;;  %1493 = vst.msk [vmem:[#allocation3 + $0x10] sm:$0xff] %vm1456_vm5, %v1485_v16  ;;  %v1615_v46 = vrot.slane %v8317_v11, 2  ;;  %v8350_v48 = vmul.f32 %v8274_v39, %v8276_v40  ;;  %v8359_v44 = vsel %vm8332_vm15, 1.0, %v11975_v12  ;;  %v8368_v62 = vsel %vm8342_vm1, 1.0, %v11975_v12 }
 0x2a6   : > { %v1427_v18 = vmul.f32 0.0625, %v1388_v5  ;;  %1494 = vst.msk [vmem:[#allocation3 + $0x20] sm:$0xff] %vm1456_vm5, %v1486_v20  ;;  %v1614_v36 = vsel %vm1611_vm14, %v1612_v9, %v1613_v19  ;;  %v1765_v58 = vrot.slane %v1747_v13, 2  ;;  %v7085_v13 = vsel %vm885_vm2, 1.0, %v11975_v12 }
 0x2a7   : > { %1831 = vrot.lane.b32.xlu0 %v1815_v7, %s7812_s6  ;;  %1529 = vrot.lane.b32.xlu1 %v1514_v52, %s7813_s4  ;;  %v1616_v2 = vsel %vm1611_vm14, %v1613_v19, %v1615_v46  ;;  %v1766_v5 = vrot.slane %v8350_v48, 2  ;;  %v1574_v45 = vrot.slane %v7085_v13, 6  ;;  %v8508_v11 = vadd.s32 56, %v8224_v37 }
 0x2a8   : > { %v1444_v25 = vsel %vm1439_vm6, %v1340_v8, %v1427_v18  ;;  %v8352_v49 = vld [vmem:[#allocation2 + $0x18] sm:$0xff]  ;;  %v8362_v54 = vld [vmem:[#allocation2 + $0x20] sm:$0xff]  ;;  %vm1702_vm15 = vcmask 64560   ;;  %vm1738_vm1 = vcmask 80960   ;;  %vm1855_vm2 = vcmask 113760  }
 0x2a9   : > { %1461 = vst.msk [vmem:[#allocation2 + $0x29] sm:$0xff] %vm1456_vm5, %v1444_v25  ;;  %v1397_v29 = vpop.xlane.xlu0 %1396  ;;  %v1349_v32 = vpop.xlane.xlu1 %1348  ;;  %v1487_v7 = vmul.f32 %v8359_v44, %v8352_v49  ;;  %v1488_v9 = vmul.f32 %v8368_v62, %v8362_v54  ;;  %v1816_v16 = vmul.f32 %v8270_v38, %v8352_v49  ;;  %v1767_v20 = vsel %vm1611_vm14, %v1765_v58, %v1766_v5 }
 0x2aa   : > { %v1430_v41 = vmul.f32 0.0625, %v1397_v29  ;;  %v1665_v26 = vmul.f32 %v8359_v44, %v8362_v54  ;;  %v1817_v4 = vmul.f32 %v8304_v63, %v8362_v54 }
 0x2ab   : > { %1629 = vrot.lane.b32.xlu1 %v1614_v36, %s7814_s24  ;;  %1527 = vrot.lane.b32.xlu0 %v1512_v27, %s7813_s4  ;;  %1495 = vst.msk [vmem:[#allocation3 + $0x30] sm:$0xff] %vm1456_vm5, %v1487_v7  ;;  %1496 = vst.msk [vmem:[#allocation3 + $0x40] sm:$0xff] %vm1456_vm5, %v1488_v9  ;;  %v1664_v27 = vmul.f32 %v8304_v63, %v8352_v49  ;;  %v1515_v36 = vrot.slane %v8352_v49, 1 }
 0x2ac   : > { %v1447_v53 = vsel %vm1439_vm6, %v1349_v32, %v1430_v41 }
 0x2ad   : > { %1464 = vst.msk [vmem:[#allocation2 + $0x41] sm:$0xff] %vm1456_vm5, %v1447_v53  ;;  %v1394_v55 = vpop.xlane.xlu0 %1393  ;;  %v1346_v59 = vpop.xlane.xlu1 %1345  ;;  %v1516_v58 = vsel %vm1509_vm13, %v1513_v60, %v1515_v36 }
 0x2ae   : > { %v1429_v3 = vmul.f32 0.0625, %v1394_v55 }
 0x2af   : > { %1631 = vrot.lane.b32.xlu1 %v1616_v2, %s7814_s24  ;;  %1714 = vrot.lane.b32.xlu0 %v1514_v52, %s11981_s0  ;;  %v8414_v2 = vmul.f32 %v8295_v57, %v8352_v49 }
 0x2b0   : > { %v1446_v8 = vsel %vm1439_vm6, %v1346_v59, %v1429_v3  ;;  %v8419_v3 = vadd.s32 40, %v8224_v37 }
 0x2b1   : > { %1463 = vst.msk [vmem:[#allocation2 + $0x39] sm:$0xff] %vm1456_vm5, %v1446_v8  ;;  %v1400_v18 = vpop.xlane.xlu0 %1399  ;;  %v1403_v19 = vpop.xlane.xlu1 %1402  ;;  %v8429_v8 = vsel %vm1568_vm11, %v1572_v35, %v1574_v45 }
 0x2b2   : > { %v1431_v25 = vmul.f32 0.0625, %v1400_v18  ;;  %v1432_v52 = vmul.f32 0.0625, %v1403_v19  ;;  %v1768_v18 = vrot.slane %v8414_v2, 2  ;;  %v1901_v19 = vmul.f32 %v8274_v39, %v8352_v49 }
 0x2b3   : > { %1782 = vrot.lane.b32.xlu0 %v1767_v20, %s7816_s7  ;;  %1833 = vrot.lane.b32.xlu1 %v1816_v16, %s7812_s6  ;;  %v1517_v16 = vrot.slane %v8362_v54, 1  ;;  %v1576_v20 = vrot.slane %v8423_v0, 6  ;;  %v801_v28 = vand.u32 7, %v8419_v3 }
 0x2b4   : > { %v1919_v13 = vrot.slane %v1901_v19, 2 }
 0x2b5   : > { %v1352_v29 = vpop.xlane.xlu0 %1351  ;;  %v1355_v32 = vpop.xlane.xlu1 %1354  ;;  %vm8447_vm4 = vcmp.gt.s32.totalorder %v801_v28, 0  ;;  %vm887_vm9 = vcmp.lt.s32.totalorder %v801_v28, 7 }
 0x2b6   : > { %v1448_v33 = vsel %vm1439_vm6, %v1352_v29, %v1431_v25  ;;  %v1449_v41 = vsel %vm1439_vm6, %v1355_v32, %v1432_v52  ;;  %v1900_v25 = vmul.f32 %v8264_v31, %v8276_v40  ;;  %v1518_v29 = vsel %vm1509_vm13, %v1515_v36, %v1517_v16 }
 0x2b7   : > { %1684 = vrot.lane.b32.xlu1 %v1665_v26, %s7811_s26  ;;  %1682 = vrot.lane.b32.xlu0 %v1664_v27, %s7811_s26  ;;  %1465 = vst.msk [vmem:[#allocation2 + $0x61] sm:$0xff] %vm1456_vm5, %v1448_v33  ;;  %1466 = vst.msk [vmem:[#allocation2 + $0x69] sm:$0xff] %vm1456_vm5, %v1449_v41  ;;  %v1596_v26 = vmul.f32 %v8429_v8, %v8352_v49  ;;  %v1769_v40 = vsel %vm1611_vm14, %v1766_v5, %v1768_v18  ;;  %v8467_v36 = vadd.s32 48, %v8224_v37 }
 0x2b8   : > { %v8464_v49 = vsel %vm1568_vm11, %v1574_v45, %v1576_v20  ;;  %v1918_v41 = vrot.slane %v1900_v25, 2  ;;  %v8480_v45 = vsel %vm8447_vm4, 1.0, %v11975_v12  ;;  %vm1959_vm4 = vcmask 146560  }
 0x2b9   : > { %v1409_v53 = vpop.xlane.xlu0 %1408  ;;  %v1361_v55 = vpop.xlane.xlu1 %1360 }
 0x2ba   : > { %v1434_v59 = vmul.f32 0.0625, %v1409_v53  ;;  %v8475_v53 = vmul.f32 %v8295_v57, %v8362_v54 }
 0x2bb   : > { %1835 = vrot.lane.b32.xlu0 %v1817_v4, %s7812_s6  ;;  %1716 = vrot.lane.b32.xlu1 %v1516_v58, %s11981_s0  ;;  %v8470_v4 = vld [vmem:[#allocation2 + $0x28] sm:$0xff] }
 0x2bc   : > { %v1451_v7 = vsel %vm1439_vm6, %v1361_v55, %v1434_v59  ;;  %v1920_v55 = vsel %vm1611_vm14, %v1918_v41, %v1919_v13  ;;  %v1617_v59 = vrot.slane %v1596_v26, 2  ;;  %v1489_v19 = vmul.f32 %v8480_v45, %v8470_v4  ;;  %v8514_v41 = vld [vmem:[#allocation2 + $0x30] sm:$0xff] }
 0x2bd   : > { %1468 = vst.msk [vmem:[#allocation2 + $0x79] sm:$0xff] %vm1456_vm5, %v1451_v7  ;;  %v1406_v60 = vpop.xlane.xlu0 %1405  ;;  %v1358_v23 = vpop.xlane.xlu1 %1357  ;;  %v1921_v25 = vrot.slane %v8475_v53, 2  ;;  %v1519_v2 = vrot.slane %v8470_v4, 1 }
 0x2be   : > { %v1433_v9 = vmul.f32 0.0625, %v1406_v60  ;;  %v8485_v60 = vmul.f32 %v8464_v49, %v8362_v54  ;;  %1497 = vst.msk [vmem:[#allocation3 + $0x50] sm:$0xff] %vm1456_vm5, %v1489_v19  ;;  %v815_v19 = vand.u32 7, %v8508_v11  ;;  %v8568_v3 = vld [vmem:[#allocation2 + $0x60] sm:$0xff] }
 0x2bf   : > { %1867 = vrot.lane.b32.xlu0 %v1516_v58, %s7817_s28  ;;  %1531 = vrot.lane.b32.xlu1 %v1516_v58, %s7813_s4 }
 0x2c0   : > { %v1450_v35 = vsel %vm1439_vm6, %v1358_v23, %v1433_v9  ;;  %v808_v23 = vand.u32 7, %v8467_v36  ;;  %v1619_v27 = vrot.slane %v8485_v60, 2  ;;  %vm865_vm8 = vcmp.gt.s32.totalorder %v815_v19, 0 }
 0x2c1   : > { %1467 = vst.msk [vmem:[#allocation2 + $0x71] sm:$0xff] %vm1456_vm5, %v1450_v35  ;;  %v1415_v52 = vpop.xlane.xlu0 %1414  ;;  %vm889_vm12 = vcmp.lt.s32.totalorder %v815_v19, 7 }
 0x2c2   : > { %v1436_v32 = vmul.f32 0.0625, %v1415_v52  ;;  %v1367_v33 = vpop.xlane.xlu1 %1366  ;;  %vm864_vm7 = vcmp.gt.s32.totalorder %v808_v23, 0  ;;  %v1618_v52 = vsel %vm1611_vm14, %v1615_v46, %v1617_v59  ;;  %vm888_vm10 = vcmp.lt.s32.totalorder %v808_v23, 7  ;;  %v8573_v23 = vld [vmem:[#allocation2 + $0x68] sm:$0xff] }
 0x2c3   : > { %1869 = vrot.lane.b32.xlu0 %v1518_v29, %s7817_s28  ;;  %1784 = vrot.lane.b32.xlu1 %v1769_v40, %s7816_s7  ;;  %v8511_v46 = vsel %vm864_vm7, 1.0, %v11975_v12  ;;  %v8571_v28 = vsel %vm888_vm10, 1.0, %v11975_v12  ;;  %vm2459_vm7 = vcmask 146432   ;;  %vm3528_vm10 = vcmask 392448  }
 0x2c4   : > { %v1453_v48 = vsel %vm1439_vm6, %v1367_v33, %v1436_v32  ;;  %v8501_v32 = vmul.f32 %v8429_v8, %v8362_v54 }
 0x2c5   : > { %1470 = vst.msk [vmem:[#allocation2 + $0x89] sm:$0xff] %vm1456_vm5, %v1453_v48  ;;  %v1412_v5 = vpop.xlane.xlu0 %1411  ;;  %v1922_v48 = vsel %vm1611_vm14, %v1919_v13, %v1921_v25  ;;  %v1818_v13 = vmul.f32 %v8359_v44, %v8470_v4 }
 0x2c6   : > { %v1435_v58 = vmul.f32 0.0625, %v1412_v5  ;;  %v1364_v7 = vpop.xlane.xlu1 %1363 }
 0x2c7   : > { %1533 = vrot.lane.b32.xlu0 %v1518_v29, %s7813_s4  ;;  %1935 = vrot.lane.b32.xlu1 %v1920_v55, %s11990_s25  ;;  %v1770_v55 = vrot.slane %v8501_v32, 2  ;;  %v8662_v32 = vld [vmem:[#allocation2 + $0x48] sm:$0xff] }
 0x2c8   : > { %v1452_v9 = vsel %vm1439_vm6, %v1364_v7, %v1435_v58  ;;  %v1490_v7 = vmul.f32 %v8511_v46, %v8514_v41  ;;  %v8575_v54 = vld [vmem:[#allocation2 + $0x70] sm:$0xff] }
 0x2c9   : > { %1469 = vst.msk [vmem:[#allocation2 + $0x81] sm:$0xff] %vm1456_vm5, %v1452_v9  ;;  %v1421_v35 = vpop.xlane.xlu0 %1420 }
 0x2ca   : > { %v1438_v26 = vmul.f32 0.0625, %v1421_v35  ;;  %v1373_v40 = vpop.xlane.xlu1 %1372  ;;  %1498 = vst.msk [vmem:[#allocation3 + $0x60] sm:$0xff] %vm1456_vm5, %v1490_v7  ;;  %v8542_v35 = vld [vmem:[#allocation2 + $0x38] sm:$0xff]  ;;  %v1903_v7 = vmul.f32 %v8429_v8, %v8470_v4 }
 0x2cb   : > { %1718 = vrot.lane.b32.xlu0 %v1518_v29, %s11981_s0  ;;  %1633 = vrot.lane.b32.xlu1 %v1618_v52, %s7814_s24  ;;  %v1620_v29 = vsel %vm1611_vm14, %v1617_v59, %v1619_v27  ;;  %v1771_v59 = vsel %vm1611_vm14, %v1768_v18, %v1770_v55  ;;  %v1667_v52 = vmul.f32 %v8480_v45, %v8514_v41 }
 0x2cc   : > { %v1455_v33 = vsel %vm1439_vm6, %v1373_v40, %v1438_v26  ;;  %v1666_v26 = vmul.f32 %v8368_v62, %v8470_v4  ;;  %v8549_v40 = vsel %vm865_vm8, 1.0, %v11975_v12  ;;  %v1923_v10 = vrot.slane %v1903_v7, 2 }
 0x2cd   : > { %1472 = vst.msk [vmem:[#allocation2 + $0x99] sm:$0xff] %vm1456_vm5, %v1455_v33  ;;  %v1418_v36 = vpop.xlane.xlu0 %1417  ;;  %v1491_v18 = vmul.f32 %v8549_v40, %v8542_v35  ;;  %v1819_v33 = vmul.f32 %v8368_v62, %v8514_v41  ;;  %vm2939_vm8 = vcmask 261120  }
 0x2ce   : > { %v1437_v5 = vmul.f32 0.0625, %v1418_v36  ;;  %v1370_v58 = vpop.xlane.xlu1 %1369  ;;  %v1520_v36 = vsel %vm1509_vm13, %v1517_v16, %v1519_v2 }
 0x2cf   : > { %1937 = vrot.lane.b32.xlu0 %v1922_v48, %s11990_s25  ;;  %1635 = vrot.lane.b32.xlu1 %v1620_v29, %s7814_s24  ;;  %v11976_v48 = vrot.slane %v8514_v41, 1  ;;  %1499 = vst.msk [vmem:[#allocation3 + $0x70] sm:$0xff] %vm1456_vm5, %v1491_v18  ;;  %v7087_v29 = vsel %vm887_vm9, 1.0, %v11975_v12  ;;  %v8606_v12 = vmul.f32 %v8464_v49, %v8514_v41  ;;  %vm3460_vm9 = vcmask 261248  }
 0x2d0   : > { %v1454_v9 = vsel %vm1439_vm6, %v1370_v58, %v1437_v5  ;;  %v8577_v16 = vld [vmem:[#allocation2 + $0x80] sm:$0xff]  ;;  %v1578_v5 = vrot.slane %v7087_v29, 6  ;;  %v8602_v29 = vld [vmem:[#allocation2 + $0x88] sm:$0xff] }
 0x2d1   : > { %1471 = vst.msk [vmem:[#allocation2 + $0x91] sm:$0xff] %vm1456_vm5, %v1454_v9  ;;  %v1522_v58 = vsel %vm1509_vm13, %v1519_v2, %v11976_v48  ;;  %v1980_v9 = vmul.f32 %v8270_v38, %v8568_v3  ;;  %v1982_v2 = vmul.f32 %v8359_v44, %v8575_v54  ;;  %v1985_v0 = vmul.f32 %v8511_v46, %v8602_v29 }
 0x2d2   : > { %v8613_v48 = vsel %vm1568_vm11, %v1576_v20, %v1578_v5 }
 0x2d3   : > { %1786 = vrot.lane.b32.xlu0 %v1771_v59, %s7816_s7  ;;  %1837 = vrot.lane.b32.xlu1 %v1818_v13, %s7812_s6  ;;  %v1580_v13 = vrot.slane %v8571_v28, 6  ;;  %v8589_v59 = vld [vmem:[#allocation2 + $0x78] sm:$0xff]  ;;  %1988 = vst.msk [vmem:[#allocation3 + $0x90] sm:$0xff] %vm1456_vm5, %v1980_v9  ;;  %v1751_v9 = vmul.f32 %v8464_v49, %v8470_v4  ;;  %1990 = vst.msk [vmem:[#allocation3 + $0xb0] sm:$0xff] %vm1456_vm5, %v1982_v2 }
 0x2d4   : > { %v1983_v18 = vmul.f32 %v8368_v62, %v8589_v59  ;;  %1993 = vst.msk [vmem:[#allocation3 + $0xe0] sm:$0xff] %vm1456_vm5, %v1985_v0  ;;  %v1668_v0 = vmul.f32 %v8511_v46, %v8542_v35 }
 0x2d5   : > { %v8621_v7 = vsel %vm1568_vm11, %v1578_v5, %v1580_v13  ;;  %v1924_v5 = vsel %vm1611_vm14, %v1921_v25, %v1923_v10  ;;  %v1772_v2 = vrot.slane %v1751_v9, 2 }
 0x2d6   : > { %1991 = vst.msk [vmem:[#allocation3 + $0xc0] sm:$0xff] %vm1456_vm5, %v1983_v18  ;;  %v8640_v18 = vmul.f32 %v8621_v7, %v8514_v41  ;;  %v1753_v28 = vmul.f32 %v8621_v7, %v8542_v35 }
 0x2d7   : > { %1688 = vrot.lane.b32.xlu1 %v1667_v52, %s7811_s26  ;;  %1686 = vrot.lane.b32.xlu0 %v1666_v26, %s7811_s26  ;;  %v1981_v26 = vmul.f32 %v8304_v63, %v8573_v23  ;;  %v1773_v53 = vsel %vm1611_vm14, %v1770_v55, %v1772_v2  ;;  %v1822_v55 = vmul.f32 %v8549_v40, %v8662_v32 }
 0x2d8   : > { %v8591_v52 = vld [vmem:[#allocation2 + $0x90] sm:$0xff]  ;;  %v11978_v25 = vrot.slane %v8640_v18, 2 }
 0x2d9   : > { %1989 = vst.msk [vmem:[#allocation3 + $0xa0] sm:$0xff] %vm1456_vm5, %v1981_v26  ;;  %v1986_v20 = vmul.f32 %v8549_v40, %v8591_v52  ;;  %v1925_v26 = vrot.slane %v8606_v12, 2 }
 0x2db   : > { %1839 = vrot.lane.b32.xlu0 %v1819_v33, %s7812_s6  ;;  %1720 = vrot.lane.b32.xlu1 %v1520_v36, %s11981_s0  ;;  %v1984_v33 = vmul.f32 %v8480_v45, %v8577_v16  ;;  %1994 = vst.msk [vmem:[#allocation3 + $0xf0] sm:$0xff] %vm1456_vm5, %v1986_v20  ;;  %v1483_v20 = vld [vmem:[#allocation2 + $0x50] sm:$0x3] }
 0x2dd   : > { %1992 = vst.msk [vmem:[#allocation3 + $0xd0] sm:$0xff] %vm1456_vm5, %v1984_v33  ;;  %v1926_v33 = vsel %vm1611_vm14, %v1923_v10, %v1925_v26 }
 0x2df   : > { %1871 = vrot.lane.b32.xlu0 %v1520_v36, %s7817_s28  ;;  %1873 = vrot.lane.b32.xlu1 %v1522_v58, %s7817_s28 }
 0x2e3   : > { %1722 = vrot.lane.b32.xlu0 %v1522_v58, %s11981_s0  ;;  %1535 = vrot.lane.b32.xlu1 %v1520_v36, %s7813_s4  ;;  %v1598_v36 = vmul.f32 %v8613_v48, %v8470_v4  ;;  %v8646_v4 = vmul.f32 %v8613_v48, %v8514_v41 }
 0x2e5   : > { %v1621_v12 = vrot.slane %v1598_v36, 2  ;;  %v11977_v10 = vrot.slane %v8646_v4, 2  ;;  %v1481_v36 = vld [vmem:[#allocation2 + $0x40] sm:$0xff] }
 0x2e7   : > { %1939 = vrot.lane.b32.xlu0 %v1924_v5, %s11990_s25  ;;  %1537 = vrot.lane.b32.xlu1 %v1522_v58, %s7813_s4  ;;  %v1622_v58 = vsel %vm1611_vm14, %v1619_v27, %v1621_v12  ;;  %v1624_v9 = vsel %vm1611_vm14, %v1621_v12, %v11978_v25  ;;  %v1775_v60 = vsel %vm1611_vm14, %v1772_v2, %v11977_v10  ;;  %v1523_v12 = vrot.slane %v8542_v35, 1 }
 0x2e8   : > { %v1820_v27 = vmul.f32 %v8480_v45, %v8542_v35  ;;  %v1669_v5 = vmul.f32 %v8549_v40, %v1481_v36  ;;  %v1821_v2 = vmul.f32 %v8511_v46, %v1481_v36 }
 0x2eb   : > { %1941 = vrot.lane.b32.xlu0 %v1926_v33, %s11990_s25  ;;  %1788 = vrot.lane.b32.xlu1 %v1773_v53, %s7816_s7  ;;  %v1712_v33 = vrot.slane %v8662_v32, 1  ;;  %v1865_v53 = vrot.slane %v1483_v20, 1 }
 0x2ef   : > { %1637 = vrot.lane.b32.xlu0 %v1622_v58, %s7814_s24  ;;  %1639 = vrot.lane.b32.xlu1 %v1624_v9, %s7814_s24  ;;  %v1866_v58 = vsel %vm1509_vm13, %v1712_v33, %v1865_v53  ;;  %v12039_v9 = vrot.slane %v8514_v41, 1  ;;  %v7141_v41 = vld [vmem:[#allocation4] ss:$0 sm:$0xff] }
 0x2f3   : > { %1790 = vrot.lane.b32.xlu0 %v1775_v60, %s7816_s7  ;;  %1845 = vrot.lane.b32.xlu1 %v1822_v55, %s7812_s6  ;;  %v1524_v55 = vsel %vm1509_vm13, %v12039_v9, %v1523_v12  ;;  %v1525_v60 = vrot.slane %v1481_v36, 1 }
 0x2f5   : > { %v1713_v19 = vsel %vm1509_vm13, %v1525_v60, %v1712_v33 }
 0x2f7   : > { %1841 = vrot.lane.b32.xlu1 %v1820_v27, %s7812_s6  ;;  %1690 = vrot.lane.b32.xlu0 %v1668_v0, %s7811_s26  ;;  %v12040_v27 = vmov 0.0  }
 0x2f8   : > { %v7089_v0 = vsel %vm889_vm12, 1.0, %v12040_v27  ;;  %vm3577_vm12 = vcmask 523648  }
 0x2f9   : > { %v8697_v11 = vrot.slane %v7089_v0, 6 }
 0x2fb   : > { %1692 = vrot.lane.b32.xlu1 %v1669_v5, %s7811_s26  ;;  %1843 = vrot.lane.b32.xlu0 %v1821_v2, %s7812_s6  ;;  %v1526_v5 = vsel %vm1509_vm13, %v1523_v12, %v1525_v60  ;;  %v1905_v2 = vmul.f32 %v8613_v48, %v8542_v35  ;;  %v8709_v12 = vsel %vm1568_vm11, %v1580_v13, %v8697_v11  ;;  %vm1653_vm11 = vcmask 48160  }
 0x2fc   : > { %v1600_v60 = vmul.f32 %v8709_v12, %v8542_v35  ;;  %v1908_v13 = vmul.f32 %v8697_v11, %v1483_v20  ;;  %v1776_v35 = vrot.slane %v1753_v28, 2 }
 0x2fd   : > { %v1927_v53 = vrot.slane %v1905_v2, 2 }
 0x2ff   : > { %1881 = vrot.lane.b32.xlu1 %v1866_v58, %s7817_s28  ;;  %1875 = vrot.lane.b32.xlu0 %v1524_v55, %s7817_s28  ;;  %v1906_v58 = vmul.f32 %v8621_v7, %v1481_v36  ;;  %v1928_v25 = vsel %vm1611_vm14, %v1925_v26, %v1927_v53  ;;  %v1754_v26 = vmul.f32 %v8709_v12, %v1481_v36 }
 0x301   : > { %v1929_v33 = vrot.slane %v1906_v58, 2  ;;  %v1907_v58 = vmul.f32 %v8709_v12, %v8662_v32 }
 0x303   : > { %1726 = vrot.lane.b32.xlu0 %v1526_v5, %s11981_s0  ;;  %1724 = vrot.lane.b32.xlu1 %v1524_v55, %s11981_s0  ;;  %v1930_v2 = vsel %vm1611_vm14, %v1927_v53, %v1929_v33  ;;  %v1931_v20 = vrot.slane %v1907_v58, 2 }
 0x307   : > { %v2729_v9 = vpop.f32.mrb[32].mxu0  ;;  %1879 = vrot.lane.b32.xlu0 %v1713_v19, %s7817_s28  ;;  %1877 = vrot.lane.b32.xlu1 %v1526_v5, %s7817_s28 }
 0x308   : > { %v2730_v27 = vadd.f32 %v7141_v41, %v2729_v9  ;;  %v7383_v0 = vpop.f32.mrb[33].mxu0  ;;  %v1625_v41 = vrot.slane %v1600_v60, 2  ;;  %v1778_v9 = vrot.slane %v1754_v26, 2  ;;  %v12042_v26 = vrot.slane %v8646_v4, 2 }
 0x30a   : > { %v2733_v10 = vmax.f32 %v2730_v27, 0.0  ;;  %v1779_v0 = vsel %vm1611_vm14, %v1776_v35, %v1778_v9  ;;  %v1777_v58 = vsel %vm1611_vm14, %v12042_v26, %v1776_v35  ;;  %v2007_v26 = vrot.slane %v8573_v23, 1 }
 0x30b   : > { %1943 = vrot.lane.b32.xlu0 %v1928_v25, %s11990_s25  ;;  %1539 = vrot.lane.b32.xlu1 %v1524_v55, %s7813_s4  ;;  %v1933_v25 = vrot.slane %v1908_v13, 2 }
 0x30c   : > { %7387 = vmatmul.mubr.msk.f32.vlgmr.msra.gmra.mrb[0].mxu1 %vm1439_vm6, %v2733_v10  ;;  %v12041_v10 = vrot.slane %v8640_v18, 2  ;;  %vm1551_vm6 = vcmask 31760   ;;  %v1968_v18 = vld [vmem:[#allocation2 + $0x58] sm:$0xff] }
 0x30d   : > { %v1934_v60 = vsel %vm1611_vm14, %v1931_v20, %v1933_v25 }
 0x30e   : > { %v1626_v55 = vsel %vm1611_vm14, %v12041_v10, %v1625_v41 }
 0x30f   : > { %1945 = vrot.lane.b32.xlu0 %v1930_v2, %s11990_s25  ;;  %1541 = vrot.lane.b32.xlu1 %v1526_v5, %s7813_s4  ;;  %v1601_v5 = vmul.f32 %v8697_v11, %v1481_v36  ;;  %v1979_v2 = vmul.f32 %v8232_v50, %v1968_v18  ;;  %v1755_v36 = vmul.f32 %v8697_v11, %v8662_v32 }
 0x311   : > { %v1627_v25 = vrot.slane %v1601_v5, 2  ;;  %1987 = vst.msk [vmem:[#allocation3 + $0x80] sm:$0xff] %vm1456_vm5, %v1979_v2  ;;  %v1780_v35 = vrot.slane %v1755_v36, 2  ;;  %v2005_v5 = vrot.slane %v8568_v3, 1  ;;  %vm1806_vm5 = vcmask 97360  }
 0x312   : > { %v2121_v2 = vmul.f32 %v8270_v38, %v8573_v23 }
 0x313   : > { %1641 = vrot.lane.b32.xlu0 %v1626_v55, %s7814_s24  ;;  %1728 = vrot.lane.b32.xlu1 %v1713_v19, %s11981_s0  ;;  %v1932_v19 = vsel %vm1611_vm14, %v1929_v33, %v1931_v20  ;;  %v2120_v33 = vmul.f32 %v8232_v50, %v8568_v3  ;;  %v1628_v4 = vsel %vm1611_vm14, %v1625_v41, %v1627_v25 }
 0x314   : > { %v1781_v41 = vsel %vm1611_vm14, %v1778_v9, %v1780_v35  ;;  %v2204_v35 = vmul.f32 %v8573_v23, %v8274_v39 }
 0x315   : > { %v1679_v53 = vpop.permute.xlu0 %1678  ;;  %v1681_v27 = vpop.permute.xlu1 %1680 }
 0x317   : > { %1794 = vrot.lane.b32.xlu0 %v1779_v0, %s7816_s7  ;;  %1949 = vrot.lane.b32.xlu1 %v1934_v60, %s11990_s25  ;;  %v2270_v0 = vmul.f32 %v8232_v50, %v8573_v23  ;;  %v2004_v60 = vrot.slane %v1968_v18, 1 }
 0x319   : > { %v1832_v28 = vpop.permute.xlu0 %1831  ;;  %v1530_v13 = vpop.permute.xlu1 %1529  ;;  %v2006_v9 = vsel %vm1509_vm13, %v2004_v60, %v2005_v5 }
 0x31a   : > { %1553 = vst.msk [vmem:[#allocation3 + $0x10] sm:$0xff] %vm1551_vm6, %v1530_v13 }
 0x31b   : > { %1947 = vrot.lane.b32.xlu0 %v1932_v19, %s11990_s25  ;;  %1792 = vrot.lane.b32.xlu1 %v1777_v58, %s7816_s7  ;;  %v2053_v19 = vmul.f32 %v1968_v18, %v8264_v31  ;;  %v8774_v58 = vmul.f32 %v8573_v23, %v8295_v57 }
 0x31d   : > { %v1528_v10 = vpop.permute.xlu0 %1527  ;;  %v1630_v55 = vpop.permute.xlu1 %1629  ;;  %v2071_v36 = vrot.slane %v2053_v19, 2 }
 0x31e   : > { %1552 = vst.msk [vmem:[#allocation3] sm:$0xff] %vm1551_vm6, %v1528_v10  ;;  %v2203_v10 = vmul.f32 %v8568_v3, %v8264_v31 }
 0x31f   : > { %1654 = vst.msk [vmem:[#allocation3] sm:$0xff] %vm1653_vm11, %v1630_v55  ;;  %2136 = vrot.lane.b32.xlu0 %v2120_v33, %s7811_s26  ;;  %1643 = vrot.lane.b32.xlu1 %v1628_v4, %s7814_s24  ;;  %v2008_v55 = vsel %vm1509_vm13, %v2005_v5, %v2007_v26  ;;  %v2074_v4 = vrot.slane %v8774_v58, 2 }
 0x320   : > { %1703 = vst.msk [vmem:[#allocation3] sm:$0xff] %vm1702_vm15, %v1679_v53 }
 0x321   : > { %v1715_v32 = vpop.permute.xlu0 %1714  ;;  %v1632_v20 = vpop.permute.xlu1 %1631 }
 0x322   : > { %1739 = vst.msk [vmem:[#allocation3] sm:$0xff] %vm1738_vm1, %v1715_v32 }
 0x323   : > { %1655 = vst.msk [vmem:[#allocation3 + $0x10] sm:$0xff] %vm1653_vm11, %v1632_v20  ;;  %1796 = vrot.lane.b32.xlu1 %v1781_v41, %s7816_s7  ;;  %2286 = vrot.lane.b32.xlu0 %v2270_v0, %s7812_s6  ;;  %v2221_v0 = vrot.slane %v2203_v10, 2  ;;  %v2222_v41 = vrot.slane %v2204_v35, 2  ;;  %v2009_v10 = vrot.slane %v8575_v54, 1  ;;  %v2272_v35 = vmul.f32 %v8304_v63, %v8589_v59 }
 0x324   : > { %1704 = vst.msk [vmem:[#allocation3 + $0x10] sm:$0xff] %vm1702_vm15, %v1681_v27  ;;  %v2054_v27 = vmul.f32 %v8568_v3, %v8274_v39 }
 0x325   : > { %v1783_v53 = vpop.permute.xlu0 %1782  ;;  %v1834_v13 = vpop.permute.xlu1 %1833 }
 0x326   : > { %1807 = vst.msk [vmem:[#allocation3] sm:$0xff] %vm1806_vm5, %v1783_v53  ;;  %v2072_v33 = vrot.slane %v2054_v27, 2  ;;  %v2271_v53 = vmul.f32 %v8270_v38, %v8575_v54  ;;  %v2123_v27 = vmul.f32 %v8359_v44, %v8589_v59 }
 0x327   : > { %2021 = vrot.lane.b32.xlu0 %v2006_v9, %s7813_s4  ;;  %2138 = vrot.lane.b32.xlu1 %v2121_v2, %s7811_s26  ;;  %1856 = vst.msk [vmem:[#allocation3] sm:$0xff] %vm1855_vm2, %v1832_v28  ;;  %v2223_v2 = vsel %vm1611_vm14, %v2221_v0, %v2222_v41  ;;  %v2353_v0 = vmul.f32 %v8573_v23, %v8264_v31 }
 0x328   : > { %v2073_v20 = vsel %vm1611_vm14, %v2071_v36, %v2072_v33  ;;  %v2075_v3 = vsel %vm1611_vm14, %v2072_v33, %v2074_v4  ;;  %v2122_v36 = vmul.f32 %v8304_v63, %v8575_v54 }
 0x329   : > { %v1683_v18 = vpop.permute.xlu0 %1682  ;;  %v8779_v25 = vpop.permute.xlu1 %1684 }
 0x32b   : > { %2171 = vrot.lane.b32.xlu0 %v2008_v55, %s11981_s0  ;;  %2023 = vrot.lane.b32.xlu1 %v2008_v55, %s7813_s4 }
 0x32d   : > { %v8789_v28 = vpop.permute.xlu0 %1835  ;;  %v1717_v32 = vpop.permute.xlu1 %1716 }
 0x32e   : > { %1740 = vst.msk [vmem:[#allocation3 + $0x10] sm:$0xff] %vm1738_vm1, %v1717_v32  ;;  %v2010_v32 = vsel %vm1509_vm13, %v2007_v26, %v2009_v10  ;;  %v2354_v26 = vmul.f32 %v8575_v54, %v8274_v39 }
 0x32f   : > { %2088 = vrot.lane.b32.xlu0 %v2073_v20, %s7814_s24  ;;  %2090 = vrot.lane.b32.xlu1 %v2075_v3, %s7814_s24 }
 0x331   : > { %v1868_v60 = vpop.permute.xlu0 %1867  ;;  %v1532_v5 = vpop.permute.xlu1 %1531 }
 0x332   : > { %1892 = vst.msk [vmem:[#allocation3] sm:$0xff] %vm1891_vm3, %v1868_v60  ;;  %v2011_v60 = vrot.slane %v8589_v59, 1 }
 0x333   : > { %1554 = vst.msk [vmem:[#allocation3 + $0x20] sm:$0xff] %vm1551_vm6, %v1532_v5  ;;  %2238 = vrot.lane.b32.xlu0 %v2223_v2, %s7816_s7  ;;  %2288 = vrot.lane.b32.xlu1 %v2271_v53, %s7812_s6 }
 0x334   : > { %v2012_v23 = vsel %vm1509_vm13, %v2009_v10, %v2011_v60 }
 0x335   : > { %v1870_v19 = vpop.permute.xlu0 %1869  ;;  %v1785_v9 = vpop.permute.xlu1 %1784 }
 0x336   : > { %1808 = vst.msk [vmem:[#allocation3 + $0x10] sm:$0xff] %vm1806_vm5, %v1785_v9 }
 0x337   : > { %1857 = vst.msk [vmem:[#allocation3 + $0x10] sm:$0xff] %vm1855_vm2, %v1834_v13  ;;  %2142 = vrot.lane.b32.xlu1 %v2123_v27, %s7811_s26  ;;  %2140 = vrot.lane.b32.xlu0 %v2122_v36, %s7811_s26  ;;  %v2205_v13 = vmul.f32 %v8575_v54, %v8295_v57  ;;  %v2056_v27 = vmul.f32 %v8575_v54, %v8429_v8 }
 0x338   : > { %1893 = vst.msk [vmem:[#allocation3 + $0x10] sm:$0xff] %vm1891_vm3, %v1870_v19  ;;  %v2371_v19 = vrot.slane %v2353_v0, 2  ;;  %v8854_v54 = vmul.f32 %v8589_v59, %v8464_v49 }
 0x339   : > { %v1534_v55 = vpop.permute.xlu0 %1533  ;;  %v1936_v33 = vpop.permute.xlu1 %1935  ;;  %v2224_v5 = vrot.slane %v2205_v13, 2  ;;  %v2076_v10 = vrot.slane %v2056_v27, 2  ;;  %v2125_v27 = vmul.f32 %v8480_v45, %v8602_v29 }
 0x33a   : > { %1555 = vst.msk [vmem:[#allocation3 + $0x30] sm:$0xff] %vm1551_vm6, %v1534_v55 }
 0x33b   : > { %1960 = vst.msk [vmem:[#allocation3] sm:$0xff] %vm1959_vm4, %v1936_v33  ;;  %2290 = vrot.lane.b32.xlu0 %v2272_v35, %s7812_s6  ;;  %2173 = vrot.lane.b32.xlu1 %v2010_v32, %s11981_s0  ;;  %v2225_v9 = vsel %vm1611_vm14, %v2222_v41, %v2224_v5  ;;  %v8850_v41 = vmul.f32 %v8589_v59, %v8295_v57 }
 0x33d   : > { %v1719_v20 = vpop.permute.xlu0 %1718  ;;  %v1634_v3 = vpop.permute.xlu1 %1633  ;;  %v2374_v13 = vrot.slane %v8850_v41, 2  ;;  %v8953_v41 = vmul.f32 %v8602_v29, %v8613_v48 }
 0x33e   : > { %1656 = vst.msk [vmem:[#allocation3 + $0x20] sm:$0xff] %vm1653_vm11, %v1634_v3  ;;  %v8867_v3 = vmul.f32 %v8589_v59, %v8429_v8 }
 0x33f   : > { %1705 = vst.msk [vmem:[#allocation3 + $0x20] sm:$0xff] %vm1702_vm15, %v1683_v18  ;;  %2321 = vrot.lane.b32.xlu0 %v2010_v32, %s7817_s28  ;;  %2025 = vrot.lane.b32.xlu1 %v2010_v32, %s7813_s4  ;;  %v2372_v18 = vrot.slane %v2354_v26, 2  ;;  %v2077_v32 = vsel %vm1611_vm14, %v2074_v4, %v2076_v10 }
 0x340   : > { %1741 = vst.msk [vmem:[#allocation3 + $0x20] sm:$0xff] %vm1738_vm1, %v1719_v20  ;;  %v2078_v20 = vrot.slane %v8854_v54, 2  ;;  %v2226_v26 = vrot.slane %v8867_v3, 2 }
 0x341   : > { %v1938_v53 = vpop.permute.xlu0 %1937  ;;  %v1636_v2 = vpop.permute.xlu1 %1635  ;;  %v2373_v33 = vsel %vm1611_vm14, %v2371_v19, %v2372_v18  ;;  %v2375_v58 = vsel %vm1611_vm14, %v2372_v18, %v2374_v13  ;;  %v2273_v19 = vmul.f32 %v8359_v44, %v8577_v16 }
 0x342   : > { %1961 = vst.msk [vmem:[#allocation3 + $0x10] sm:$0xff] %vm1959_vm4, %v1938_v53  ;;  %v2079_v4 = vsel %vm1611_vm14, %v2076_v10, %v2078_v20 }
 0x343   : > { %1657 = vst.msk [vmem:[#allocation3 + $0x30] sm:$0xff] %vm1653_vm11, %v1636_v2  ;;  %2323 = vrot.lane.b32.xlu0 %v2012_v23, %s7817_s28  ;;  %2240 = vrot.lane.b32.xlu1 %v2225_v9, %s7816_s7 }
 0x344   : > { %1706 = vst.msk [vmem:[#allocation3 + $0x30] sm:$0xff] %vm1702_vm15, %v8779_v25 }
 0x345   : > { %v1787_v36 = vpop.permute.xlu0 %1786  ;;  %v1838_v55 = vpop.permute.xlu1 %1837 }
 0x346   : > { %1809 = vst.msk [vmem:[#allocation3 + $0x20] sm:$0xff] %vm1806_vm5, %v1787_v36  ;;  %v2124_v36 = vmul.f32 %v8368_v62, %v8577_v16 }
 0x347   : > { %1858 = vst.msk [vmem:[#allocation3 + $0x20] sm:$0xff] %vm1855_vm2, %v8789_v28  ;;  %2027 = vrot.lane.b32.xlu0 %v2012_v23, %s7813_s4  ;;  %2388 = vrot.lane.b32.xlu1 %v2373_v33, %s11990_s25  ;;  %v2013_v33 = vrot.slane %v8577_v16, 1 }
 0x349   : > { %v1687_v25 = vpop.permute.xlu0 %1686  ;;  %v1689_v35 = vpop.permute.xlu1 %1688 }
 0x34b   : > { %2175 = vrot.lane.b32.xlu0 %v2012_v23, %s11981_s0  ;;  %2092 = vrot.lane.b32.xlu1 %v2077_v32, %s7814_s24  ;;  %v2227_v23 = vsel %vm1611_vm14, %v2224_v5, %v2226_v26  ;;  %v2274_v32 = vmul.f32 %v8368_v62, %v8602_v29 }
 0x34d   : > { %v1840_v28 = vpop.permute.xlu0 %1839  ;;  %v1721_v0 = vpop.permute.xlu1 %1720 }
 0x34e   : > { %1742 = vst.msk [vmem:[#allocation3 + $0x30] sm:$0xff] %vm1738_vm1, %v1721_v0  ;;  %v2014_v0 = vsel %vm1509_vm13, %v2011_v60, %v2013_v33 }
 0x34f   : > { %2390 = vrot.lane.b32.xlu0 %v2375_v58, %s11990_s25  ;;  %2094 = vrot.lane.b32.xlu1 %v2079_v4, %s7814_s24  ;;  %v2015_v58 = vrot.slane %v8602_v29, 1 }
 0x351   : > { %v1872_v53 = vpop.permute.xlu0 %1871  ;;  %v1874_v2 = vpop.permute.xlu1 %1873 }
 0x352   : > { %1894 = vst.msk [vmem:[#allocation3 + $0x20] sm:$0xff] %vm1891_vm3, %v1872_v53 }
 0x353   : > { %2242 = vrot.lane.b32.xlu0 %v2227_v23, %s7816_s7  ;;  %2292 = vrot.lane.b32.xlu1 %v2273_v19, %s7812_s6  ;;  %v2016_v19 = vsel %vm1509_vm13, %v2013_v33, %v2015_v58  ;;  %v2356_v23 = vmul.f32 %v8577_v16, %v8429_v8  ;;  %v2058_v33 = vmul.f32 %v8577_v16, %v8613_v48 }
 0x355   : > { %v1723_v9 = vpop.permute.xlu0 %1722  ;;  %v1536_v18 = vpop.permute.xlu1 %1535 }
 0x356   : > { %1556 = vst.msk [vmem:[#allocation3 + $0x40] sm:$0xff] %vm1551_vm6, %v1536_v18  ;;  %v2376_v18 = vrot.slane %v2356_v23, 2  ;;  %v8975_v23 = vld [vmem:[#allocation2 + $0xa0] sm:$0xff] }
 0x357   : > { %2146 = vrot.lane.b32.xlu1 %v2125_v27, %s7811_s26  ;;  %2144 = vrot.lane.b32.xlu0 %v2124_v36, %s7811_s26  ;;  %v8922_v27 = vmul.f32 %v8602_v29, %v8464_v49  ;;  %v2277_v54 = vmul.f32 %v8549_v40, %v8975_v23 }
 0x359   : > { %v1940_v5 = vpop.permute.xlu0 %1939  ;;  %v1538_v10 = vpop.permute.xlu1 %1537 }
 0x35a   : > { %1962 = vst.msk [vmem:[#allocation3 + $0x20] sm:$0xff] %vm1959_vm4, %v1940_v5 }
 0x35b   : > { %1557 = vst.msk [vmem:[#allocation3 + $0x50] sm:$0xff] %vm1551_vm6, %v1538_v10  ;;  %2294 = vrot.lane.b32.xlu0 %v2274_v32, %s7812_s6  ;;  %2177 = vrot.lane.b32.xlu1 %v2014_v0, %s11981_s0  ;;  %v8942_v10 = vmul.f32 %v8602_v29, %v8621_v7  ;;  %v2080_v32 = vrot.slane %v2058_v33, 2  ;;  %v2275_v33 = vmul.f32 %v8480_v45, %v8591_v52 }
 0x35d   : > { %v1942_v4 = vpop.permute.xlu0 %1941  ;;  %v1789_v53 = vpop.permute.xlu1 %1788 }
 0x35e   : > { %1810 = vst.msk [vmem:[#allocation3 + $0x30] sm:$0xff] %vm1806_vm5, %v1789_v53 }
 0x35f   : > { %1859 = vst.msk [vmem:[#allocation3 + $0x30] sm:$0xff] %vm1855_vm2, %v1838_v55  ;;  %2325 = vrot.lane.b32.xlu0 %v2014_v0, %s7817_s28  ;;  %2327 = vrot.lane.b32.xlu1 %v2016_v19, %s7817_s28  ;;  %v2207_v55 = vmul.f32 %v8577_v16, %v8464_v49 }
 0x360   : > { %1895 = vst.msk [vmem:[#allocation3 + $0x30] sm:$0xff] %vm1891_vm3, %v1874_v2 }
 0x361   : > { %1963 = vst.msk [vmem:[#allocation3 + $0x30] sm:$0xff] %vm1959_vm4, %v1942_v4  ;;  %v1638_v59 = vpop.permute.xlu0 %1637  ;;  %v1640_v60 = vpop.permute.xlu1 %1639  ;;  %v2228_v5 = vrot.slane %v2207_v55, 2 }
 0x362   : > { %1658 = vst.msk [vmem:[#allocation3 + $0x40] sm:$0xff] %vm1653_vm11, %v1638_v59  ;;  %1659 = vst.msk [vmem:[#allocation3 + $0x50] sm:$0xff] %vm1653_vm11, %v1640_v60 }
 0x363   : > { %1707 = vst.msk [vmem:[#allocation3 + $0x40] sm:$0xff] %vm1702_vm15, %v1687_v25  ;;  %1708 = vst.msk [vmem:[#allocation3 + $0x50] sm:$0xff] %vm1702_vm15, %v1689_v35  ;;  %2179 = vrot.lane.b32.xlu0 %v2016_v19, %s11981_s0  ;;  %2029 = vrot.lane.b32.xlu1 %v2014_v0, %s7813_s4  ;;  %v2377_v25 = vsel %vm1611_vm14, %v2374_v13, %v2376_v18  ;;  %v2378_v35 = vrot.slane %v8922_v27, 2  ;;  %v11980_v0 = vrot.slane %v8942_v10, 2 }
 0x364   : > { %1743 = vst.msk [vmem:[#allocation3 + $0x40] sm:$0xff] %vm1738_vm1, %v1723_v9  ;;  %v2209_v27 = vmul.f32 %v8591_v52, %v8621_v7 }
 0x365   : > { %v1791_v2 = vpop.permute.xlu0 %1790  ;;  %v8931_v36 = vpop.permute.xlu1 %1845  ;;  %v2379_v13 = vsel %vm1611_vm14, %v2376_v18, %v2378_v35  ;;  %v2083_v3 = vsel %vm1611_vm14, %v2080_v32, %v11980_v0 }
 0x366   : > { %1811 = vst.msk [vmem:[#allocation3 + $0x40] sm:$0xff] %vm1806_vm5, %v1791_v2  ;;  %v2126_v2 = vmul.f32 %v8511_v46, %v8591_v52 }
 0x367   : > { %1860 = vst.msk [vmem:[#allocation3 + $0x40] sm:$0xff] %vm1855_vm2, %v1840_v28  ;;  %2392 = vrot.lane.b32.xlu0 %v2377_v25, %s11990_s25  ;;  %2031 = vrot.lane.b32.xlu1 %v2016_v19, %s7813_s4  ;;  %v2229_v28 = vsel %vm1611_vm14, %v2226_v26, %v2228_v5  ;;  %v2081_v19 = vsel %vm1611_vm14, %v2078_v20, %v2080_v32  ;;  %v11979_v26 = vrot.slane %v8953_v41, 2  ;;  %v1978_v25 = vld [vmem:[#allocation2 + $0xa8] sm:$0x3] }
 0x369   : > { %v8947_v16 = vpop.permute.xlu0 %1690  ;;  %v8949_v9 = vpop.permute.xlu1 %1841  ;;  %v2231_v20 = vsel %vm1611_vm14, %v2228_v5, %v11979_v26  ;;  %v8996_v5 = vld [vmem:[#allocation2 + $0x98] sm:$0xff] }
 0x36a   : > { %v2276_v32 = vmul.f32 %v8511_v46, %v8996_v5  ;;  %v2019_v26 = vrot.slane %v8996_v5, 1  ;;  %v2359_v0 = vmul.f32 %v8996_v5, %v8621_v7 }
 0x36b   : > { %2394 = vrot.lane.b32.xlu0 %v2379_v13, %s11990_s25  ;;  %2244 = vrot.lane.b32.xlu1 %v2229_v28, %s7816_s7 }
 0x36d   : > { %v8964_v4 = vpop.permute.xlu0 %1843  ;;  %v8966_v53 = vpop.permute.xlu1 %1692 }
 0x36f   : > { %2096 = vrot.lane.b32.xlu0 %v2081_v19, %s7814_s24  ;;  %2098 = vrot.lane.b32.xlu1 %v2083_v3, %s7814_s24  ;;  %v2127_v19 = vmul.f32 %v8549_v40, %v8996_v5  ;;  %v2017_v3 = vrot.slane %v8591_v52, 1 }
 0x371   : > { %v1876_v59 = vpop.permute.xlu0 %1875  ;;  %v8979_v60 = vpop.permute.xlu1 %1881 }
 0x372   : > { %1896 = vst.msk [vmem:[#allocation3 + $0x40] sm:$0xff] %vm1891_vm3, %v1876_v59  ;;  %v2169_v59 = vrot.slane %v8975_v23, 1 }
 0x373   : > { %2246 = vrot.lane.b32.xlu0 %v2231_v20, %s7816_s7  ;;  %2300 = vrot.lane.b32.xlu1 %v2277_v54, %s7812_s6  ;;  %v2319_v54 = vrot.slane %v1978_v25, 1 }
 0x375   : > { %v1727_v18 = vpop.permute.xlu0 %1726  ;;  %v1725_v55 = vpop.permute.xlu1 %1724 }
 0x376   : > { %1744 = vst.msk [vmem:[#allocation3 + $0x50] sm:$0xff] %vm1738_vm1, %v1725_v55 }
 0x377   : > { %2148 = vrot.lane.b32.xlu0 %v2126_v2, %s7811_s26  ;;  %2296 = vrot.lane.b32.xlu1 %v2275_v33, %s7812_s6  ;;  %v2018_v2 = vsel %vm1509_vm13, %v2015_v58, %v2017_v3  ;;  %v2320_v33 = vsel %vm1509_vm13, %v2169_v59, %v2319_v54  ;;  %v2170_v54 = vsel %vm1509_vm13, %v2019_v26, %v2169_v59  ;;  %v2382_v59 = vrot.slane %v2359_v0, 2 }
 0x379   : > { %v1880_v13 = vpop.permute.xlu0 %1879  ;;  %v1878_v28 = vpop.permute.xlu1 %1877 }
 0x37b   : > { %2298 = vrot.lane.b32.xlu0 %v2276_v32, %s7812_s6  ;;  %2150 = vrot.lane.b32.xlu1 %v2127_v19, %s7811_s26  ;;  %s12045_s6 = sld [smem:[#allocation22_spill]]  ;;  %s11988_s26 = smov 64  }
 0x37d   : > { %v1944_v20 = vpop.permute.xlu0 %1943  ;;  %v1540_v55 = vpop.permute.xlu1 %1539 }
 0x37e   : > { %1964 = vst.msk [vmem:[#allocation3 + $0x40] sm:$0xff] %vm1959_vm4, %v1944_v20  ;;  %v2020_v20 = vsel %vm1509_vm13, %v2017_v3, %v2019_v26 }
 0x37f   : > { %1558 = vst.msk [vmem:[#allocation3 + $0x60] sm:$0xff] %vm1551_vm6, %v1540_v55  ;;  %2329 = vrot.lane.b32.xlu0 %v2018_v2, %s7817_s28  ;;  %2335 = vrot.lane.b32.xlu1 %v2320_v33, %s7817_s28  ;;  %v2358_v55 = vmul.f32 %v8591_v52, %v8613_v48 }
 0x381   : > { %v1946_v32 = vpop.permute.xlu0 %1945  ;;  %v1542_v19 = vpop.permute.xlu1 %1541  ;;  %v2380_v33 = vrot.slane %v2358_v55, 2  ;;  %v2060_v55 = vmul.f32 %v8591_v52, %v8709_v12 }
 0x382   : > { %1559 = vst.msk [vmem:[#allocation3 + $0x70] sm:$0xff] %vm1551_vm6, %v1542_v19 }
 0x383   : > { %2183 = vrot.lane.b32.xlu0 %v2020_v20, %s11981_s0  ;;  %2181 = vrot.lane.b32.xlu1 %v2018_v2, %s11981_s0  ;;  %v2381_v26 = vsel %vm1611_vm14, %v2378_v35, %v2380_v33  ;;  %v2361_v35 = vmul.f32 %v1978_v25, %v8697_v11  ;;  %v2383_v0 = vsel %vm1611_vm14, %v2380_v33, %v2382_v59  ;;  %v12043_v33 = vrot.slane %v8942_v10, 2 }
 0x385   : > { %v1642_v29 = vpop.permute.xlu0 %1641  ;;  %v1729_v58 = vpop.permute.xlu1 %1728 }
 0x386   : > { %1660 = vst.msk [vmem:[#allocation3 + $0x60] sm:$0xff] %vm1653_vm11, %v1642_v29  ;;  %v2210_v29 = vmul.f32 %v8996_v5, %v8709_v12 }
 0x387   : > { %1709 = vst.msk [vmem:[#allocation3 + $0x60] sm:$0xff] %vm1702_vm15, %v8947_v16  ;;  %2333 = vrot.lane.b32.xlu0 %v2170_v54, %s7817_s28  ;;  %2331 = vrot.lane.b32.xlu1 %v2020_v20, %s7817_s28 }
 0x388   : > { %1745 = vst.msk [vmem:[#allocation3 + $0x60] sm:$0xff] %vm1738_vm1, %v1727_v18 }
 0x389   : > { %v1795_v3 = vpop.permute.xlu0 %1794  ;;  %v1950_v19 = vpop.permute.xlu1 %1949 }
 0x38a   : > { %1813 = vst.msk [vmem:[#allocation3 + $0x60] sm:$0xff] %vm1806_vm5, %v1795_v3 }
 0x38b   : > { %1862 = vst.msk [vmem:[#allocation3 + $0x60] sm:$0xff] %vm1855_vm2, %v8964_v4  ;;  %2396 = vrot.lane.b32.xlu0 %v2381_v26, %s11990_s25  ;;  %2033 = vrot.lane.b32.xlu1 %v2018_v2, %s7813_s4  ;;  %v2084_v4 = vrot.slane %v2060_v55, 2  ;;  %v2386_v2 = vrot.slane %v2361_v35, 2  ;;  %v2232_v26 = vrot.slane %v2209_v27, 2  ;;  %v2234_v55 = vrot.slane %v2210_v29, 2 }
 0x38c   : > { %1898 = vst.msk [vmem:[#allocation3 + $0x60] sm:$0xff] %vm1891_vm3, %v1880_v13  ;;  %v2360_v13 = vmul.f32 %v8975_v23, %v8709_v12  ;;  %v2211_v27 = vmul.f32 %v8975_v23, %v8697_v11 }
 0x38d   : > { %v1948_v16 = vpop.permute.xlu0 %1947  ;;  %v1793_v18 = vpop.permute.xlu1 %1792  ;;  %v2085_v3 = vsel %vm1611_vm14, %v12043_v33, %v2084_v4  ;;  %v2235_v10 = vsel %vm1611_vm14, %v2232_v26, %v2234_v55 }
 0x38e   : > { %1966 = vst.msk [vmem:[#allocation3 + $0x60] sm:$0xff] %vm1959_vm4, %v1948_v16  ;;  %v2061_v16 = vmul.f32 %v8996_v5, %v8697_v11  ;;  %v12044_v5 = vrot.slane %v8953_v41, 2 }
 0x38f   : > { %1812 = vst.msk [vmem:[#allocation3 + $0x50] sm:$0xff] %vm1806_vm5, %v1793_v18  ;;  %2398 = vrot.lane.b32.xlu0 %v2383_v0, %s11990_s25  ;;  %2035 = vrot.lane.b32.xlu1 %v2020_v20, %s7813_s4  ;;  %v2236_v0 = vrot.slane %v2211_v27, 2  ;;  %s11992_s4 = smov 96  }
 0x390   : > { %1861 = vst.msk [vmem:[#allocation3 + $0x50] sm:$0xff] %vm1855_vm2, %v8949_v9  ;;  %v2384_v9 = vrot.slane %v2360_v13, 2  ;;  %v2233_v18 = vsel %vm1611_vm14, %v12044_v5, %v2232_v26  ;;  %v2420_v26 = vld [vmem:[#allocation3] sm:$0xff] }
 0x391   : > { %1897 = vst.msk [vmem:[#allocation3 + $0x50] sm:$0xff] %vm1891_vm3, %v1878_v28  ;;  %v2137_v52 = vpop.permute.xlu0 %2136  ;;  %v1644_v25 = vpop.permute.xlu1 %1643  ;;  %v2237_v23 = vsel %vm1611_vm14, %v2234_v55, %v2236_v0  ;;  %v9105_v55 = vld [vmem:[%s12045_s6] ss:$0 sm:$0xff]  ;;  %s12053_s6 = smov 16  }
 0x392   : > { %1965 = vst.msk [vmem:[#allocation3 + $0x50] sm:$0xff] %vm1959_vm4, %v1946_v32  ;;  %v2387_v20 = vsel %vm1611_vm14, %v2384_v9, %v2386_v2 }
 0x393   : > { %1661 = vst.msk [vmem:[#allocation3 + $0x70] sm:$0xff] %vm1653_vm11, %v1644_v25  ;;  %2100 = vrot.lane.b32.xlu0 %v2085_v3, %s7814_s24  ;;  %2185 = vrot.lane.b32.xlu1 %v2170_v54, %s11981_s0  ;;  %v2385_v54 = vsel %vm1611_vm14, %v2382_v59, %v2384_v9  ;;  %s11982_s0 = smov 80  }
 0x394   : > { %1710 = vst.msk [vmem:[#allocation3 + $0x70] sm:$0xff] %vm1702_vm15, %v8966_v53 }
 0x395   : > { %1746 = vst.msk [vmem:[#allocation3 + $0x70] sm:$0xff] %vm1738_vm1, %v1729_v58  ;;  %v2287_v28 = vpop.permute.xlu0 %2286  ;;  %v1797_v32 = vpop.permute.xlu1 %1796 }
 0x396   : > { %1814 = vst.msk [vmem:[#allocation3 + $0x70] sm:$0xff] %vm1806_vm5, %v1797_v32  ;;  %v2443_v32 = vmul.f32 %v9105_v55, %v2420_v26 }
 0x397   : > { %1863 = vst.msk [vmem:[#allocation3 + $0x70] sm:$0xff] %vm1855_vm2, %v8931_v36  ;;  %2250 = vrot.lane.b32.xlu0 %v2235_v10, %s7816_s7  ;;  %2402 = vrot.lane.b32.xlu1 %v2387_v20, %s11990_s25  ;;  %v2086_v36 = vrot.slane %v2061_v16, 2  ;;  %v2422_v10 = vld [vmem:[#allocation3 + $0x20] sm:$0xff] }
 0x398   : > { %1899 = vst.msk [vmem:[#allocation3 + $0x70] sm:$0xff] %vm1891_vm3, %v8979_v60 }
 0x399   : > { %1967 = vst.msk [vmem:[#allocation3 + $0x70] sm:$0xff] %vm1959_vm4, %v1950_v19  ;;  %v2022_v53 = vpop.permute.xlu0 %2021  ;;  %v2139_v58 = vpop.permute.xlu1 %2138  ;;  %v2087_v35 = vsel %vm1611_vm14, %v2084_v4, %v2086_v36 }
 0x39a   : > { %2045 = vst.msk [vmem:[#allocation3 + $0x80] sm:$0xff] %vm1551_vm6, %v2022_v53  ;;  %v2460_v53 = vsel %vm2459_vm7, %v2443_v32, 0.0 }
 0x39b   : > { %2400 = vrot.lane.b32.xlu0 %v2385_v54, %s11990_s25  ;;  %2248 = vrot.lane.b32.xlu1 %v2233_v18, %s7816_s7  ;;  %v2423_v54 = vld [vmem:[#allocation3 + $0x30] sm:$0xff] }
 0x39c   : > { %v2446_v27 = vmul.f32 %v9105_v55, %v2423_v54 }
 0x39d   : > { %v2172_v60 = vpop.permute.xlu0 %2171  ;;  %v2024_v19 = vpop.permute.xlu1 %2023 }
 0x39e   : > { %2046 = vst.msk [vmem:[#allocation3 + $0x90] sm:$0xff] %vm1551_vm6, %v2024_v19  ;;  %v2421_v19 = vld [vmem:[#allocation3 + $0x10] sm:$0xff] }
 0x39f   : > { %2102 = vrot.lane.b32.xlu1 %v2087_v35, %s7814_s24  ;;  %s11994_s24 = smov 48  }
 0x3a0   : > { %v2427_v32 = vld [vmem:[#allocation3 + $0x70] sm:$0xff] }
 0x3a1   : > { %v2089_v41 = vpop.permute.xlu0 %2088  ;;  %v2091_v59 = vpop.permute.xlu1 %2090 }
 0x3a2   : > { %2112 = vst.msk [vmem:[#allocation3 + $0x80] sm:$0xff] %vm1653_vm11, %v2089_v41  ;;  %2113 = vst.msk [vmem:[#allocation3 + $0x90] sm:$0xff] %vm1653_vm11, %v2091_v59  ;;  %v2469_v41 = vsel %vm2459_vm7, %v2446_v27, 0.0 }
 0x3a3   : > { %2160 = vst.msk [vmem:[#allocation3 + $0x80] sm:$0xff] %vm1702_vm15, %v2137_v52  ;;  %2161 = vst.msk [vmem:[#allocation3 + $0x90] sm:$0xff] %vm1702_vm15, %v2139_v58  ;;  %2252 = vrot.lane.b32.xlu1 %v2237_v23, %s7816_s7  ;;  %v2445_v58 = vmul.f32 %v9105_v55, %v2422_v10  ;;  %v2444_v23 = vmul.f32 %v9105_v55, %v2421_v19  ;;  %s12054_s7 = smov 64  }
 0x3a4   : > { %2195 = vst.msk [vmem:[#allocation3 + $0x80] sm:$0xff] %vm1738_vm1, %v2172_v60  ;;  %v2424_v60 = vld [vmem:[#allocation3 + $0x40] sm:$0xff] }
 0x3a5   : > { %v2239_v4 = vpop.permute.xlu0 %2238  ;;  %v2289_v29 = vpop.permute.xlu1 %2288  ;;  %v2466_v36 = vsel %vm2459_vm7, %v2445_v58, 0.0  ;;  %v2447_v59 = vmul.f32 %v9105_v55, %v2424_v60  ;;  %v2463_v26 = vsel %vm2459_vm7, %v2444_v23, 0.0  ;;  %v2450_v58 = vmul.f32 %v9105_v55, %v2427_v32 }
 0x3a6   : > { %2262 = vst.msk [vmem:[#allocation3 + $0x80] sm:$0xff] %vm1806_vm5, %v2239_v4  ;;  %v2426_v4 = vld [vmem:[#allocation3 + $0x60] sm:$0xff] }
 0x3a7   : > { %2310 = vst.msk [vmem:[#allocation3 + $0x80] sm:$0xff] %vm1855_vm2, %v2287_v28 }
 0x3a9   : > { %v2141_v13 = vpop.permute.xlu0 %2140  ;;  %v2143_v25 = vpop.permute.xlu1 %2142 }
 0x3ad   : > { %v2291_v2 = vpop.permute.xlu0 %2290  ;;  %v2174_v33 = vpop.permute.xlu1 %2173 }
 0x3ae   : > { %2196 = vst.msk [vmem:[#allocation3 + $0x90] sm:$0xff] %vm1738_vm1, %v2174_v33 }
 0x3b1   : > { %v2322_v3 = vpop.permute.xlu0 %2321  ;;  %v2026_v52 = vpop.permute.xlu1 %2025 }
 0x3b2   : > { %2345 = vst.msk [vmem:[#allocation3 + $0x80] sm:$0xff] %vm1891_vm3, %v2322_v3  ;;  %v2472_v3 = vsel %vm2459_vm7, %v2447_v59, 0.0 }
 0x3b3   : > { %2047 = vst.msk [vmem:[#allocation3 + $0xa0] sm:$0xff] %vm1551_vm6, %v2026_v52  ;;  %v2449_v52 = vmul.f32 %v9105_v55, %v2426_v4 }
 0x3b5   : > { %v2324_v9 = vpop.permute.xlu0 %2323  ;;  %v2241_v28 = vpop.permute.xlu1 %2240 }
 0x3b6   : > { %2263 = vst.msk [vmem:[#allocation3 + $0x90] sm:$0xff] %vm1806_vm5, %v2241_v28 }
 0x3b7   : > { %2311 = vst.msk [vmem:[#allocation3 + $0x90] sm:$0xff] %vm1855_vm2, %v2289_v29  ;;  %v2425_v29 = vld [vmem:[#allocation3 + $0x50] sm:$0xff] }
 0x3b8   : > { %2346 = vst.msk [vmem:[#allocation3 + $0x90] sm:$0xff] %vm1891_vm3, %v2324_v9  ;;  %v2448_v9 = vmul.f32 %v9105_v55, %v2425_v29 }
 0x3b9   : > { %v2028_v20 = vpop.permute.xlu0 %2027  ;;  %v2389_v16 = vpop.permute.xlu1 %2388 }
 0x3ba   : > { %2048 = vst.msk [vmem:[#allocation3 + $0xb0] sm:$0xff] %vm1551_vm6, %v2028_v20  ;;  %2461 = vadd.xlane.f32.xlu0 %v2460_v53  ;;  %v2478_v20 = vsel %vm2459_vm7, %v2449_v52, 0.0  ;;  %v2475_v53 = vsel %vm2459_vm7, %v2448_v9, 0.0 }
 0x3bb   : > { %2412 = vst.msk [vmem:[#allocation3 + $0x80] sm:$0xff] %vm1959_vm4, %v2389_v16 }
 0x3bd   : > { %v2176_v5 = vpop.permute.xlu0 %2175  ;;  %v2093_v18 = vpop.permute.xlu1 %2092 }
 0x3be   : > { %2114 = vst.msk [vmem:[#allocation3 + $0xa0] sm:$0xff] %vm1653_vm11, %v2093_v18  ;;  %2467 = vadd.xlane.f32.xlu0 %v2466_v36 }
 0x3bf   : > { %2162 = vst.msk [vmem:[#allocation3 + $0xa0] sm:$0xff] %vm1702_vm15, %v2141_v13 }
 0x3c0   : > { %2197 = vst.msk [vmem:[#allocation3 + $0xa0] sm:$0xff] %vm1738_vm1, %v2176_v5 }
 0x3c1   : > { %v2391_v35 = vpop.permute.xlu0 %2390  ;;  %v2095_v0 = vpop.permute.xlu1 %2094 }
 0x3c2   : > { %2413 = vst.msk [vmem:[#allocation3 + $0x90] sm:$0xff] %vm1959_vm4, %v2391_v35  ;;  %2470 = vadd.xlane.f32.xlu0 %v2469_v41  ;;  %v2428_v28 = vld [vmem:[#allocation3 + $0x80] sm:$0xff] }
 0x3c3   : > { %2115 = vst.msk [vmem:[#allocation3 + $0xb0] sm:$0xff] %vm1653_vm11, %v2095_v0  ;;  %v2451_v16 = vmul.f32 %v9105_v55, %v2428_v28 }
 0x3c4   : > { %2163 = vst.msk [vmem:[#allocation3 + $0xb0] sm:$0xff] %vm1702_vm15, %v2143_v25 }
 0x3c5   : > { %v2243_v13 = vpop.permute.xlu0 %2242  ;;  %v2293_v33 = vpop.permute.xlu1 %2292  ;;  %v2484_v36 = vsel %vm2459_vm7, %v2451_v16, 0.0 }
 0x3c6   : > { %2264 = vst.msk [vmem:[#allocation3 + $0xa0] sm:$0xff] %vm1806_vm5, %v2243_v13  ;;  %2473 = vadd.xlane.f32.xlu0 %v2472_v3 }
 0x3c7   : > { %2312 = vst.msk [vmem:[#allocation3 + $0xa0] sm:$0xff] %vm1855_vm2, %v2291_v2  ;;  %2464 = vadd.xlane.f32.xlu1 %v2463_v26  ;;  %v2481_v2 = vsel %vm2459_vm7, %v2450_v58, 0.0 }
 0x3c9   : > { %v2145_v25 = vpop.permute.xlu0 %2144  ;;  %v2147_v10 = vpop.permute.xlu1 %2146  ;;  %v2429_v54 = vld [vmem:[#allocation3 + $0x90] sm:$0xff] }
 0x3ca   : > { %2479 = vadd.xlane.f32.xlu0 %v2478_v20  ;;  %v2452_v27 = vmul.f32 %v9105_v55, %v2429_v54 }
 0x3cb   : > { %2476 = vadd.xlane.f32.xlu1 %v2475_v53 }
 0x3cc   : > { %v2487_v35 = vsel %vm2459_vm7, %v2452_v27, 0.0 }
 0x3cd   : > { %v2295_v5 = vpop.permute.xlu0 %2294  ;;  %v2178_v18 = vpop.permute.xlu1 %2177 }
 0x3ce   : > { %2198 = vst.msk [vmem:[#allocation3 + $0xb0] sm:$0xff] %vm1738_vm1, %v2178_v18  ;;  %2485 = vadd.xlane.f32.xlu0 %v2484_v36 }
 0x3cf   : > { %2482 = vadd.xlane.f32.xlu1 %v2481_v2 }
 0x3d1   : > { %v2326_v60 = vpop.permute.xlu0 %2325  ;;  %v2328_v19 = vpop.permute.xlu1 %2327 }
 0x3d2   : > { %2347 = vst.msk [vmem:[#allocation3 + $0xa0] sm:$0xff] %vm1891_vm3, %v2326_v60 }
 0x3d3   : > { %2488 = vadd.xlane.f32.xlu1 %v2487_v35 }
 0x3d5   : > { %v2180_v0 = vpop.permute.xlu0 %2179  ;;  %v2030_v41 = vpop.permute.xlu1 %2029 }
 0x3d6   : > { %2049 = vst.msk [vmem:[#allocation3 + $0xc0] sm:$0xff] %vm1551_vm6, %v2030_v41 }
 0x3d9   : > { %v2393_v59 = vpop.permute.xlu0 %2392  ;;  %v2032_v23 = vpop.permute.xlu1 %2031 }
 0x3da   : > { %2414 = vst.msk [vmem:[#allocation3 + $0xa0] sm:$0xff] %vm1959_vm4, %v2393_v59 }
 0x3db   : > { %2050 = vst.msk [vmem:[#allocation3 + $0xd0] sm:$0xff] %vm1551_vm6, %v2032_v23 }
 0x3dd   : > { %v2395_v4 = vpop.permute.xlu0 %2394  ;;  %v2245_v29 = vpop.permute.xlu1 %2244 }
 0x3de   : > { %2265 = vst.msk [vmem:[#allocation3 + $0xb0] sm:$0xff] %vm1806_vm5, %v2245_v29 }
 0x3df   : > { %2313 = vst.msk [vmem:[#allocation3 + $0xb0] sm:$0xff] %vm1855_vm2, %v2293_v33  ;;  %v2814_v13 = vpop.f32.mrb[0].mxu1 }
 0x3e0   : > { %2348 = vst.msk [vmem:[#allocation3 + $0xb0] sm:$0xff] %vm1891_vm3, %v2328_v19  ;;  %v7388_v3 = vpop.f32.mrb[1].mxu1 }
 0x3e1   : > { %2415 = vst.msk [vmem:[#allocation3 + $0xb0] sm:$0xff] %vm1959_vm4, %v2395_v4  ;;  %v2097_v52 = vpop.permute.xlu0 %2096  ;;  %v2099_v26 = vpop.permute.xlu1 %2098  ;;  %v2430_v9 = vld [vmem:[#allocation3 + $0xa0] sm:$0xff] }
 0x3e2   : > { %2116 = vst.msk [vmem:[#allocation3 + $0xc0] sm:$0xff] %vm1653_vm11, %v2097_v52  ;;  %2117 = vst.msk [vmem:[#allocation3 + $0xd0] sm:$0xff] %vm1653_vm11, %v2099_v26  ;;  %v2453_v28 = vmul.f32 %v9105_v55, %v2430_v9 }
 0x3e3   : > { %2164 = vst.msk [vmem:[#allocation3 + $0xc0] sm:$0xff] %vm1702_vm15, %v2145_v25  ;;  %2165 = vst.msk [vmem:[#allocation3 + $0xd0] sm:$0xff] %vm1702_vm15, %v2147_v10  ;;  %v7143_v25 = vld [vmem:[%s12046_s9] ss:$0 sm:$0xff] }
 0x3e4   : > { %2199 = vst.msk [vmem:[#allocation3 + $0xc0] sm:$0xff] %vm1738_vm1, %v2180_v0  ;;  %v2490_v33 = vsel %vm2459_vm7, %v2453_v28, 0.0  ;;  %v2815_v2 = vadd.f32 %v7143_v25, %v2814_v13 }
 0x3e5   : > { %v2247_v32 = vpop.permute.xlu0 %2246  ;;  %2491 = vadd.xlane.f32.xlu0 %v2490_v33  ;;  %v9156_v20 = vpop.permute.xlu1 %2300 }
 0x3e6   : > { %2266 = vst.msk [vmem:[#allocation3 + $0xc0] sm:$0xff] %vm1806_vm5, %v2247_v32  ;;  %v7146_v19 = vmul.f32 -1.442695, %v2815_v2 }
 0x3e7   : > { %2314 = vst.msk [vmem:[#allocation3 + $0xc0] sm:$0xff] %vm1855_vm2, %v2295_v5 }
 0x3e8   : > { %v2431_v16 = vld [vmem:[#allocation3 + $0xb0] sm:$0xff]  ;;  %7623 = vpow2.f32 %v7146_v19 }
 0x3e9   : > { %v2149_v53 = vpop.permute.xlu0 %2148  ;;  %v2297_v58 = vpop.permute.xlu1 %2296  ;;  %v2454_v54 = vmul.f32 %v9105_v55, %v2431_v16 }
 0x3eb   : > { %v2493_v10 = vsel %vm2459_vm7, %v2454_v54, 0.0 }
 0x3ec   : > { %2494 = vadd.xlane.f32.xlu1 %v2493_v10 }
 0x3ed   : > { %v2299_v18 = vpop.permute.xlu0 %2298  ;;  %v2151_v36 = vpop.permute.xlu1 %2150 }
 0x3f1   : > { %v2330_v27 = vpop.permute.xlu0 %2329  ;;  %v2336_v60 = vpop.permute.xlu1 %2335 }
 0x3f2   : > { %2349 = vst.msk [vmem:[#allocation3 + $0xc0] sm:$0xff] %vm1891_vm3, %v2330_v27  ;;  %v7624_v4 = vpop.eup %7623 }
 0x3f3   : > { %v2821_v3 = vadd.f32 1.0, %v7624_v4  ;;  %v2931_v4 = vld [vmem:[%s12047_s10 + $0x18] sm:$0xff] }
 0x3f5   : > { %v2184_v5 = vpop.permute.xlu0 %2183  ;;  %v2182_v35 = vpop.permute.xlu1 %2181  ;;  %7625 = vrcp.f32 %v2821_v3 }
 0x3f6   : > { %2200 = vst.msk [vmem:[#allocation3 + $0xd0] sm:$0xff] %vm1738_vm1, %v2182_v35 }
 0x3f9   : > { %v2334_v0 = vpop.permute.xlu0 %2333  ;;  %v2332_v41 = vpop.permute.xlu1 %2331 }
 0x3fd   : > { %v2397_v59 = vpop.permute.xlu0 %2396  ;;  %v2034_v23 = vpop.permute.xlu1 %2033 }
 0x3fe   : > { %2416 = vst.msk [vmem:[#allocation3 + $0xc0] sm:$0xff] %vm1959_vm4, %v2397_v59 }
 0x3ff   : > { %2051 = vst.msk [vmem:[#allocation3 + $0xe0] sm:$0xff] %vm1551_vm6, %v2034_v23  ;;  %v7626_v10 = vpop.eup %7625  ;;  %v2930_v23 = vld [vmem:[%s12047_s10 + $0x10] sm:$0xff] }
 0x401   : > { %v2399_v29 = vpop.permute.xlu0 %2398  ;;  %v2036_v13 = vpop.permute.xlu1 %2035 }
 0x402   : > { %2052 = vst.msk [vmem:[#allocation3 + $0xf0] sm:$0xff] %vm1551_vm6, %v2036_v13  ;;  %v7464_v13 = vpack.c.bf16 %v2931_v4, %v2930_v23  ;;  %vm3613_vm6 = vcmask 654848  }
 0x405   : > { %v2101_v52 = vpop.permute.xlu0 %2100  ;;  %v2186_v26 = vpop.permute.xlu1 %2185  ;;  %v2432_v9 = vld [vmem:[#allocation3 + $0xc0] sm:$0xff] }
 0x406   : > { %2118 = vst.msk [vmem:[#allocation3 + $0xe0] sm:$0xff] %vm1653_vm11, %v2101_v52  ;;  %v2455_v28 = vmul.f32 %v9105_v55, %v2432_v9  ;;  %v12048_v52 = vmov 0.0|0.0  }
 0x407   : > { %2166 = vst.msk [vmem:[#allocation3 + $0xe0] sm:$0xff] %vm1702_vm15, %v2149_v53  ;;  %v2826_v53 = vsub.s32 0, %v8224_v37 }
 0x408   : > { %2201 = vst.msk [vmem:[#allocation3 + $0xe0] sm:$0xff] %vm1738_vm1, %v2184_v5  ;;  %v2496_v33 = vsel %vm2459_vm7, %v2455_v28, 0.0 }
 0x409   : > { %v2251_v32 = vpop.permute.xlu0 %2250  ;;  %2497 = vadd.xlane.f32.xlu1 %v2496_v33  ;;  %v2403_v16 = vpop.permute.xlu1 %2402 }
 0x40a   : > { %2268 = vst.msk [vmem:[#allocation3 + $0xe0] sm:$0xff] %vm1806_vm5, %v2251_v32 }
 0x40b   : > { %2316 = vst.msk [vmem:[#allocation3 + $0xe0] sm:$0xff] %vm1855_vm2, %v2299_v18  ;;  %v2827_v18 = vrot.slane %v7626_v10, %v2826_v53 }
 0x40c   : > { %2351 = vst.msk [vmem:[#allocation3 + $0xe0] sm:$0xff] %vm1891_vm3, %v2334_v0 }
 0x40d   : > { %v2401_v54 = vpop.permute.xlu0 %2400  ;;  %v2249_v25 = vpop.permute.xlu1 %2248  ;;  %v2835_v35 = vmul.f32 %v2827_v18, %v8133_v22  ;;  %v2834_v59 = vmul.f32 %v2827_v18, %v8136_v24  ;;  %v2837_v33 = vmul.f32 %v2827_v18, %v8145_v30  ;;  %v2839_v53 = vmul.f32 %v2827_v18, %v8159_v42 }
 0x40e   : > { %2418 = vst.msk [vmem:[#allocation3 + $0xe0] sm:$0xff] %vm1959_vm4, %v2401_v54  ;;  %v2838_v54 = vmul.f32 %v2827_v18, %v8162_v43 }
 0x40f   : > { %2267 = vst.msk [vmem:[#allocation3 + $0xd0] sm:$0xff] %vm1806_vm5, %v2249_v25 }
 0x410   : > { %2315 = vst.msk [vmem:[#allocation3 + $0xd0] sm:$0xff] %vm1855_vm2, %v2297_v58  ;;  %v2833_v58 = vmul.f32 %v2827_v18, %v8121_v15 }
 0x411   : > { %2350 = vst.msk [vmem:[#allocation3 + $0xd0] sm:$0xff] %vm1891_vm3, %v2332_v41  ;;  %v2103_v2 = vpop.permute.xlu1 %2102  ;;  %v2832_v41 = vmul.f32 %v2827_v18, %v8124_v17 }
 0x412   : > { %2417 = vst.msk [vmem:[#allocation3 + $0xd0] sm:$0xff] %vm1959_vm4, %v2399_v29 }
 0x413   : > { %2119 = vst.msk [vmem:[#allocation3 + $0xf0] sm:$0xff] %vm1653_vm11, %v2103_v2  ;;  %vm3681_vm11 = vcmask 786048  }
 0x414   : > { %2167 = vst.msk [vmem:[#allocation3 + $0xf0] sm:$0xff] %vm1702_vm15, %v2151_v36  ;;  %vm3730_vm15 = vcmask 917248  }
 0x415   : > { %2202 = vst.msk [vmem:[#allocation3 + $0xf0] sm:$0xff] %vm1738_vm1, %v2186_v26  ;;  %v2253_v27 = vpop.permute.xlu1 %2252  ;;  %v2434_v29 = vld [vmem:[#allocation3 + $0xe0] sm:$0xff]  ;;  %vm3766_vm1 = vcmask 1048448  }
 0x416   : > { %2269 = vst.msk [vmem:[#allocation3 + $0xf0] sm:$0xff] %vm1806_vm5, %v2253_v27  ;;  %v2457_v3 = vmul.f32 %v9105_v55, %v2434_v29 }
 0x417   : > { %2317 = vst.msk [vmem:[#allocation3 + $0xf0] sm:$0xff] %vm1855_vm2, %v9156_v20  ;;  %v2928_v20 = vld [vmem:[%s12047_s10] sm:$0xff] }
 0x418   : > { %2352 = vst.msk [vmem:[#allocation3 + $0xf0] sm:$0xff] %vm1891_vm3, %v2336_v60  ;;  %v2929_v60 = vld [vmem:[%s12047_s10 + $0x8] sm:$0xff]  ;;  %v2502_v26 = vsel %vm2459_vm7, %v2457_v3, 0.0 }
 0x419   : > { %v2433_v19 = vld [vmem:[#allocation3 + $0xd0] sm:$0xff]  ;;  %2419 = vst.msk [vmem:[#allocation3 + $0xf0] sm:$0xff] %vm1959_vm4, %v2403_v16  ;;  %v7460_v0 = vpack.c.bf16 %v2929_v60, %v2928_v20  ;;  %v2830_v16 = vsub.s32 1, %v8224_v37 }
 0x41a   : > { %v2456_v5 = vmul.f32 %v9105_v55, %v2433_v19  ;;  %2866 = vrot.lane.b32.xlu1 %v2833_v58, %s11990_s25 }
 0x41b   : > { %7461 = vmatprep.subr.bf16.mxu0 %v7460_v0  ;;  %v2831_v25 = vrot.slane %v7626_v10, %v2830_v16  ;;  %v2836_v10 = vmul.f32 %v2827_v18, %v8150_v34 }
 0x41c   : > { %v2499_v36 = vsel %vm2459_vm7, %v2456_v5, 0.0  ;;  %7463 = vmatpush3.bf16.msra.mxu0 %v7460_v0 }
 0x41d   : > { %2500 = vadd.xlane.f32.xlu0 %v2499_v36  ;;  %7465 = vmatprep.subr.bf16.mxu0 %v7464_v13  ;;  %v2843_v2 = vmul.f32 %v2831_v25, %v8181_v56  ;;  %v2845_v37 = vmul.f32 %v2831_v25, %v8193_v1  ;;  %v2847_v27 = vmul.f32 %v2831_v25, %v8209_v14 }
 0x41e   : > { %2870 = vrot.lane.b32.xlu1 %v2835_v35, %s11990_s25  ;;  %v2840_v58 = vmul.f32 %v2831_v25, %v8172_v51  ;;  %v2842_v19 = vmul.f32 %v2831_v25, %v8186_v61  ;;  %v2844_v5 = vmul.f32 %v2831_v25, %v8202_v6  ;;  %v2846_v36 = vmul.f32 %v2831_v25, %v8214_v21 }
 0x420   : > { %7467 = vmatpush3.bf16.msra.mxu0 %v7464_v13  ;;  %v2435_v9 = vld [vmem:[#allocation3 + $0xf0] sm:$0xff] }
 0x421   : > { %7499 = vmatprep.subr.bf16.mxu0 %v12048_v52  ;;  %v2458_v28 = vmul.f32 %v9105_v55, %v2435_v9  ;;  %v2841_v55 = vmul.f32 %v2831_v25, %v8167_v47 }
 0x423   : > { %v2505_v32 = vsel %vm2459_vm7, %v2458_v28, 0.0 }
 0x433   : > { %2864 = vrot.lane.b32.xlu0 %v2832_v41, %s11990_s25 }
 0x437   : > { %2868 = vrot.lane.b32.xlu0 %v2834_v59, %s11990_s25 }
 0x442   : > { %2503 = vadd.xlane.f32.xlu1 %v2502_v26 }
 0x447   : > { %v2462_v18 = vpop.xlane.xlu0 %2461 }
 0x448   : > { %v7125_v60 = vmul.f32 -1.442695, %v2462_v18 }
 0x44a   : > { %7627 = vpow2.f32 %v7125_v60 }
 0x44b   : > { %v2468_v35 = vpop.xlane.xlu0 %2467 }
 0x44c   : > { %v7127_v59 = vmul.f32 -1.442695, %v2468_v35 }
 0x44f   : > { %v2471_v41 = vpop.xlane.xlu0 %2470 }
 0x450   : > { %v7128_v23 = vmul.f32 -1.442695, %v2471_v41 }
 0x453   : > { %2874 = vrot.lane.b32.xlu1 %v2837_v33, %s11990_s25  ;;  %v2474_v29 = vpop.xlane.xlu0 %2473 }
 0x454   : > { %v2465_v20 = vpop.xlane.xlu1 %2464  ;;  %v7628_v3 = vpop.eup %7627 }
 0x455   : > { %v7126_v0 = vmul.f32 -1.442695, %v2465_v20  ;;  %v2556_v9 = vadd.f32 1.0, %v7628_v3 }
 0x456   : > { %2506 = vadd.xlane.f32.xlu0 %v2505_v32 }
 0x457   : > { %2876 = vrot.lane.b32.xlu1 %v2838_v54, %s11990_s25  ;;  %7629 = vpow2.f32 %v7126_v0  ;;  %v2480_v28 = vpop.xlane.xlu0 %2479 }
 0x458   : > { %v2477_v4 = vpop.xlane.xlu1 %2476  ;;  %7631 = vpow2.f32 %v7127_v59 }
 0x459   : > { %7633 = vpow2.f32 %v7128_v23 }
 0x45a   : > { %7635 = vrcp.f32 %v2556_v9  ;;  %v7129_v9 = vmul.f32 -1.442695, %v2474_v29 }
 0x45b   : > { %2878 = vrot.lane.b32.xlu1 %v2839_v53, %s11990_s25 }
 0x45c   : > { %v2483_v13 = vpop.xlane.xlu1 %2482 }
 0x45f   : > { %2882 = vrot.lane.b32.xlu1 %v2841_v55, %s11990_s25 }
 0x460   : > { %v2489_v16 = vpop.xlane.xlu1 %2488 }
 0x461   : > { %v7630_v26 = vpop.eup %7629 }
 0x462   : > { %v7632_v33 = vpop.eup %7631  ;;  %v2557_v32 = vadd.f32 1.0, %v7630_v26 }
 0x463   : > { %2886 = vrot.lane.b32.xlu1 %v2843_v2, %s11990_s25  ;;  %v7634_v54 = vpop.eup %7633  ;;  %v2558_v25 = vadd.f32 1.0, %v7632_v33  ;;  %v2486_v2 = vpop.xlane.xlu0 %2485  ;;  %v7130_v33 = vmul.f32 -1.442695, %v2477_v4 }
 0x464   : > { %v2559_v53 = vadd.f32 1.0, %v7634_v54  ;;  %7637 = vrcp.f32 %v2557_v32  ;;  %v7131_v32 = vmul.f32 -1.442695, %v2480_v28  ;;  %v7132_v54 = vmul.f32 -1.442695, %v2483_v13 }
 0x465   : > { %7639 = vrcp.f32 %v2558_v25  ;;  %v7133_v25 = vmul.f32 -1.442695, %v2486_v2 }
 0x466   : > { %7641 = vrcp.f32 %v2559_v53 }
 0x467   : > { %2890 = vrot.lane.b32.xlu1 %v2845_v37, %s11990_s25  ;;  %7643 = vpow2.f32 %v7129_v9 }
 0x468   : > { %7645 = vpow2.f32 %v7130_v33 }
 0x469   : > { %7647 = vpow2.f32 %v7131_v32 }
 0x46a   : > { %7649 = vpow2.f32 %v7132_v54 }
 0x46b   : > { %2894 = vrot.lane.b32.xlu1 %v2847_v27, %s11990_s25  ;;  %7651 = vpow2.f32 %v7133_v25 }
 0x46c   : > { %2872 = vrot.lane.b32.xlu0 %v2836_v10, %s11990_s25  ;;  %v7636_v10 = vpop.eup %7635 }
 0x470   : > { %2880 = vrot.lane.b32.xlu0 %v2840_v58, %s11990_s25 }
 0x472   : > { %v2492_v27 = vpop.xlane.xlu0 %2491 }
 0x474   : > { %2884 = vrot.lane.b32.xlu0 %v2842_v19, %s11990_s25  ;;  %v7638_v19 = vpop.eup %7637 }
 0x475   : > { %v7640_v18 = vpop.eup %7639  ;;  %v2605_v35 = vmul.f32 %v7638_v19, %v8121_v15 }
 0x476   : > { %v7642_v60 = vpop.eup %7641  ;;  %v2606_v23 = vmul.f32 %v7640_v18, %v8136_v24  ;;  %v7134_v24 = vmul.f32 -1.442695, %v2489_v16 }
 0x477   : > { %v2607_v3 = vmul.f32 %v7642_v60, %v8133_v22  ;;  %v7135_v22 = vmul.f32 -1.442695, %v2492_v27  ;;  %v7644_v53 = vpop.eup %7643 }
 0x478   : > { %2888 = vrot.lane.b32.xlu0 %v2844_v5, %s11990_s25  ;;  %v7646_v19 = vpop.eup %7645  ;;  %7653 = vpow2.f32 %v7134_v24  ;;  %v2560_v18 = vadd.f32 1.0, %v7644_v53 }
 0x479   : > { %v2495_v55 = vpop.xlane.xlu1 %2494  ;;  %7655 = vpow2.f32 %v7135_v22  ;;  %v7648_v29 = vpop.eup %7647  ;;  %v2561_v4 = vadd.f32 1.0, %v7646_v19 }
 0x47a   : > { %v2562_v2 = vadd.f32 1.0, %v7648_v29 }
 0x47c   : > { %2892 = vrot.lane.b32.xlu0 %v2846_v36, %s11990_s25  ;;  %v2604_v36 = vmul.f32 %v7636_v10, %v8124_v17  ;;  %v7136_v10 = vmul.f32 -1.442695, %v2495_v55 }
 0x47e   : > { %7657 = vpow2.f32 %v7136_v10 }
 0x496   : > { %v2498_v37 = vpop.xlane.xlu1 %2497 }
 0x49a   : > { %v2867_v5 = vpop.permute.xlu1 %2866 }
 0x49b   : > { %v2913_v41 = vsel %vm742_vm0, %v2605_v35, %v2867_v5  ;;  %v7137_v5 = vmul.f32 -1.442695, %v2498_v37  ;;  %v7650_v35 = vpop.eup %7649 }
 0x49c   : > { %v7652_v16 = vpop.eup %7651  ;;  %v2563_v55 = vadd.f32 1.0, %v7650_v35 }
 0x49d   : > { %7659 = vpow2.f32 %v7137_v5  ;;  %v2564_v37 = vadd.f32 1.0, %v7652_v16 }
 0x49e   : > { %v2871_v59 = vpop.permute.xlu1 %2870  ;;  %7661 = vrcp.f32 %v2560_v18 }
 0x49f   : > { %v2915_v15 = vsel %vm742_vm0, %v2607_v3, %v2871_v59  ;;  %7663 = vrcp.f32 %v2561_v4 }
 0x4aa   : > { %v2501_v58 = vpop.xlane.xlu0 %2500 }
 0x4ab   : > { %v7138_v28 = vmul.f32 -1.442695, %v2501_v58 }
 0x4ad   : > { %7665 = vpow2.f32 %v7138_v28 }
 0x4ae   : > { %v2865_v20 = vpop.permute.xlu0 %2864 }
 0x4af   : > { %v2912_v0 = vsel %vm742_vm0, %v2604_v36, %v2865_v20  ;;  %v7654_v20 = vpop.eup %7653 }
 0x4b0   : > { %7397 = vmatprep.mubr.msk.f32.mxu0 %vm2939_vm8, %v2912_v0  ;;  %v7656_v60 = vpop.eup %7655 }
 0x4b1   : > { %7398 = vmatmul.mubr.msk.f32.vlgmr.msra.gmra.mrb[34].mxu0 %vm2939_vm8, %v2913_v41  ;;  %v7658_v0 = vpop.eup %7657  ;;  %v2565_v41 = vadd.f32 1.0, %v7654_v20  ;;  %v2566_v58 = vadd.f32 1.0, %v7656_v60 }
 0x4b2   : > { %v2869_v17 = vpop.permute.xlu0 %2868 }
 0x4b3   : > { %v2914_v26 = vsel %vm742_vm0, %v2606_v23, %v2869_v17  ;;  %v7660_v23 = vpop.eup %7659  ;;  %v2567_v17 = vadd.f32 1.0, %v7658_v0 }
 0x4b4   : > { %7400 = vmatprep.mubr.msk.f32.mxu0 %vm2939_vm8, %v2914_v26  ;;  %v7662_v3 = vpop.eup %7661  ;;  %v2568_v9 = vadd.f32 1.0, %v7660_v23 }
 0x4b5   : > { %7401 = vmatmul.mubr.msk.f32.gmra.mrb[36].mxu0 %vm2939_vm8, %v2915_v15  ;;  %v7664_v26 = vpop.eup %7663  ;;  %v2608_v53 = vmul.f32 %v7662_v3, %v8150_v34 }
 0x4b6   : > { %v2609_v19 = vmul.f32 %v7664_v26, %v8145_v30 }
 0x4b7   : > { %v7666_v15 = vpop.eup %7665 }
 0x4b8   : > { %v2569_v22 = vadd.f32 1.0, %v7666_v15 }
 0x4cf   : > { %v2504_v36 = vpop.xlane.xlu1 %2503 }
 0x4d0   : > { %v7139_v13 = vmul.f32 -1.442695, %v2504_v36 }
 0x4d2   : > { %7667 = vpow2.f32 %v7139_v13 }
 0x4d3   : > { %v2875_v27 = vpop.permute.xlu1 %2874  ;;  %7669 = vrcp.f32 %v2562_v2 }
 0x4d4   : > { %7671 = vrcp.f32 %v2563_v55  ;;  %v2917_v28 = vsel %vm742_vm0, %v2609_v19, %v2875_v27 }
 0x4d5   : > { %7673 = vrcp.f32 %v2564_v37 }
 0x4d6   : > { %7675 = vrcp.f32 %v2565_v41 }
 0x4d7   : > { %v2877_v59 = vpop.permute.xlu1 %2876  ;;  %7677 = vrcp.f32 %v2566_v58 }
 0x4d8   : > { %7679 = vrcp.f32 %v2567_v17 }
 0x4db   : > { %v2879_v54 = vpop.permute.xlu1 %2878 }
 0x4dc   : > { %v7668_v32 = vpop.eup %7667 }
 0x4dd   : > { %v7670_v24 = vpop.eup %7669  ;;  %v2570_v10 = vadd.f32 1.0, %v7668_v32 }
 0x4de   : > { %v7672_v36 = vpop.eup %7671  ;;  %v2610_v18 = vmul.f32 %v7670_v24, %v8162_v43 }
 0x4df   : > { %v7674_v4 = vpop.eup %7673  ;;  %v2883_v35 = vpop.permute.xlu1 %2882  ;;  %v2611_v30 = vmul.f32 %v7672_v36, %v8159_v42 }
 0x4e0   : > { %v2918_v13 = vsel %vm742_vm0, %v2610_v18, %v2877_v59  ;;  %v7676_v43 = vpop.eup %7675  ;;  %v2612_v2 = vmul.f32 %v7674_v4, %v8172_v51  ;;  %v9307_v4 = vld [vmem:[%s8038_s23] sm:$0xff] }
 0x4e1   : > { %v7678_v16 = vpop.eup %7677  ;;  %v2919_v27 = vsel %vm742_vm0, %v2611_v30, %v2879_v54  ;;  %v2613_v37 = vmul.f32 %v7676_v43, %v8167_v47 }
 0x4e2   : > { %v7680_v20 = vpop.eup %7679  ;;  %v2614_v41 = vmul.f32 %v7678_v16, %v8186_v61  ;;  %v9319_v16 = vld [vmem:[%s8038_s23 + $0x10] sm:$0xff] }
 0x4e3   : > { %v2507_v33 = vpop.xlane.xlu0 %2506  ;;  %v2887_v0 = vpop.permute.xlu1 %2886  ;;  %v2921_v51 = vsel %vm742_vm0, %v2613_v37, %v2883_v35  ;;  %v2615_v3 = vmul.f32 %v7680_v20, %v8181_v56  ;;  %v9311_v35 = vld [vmem:[%s8038_s23 + $0x8] sm:$0xff] }
 0x4e4   : > { %v7140_v25 = vmul.f32 -1.442695, %v2507_v33 }
 0x4e5   : > { %v2923_v61 = vsel %vm742_vm0, %v2615_v3, %v2887_v0 }
 0x4e6   : > { %7681 = vpow2.f32 %v7140_v25 }
 0x4e7   : > { %7683 = vrcp.f32 %v2568_v9  ;;  %v2873_v5 = vpop.permute.xlu0 %2872  ;;  %v2891_v9 = vpop.permute.xlu1 %2890 }
 0x4e8   : > { %v2916_v29 = vsel %vm742_vm0, %v2608_v53, %v2873_v5  ;;  %7685 = vrcp.f32 %v2569_v22 }
 0x4e9   : > { %7403 = vmatprep.mubr.msk.f32.mxu0 %vm2939_vm8, %v2916_v29  ;;  %7687 = vrcp.f32 %v2570_v10  ;;  %v3150_v10 = vld [vmem:[%s12049_s12 + $0x8] sm:$0xff] }
 0x4ea   : > { %7404 = vmatmul.mubr.msk.f32.gmra.mrb[38].mxu0 %vm2939_vm8, %v2917_v28 }
 0x4eb   : > { %v2881_v34 = vpop.permute.xlu0 %2880  ;;  %7406 = vmatprep.mubr.msk.f32.mxu0 %vm2939_vm8, %v2918_v13  ;;  %v2895_v53 = vpop.permute.xlu1 %2894 }
 0x4ec   : > { %v2920_v55 = vsel %vm742_vm0, %v2612_v2, %v2881_v34 }
 0x4ee   : > { %7407 = vmatmul.mubr.msk.f32.gmra.mrb[40].mxu0 %vm2939_vm8, %v2919_v27 }
 0x4ef   : > { %v2885_v60 = vpop.permute.xlu0 %2884  ;;  %7409 = vmatprep.mubr.msk.f32.mxu0 %vm2939_vm8, %v2920_v55  ;;  %v9323_v55 = vld [vmem:[%s8038_s23 + $0x18] sm:$0xff] }
 0x4f0   : > { %v7682_v42 = vpop.eup %7681  ;;  %v2922_v23 = vsel %vm742_vm0, %v2614_v41, %v2885_v60  ;;  %v9331_v41 = vld [vmem:[%s8038_s23 + $0x20] sm:$0xff] }
 0x4f1   : > { %v7684_v59 = vpop.eup %7683  ;;  %v2571_v58 = vadd.f32 1.0, %v7682_v42 }
 0x4f2   : > { %7410 = vmatmul.mubr.msk.f32.gmra.mrb[42].mxu0 %vm2939_vm8, %v2921_v51  ;;  %v7686_v47 = vpop.eup %7685  ;;  %v2616_v26 = vmul.f32 %v7684_v59, %v8202_v6 }
 0x4f3   : > { %7689 = vrcp.f32 %v2571_v58  ;;  %v2889_v17 = vpop.permute.xlu0 %2888  ;;  %7412 = vmatprep.mubr.msk.f32.mxu0 %vm2939_vm8, %v2922_v23  ;;  %v7688_v15 = vpop.eup %7687  ;;  %v2617_v32 = vmul.f32 %v7686_v47, %v8193_v1  ;;  %v9335_v58 = vld [vmem:[%s8038_s23 + $0x28] sm:$0xff] }
 0x4f4   : > { %v2924_v33 = vsel %vm742_vm0, %v2616_v26, %v2889_v17  ;;  %v2618_v56 = vmul.f32 %v7688_v15, %v8214_v21  ;;  %v3149_v21 = vld [vmem:[%s12049_s12] sm:$0xff]  ;;  %v9343_v26 = vld [vmem:[%s8038_s23 + $0x30] sm:$0xff] }
 0x4f5   : > { %v2925_v25 = vsel %vm742_vm0, %v2617_v32, %v2891_v9  ;;  %v7468_v19 = vpack.c.bf16 %v3150_v10, %v3149_v21  ;;  %v9347_v9 = vld [vmem:[%s8038_s23 + $0x38] sm:$0xff] }
 0x4f6   : > { %7413 = vmatmul.mubr.msk.f32.gmra.mrb[44].mxu0 %vm2939_vm8, %v2923_v61 }
 0x4f7   : > { %v2893_v54 = vpop.permute.xlu0 %2892  ;;  %7415 = vmatprep.mubr.msk.f32.mxu0 %vm2939_vm8, %v2924_v33  ;;  %7469 = vmatprep.subr.bf16.mxu1 %v7468_v19 }
 0x4f8   : > { %v2926_v24 = vsel %vm742_vm0, %v2618_v56, %v2893_v54  ;;  %7471 = vmatpush3.bf16.msra.mxu1 %v7468_v19  ;;  %v9367_v19 = vld [vmem:[%s8038_s23 + $0x50] sm:$0xff] }
 0x4f9   : > { %7472 = vmatprep.subr.bf16.mxu1 %v12048_v52 }
 0x4fa   : > { %7416 = vmatmul.mubr.msk.f32.gmra.mrb[46].mxu0 %vm2939_vm8, %v2925_v25  ;;  %v9355_v25 = vld [vmem:[%s8038_s23 + $0x40] sm:$0xff] }
 0x4fb   : > { %7418 = vmatprep.mubr.msk.f32.mxu0 %vm2939_vm8, %v2926_v24 }
 0x4fd   : > { %v7690_v6 = vpop.eup %7689 }
 0x4fe   : > { %v2619_v22 = vmul.f32 %v7690_v6, %v8209_v14  ;;  %v9302_v14 = vld [vmem:[%s12050_s11] ss:$0 sm:$0xff]  ;;  %s12058_s11 = sld [smem:[#allocation30_spill]] }
 0x500   : > { %v2927_v1 = vsel %vm742_vm0, %v2619_v22, %v2895_v53  ;;  %v9359_v22 = vld [vmem:[%s8038_s23 + $0x48] sm:$0xff] }
 0x501   : > { %7419 = vmatmul.mubr.msk.f32.gmra.mrb[48].mxu0 %vm2939_vm8, %v2927_v1 }
 0x584   : > { %v7399_v5 = vpop.f32.mrb[34].mxu0 }
 0x585   : > { %v3060_v36 = vadd.f32 %v7399_v5, %v9302_v14  ;;  %v3054_v18 = vpop.f32.mrb[35].mxu0 }
 0x586   : > { %v3055_v29 = vadd.f32 %v9302_v14, %v3054_v18  ;;  %v9371_v18 = vld [vmem:[%s8038_s23 + $0x58] sm:$0xff] }
 0x587   : > { %v3134_v30 = vadd.f32 %v9311_v35, %v3060_v36 }
 0x588   : > { %v3133_v28 = vadd.f32 %v9307_v4, %v3055_v29  ;;  %v7402_v13 = vpop.f32.mrb[36].mxu0 }
 0x589   : > { %v3070_v34 = vadd.f32 %v7402_v13, %v9302_v14  ;;  %v3064_v43 = vpop.f32.mrb[37].mxu0 }
 0x58a   : > { %v3065_v2 = vadd.f32 %v9302_v14, %v3064_v43  ;;  %7425 = vmatprep.mubr.msk.f32.mxu1 %vm742_vm0, %v3133_v28 }
 0x58b   : > { %7426 = vmatmul.mubr.msk.f32.vlgmr.msra.gmra.mrb[2].mxu1 %vm742_vm0, %v3134_v30  ;;  %v3136_v20 = vadd.f32 %v9323_v55, %v3070_v34  ;;  %v9379_v34 = vld [vmem:[%s8038_s23 + $0x60] sm:$0xff] }
 0x58c   : > { %v3135_v27 = vadd.f32 %v9319_v16, %v3065_v2  ;;  %v9383_v2 = vld [vmem:[%s8038_s23 + $0x68] sm:$0xff] }
 0x58e   : > { %7428 = vmatprep.mubr.msk.f32.mxu1 %vm742_vm0, %v3135_v27 }
 0x58f   : > { %7429 = vmatmul.mubr.msk.f32.gmra.mrb[4].mxu1 %vm742_vm0, %v3136_v20 }
 0x5bd   : > { %v7405_v37 = vpop.f32.mrb[38].mxu0 }
 0x5be   : > { %v3080_v60 = vadd.f32 %v7405_v37, %v9302_v14  ;;  %v3074_v42 = vpop.f32.mrb[39].mxu0 }
 0x5bf   : > { %v3075_v0 = vadd.f32 %v9302_v14, %v3074_v42 }
 0x5c0   : > { %v3138_v23 = vadd.f32 %v9335_v58, %v3080_v60 }
 0x5c1   : > { %v3137_v59 = vadd.f32 %v9331_v41, %v3075_v0  ;;  %v7408_v51 = vpop.f32.mrb[40].mxu0  ;;  %v9391_v0 = vld [vmem:[%s8038_s23 + $0x70] sm:$0xff] }
 0x5c2   : > { %v3090_v3 = vadd.f32 %v7408_v51, %v9302_v14  ;;  %v3084_v17 = vpop.f32.mrb[41].mxu0  ;;  %v9395_v51 = vld [vmem:[%s8038_s23 + $0x78] sm:$0xff]  ;;  %s11986_s23 = smov 32  }
 0x5c3   : > { %v3085_v47 = vadd.f32 %v9302_v14, %v3084_v17  ;;  %7431 = vmatprep.mubr.msk.f32.mxu1 %vm742_vm0, %v3137_v59 }
 0x5c4   : > { %7432 = vmatmul.mubr.msk.f32.gmra.mrb[6].mxu1 %vm742_vm0, %v3138_v23  ;;  %v3140_v33 = vadd.f32 %v9347_v9, %v3090_v3  ;;  %v9400_v3 = vld [vmem:[#allocation2] sm:$0xff] }
 0x5c5   : > { %v3139_v15 = vadd.f32 %v9343_v26, %v3085_v47  ;;  %v7411_v61 = vpop.f32.mrb[42].mxu0  ;;  %v3394_v17 = vmul.f32 %v8232_v50, %v9400_v3  ;;  %v4295_v47 = vld [vmem:[%s11950_s14 + $0x8] sm:$0xff] }
 0x5c6   : > { %v3100_v32 = vadd.f32 %v7411_v61, %v9302_v14  ;;  %v3094_v54 = vpop.f32.mrb[43].mxu0 }
 0x5c7   : > { %v3095_v56 = vadd.f32 %v9302_v14, %v3094_v54  ;;  %7434 = vmatprep.mubr.msk.f32.mxu1 %vm742_vm0, %v3139_v15  ;;  %3402 = vst.msk [vmem:[#allocation3] sm:$0xff] %vm742_vm0, %v3394_v17  ;;  %v9414_v15 = vld [vmem:[%s11949_s13] ss:$0 sm:$0xff] }
 0x5c8   : > { %7435 = vmatmul.mubr.msk.f32.gmra.mrb[8].mxu1 %vm742_vm0, %v3140_v33  ;;  %v3142_v53 = vadd.f32 %v9359_v22, %v3100_v32 }
 0x5c9   : > { %v3141_v24 = vadd.f32 %v9355_v25, %v3095_v56  ;;  %v7414_v6 = vpop.f32.mrb[44].mxu0 }
 0x5ca   : > { %v3110_v1 = vadd.f32 %v7414_v6, %v9302_v14  ;;  %v3104_v21 = vpop.f32.mrb[45].mxu0  ;;  %v4297_v6 = vld [vmem:[%s11950_s14 + $0x18] sm:$0xff] }
 0x5cb   : > { %v3105_v10 = vadd.f32 %v9302_v14, %v3104_v21  ;;  %7437 = vmatprep.mubr.msk.f32.mxu1 %vm742_vm0, %v3141_v24  ;;  %v4296_v24 = vld [vmem:[%s11950_s14 + $0x10] sm:$0xff] }
 0x5cc   : > { %7438 = vmatmul.mubr.msk.f32.gmra.mrb[10].mxu1 %vm742_vm0, %v3142_v53  ;;  %v3144_v29 = vadd.f32 %v9371_v18, %v3110_v1  ;;  %v7476_v1 = vpack.c.bf16 %v4297_v6, %v4296_v24  ;;  %v3419_v6 = vrot.slane %v9400_v3, 1 }
 0x5cd   : > { %v3143_v5 = vadd.f32 %v9367_v19, %v3105_v10  ;;  %v7417_v36 = vpop.f32.mrb[46].mxu0 }
 0x5ce   : > { %v3120_v28 = vadd.f32 %v7417_v36, %v9302_v14  ;;  %v3114_v13 = vpop.f32.mrb[47].mxu0 }
 0x5cf   : > { %v3115_v30 = vadd.f32 %v9302_v14, %v3114_v13  ;;  %7440 = vmatprep.mubr.msk.f32.mxu1 %vm742_vm0, %v3143_v5 }
 0x5d0   : > { %7441 = vmatmul.mubr.msk.f32.gmra.mrb[12].mxu1 %vm742_vm0, %v3144_v29  ;;  %v3146_v27 = vadd.f32 %v9383_v2, %v3120_v28 }
 0x5d1   : > { %v3145_v43 = vadd.f32 %v9379_v34, %v3115_v30 }
 0x5d3   : > { %7443 = vmatprep.mubr.msk.f32.mxu1 %vm742_vm0, %v3145_v43  ;;  %v9443_v43 = vld [vmem:[#allocation2 + $0x58] sm:$0xff] }
 0x5d4   : > { %v7420_v20 = vpop.f32.mrb[48].mxu0  ;;  %7444 = vmatmul.mubr.msk.f32.gmra.mrb[14].mxu1 %vm742_vm0, %v3146_v27 }
 0x5d5   : > { %v3130_v37 = vadd.f32 %v7420_v20, %v9302_v14  ;;  %v3124_v60 = vpop.f32.mrb[49].mxu0 }
 0x5d6   : > { %v3125_v42 = vadd.f32 %v9302_v14, %v3124_v60  ;;  %v4294_v14 = vld [vmem:[%s11950_s14] sm:$0xff] }
 0x5d7   : > { %v3148_v23 = vadd.f32 %v9395_v51, %v3130_v37  ;;  %v7473_v61 = vpack.c.bf16 %v4295_v47, %v4294_v14  ;;  %v3837_v37 = vmul.f32 %v8232_v50, %v9443_v43 }
 0x5d8   : > { %v3147_v59 = vadd.f32 %v9391_v0, %v3125_v42 }
 0x5d9   : > { %7474 = vmatpush1.bf16.msra.mxu1 %v7473_v61  ;;  %3845 = vst.msk [vmem:[#allocation3 + $0x80] sm:$0xff] %vm742_vm0, %v3837_v37 }
 0x5da   : > { %7446 = vmatprep.mubr.msk.f32.mxu1 %vm742_vm0, %v3147_v59  ;;  %7475 = vmatprep.subr.bf16.mxu1 %v12048_v52  ;;  %v3469_v59 = vmul.f32 %v9400_v3, %v8264_v31 }
 0x5db   : > { %7447 = vmatmul.mubr.msk.f32.gmra.mrb[16].mxu1 %vm742_vm0, %v3148_v23 }
 0x5dd   : > { %7477 = vmatpush1.bf16.msra.mxu1 %v7476_v1  ;;  %v4301_v1 = vld [vmem:[%s11950_s14 + $0x38] sm:$0xff] }
 0x5de   : > { %7478 = vmatprep.subr.bf16.mxu1 %v12048_v52 }
 0x65e   : > { %v7427_v33 = vpop.f32.mrb[2].mxu1 }
 0x65f   : > { %v3278_v32 = vadd.f32 %v7427_v33, %v9414_v15  ;;  %v3272_v54 = vpop.f32.mrb[3].mxu1 }
 0x660   : > { %v3273_v56 = vadd.f32 %v9414_v15, %v3272_v54 }
 0x661   : > { %v3352_v53 = vadd.f32 %v9311_v35, %v3278_v32  ;;  %v4298_v35 = vld [vmem:[%s11950_s14 + $0x20] sm:$0xff] }
 0x662   : > { %v3351_v21 = vadd.f32 %v9307_v4, %v3273_v56  ;;  %v7430_v10 = vpop.f32.mrb[4].mxu1  ;;  %v4299_v4 = vld [vmem:[%s11950_s14 + $0x28] sm:$0xff]  ;;  %v3487_v56 = vrot.slane %v3469_v59, 2 }
 0x663   : > { %3368 = vst.msk [vmem:[#allocation2 + $0x11] sm:$0xff] %vm742_vm0, %v3352_v53  ;;  %v3288_v5 = vadd.f32 %v7430_v10, %v9414_v15  ;;  %v3282_v36 = vpop.f32.mrb[5].mxu1  ;;  %v7479_v13 = vpack.c.bf16 %v4299_v4, %v4298_v35  ;;  %v4300_v53 = vld [vmem:[%s11950_s14 + $0x30] sm:$0xff]  ;;  %v4302_v4 = vld [vmem:[%s11950_s14 + $0x40] sm:$0xff] }
 0x664   : > { %3367 = vst.msk [vmem:[#allocation2 + $0x9] sm:$0xff] %vm742_vm0, %v3351_v21  ;;  %v3283_v29 = vadd.f32 %v9414_v15, %v3282_v36  ;;  %v7482_v35 = vpack.c.bf16 %v4301_v1, %v4300_v53 }
 0x665   : > { %v3354_v28 = vadd.f32 %v9323_v55, %v3288_v5  ;;  %7480 = vmatpush1.bf16.msra.mxu1 %v7479_v13 }
 0x666   : > { %v3353_v30 = vadd.f32 %v9319_v16, %v3283_v29  ;;  %7481 = vmatprep.subr.bf16.mxu1 %v12048_v52 }
 0x667   : > { %3370 = vst.msk [vmem:[#allocation2 + $0x21] sm:$0xff] %vm742_vm0, %v3354_v28  ;;  %v4303_v28 = vld [vmem:[%s11950_s14 + $0x48] sm:$0xff] }
 0x668   : > { %3369 = vst.msk [vmem:[#allocation2 + $0x19] sm:$0xff] %vm742_vm0, %v3353_v30 }
 0x669   : > { %7483 = vmatpush1.bf16.msra.mxu1 %v7482_v35 }
 0x66a   : > { %7484 = vmatprep.subr.bf16.mxu1 %v12048_v52 }
 0x66b   : > { %v9445_v27 = vld [vmem:[#allocation2 + $0x10] sm:$0xff]  ;;  %v3384_v20 = vld [vmem:[#allocation2 + $0x8] sm:$0xff] }
 0x66c   : > { %v3690_v55 = vmul.f32 %v8232_v50, %v9445_v27  ;;  %v3537_v16 = vmul.f32 %v8232_v50, %v3384_v20  ;;  %v3420_v60 = vrot.slane %v3384_v20, 1  ;;  %v3422_v42 = vrot.slane %v9445_v27, 1 }
 0x66d   : > { %v9456_v23 = vmul.f32 %v3384_v20, %v8274_v39  ;;  %v3775_v17 = vmul.f32 %v9445_v27, %v8264_v31  ;;  %v3538_v47 = vmul.f32 %v8270_v38, %v9445_v27  ;;  %v3622_v61 = vmul.f32 %v3384_v20, %v8264_v31 }
 0x66e   : > { %3706 = vrot.lane.b32.xlu1 %v3690_v55, %s11992_s4  ;;  %3553 = vrot.lane.b32.xlu0 %v3537_v16, %s11994_s24  ;;  %v9470_v33 = vmul.f32 %v9445_v27, %v8274_v39  ;;  %v3423_v54 = vsel %vm1509_vm13, %v3420_v60, %v3422_v42  ;;  %v9489_v5 = vmul.f32 %v9445_v27, %v8295_v57 }
 0x66f   : > { %v9463_v14 = vld [vmem:[#allocation2 + $0x18] sm:$0xff]  ;;  %v3488_v24 = vrot.slane %v9456_v23, 2  ;;  %v3793_v21 = vrot.slane %v3775_v17, 2  ;;  %v3640_v3 = vrot.slane %v3622_v61, 2  ;;  %v3421_v30 = vsel %vm1509_vm13, %v3419_v6, %v3420_v60  ;;  %v9504_v37 = vld [vmem:[#allocation2 + $0x20] sm:$0xff]  ;;  %v4304_v60 = vld [vmem:[%s11950_s14 + $0x50] sm:$0xff] }
 0x670   : > { %v3776_v32 = vmul.f32 %v9463_v14, %v8274_v39  ;;  %v3641_v36 = vrot.slane %v9470_v33, 2  ;;  %v3395_v55 = vmul.f32 %v8270_v38, %v3384_v20  ;;  %v7485_v16 = vpack.c.bf16 %v4303_v28, %v4302_v4  ;;  %v4305_v20 = vld [vmem:[%s11950_s14 + $0x58] sm:$0xff] }
 0x671   : > { %v3489_v13 = vsel %vm1611_vm14, %v3487_v56, %v3488_v24  ;;  %v3490_v23 = vrot.slane %v9489_v5, 2  ;;  %v3396_v17 = vmul.f32 %v8304_v63, %v9445_v27  ;;  %v3397_v61 = vmul.f32 %v8359_v44, %v9463_v14 }
 0x672   : > { %3555 = vrot.lane.b32.xlu0 %v3538_v47, %s11994_s24  ;;  %3589 = vrot.lane.b32.xlu1 %v3423_v54, %s11988_s26  ;;  %v3794_v10 = vrot.slane %v3776_v32, 2  ;;  %v3642_v59 = vsel %vm1611_vm14, %v3640_v3, %v3641_v36  ;;  %3403 = vst.msk [vmem:[#allocation3 + $0x10] sm:$0xff] %vm742_vm0, %v3395_v55  ;;  %v9523_v47 = vmul.f32 %v9504_v37, %v8295_v57 }
 0x673   : > { %v3398_v32 = vmul.f32 %v8368_v62, %v9504_v37  ;;  %7486 = vmatpush1.bf16.msra.mxu1 %v7485_v16  ;;  %v7488_v56 = vpack.c.bf16 %v4305_v20, %v4304_v60  ;;  %3404 = vst.msk [vmem:[#allocation3 + $0x20] sm:$0xff] %vm742_vm0, %v3396_v17  ;;  %3405 = vst.msk [vmem:[#allocation3 + $0x30] sm:$0xff] %vm742_vm0, %v3397_v61  ;;  %v3539_v1 = vmul.f32 %v8304_v63, %v9463_v14  ;;  %v4310_v16 = vld [vmem:[%s11950_s14 + $0x80] sm:$0xff] }
 0x674   : > { %v3795_v29 = vsel %vm1611_vm14, %v3793_v21, %v3794_v10  ;;  %v3796_v6 = vrot.slane %v9523_v47, 2  ;;  %7487 = vmatprep.subr.bf16.mxu1 %v12048_v52  ;;  %v4307_v21 = vld [vmem:[%s11950_s14 + $0x68] sm:$0xff]  ;;  %v3491_v3 = vsel %vm1611_vm14, %v3488_v24, %v3490_v23  ;;  %v3691_v4 = vmul.f32 %v8270_v38, %v9463_v14  ;;  %v4308_v24 = vld [vmem:[%s11950_s14 + $0x70] sm:$0xff] }
 0x675   : > { %3818 = vst.msk [vmem:[#allocation3 + $0x8] sm:$0xff] %vm742_vm0, %v3795_v29  ;;  %3406 = vst.msk [vmem:[#allocation3 + $0x40] sm:$0xff] %vm742_vm0, %v3398_v32  ;;  %v3692_v28 = vmul.f32 %v8304_v63, %v9504_v37  ;;  %v3540_v55 = vmul.f32 %v8359_v44, %v9504_v37  ;;  %v3426_v17 = vrot.slane %v9504_v37, 1  ;;  %v3472_v61 = vmul.f32 %v9463_v14, %v8429_v8 }
 0x676   : > { %3504 = vrot.lane.b32.xlu1 %v3489_v13, %s11986_s23  ;;  %3436 = vrot.lane.b32.xlu0 %v3421_v30, %s11990_s25  ;;  %v3797_v29 = vsel %vm1611_vm14, %v3794_v10, %v3796_v6  ;;  %v4309_v10 = vld [vmem:[%s11950_s14 + $0x78] sm:$0xff]  ;;  %v3424_v13 = vrot.slane %v9463_v14, 1  ;;  %v3624_v32 = vmul.f32 %v9463_v14, %v8295_v57 }
 0x677   : > { %3819 = vst.msk [vmem:[#allocation3 + $0x18] sm:$0xff] %vm742_vm0, %v3797_v29  ;;  %7489 = vmatpush1.bf16.msra.mxu1 %v7488_v56  ;;  %v7494_v30 = vpack.c.bf16 %v4309_v10, %v4308_v24  ;;  %v9596_v56 = vmul.f32 %v9504_v37, %v8429_v8 }
 0x678   : > { %7490 = vmatprep.subr.bf16.mxu1 %v12048_v52  ;;  %v3425_v60 = vsel %vm1509_vm13, %v3422_v42, %v3424_v13  ;;  %v3427_v27 = vsel %vm1509_vm13, %v3424_v13, %v3426_v17  ;;  %v3492_v42 = vrot.slane %v3472_v61, 2 }
 0x67a   : > { %3657 = vrot.lane.b32.xlu1 %v3642_v59, %s11982_s0  ;;  %3438 = vrot.lane.b32.xlu0 %v3423_v54, %s11990_s25  ;;  %v4306_v54 = vld [vmem:[%s11950_s14 + $0x60] sm:$0xff]  ;;  %v4311_v59 = vld [vmem:[%s11950_s14 + $0x88] sm:$0xff]  ;;  %s12051_s0 = smov 80  }
 0x67b   : > { %v7491_v35 = vpack.c.bf16 %v4307_v21, %v4306_v54  ;;  %v7497_v20 = vpack.c.bf16 %v4311_v59, %v4310_v16  ;;  %v3645_v54 = vrot.slane %v9596_v56, 2  ;;  %v9606_v21 = vmul.f32 %v9504_v37, %v8464_v49 }
 0x67c   : > { %v4263_v53 = vld [vmem:[#allocation3 + $0x8] sm:$0xff] }
 0x67d   : > { %7181 = vmatprep.mubr.msk.f32.mxu1 %vm742_vm0, %v4263_v53  ;;  %7492 = vmatpush1.bf16.msra.mxu1 %v7491_v35  ;;  %v3493_v53 = vsel %vm1611_vm14, %v3490_v23, %v3492_v42  ;;  %v3494_v23 = vrot.slane %v9606_v21, 2 }
 0x67e   : > { %3506 = vrot.lane.b32.xlu0 %v3491_v3, %s11986_s23  ;;  %3557 = vrot.lane.b32.xlu1 %v3539_v1, %s11994_s24  ;;  %v3643_v1 = vrot.slane %v3624_v32, 2 }
 0x67f   : > { %7493 = vmatprep.subr.bf16.mxu1 %v12048_v52  ;;  %v3495_v33 = vsel %vm1611_vm14, %v3492_v42, %v3494_v23 }
 0x680   : > { %v3644_v14 = vsel %vm1611_vm14, %v3641_v36, %v3643_v1  ;;  %v3646_v5 = vsel %vm1611_vm14, %v3643_v1, %v3645_v54 }
 0x681   : > { %7495 = vmatpush1.bf16.msra.mxu1 %v7494_v30 }
 0x682   : > { %3708 = vrot.lane.b32.xlu0 %v3691_v4, %s11992_s4  ;;  %3710 = vrot.lane.b32.xlu1 %v3692_v28, %s11992_s4 }
 0x683   : > { %7496 = vmatprep.subr.bf16.mxu1 %v12048_v52 }
 0x685   : > { %7498 = vmatpush1.bf16.msra.mxu1 %v7497_v20 }
 0x686   : > { %3559 = vrot.lane.b32.xlu0 %v3540_v55, %s11994_s24  ;;  %3742 = vrot.lane.b32.xlu1 %v3425_v60, %s11984_s1 }
 0x687   : > { %7526 = vmatprep.subr.bf16.mxu1 %v12048_v52 }
 0x68a   : > { %3591 = vrot.lane.b32.xlu0 %v3425_v60, %s11988_s26  ;;  %3440 = vrot.lane.b32.xlu1 %v3425_v60, %s11990_s25 }
 0x68e   : > { %3744 = vrot.lane.b32.xlu0 %v3427_v27, %s11984_s1  ;;  %3593 = vrot.lane.b32.xlu1 %v3427_v27, %s11988_s26 }
 0x692   : > { %3442 = vrot.lane.b32.xlu0 %v3427_v27, %s11990_s25  ;;  %3508 = vrot.lane.b32.xlu1 %v3493_v53, %s11986_s23 }
 0x696   : > { %3659 = vrot.lane.b32.xlu0 %v3644_v14, %s12051_s0  ;;  %3661 = vrot.lane.b32.xlu1 %v3646_v5, %s12051_s0 }
 0x697   : > { %v7433_v3 = vpop.f32.mrb[6].mxu1 }
 0x698   : > { %v3298_v29 = vadd.f32 %v7433_v3, %v9414_v15  ;;  %v3292_v35 = vpop.f32.mrb[7].mxu1  ;;  %v9655_v3 = vld [vmem:[#allocation2 + $0x50] sm:$0x3] }
 0x699   : > { %v3293_v4 = vadd.f32 %v9414_v15, %v3292_v35 }
 0x69a   : > { %v3356_v36 = vadd.f32 %v9335_v58, %v3298_v29  ;;  %3510 = vrot.lane.b32.xlu0 %v3495_v33, %s11986_s23 }
 0x69b   : > { %v3355_v28 = vadd.f32 %v9331_v41, %v3293_v4  ;;  %v7436_v24 = vpop.f32.mrb[8].mxu1 }
 0x69c   : > { %3372 = vst.msk [vmem:[#allocation2 + $0x31] sm:$0xff] %vm742_vm0, %v3356_v36  ;;  %v3308_v10 = vadd.f32 %v7436_v24, %v9414_v15  ;;  %v3302_v13 = vpop.f32.mrb[9].mxu1  ;;  %v3783_v24 = vmul.f32 %v9655_v3, %v8697_v11 }
 0x69d   : > { %3371 = vst.msk [vmem:[#allocation2 + $0x29] sm:$0xff] %vm742_vm0, %v3355_v28  ;;  %v3303_v30 = vadd.f32 %v9414_v15, %v3302_v13 }
 0x69e   : > { %v3358_v55 = vadd.f32 %v9347_v9, %v3308_v10 }
 0x69f   : > { %v3357_v16 = vadd.f32 %v9343_v26, %v3303_v30  ;;  %v7439_v59 = vpop.f32.mrb[10].mxu1 }
 0x6a0   : > { %3374 = vst.msk [vmem:[#allocation2 + $0x41] sm:$0xff] %vm742_vm0, %v3358_v55  ;;  %v3318_v58 = vadd.f32 %v7439_v59, %v9414_v15  ;;  %v3312_v41 = vpop.f32.mrb[11].mxu1 }
 0x6a1   : > { %3373 = vst.msk [vmem:[#allocation2 + $0x39] sm:$0xff] %vm742_vm0, %v3357_v16  ;;  %v3313_v60 = vadd.f32 %v9414_v15, %v3312_v41  ;;  %v3808_v41 = vrot.slane %v3783_v24, 2 }
 0x6a2   : > { %v3360_v20 = vadd.f32 %v9359_v22, %v3318_v58 }
 0x6a3   : > { %v3359_v61 = vadd.f32 %v9355_v25, %v3313_v60  ;;  %v7442_v27 = vpop.f32.mrb[12].mxu1 }
 0x6a4   : > { %3376 = vst.msk [vmem:[#allocation2 + $0x69] sm:$0xff] %vm742_vm0, %v3360_v20  ;;  %v3328_v9 = vadd.f32 %v7442_v27, %v9414_v15  ;;  %v3322_v26 = vpop.f32.mrb[13].mxu1  ;;  %v9641_v42 = vld [vmem:[#allocation2 + $0x28] sm:$0xff]  ;;  %v9650_v1 = vld [vmem:[#allocation2 + $0x30] sm:$0xff] }
 0x6a5   : > { %3375 = vst.msk [vmem:[#allocation2 + $0x61] sm:$0xff] %vm742_vm0, %v3359_v61  ;;  %v3323_v32 = vadd.f32 %v9414_v15, %v3322_v26  ;;  %v3693_v53 = vmul.f32 %v8359_v44, %v9641_v42  ;;  %v3541_v22 = vmul.f32 %v8368_v62, %v9641_v42  ;;  %v3542_v4 = vmul.f32 %v8480_v45, %v9650_v1 }
 0x6a6   : > { %v3362_v25 = vadd.f32 %v9371_v18, %v3328_v9  ;;  %v3428_v36 = vrot.slane %v9641_v42, 1 }
 0x6a7   : > { %v3361_v14 = vadd.f32 %v9367_v19, %v3323_v32  ;;  %3712 = vrot.lane.b32.xlu0 %v3693_v53, %s11992_s4  ;;  %3561 = vrot.lane.b32.xlu1 %v3541_v22, %s11994_s24  ;;  %v7445_v5 = vpop.f32.mrb[14].mxu1  ;;  %v3694_v19 = vmul.f32 %v8368_v62, %v9650_v1  ;;  %v9674_v13 = vld [vmem:[#allocation2 + $0x48] sm:$0xff]  ;;  %v3626_v32 = vmul.f32 %v9641_v42, %v8464_v49 }
 0x6a8   : > { %3378 = vst.msk [vmem:[#allocation2 + $0x79] sm:$0xff] %vm742_vm0, %v3362_v25  ;;  %v3338_v29 = vadd.f32 %v7445_v5, %v9414_v15  ;;  %v3332_v35 = vpop.f32.mrb[15].mxu1  ;;  %v9667_v28 = vld [vmem:[#allocation2 + $0x38] sm:$0xff]  ;;  %v9676_v30 = vld [vmem:[#allocation2 + $0x40] sm:$0xff]  ;;  %v3782_v58 = vmul.f32 %v9674_v13, %v8709_v12  ;;  %v3474_v53 = vmul.f32 %v9641_v42, %v8613_v48  ;;  %v9718_v5 = vmul.f32 %v9650_v1, %v8621_v7 }
 0x6a9   : > { %3377 = vst.msk [vmem:[#allocation2 + $0x71] sm:$0xff] %vm742_vm0, %v3361_v14  ;;  %v3333_v18 = vadd.f32 %v9414_v15, %v3332_v35  ;;  %v9683_v55 = vmul.f32 %v9667_v28, %v8613_v48  ;;  %v3781_v59 = vmul.f32 %v9676_v30, %v8621_v7  ;;  %v3544_v47 = vmul.f32 %v8549_v40, %v9676_v30 }
 0x6aa   : > { %v3364_v33 = vadd.f32 %v9383_v2, %v3338_v29  ;;  %v3430_v2 = vrot.slane %v9650_v1, 1  ;;  %v9722_v29 = vmul.f32 %v9650_v1, %v8613_v48 }
 0x6ab   : > { %v3363_v10 = vadd.f32 %v9379_v34, %v3333_v18  ;;  %3563 = vrot.lane.b32.xlu0 %v3542_v4, %s11994_s24  ;;  %3714 = vrot.lane.b32.xlu1 %v3694_v19, %s11992_s4  ;;  %v3429_v34 = vsel %vm1509_vm13, %v3426_v17, %v3428_v36  ;;  %v3802_v61 = vrot.slane %v9683_v55, 2  ;;  %v3804_v27 = vrot.slane %v3781_v59, 2  ;;  %v9767_v59 = vld [vmem:[#allocation2 + $0xa8] sm:$0x3] }
 0x6ac   : > { %3380 = vst.msk [vmem:[#allocation2 + $0x89] sm:$0xff] %vm742_vm0, %v3364_v33  ;;  %v3806_v17 = vrot.slane %v3782_v58, 2  ;;  %v3431_v26 = vsel %vm1509_vm13, %v3428_v36, %v3430_v2  ;;  %v3498_v4 = vrot.slane %v9718_v5, 2  ;;  %v3649_v19 = vrot.slane %v9722_v29, 2 }
 0x6ad   : > { %3379 = vst.msk [vmem:[#allocation2 + $0x81] sm:$0xff] %vm742_vm0, %v3363_v10  ;;  %v3805_v25 = vsel %vm1611_vm14, %v3802_v61, %v3804_v27  ;;  %v3778_v33 = vmul.f32 %v9641_v42, %v8429_v8  ;;  %v3695_v36 = vmul.f32 %v8480_v45, %v9667_v28  ;;  %v3399_v10 = vmul.f32 %v8480_v45, %v9641_v42 }
 0x6ae   : > { %v7448_v16 = vpop.f32.mrb[16].mxu1  ;;  %v3809_v14 = vsel %vm1611_vm14, %v3806_v17, %v3808_v41  ;;  %3823 = vst.msk [vmem:[#allocation3 + $0x58] sm:$0xff] %vm742_vm0, %v3805_v25  ;;  %v3779_v55 = vmul.f32 %v9650_v1, %v8464_v49  ;;  %v3432_v42 = vrot.slane %v9667_v28, 1  ;;  %v3740_v41 = vrot.slane %v9655_v3, 1 }
 0x6af   : > { %v3348_v60 = vadd.f32 %v7448_v16, %v9414_v15  ;;  %3595 = vrot.lane.b32.xlu0 %v3429_v34, %s11988_s26  ;;  %3746 = vrot.lane.b32.xlu1 %v3429_v34, %s11984_s1  ;;  %v3342_v20 = vpop.f32.mrb[17].mxu1  ;;  %3825 = vst.msk [vmem:[#allocation3 + $0x78] sm:$0xff] %vm742_vm0, %v3809_v14  ;;  %v3798_v21 = vrot.slane %v3778_v33, 2  ;;  %3407 = vst.msk [vmem:[#allocation3 + $0x50] sm:$0xff] %vm742_vm0, %v3399_v10  ;;  %v4219_v3 = vmul.f32 %v9767_v59, %v8697_v11 }
 0x6b0   : > { %v3343_v37 = vadd.f32 %v9414_v15, %v3342_v20  ;;  %v3807_v15 = vsel %vm1611_vm14, %v3804_v27, %v3806_v17  ;;  %v3800_v16 = vrot.slane %v3779_v55, 2  ;;  %v3696_v20 = vmul.f32 %v8511_v46, %v9676_v30  ;;  %v9814_v14 = vld [vmem:[#allocation2 + $0x78] sm:$0xff] }
 0x6b1   : > { %v3366_v9 = vadd.f32 %v9395_v51, %v3348_v60  ;;  %3824 = vst.msk [vmem:[#allocation3 + $0x68] sm:$0xff] %vm742_vm0, %v3807_v15  ;;  %v3496_v51 = vrot.slane %v3474_v53, 2  ;;  %v3799_v24 = vsel %vm1611_vm14, %v3796_v6, %v3798_v21  ;;  %v3543_v6 = vmul.f32 %v8511_v46, %v9667_v28  ;;  %v9800_v53 = vld [vmem:[#allocation2 + $0x60] sm:$0xff] }
 0x6b2   : > { %v3365_v22 = vadd.f32 %v9391_v0, %v3343_v37  ;;  %v3647_v0 = vrot.slane %v3626_v32, 2  ;;  %3820 = vst.msk [vmem:[#allocation3 + $0x28] sm:$0xff] %vm742_vm0, %v3799_v24  ;;  %v3803_v58 = vsel %vm1611_vm14, %v3800_v16, %v3802_v61  ;;  %v3401_v60 = vmul.f32 %v8549_v40, %v9667_v28 }
 0x6b3   : > { %3382 = vst.msk [vmem:[#allocation2 + $0x99] sm:$0xff] %vm742_vm0, %v3366_v9  ;;  %3748 = vrot.lane.b32.xlu0 %v3431_v26, %s11984_s1  ;;  %3444 = vrot.lane.b32.xlu1 %v3429_v34, %s11990_s25  ;;  %v3497_v18 = vsel %vm1611_vm14, %v3494_v23, %v3496_v51  ;;  %v3499_v56 = vsel %vm1611_vm14, %v3496_v51, %v3498_v4  ;;  %3822 = vst.msk [vmem:[#allocation3 + $0x48] sm:$0xff] %vm742_vm0, %v3803_v58  ;;  %v3587_v37 = vrot.slane %v9674_v13, 1 }
 0x6b4   : > { %3381 = vst.msk [vmem:[#allocation2 + $0x91] sm:$0xff] %vm742_vm0, %v3365_v22  ;;  %v3648_v35 = vsel %vm1611_vm14, %v3645_v54, %v3647_v0  ;;  %v3650_v54 = vsel %vm1611_vm14, %v3647_v0, %v3649_v19  ;;  %v3697_v23 = vmul.f32 %v8549_v40, %v9674_v13  ;;  %v3801_v34 = vsel %vm1611_vm14, %v3798_v21, %v3800_v16  ;;  %v9803_v22 = vld [vmem:[#allocation2 + $0x68] sm:$0xff]  ;;  %v9827_v21 = vld [vmem:[#allocation2 + $0x80] sm:$0xff] }
 0x6b5   : > { %3821 = vst.msk [vmem:[#allocation3 + $0x38] sm:$0xff] %vm742_vm0, %v3801_v34  ;;  %v3400_v9 = vmul.f32 %v8511_v46, %v9650_v1  ;;  %v9791_v61 = vsel %vm1509_vm13, %v3430_v2, %v3432_v42  ;;  %3409 = vst.msk [vmem:[#allocation3 + $0x70] sm:$0xff] %vm742_vm0, %v3401_v60  ;;  %v9805_v1 = vld [vmem:[#allocation2 + $0x70] sm:$0xff]  ;;  %v3741_v15 = vsel %vm1509_vm13, %v3587_v37, %v3740_v41  ;;  %v4244_v51 = vrot.slane %v4219_v3, 2  ;;  %v9833_v10 = vld [vmem:[#allocation2 + $0x88] sm:$0xff] }
 0x6b6   : > { %v4212_v24 = vmul.f32 %v9805_v1, %v8274_v39  ;;  %v3839_v16 = vmul.f32 %v8304_v63, %v9803_v22  ;;  %v3842_v3 = vmul.f32 %v8480_v45, %v9827_v21  ;;  %v3978_v29 = vmul.f32 %v8232_v50, %v9800_v53 }
 0x6b7   : > { %3446 = vrot.lane.b32.xlu0 %v3431_v26, %s11990_s25  ;;  %3597 = vrot.lane.b32.xlu1 %v3431_v26, %s11988_s26  ;;  %v3434_v26 = vrot.slane %v9676_v30, 1  ;;  %3408 = vst.msk [vmem:[#allocation3 + $0x60] sm:$0xff] %vm742_vm0, %v3400_v9  ;;  %v3841_v9 = vmul.f32 %v8368_v62, %v9814_v14 }
 0x6b8   : > { %v4230_v41 = vrot.slane %v4212_v24, 2  ;;  %3847 = vst.msk [vmem:[#allocation3 + $0xa0] sm:$0xff] %vm742_vm0, %v3839_v16  ;;  %3850 = vst.msk [vmem:[#allocation3 + $0xd0] sm:$0xff] %vm742_vm0, %v3842_v3  ;;  %v3476_v24 = vmul.f32 %v9667_v28, %v8709_v12  ;;  %v3865_v3 = vrot.slane %v9803_v22, 1 }
 0x6b9   : > { %3849 = vst.msk [vmem:[#allocation3 + $0xc0] sm:$0xff] %vm742_vm0, %v3841_v9 }
 0x6ba   : > { %v9795_v32 = vld [vmem:[#allocation2 + $0xa0] sm:$0xff] }
 0x6bb   : > { %3663 = vrot.lane.b32.xlu0 %v3648_v35, %s12051_s0  ;;  %3512 = vrot.lane.b32.xlu1 %v3497_v18, %s11986_s23  ;;  %v9780_v27 = vld [vmem:[#allocation2 + $0x90] sm:$0xff]  ;;  %v9782_v17 = vld [vmem:[#allocation2 + $0x98] sm:$0xff]  ;;  %v4218_v0 = vmul.f32 %v9795_v32, %v8709_v12  ;;  %v3435_v35 = vsel %vm1509_vm13, %v3432_v42, %v3434_v26 }
 0x6bc   : > { %v4216_v2 = vmul.f32 %v9780_v27, %v8613_v48  ;;  %v4217_v25 = vmul.f32 %v9782_v17, %v8621_v7 }
 0x6be   : > { %v4238_v18 = vrot.slane %v4216_v2, 2  ;;  %v4240_v33 = vrot.slane %v4217_v25, 2  ;;  %v4215_v25 = vmul.f32 %v9833_v10, %v8464_v49 }
 0x6bf   : > { %3514 = vrot.lane.b32.xlu0 %v3499_v56, %s11986_s23  ;;  %3665 = vrot.lane.b32.xlu1 %v3650_v54, %s12051_s0  ;;  %v3838_v56 = vmul.f32 %v8270_v38, %v9800_v53  ;;  %v9825_v54 = vmul.f32 %v9667_v28, %v8621_v7 }
 0x6c0   : > { %v4241_v55 = vsel %vm1611_vm14, %v4238_v18, %v4240_v33 }
 0x6c1   : > { %3846 = vst.msk [vmem:[#allocation3 + $0x90] sm:$0xff] %vm742_vm0, %v3838_v56  ;;  %4259 = vst.msk [vmem:[#allocation3 + $0xd8] sm:$0xff] %vm742_vm0, %v4241_v55  ;;  %v3588_v56 = vsel %vm1509_vm13, %v3434_v26, %v3587_v37  ;;  %v3477_v55 = vmul.f32 %v9676_v30, %v8697_v11 }
 0x6c3   : > { %3720 = vrot.lane.b32.xlu1 %v3697_v23, %s11992_s4  ;;  %3716 = vrot.lane.b32.xlu0 %v3695_v36, %s11992_s4  ;;  %v4242_v23 = vrot.slane %v4218_v0, 2  ;;  %v4211_v36 = vmul.f32 %v9803_v22, %v8264_v31 }
 0x6c5   : > { %v4243_v42 = vsel %vm1611_vm14, %v4240_v33, %v4242_v23  ;;  %v4245_v34 = vsel %vm1611_vm14, %v4242_v23, %v4244_v51  ;;  %v4229_v58 = vrot.slane %v4211_v36, 2  ;;  %v3844_v33 = vmul.f32 %v8549_v40, %v9780_v27 }
 0x6c6   : > { %4260 = vst.msk [vmem:[#allocation3 + $0xe8] sm:$0xff] %vm742_vm0, %v4243_v42  ;;  %4261 = vst.msk [vmem:[#allocation3 + $0xf8] sm:$0xff] %vm742_vm0, %v4245_v34  ;;  %v4236_v23 = vrot.slane %v4215_v25, 2  ;;  %v3651_v36 = vrot.slane %v9825_v54, 2  ;;  %v3500_v54 = vrot.slane %v3476_v24, 2  ;;  %v4061_v24 = vmul.f32 %v9800_v53, %v8264_v31 }
 0x6c7   : > { %3567 = vrot.lane.b32.xlu0 %v3544_v47, %s11994_s24  ;;  %3565 = vrot.lane.b32.xlu1 %v3543_v6, %s11994_s24  ;;  %v3840_v47 = vmul.f32 %v8359_v44, %v9805_v1  ;;  %v4213_v6 = vmul.f32 %v9814_v14, %v8295_v57  ;;  %v4231_v2 = vsel %vm1611_vm14, %v4229_v58, %v4230_v41 }
 0x6c8   : > { %4254 = vst.msk [vmem:[#allocation3 + $0x88] sm:$0xff] %vm742_vm0, %v4231_v2  ;;  %3852 = vst.msk [vmem:[#allocation3 + $0xf0] sm:$0xff] %vm742_vm0, %v3844_v33  ;;  %v4239_v26 = vsel %vm1611_vm14, %v4236_v23, %v4238_v18  ;;  %v3652_v28 = vsel %vm1611_vm14, %v3649_v19, %v3651_v36  ;;  %v3501_v19 = vsel %vm1611_vm14, %v3498_v4, %v3500_v54  ;;  %v3863_v4 = vrot.slane %v9800_v53, 1 }
 0x6c9   : > { %3848 = vst.msk [vmem:[#allocation3 + $0xb0] sm:$0xff] %vm742_vm0, %v3840_v47  ;;  %v4232_v60 = vrot.slane %v4213_v6, 2  ;;  %4258 = vst.msk [vmem:[#allocation3 + $0xc8] sm:$0xff] %vm742_vm0, %v4239_v26  ;;  %v3502_v47 = vrot.slane %v3477_v55, 2  ;;  %v3629_v6 = vmul.f32 %v9676_v30, %v8709_v12  ;;  %v3911_v2 = vmul.f32 %v9443_v43, %v8264_v31 }
 0x6ca   : > { %v4128_v33 = vmul.f32 %v8232_v50, %v9803_v22  ;;  %v9940_v55 = vmul.f32 %v9803_v22, %v8274_v39 }
 0x6cb   : > { %3718 = vrot.lane.b32.xlu1 %v3696_v20, %s11992_s4  ;;  %3599 = vrot.lane.b32.xlu0 %v9791_v61, %s11988_s26  ;;  %v4214_v20 = vmul.f32 %v9827_v21, %v8429_v8  ;;  %v4233_v0 = vsel %vm1611_vm14, %v4230_v41, %v4232_v60  ;;  %v3653_v34 = vrot.slane %v3629_v6, 2  ;;  %v3979_v41 = vmul.f32 %v8270_v38, %v9803_v22 }
 0x6cc   : > { %4255 = vst.msk [vmem:[#allocation3 + $0x98] sm:$0xff] %vm742_vm0, %v4233_v0  ;;  %v3912_v0 = vmul.f32 %v9800_v53, %v8274_v39 }
 0x6cd   : > { %v4234_v51 = vrot.slane %v4214_v20, 2  ;;  %v3654_v20 = vsel %vm1611_vm14, %v3651_v36, %v3653_v34 }
 0x6ce   : > { %v3930_v36 = vrot.slane %v3912_v0, 2 }
 0x6cf   : > { %3756 = vrot.lane.b32.xlu1 %v3741_v15, %s11984_s1  ;;  %3752 = vrot.lane.b32.xlu0 %v3435_v35, %s11984_s1  ;;  %v3843_v15 = vmul.f32 %v8511_v46, %v9833_v10  ;;  %v4235_v16 = vsel %vm1611_vm14, %v4232_v60, %v4234_v51  ;;  %v4237_v37 = vsel %vm1611_vm14, %v4234_v51, %v4236_v23  ;;  %v3862_v60 = vrot.slane %v9443_v43, 1 }
 0x6d0   : > { %4256 = vst.msk [vmem:[#allocation3 + $0xa8] sm:$0xff] %vm742_vm0, %v4235_v16  ;;  %4257 = vst.msk [vmem:[#allocation3 + $0xb8] sm:$0xff] %vm742_vm0, %v4237_v37  ;;  %v3929_v23 = vrot.slane %v3911_v2, 2  ;;  %v9944_v16 = vmul.f32 %v9803_v22, %v8295_v57  ;;  %v4063_v22 = vmul.f32 %v9805_v1, %v8295_v57 }
 0x6d1   : > { %3851 = vst.msk [vmem:[#allocation3 + $0xe0] sm:$0xff] %vm742_vm0, %v3843_v15  ;;  %v3864_v15 = vsel %vm1509_vm13, %v3862_v60, %v3863_v4  ;;  %v4130_v60 = vmul.f32 %v8304_v63, %v9814_v14 }
 0x6d2   : > { %v3931_v53 = vsel %vm1611_vm14, %v3929_v23, %v3930_v36 }
 0x6d3   : > { %3450 = vrot.lane.b32.xlu0 %v3435_v35, %s11990_s25  ;;  %3750 = vrot.lane.b32.xlu1 %v9791_v61, %s11984_s1 }
 0x6d7   : > { %3603 = vrot.lane.b32.xlu0 %v3588_v56, %s11988_s26  ;;  %3448 = vrot.lane.b32.xlu1 %v9791_v61, %s11990_s25  ;;  %v3503_v61 = vsel %vm1611_vm14, %v3500_v54, %v3502_v47  ;;  %v4080_v54 = vrot.slane %v9940_v55, 2  ;;  %v3932_v47 = vrot.slane %v9944_v16, 2  ;;  %v4267_v55 = vld [vmem:[#allocation3 + $0x28] sm:$0xff]  ;;  %v4131_v16 = vmul.f32 %v8359_v44, %v9827_v21 }
 0x6db   : > { %3667 = vrot.lane.b32.xlu0 %v3652_v28, %s12051_s0  ;;  %3601 = vrot.lane.b32.xlu1 %v3435_v35, %s11988_s26  ;;  %v3630_v35 = vmul.f32 %v9674_v13, %v8697_v11  ;;  %v4079_v28 = vrot.slane %v4061_v24, 2 }
 0x6dd   : > { %v3655_v5 = vrot.slane %v3630_v35, 2  ;;  %v3980_v35 = vmul.f32 %v8304_v63, %v9805_v1 }
 0x6df   : > { %3518 = vrot.lane.b32.xlu0 %v3503_v61, %s11986_s23  ;;  %3754 = vrot.lane.b32.xlu1 %v3588_v56, %s11984_s1  ;;  %v3656_v25 = vsel %vm1611_vm14, %v3653_v34, %v3655_v5  ;;  %v3866_v56 = vsel %vm1509_vm13, %v3863_v4, %v3865_v3  ;;  %v4129_v34 = vmul.f32 %v8270_v38, %v9805_v1 }
 0x6e0   : > { %v3554_v18 = vpop.permute.xlu0 %3553  ;;  %v3707_v42 = vpop.permute.xlu1 %3706 }
 0x6e3   : > { %3516 = vrot.lane.b32.xlu1 %v3501_v19, %s11986_s23  ;;  %3994 = vrot.lane.b32.xlu0 %v3978_v29, %s11994_s24 }
 0x6e4   : > { %v3556_v30 = vpop.permute.xlu0 %3555  ;;  %v3590_v58 = vpop.permute.xlu1 %3589 }
 0x6e7   : > { %3669 = vrot.lane.b32.xlu1 %v3654_v20, %s12051_s0  ;;  %3996 = vrot.lane.b32.xlu0 %v3979_v41, %s11994_s24  ;;  %v3981_v41 = vmul.f32 %v8359_v44, %v9814_v14  ;;  %v3867_v20 = vrot.slane %v9805_v1, 1 }
 0x6e8   : > { %v3437_v13 = vpop.permute.xlu0 %3436  ;;  %v3505_v9 = vpop.permute.xlu1 %3504 }
 0x6e9   : > { %3461 = vst.msk [vmem:[#allocation3] sm:$0xff] %vm3460_vm9, %v3437_v13  ;;  %v3868_v2 = vsel %vm1509_vm13, %v3865_v3, %v3867_v20  ;;  %v3914_v3 = vmul.f32 %v9805_v1, %v8429_v8  ;;  %v10004_v1 = vmul.f32 %v9814_v14, %v8464_v49 }
 0x6ea   : > { %3529 = vst.msk [vmem:[#allocation3] sm:$0xff] %vm3528_vm10, %v3505_v9  ;;  %v4265_v9 = vld [vmem:[#allocation3 + $0x18] sm:$0xff] }
 0x6eb   : > { %3578 = vst.msk [vmem:[#allocation3] sm:$0xff] %vm3577_vm12, %v3554_v18  ;;  %3671 = vrot.lane.b32.xlu1 %v3656_v25, %s12051_s0  ;;  %3879 = vrot.lane.b32.xlu0 %v3864_v15, %s11990_s25  ;;  %v4081_v18 = vsel %vm1611_vm14, %v4079_v28, %v4080_v54  ;;  %v3869_v25 = vrot.slane %v9814_v14, 1  ;;  %v3934_v23 = vrot.slane %v3914_v3, 2 }
 0x6ec   : > { %v3439_v51 = vpop.permute.xlu0 %3438  ;;  %3614 = vst.msk [vmem:[#allocation3] sm:$0xff] %vm3613_vm6, %v3590_v58  ;;  %v3658_v43 = vpop.permute.xlu1 %3657 }
 0x6ed   : > { %3462 = vst.msk [vmem:[#allocation3 + $0x10] sm:$0xff] %vm3460_vm9, %v3439_v51  ;;  %v3870_v51 = vsel %vm1509_vm13, %v3867_v20, %v3869_v25 }
 0x6ee   : > { %3682 = vst.msk [vmem:[#allocation3] sm:$0xff] %vm3681_vm11, %v3658_v43 }
 0x6ef   : > { %3731 = vst.msk [vmem:[#allocation3] sm:$0xff] %vm3730_vm15, %v3707_v42  ;;  %4144 = vrot.lane.b32.xlu1 %v4128_v33, %s11992_s4  ;;  %3881 = vrot.lane.b32.xlu0 %v3866_v56, %s11990_s25  ;;  %v3933_v42 = vsel %vm1611_vm14, %v3930_v36, %v3932_v47  ;;  %v10008_v36 = vmul.f32 %v9814_v14, %v8429_v8 }
 0x6f0   : > { %v3507_v37 = vpop.permute.xlu0 %3506  ;;  %v3558_v26 = vpop.permute.xlu1 %3557  ;;  %v3935_v14 = vsel %vm1611_vm14, %v3932_v47, %v3934_v23 }
 0x6f1   : > { %3530 = vst.msk [vmem:[#allocation3 + $0x10] sm:$0xff] %vm3528_vm10, %v3507_v37 }
 0x6f2   : > { %3579 = vst.msk [vmem:[#allocation3 + $0x10] sm:$0xff] %vm3577_vm12, %v3556_v30 }
 0x6f3   : > { %4029 = vrot.lane.b32.xlu1 %v3866_v56, %s11988_s26  ;;  %3946 = vrot.lane.b32.xlu0 %v3931_v53, %s11986_s23  ;;  %v4082_v56 = vrot.slane %v4063_v22, 2  ;;  %v4084_v53 = vrot.slane %v10008_v36, 2 }
 0x6f4   : > { %v3709_v61 = vpop.permute.xlu0 %3708  ;;  %v3711_v6 = vpop.permute.xlu1 %3710 }
 0x6f5   : > { %v4083_v37 = vsel %vm1611_vm14, %v4080_v54, %v4082_v56  ;;  %v3982_v54 = vmul.f32 %v8368_v62, %v9827_v21 }
 0x6f7   : > { %4096 = vrot.lane.b32.xlu1 %v4081_v18, %s12051_s0  ;;  %3948 = vrot.lane.b32.xlu0 %v3933_v42, %s11986_s23  ;;  %v3983_v42 = vmul.f32 %v8480_v45, %v9833_v10 }
 0x6f8   : > { %v3560_v29 = vpop.permute.xlu0 %3559  ;;  %v3743_v19 = vpop.permute.xlu1 %3742 }
 0x6f9   : > { %3767 = vst.msk [vmem:[#allocation3] sm:$0xff] %vm3766_vm1, %v3743_v19  ;;  %v3871_v19 = vrot.slane %v9827_v21, 1 }
 0x6fb   : > { %4146 = vrot.lane.b32.xlu0 %v4129_v34, %s11992_s4  ;;  %3998 = vrot.lane.b32.xlu1 %v3980_v35, %s11994_s24 }
 0x6fc   : > { %v3592_v30 = vpop.permute.xlu0 %3591  ;;  %v3441_v58 = vpop.permute.xlu1 %3440 }
 0x6fd   : > { %3615 = vst.msk [vmem:[#allocation3 + $0x10] sm:$0xff] %vm3613_vm6, %v3592_v30  ;;  %v3872_v30 = vsel %vm1509_vm13, %v3869_v25, %v3871_v19 }
 0x6fe   : > { %3463 = vst.msk [vmem:[#allocation3 + $0x20] sm:$0xff] %vm3460_vm9, %v3441_v58  ;;  %v3873_v58 = vrot.slane %v9833_v10, 1 }
 0x6ff   : > { %4000 = vrot.lane.b32.xlu0 %v3981_v41, %s11994_s24  ;;  %4148 = vrot.lane.b32.xlu1 %v4130_v60, %s11992_s4 }
 0x700   : > { %v3745_v5 = vpop.permute.xlu0 %3744  ;;  %v3594_v4 = vpop.permute.xlu1 %3593  ;;  %v4262_v13 = vld [vmem:[#allocation3] sm:$0xff]  ;;  %v3874_v20 = vsel %vm1509_vm13, %v3871_v19, %v3873_v58 }
 0x701   : > { %4425 = vmatmul.mubr.f32.vlgmr.msra.gmra.mrb[18].mxu1 %v4262_v13 }
 0x702   : > { %7182 = vmatprep.mubr.msk.f32.mxu1 %vm742_vm0, %v4265_v9 }
 0x703   : > { %4031 = vrot.lane.b32.xlu0 %v3868_v2, %s11988_s26  ;;  %4179 = vrot.lane.b32.xlu1 %v3868_v2, %s11984_s1 }
 0x704   : > { %v3443_v15 = vpop.permute.xlu0 %3442  ;;  %v3509_v0 = vpop.permute.xlu1 %3508 }
 0x705   : > { %3464 = vst.msk [vmem:[#allocation3 + $0x30] sm:$0xff] %vm3460_vm9, %v3443_v15  ;;  %v10061_v15 = vmul.f32 %v9833_v10, %v8621_v7 }
 0x706   : > { %3531 = vst.msk [vmem:[#allocation3 + $0x20] sm:$0xff] %vm3528_vm10, %v3509_v0  ;;  %v10065_v0 = vmul.f32 %v9833_v10, %v8613_v48 }
 0x707   : > { %3580 = vst.msk [vmem:[#allocation3 + $0x20] sm:$0xff] %vm3577_vm12, %v3558_v26  ;;  %4181 = vrot.lane.b32.xlu0 %v3870_v51, %s11984_s1  ;;  %3883 = vrot.lane.b32.xlu1 %v3868_v2, %s11990_s25  ;;  %v3936_v26 = vrot.slane %v10004_v1, 2 }
 0x708   : > { %3616 = vst.msk [vmem:[#allocation3 + $0x20] sm:$0xff] %vm3613_vm6, %v3594_v4  ;;  %v3660_v43 = vpop.permute.xlu0 %3659  ;;  %v3662_v33 = vpop.permute.xlu1 %3661  ;;  %v3916_v4 = vmul.f32 %v9827_v21, %v8613_v48 }
 0x709   : > { %3683 = vst.msk [vmem:[#allocation3 + $0x10] sm:$0xff] %vm3681_vm11, %v3660_v43  ;;  %3684 = vst.msk [vmem:[#allocation3 + $0x20] sm:$0xff] %vm3681_vm11, %v3662_v33  ;;  %v3937_v28 = vsel %vm1611_vm14, %v3934_v23, %v3936_v26  ;;  %v3940_v33 = vrot.slane %v10061_v15, 2  ;;  %v4269_v23 = vld [vmem:[#allocation3 + $0x38] sm:$0xff] }
 0x70a   : > { %3732 = vst.msk [vmem:[#allocation3 + $0x10] sm:$0xff] %vm3730_vm15, %v3709_v61  ;;  %3733 = vst.msk [vmem:[#allocation3 + $0x20] sm:$0xff] %vm3730_vm15, %v3711_v6  ;;  %v4085_v61 = vsel %vm1611_vm14, %v4082_v56, %v4084_v53  ;;  %v3938_v25 = vrot.slane %v3916_v4, 2  ;;  %v4088_v56 = vrot.slane %v10065_v0, 2  ;;  %v3918_v4 = vmul.f32 %v9780_v27, %v8709_v12 }
 0x70b   : > { %3768 = vst.msk [vmem:[#allocation3 + $0x10] sm:$0xff] %vm3766_vm1, %v3745_v5  ;;  %3885 = vrot.lane.b32.xlu0 %v3870_v51, %s11990_s25  ;;  %4033 = vrot.lane.b32.xlu1 %v3870_v51, %s11988_s26  ;;  %v4065_v5 = vmul.f32 %v9827_v21, %v8464_v49 }
 0x70c   : > { %v3511_v24 = vpop.permute.xlu0 %3510  ;;  %v3939_v43 = vsel %vm1611_vm14, %v3936_v26, %v3938_v25 }
 0x70d   : > { %3532 = vst.msk [vmem:[#allocation3 + $0x30] sm:$0xff] %vm3528_vm10, %v3511_v24  ;;  %v4086_v2 = vrot.slane %v4065_v5, 2  ;;  %v3941_v24 = vsel %vm1611_vm14, %v3938_v25, %v3940_v33  ;;  %v4027_v5 = vrot.slane %v9795_v32, 1 }
 0x70e   : > { %3581 = vst.msk [vmem:[#allocation3 + $0x30] sm:$0xff] %vm3577_vm12, %v3560_v29  ;;  %v4132_v29 = vmul.f32 %v8368_v62, %v9833_v10 }
 0x70f   : > { %4098 = vrot.lane.b32.xlu0 %v4083_v37, %s12051_s0  ;;  %3950 = vrot.lane.b32.xlu1 %v3935_v14, %s11986_s23  ;;  %v4087_v3 = vsel %vm1611_vm14, %v4084_v53, %v4086_v2  ;;  %v4089_v37 = vsel %vm1611_vm14, %v4086_v2, %v4088_v56  ;;  %v4133_v53 = vmul.f32 %v8480_v45, %v9780_v27 }
 0x710   : > { %v3919_v2 = vmul.f32 %v9782_v17, %v8697_v11 }
 0x712   : > { %v4264_v6 = vld [vmem:[#allocation3 + $0x10] sm:$0xff] }
 0x713   : > { %3952 = vrot.lane.b32.xlu0 %v3937_v28, %s11986_s23  ;;  %4100 = vrot.lane.b32.xlu1 %v4085_v61, %s12051_s0  ;;  %v3984_v28 = vmul.f32 %v8511_v46, %v9780_v27 }
 0x714   : > { %4430 = vmatmul.mubr.f32.gmra.mrb[20].mxu1 %v4264_v6 }
 0x715   : > { %7183 = vmatprep.mubr.msk.f32.mxu1 %vm742_vm0, %v4267_v55  ;;  %v3985_v55 = vmul.f32 %v8549_v40, %v9782_v17 }
 0x717   : > { %4150 = vrot.lane.b32.xlu0 %v4131_v16, %s11992_s4  ;;  %4002 = vrot.lane.b32.xlu1 %v3982_v54, %s11994_s24  ;;  %v4134_v16 = vmul.f32 %v8511_v46, %v9782_v17  ;;  %v3875_v54 = vrot.slane %v9780_v27, 1 }
 0x719   : > { %v3713_v47 = vpop.permute.xlu0 %3712  ;;  %v3562_v18 = vpop.permute.xlu1 %3561  ;;  %v3876_v19 = vsel %vm1509_vm13, %v3873_v58, %v3875_v54 }
 0x71b   : > { %4004 = vrot.lane.b32.xlu0 %v3983_v42, %s11994_s24  ;;  %4152 = vrot.lane.b32.xlu1 %v4132_v29, %s11992_s4 }
 0x71d   : > { %v3564_v34 = vpop.permute.xlu0 %3563  ;;  %v3715_v35 = vpop.permute.xlu1 %3714 }
 0x71f   : > { %4035 = vrot.lane.b32.xlu0 %v3872_v30, %s11988_s26  ;;  %4183 = vrot.lane.b32.xlu1 %v3872_v30, %s11984_s1 }
 0x721   : > { %v3596_v41 = vpop.permute.xlu0 %3595  ;;  %v3747_v60 = vpop.permute.xlu1 %3746 }
 0x722   : > { %3617 = vst.msk [vmem:[#allocation3 + $0x30] sm:$0xff] %vm3613_vm6, %v3596_v41 }
 0x723   : > { %3769 = vst.msk [vmem:[#allocation3 + $0x20] sm:$0xff] %vm3766_vm1, %v3747_v60  ;;  %4185 = vrot.lane.b32.xlu0 %v3874_v20, %s11984_s1  ;;  %3887 = vrot.lane.b32.xlu1 %v3872_v30, %s11990_s25  ;;  %v4067_v60 = vmul.f32 %v9780_v27, %v8621_v7  ;;  %v3942_v27 = vrot.slane %v3918_v4, 2 }
 0x725   : > { %v3749_v13 = vpop.permute.xlu0 %3748  ;;  %v3445_v9 = vpop.permute.xlu1 %3444  ;;  %v3943_v0 = vsel %vm1611_vm14, %v3940_v33, %v3942_v27 }
 0x726   : > { %3465 = vst.msk [vmem:[#allocation3 + $0x40] sm:$0xff] %vm3460_vm9, %v3445_v9 }
 0x727   : > { %3889 = vrot.lane.b32.xlu0 %v3874_v20, %s11990_s25  ;;  %4037 = vrot.lane.b32.xlu1 %v3874_v20, %s11988_s26  ;;  %v4090_v20 = vrot.slane %v4067_v60, 2 }
 0x729   : > { %v3447_v21 = vpop.permute.xlu0 %3446  ;;  %v3598_v51 = vpop.permute.xlu1 %3597  ;;  %v4091_v25 = vsel %vm1611_vm14, %v4088_v56, %v4090_v20 }
 0x72a   : > { %v4266_v22 = vld [vmem:[#allocation3 + $0x20] sm:$0xff]  ;;  %3466 = vst.msk [vmem:[#allocation3 + $0x50] sm:$0xff] %vm3460_vm9, %v3447_v21 }
 0x72b   : > { %4435 = vmatmul.mubr.f32.gmra.mrb[22].mxu1 %v4266_v22  ;;  %4102 = vrot.lane.b32.xlu0 %v4087_v3, %s12051_s0 }
 0x72c   : > { %3954 = vrot.lane.b32.xlu1 %v3939_v43, %s11986_s23  ;;  %7184 = vmatprep.mubr.msk.f32.mxu1 %vm742_vm0, %v4269_v23  ;;  %v3944_v43 = vrot.slane %v3919_v2, 2  ;;  %v4069_v23 = vmul.f32 %v9795_v32, %v8697_v11 }
 0x72d   : > { %v3664_v1 = vpop.permute.xlu0 %3663  ;;  %v3513_v36 = vpop.permute.xlu1 %3512 }
 0x72e   : > { %3685 = vst.msk [vmem:[#allocation3 + $0x30] sm:$0xff] %vm3681_vm11, %v3664_v1  ;;  %v4094_v33 = vrot.slane %v4069_v23, 2 }
 0x72f   : > { %3533 = vst.msk [vmem:[#allocation3 + $0x40] sm:$0xff] %vm3528_vm10, %v3513_v36  ;;  %3956 = vrot.lane.b32.xlu0 %v3941_v24, %s11986_s23  ;;  %v3945_v24 = vsel %vm1611_vm14, %v3942_v27, %v3944_v43 }
 0x730   : > { %3734 = vst.msk [vmem:[#allocation3 + $0x30] sm:$0xff] %vm3730_vm15, %v3713_v47  ;;  %4104 = vrot.lane.b32.xlu1 %v4089_v37, %s12051_s0  ;;  %v4273_v37 = vld [vmem:[#allocation3 + $0x58] sm:$0xff] }
 0x731   : > { %3582 = vst.msk [vmem:[#allocation3 + $0x40] sm:$0xff] %vm3577_vm12, %v3562_v18  ;;  %v3515_v14 = vpop.permute.xlu0 %3514  ;;  %v3666_v26 = vpop.permute.xlu1 %3665  ;;  %v4271_v18 = vld [vmem:[#allocation3 + $0x48] sm:$0xff] }
 0x732   : > { %3770 = vst.msk [vmem:[#allocation3 + $0x30] sm:$0xff] %vm3766_vm1, %v3749_v13 }
 0x733   : > { %3618 = vst.msk [vmem:[#allocation3 + $0x40] sm:$0xff] %vm3613_vm6, %v3598_v51  ;;  %4154 = vrot.lane.b32.xlu0 %v4133_v53, %s11992_s4  ;;  %v4068_v51 = vmul.f32 %v9782_v17, %v8709_v12  ;;  %v4135_v53 = vmul.f32 %v8549_v40, %v9795_v32 }
 0x734   : > { %3534 = vst.msk [vmem:[#allocation3 + $0x50] sm:$0xff] %vm3528_vm10, %v3515_v14  ;;  %4006 = vrot.lane.b32.xlu1 %v3984_v28, %s11994_s24 }
 0x735   : > { %3686 = vst.msk [vmem:[#allocation3 + $0x40] sm:$0xff] %vm3681_vm11, %v3666_v26  ;;  %v3717_v61 = vpop.permute.xlu0 %3716  ;;  %v10101_v6 = vpop.permute.xlu1 %3720  ;;  %v4092_v56 = vrot.slane %v4068_v51, 2 }
 0x736   : > { %3583 = vst.msk [vmem:[#allocation3 + $0x50] sm:$0xff] %vm3577_vm12, %v3564_v34  ;;  %v3877_v34 = vrot.slane %v9782_v17, 1 }
 0x737   : > { %3735 = vst.msk [vmem:[#allocation3 + $0x40] sm:$0xff] %vm3730_vm15, %v3715_v35  ;;  %4008 = vrot.lane.b32.xlu0 %v3985_v55, %s11994_s24  ;;  %v4093_v15 = vsel %vm1611_vm14, %v4090_v20, %v4092_v56  ;;  %v4095_v28 = vsel %vm1611_vm14, %v4092_v56, %v4094_v33  ;;  %v4281_v56 = vld [vmem:[#allocation3 + $0x98] sm:$0xff] }
 0x738   : > { %4156 = vrot.lane.b32.xlu1 %v4134_v16, %s11992_s4  ;;  %v3878_v41 = vsel %vm1509_vm13, %v3875_v54, %v3877_v34  ;;  %v4028_v21 = vsel %vm1509_vm13, %v3877_v34, %v4027_v5  ;;  %v4275_v54 = vld [vmem:[#allocation3 + $0x68] sm:$0xff] }
 0x739   : > { %v4268_v47 = vld [vmem:[#allocation3 + $0x30] sm:$0xff]  ;;  %v3568_v42 = vpop.permute.xlu0 %3567  ;;  %v10111_v29 = vpop.permute.xlu1 %3565 }
 0x73a   : > { %4440 = vmatmul.mubr.f32.gmra.mrb[24].mxu1 %v4268_v47 }
 0x73b   : > { %7185 = vmatprep.mubr.msk.f32.mxu1 %vm742_vm0, %v4271_v18  ;;  %4039 = vrot.lane.b32.xlu0 %v3876_v19, %s11988_s26 }
 0x73c   : > { %4187 = vrot.lane.b32.xlu1 %v3876_v19, %s11984_s1 }
 0x73d   : > { %v3600_v35 = vpop.permute.xlu0 %3599  ;;  %v10119_v30 = vpop.permute.xlu1 %3718 }
 0x73e   : > { %3619 = vst.msk [vmem:[#allocation3 + $0x50] sm:$0xff] %vm3613_vm6, %v3600_v35 }
 0x73f   : > { %4189 = vrot.lane.b32.xlu0 %v3878_v41, %s11984_s1 }
 0x740   : > { %3891 = vrot.lane.b32.xlu1 %v3876_v19, %s11990_s25 }
 0x741   : > { %v3753_v10 = vpop.permute.xlu0 %3752  ;;  %v10127_v58 = vpop.permute.xlu1 %3756 }
 0x743   : > { %3893 = vrot.lane.b32.xlu0 %v3878_v41, %s11990_s25 }
 0x744   : > { %4041 = vrot.lane.b32.xlu1 %v3878_v41, %s11988_s26 }
 0x745   : > { %v3451_v13 = vpop.permute.xlu0 %3450  ;;  %v3751_v9 = vpop.permute.xlu1 %3750 }
 0x746   : > { %3468 = vst.msk [vmem:[#allocation3 + $0x70] sm:$0xff] %vm3460_vm9, %v3451_v13  ;;  %v10198_v13 = vld [vmem:[#allocation2] sm:$0xff] }
 0x747   : > { %3771 = vst.msk [vmem:[#allocation3 + $0x40] sm:$0xff] %vm3766_vm1, %v3751_v9  ;;  %4106 = vrot.lane.b32.xlu0 %v4091_v25, %s12051_s0  ;;  %v4594_v9 = vmul.f32 %v8232_v50, %v10198_v13 }
 0x748   : > { %4191 = vrot.lane.b32.xlu1 %v4028_v21, %s11984_s1 }
 0x749   : > { %v3604_v22 = vpop.permute.xlu0 %3603  ;;  %v3449_v3 = vpop.permute.xlu1 %3448  ;;  %4602 = vst.msk [vmem:[#allocation3] sm:$0xff] %vm742_vm0, %v4594_v9 }
 0x74a   : > { %3467 = vst.msk [vmem:[#allocation3 + $0x60] sm:$0xff] %vm3460_vm9, %v3449_v3 }
 0x74b   : > { %4043 = vrot.lane.b32.xlu0 %v4028_v21, %s11988_s26 }
 0x74c   : > { %3958 = vrot.lane.b32.xlu1 %v3943_v0, %s11986_s23 }
 0x74d   : > { %v3668_v17 = vpop.permute.xlu0 %3667  ;;  %v3602_v1 = vpop.permute.xlu1 %3601 }
 0x74e   : > { %v4270_v36 = vld [vmem:[#allocation3 + $0x40] sm:$0xff]  ;;  %3687 = vst.msk [vmem:[#allocation3 + $0x50] sm:$0xff] %vm3681_vm11, %v3668_v17 }
 0x74f   : > { %4445 = vmatmul.mubr.f32.gmra.mrb[26].mxu1 %v4270_v36  ;;  %3736 = vst.msk [vmem:[#allocation3 + $0x50] sm:$0xff] %vm3730_vm15, %v3717_v61  ;;  %3960 = vrot.lane.b32.xlu0 %v3945_v24, %s11986_s23  ;;  %v4177_v61 = vrot.slane %v9767_v59, 1 }
 0x750   : > { %4108 = vrot.lane.b32.xlu1 %v4093_v15, %s12051_s0  ;;  %3772 = vst.msk [vmem:[#allocation3 + $0x50] sm:$0xff] %vm3766_vm1, %v3753_v10  ;;  %7186 = vmatprep.mubr.msk.f32.mxu1 %vm742_vm0, %v4273_v37  ;;  %v4283_v37 = vld [vmem:[#allocation3 + $0xa8] sm:$0xff] }
 0x751   : > { %v3519_v14 = vpop.permute.xlu0 %3518  ;;  %v3755_v26 = vpop.permute.xlu1 %3754  ;;  %v4178_v32 = vsel %vm1509_vm13, %v4027_v5, %v4177_v61 }
 0x752   : > { %3536 = vst.msk [vmem:[#allocation3 + $0x70] sm:$0xff] %vm3528_vm10, %v3519_v14 }
 0x753   : > { %3585 = vst.msk [vmem:[#allocation3 + $0x70] sm:$0xff] %vm3577_vm12, %v3568_v42  ;;  %4158 = vrot.lane.b32.xlu0 %v4135_v53, %s11992_s4  ;;  %s12057_s4 = smov 112  }
 0x754   : > { %4110 = vrot.lane.b32.xlu1 %v4095_v28, %s12051_s0  ;;  %3621 = vst.msk [vmem:[#allocation3 + $0x70] sm:$0xff] %vm3613_vm6, %v3604_v22 }
 0x755   : > { %v3995_v55 = vpop.permute.xlu0 %3994  ;;  %v3517_v16 = vpop.permute.xlu1 %3516 }
 0x756   : > { %3535 = vst.msk [vmem:[#allocation3 + $0x60] sm:$0xff] %vm3528_vm10, %v3517_v16 }
 0x757   : > { %3584 = vst.msk [vmem:[#allocation3 + $0x60] sm:$0xff] %vm3577_vm12, %v10111_v29  ;;  %v4272_v59 = vld [vmem:[#allocation3 + $0x50] sm:$0xff] }
 0x758   : > { %4193 = vrot.lane.b32.xlu1 %v4178_v32, %s11984_s1  ;;  %3620 = vst.msk [vmem:[#allocation3 + $0x60] sm:$0xff] %vm3613_vm6, %v3602_v1  ;;  %4450 = vmatmul.mubr.f32.gmra.mrb[28].mxu1 %v4272_v59  ;;  %s12055_s1 = smov 32  }
 0x759   : > { %v3997_v47 = vpop.permute.xlu0 %3996  ;;  %7187 = vmatprep.mubr.msk.f32.mxu1 %vm742_vm0, %v4275_v54  ;;  %v3670_v18 = vpop.permute.xlu1 %3669  ;;  %v4285_v54 = vld [vmem:[#allocation3 + $0xb8] sm:$0xff] }
 0x75a   : > { %3688 = vst.msk [vmem:[#allocation3 + $0x60] sm:$0xff] %vm3681_vm11, %v3670_v18 }
 0x75b   : > { %3737 = vst.msk [vmem:[#allocation3 + $0x60] sm:$0xff] %vm3730_vm15, %v10119_v30  ;;  %v4277_v30 = vld [vmem:[#allocation3 + $0x78] sm:$0xff] }
 0x75c   : > { %3773 = vst.msk [vmem:[#allocation3 + $0x60] sm:$0xff] %vm3766_vm1, %v3755_v26 }
 0x75d   : > { %v3880_v42 = vpop.permute.xlu0 %3879  ;;  %v3672_v29 = vpop.permute.xlu1 %3671 }
 0x75e   : > { %3903 = vst.msk [vmem:[#allocation3 + $0x80] sm:$0xff] %vm3460_vm9, %v3880_v42 }
 0x75f   : > { %3689 = vst.msk [vmem:[#allocation3 + $0x70] sm:$0xff] %vm3681_vm11, %v3672_v29 }
 0x760   : > { %3738 = vst.msk [vmem:[#allocation3 + $0x70] sm:$0xff] %vm3730_vm15, %v10101_v6  ;;  %v4279_v6 = vld [vmem:[#allocation3 + $0x88] sm:$0xff] }
 0x761   : > { %3774 = vst.msk [vmem:[#allocation3 + $0x70] sm:$0xff] %vm3766_vm1, %v10127_v58  ;;  %v3882_v19 = vpop.permute.xlu0 %3881  ;;  %v4145_v34 = vpop.permute.xlu1 %4144 }
 0x762   : > { %3904 = vst.msk [vmem:[#allocation3 + $0x90] sm:$0xff] %vm3460_vm9, %v3882_v19 }
 0x763   : > { %v4274_v35 = vld [vmem:[#allocation3 + $0x60] sm:$0xff] }
 0x764   : > { %4455 = vmatmul.mubr.f32.gmra.mrb[30].mxu1 %v4274_v35 }
 0x765   : > { %v3947_v41 = vpop.permute.xlu0 %3946  ;;  %7188 = vmatprep.mubr.msk.f32.mxu1 %vm742_vm0, %v4277_v30  ;;  %v4030_v60 = vpop.permute.xlu1 %4029  ;;  %v4287_v30 = vld [vmem:[#allocation3 + $0xc8] sm:$0xff] }
 0x766   : > { %3970 = vst.msk [vmem:[#allocation3 + $0x80] sm:$0xff] %vm3528_vm10, %v3947_v41 }
 0x767   : > { %4018 = vst.msk [vmem:[#allocation3 + $0x80] sm:$0xff] %vm3577_vm12, %v3995_v55 }
 0x768   : > { %v4276_v10 = vld [vmem:[#allocation3 + $0x70] sm:$0xff]  ;;  %4053 = vst.msk [vmem:[#allocation3 + $0x80] sm:$0xff] %vm3613_vm6, %v4030_v60 }
 0x769   : > { %4460 = vmatmul.mubr.f32.gmra.mrb[32].mxu1 %v4276_v10  ;;  %v3949_v58 = vpop.permute.xlu0 %3948  ;;  %v4097_v20 = vpop.permute.xlu1 %4096 }
 0x76a   : > { %7189 = vmatprep.mubr.msk.f32.mxu1 %vm742_vm0, %v4279_v6  ;;  %3971 = vst.msk [vmem:[#allocation3 + $0x90] sm:$0xff] %vm3528_vm10, %v3949_v58 }
 0x76b   : > { %4120 = vst.msk [vmem:[#allocation3 + $0x80] sm:$0xff] %vm3681_vm11, %v4097_v20 }
 0x76c   : > { %4019 = vst.msk [vmem:[#allocation3 + $0x90] sm:$0xff] %vm3577_vm12, %v3997_v47 }
 0x76d   : > { %4168 = vst.msk [vmem:[#allocation3 + $0x80] sm:$0xff] %vm3730_vm15, %v4145_v34  ;;  %v4147_v5 = vpop.permute.xlu0 %4146  ;;  %v3999_v4 = vpop.permute.xlu1 %3998 }
 0x771   : > { %v4001_v2 = vpop.permute.xlu0 %4000  ;;  %v4149_v25 = vpop.permute.xlu1 %4148 }
 0x775   : > { %v4032_v21 = vpop.permute.xlu0 %4031  ;;  %v4180_v27 = vpop.permute.xlu1 %4179 }
 0x776   : > { %4054 = vst.msk [vmem:[#allocation3 + $0x90] sm:$0xff] %vm3613_vm6, %v4032_v21 }
 0x777   : > { %4203 = vst.msk [vmem:[#allocation3 + $0x80] sm:$0xff] %vm3766_vm1, %v4180_v27 }
 0x779   : > { %v4182_v51 = vpop.permute.xlu0 %4181  ;;  %v3884_v22 = vpop.permute.xlu1 %3883 }
 0x77a   : > { %3905 = vst.msk [vmem:[#allocation3 + $0xa0] sm:$0xff] %vm3460_vm9, %v3884_v22 }
 0x77d   : > { %v3886_v3 = vpop.permute.xlu0 %3885  ;;  %v4034_v0 = vpop.permute.xlu1 %4033 }
 0x77e   : > { %v4278_v43 = vld [vmem:[#allocation3 + $0x80] sm:$0xff]  ;;  %3906 = vst.msk [vmem:[#allocation3 + $0xb0] sm:$0xff] %vm3460_vm9, %v3886_v3 }
 0x77f   : > { %4465 = vmatmul.mubr.f32.gmra.mrb[34].mxu1 %v4278_v43  ;;  %v4291_v43 = vld [vmem:[#allocation3 + $0xe8] sm:$0xff] }
 0x780   : > { %7190 = vmatprep.mubr.msk.f32.mxu1 %vm742_vm0, %v4281_v56 }
 0x781   : > { %v4099_v23 = vpop.permute.xlu0 %4098  ;;  %v3951_v17 = vpop.permute.xlu1 %3950 }
 0x782   : > { %4121 = vst.msk [vmem:[#allocation3 + $0x90] sm:$0xff] %vm3681_vm11, %v4099_v23 }
 0x783   : > { %3972 = vst.msk [vmem:[#allocation3 + $0xa0] sm:$0xff] %vm3528_vm10, %v3951_v17 }
 0x784   : > { %4169 = vst.msk [vmem:[#allocation3 + $0x90] sm:$0xff] %vm3730_vm15, %v4147_v5 }
 0x785   : > { %4020 = vst.msk [vmem:[#allocation3 + $0xa0] sm:$0xff] %vm3577_vm12, %v3999_v4  ;;  %v3953_v1 = vpop.permute.xlu0 %3952  ;;  %v4101_v36 = vpop.permute.xlu1 %4100 }
 0x786   : > { %4204 = vst.msk [vmem:[#allocation3 + $0x90] sm:$0xff] %vm3766_vm1, %v4182_v51 }
 0x787   : > { %4055 = vst.msk [vmem:[#allocation3 + $0xa0] sm:$0xff] %vm3613_vm6, %v4034_v0 }
 0x788   : > { %3973 = vst.msk [vmem:[#allocation3 + $0xb0] sm:$0xff] %vm3528_vm10, %v3953_v1 }
 0x789   : > { %4122 = vst.msk [vmem:[#allocation3 + $0xa0] sm:$0xff] %vm3681_vm11, %v4101_v36  ;;  %v4151_v24 = vpop.permute.xlu0 %4150  ;;  %v4003_v15 = vpop.permute.xlu1 %4002  ;;  %v4293_v36 = vld [vmem:[#allocation3 + $0xf8] sm:$0xff] }
 0x78a   : > { %4021 = vst.msk [vmem:[#allocation3 + $0xb0] sm:$0xff] %vm3577_vm12, %v4001_v2  ;;  %v4289_v2 = vld [vmem:[#allocation3 + $0xd8] sm:$0xff] }
 0x78b   : > { %4170 = vst.msk [vmem:[#allocation3 + $0xa0] sm:$0xff] %vm3730_vm15, %v4149_v25 }
 0x78d   : > { %v4280_v33 = vld [vmem:[#allocation3 + $0x90] sm:$0xff]  ;;  %v4005_v14 = vpop.permute.xlu0 %4004  ;;  %v4153_v26 = vpop.permute.xlu1 %4152 }
 0x78e   : > { %4470 = vmatmul.mubr.f32.gmra.mrb[36].mxu1 %v4280_v33 }
 0x78f   : > { %7191 = vmatprep.mubr.msk.f32.mxu1 %vm742_vm0, %v4283_v37  ;;  %v10265_v37 = vld [vmem:[%s11952_s16] ss:$0 sm:$0xff] }
 0x791   : > { %v4036_v53 = vpop.permute.xlu0 %4035  ;;  %v4184_v28 = vpop.permute.xlu1 %4183 }
 0x792   : > { %4056 = vst.msk [vmem:[#allocation3 + $0xb0] sm:$0xff] %vm3613_vm6, %v4036_v53 }
 0x793   : > { %4205 = vst.msk [vmem:[#allocation3 + $0xa0] sm:$0xff] %vm3766_vm1, %v4184_v28 }
 0x795   : > { %v4186_v61 = vpop.permute.xlu0 %4185  ;;  %v3888_v55 = vpop.permute.xlu1 %3887 }
 0x796   : > { %3907 = vst.msk [vmem:[#allocation3 + $0xc0] sm:$0xff] %vm3460_vm9, %v3888_v55 }
 0x799   : > { %v3890_v16 = vpop.permute.xlu0 %3889  ;;  %v4038_v32 = vpop.permute.xlu1 %4037 }
 0x79a   : > { %v4282_v59 = vld [vmem:[#allocation3 + $0xa0] sm:$0xff]  ;;  %3908 = vst.msk [vmem:[#allocation3 + $0xd0] sm:$0xff] %vm3460_vm9, %v3890_v16 }
 0x79b   : > { %4475 = vmatmul.mubr.f32.gmra.mrb[38].mxu1 %v4282_v59 }
 0x79c   : > { %7192 = vmatprep.mubr.msk.f32.mxu1 %vm742_vm0, %v4285_v54  ;;  %v4619_v54 = vrot.slane %v10198_v13, 1 }
 0x79d   : > { %v4103_v47 = vpop.permute.xlu0 %4102 }
 0x79e   : > { %v3955_v18 = vpop.permute.xlu1 %3954  ;;  %4123 = vst.msk [vmem:[#allocation3 + $0xb0] sm:$0xff] %vm3681_vm11, %v4103_v47 }
 0x79f   : > { %3974 = vst.msk [vmem:[#allocation3 + $0xc0] sm:$0xff] %vm3528_vm10, %v3955_v18 }
 0x7a0   : > { %4171 = vst.msk [vmem:[#allocation3 + $0xb0] sm:$0xff] %vm3730_vm15, %v4151_v24 }
 0x7a1   : > { %4022 = vst.msk [vmem:[#allocation3 + $0xc0] sm:$0xff] %vm3577_vm12, %v4003_v15  ;;  %v3957_v42 = vpop.permute.xlu0 %3956  ;;  %v10260_v15 = vld [vmem:[%s11951_s15] ss:$0 sm:$0xff] }
 0x7a2   : > { %4206 = vst.msk [vmem:[#allocation3 + $0xb0] sm:$0xff] %vm3766_vm1, %v4186_v61  ;;  %v4105_v29 = vpop.permute.xlu1 %4104  ;;  %v4668_v61 = vmul.f32 %v10198_v13, %v8264_v31 }
 0x7a3   : > { %4057 = vst.msk [vmem:[#allocation3 + $0xc0] sm:$0xff] %vm3613_vm6, %v4038_v32 }
 0x7a4   : > { %3975 = vst.msk [vmem:[#allocation3 + $0xd0] sm:$0xff] %vm3528_vm10, %v3957_v42  ;;  %v4686_v59 = vrot.slane %v4668_v61, 2 }
 0x7a5   : > { %4124 = vst.msk [vmem:[#allocation3 + $0xc0] sm:$0xff] %vm3681_vm11, %v4105_v29  ;;  %v4155_v19 = vpop.permute.xlu0 %4154 }
 0x7a6   : > { %4023 = vst.msk [vmem:[#allocation3 + $0xd0] sm:$0xff] %vm3577_vm12, %v4005_v14  ;;  %v4007_v34 = vpop.permute.xlu1 %4006 }
 0x7a7   : > { %4172 = vst.msk [vmem:[#allocation3 + $0xc0] sm:$0xff] %vm3730_vm15, %v4153_v26 }
 0x7a9   : > { %v4284_v35 = vld [vmem:[#allocation3 + $0xb0] sm:$0xff]  ;;  %v4009_v41 = vpop.permute.xlu0 %4008 }
 0x7aa   : > { %4480 = vmatmul.mubr.f32.gmra.mrb[40].mxu1 %v4284_v35  ;;  %v4157_v60 = vpop.permute.xlu1 %4156 }
 0x7ab   : > { %7193 = vmatprep.mubr.msk.f32.mxu1 %vm742_vm0, %v4287_v30 }
 0x7ad   : > { %v4040_v10 = vpop.permute.xlu0 %4039 }
 0x7ae   : > { %v4188_v6 = vpop.permute.xlu1 %4187  ;;  %4058 = vst.msk [vmem:[#allocation3 + $0xd0] sm:$0xff] %vm3613_vm6, %v4040_v10 }
 0x7af   : > { %4207 = vst.msk [vmem:[#allocation3 + $0xc0] sm:$0xff] %vm3766_vm1, %v4188_v6 }
 0x7b1   : > { %v4190_v58 = vpop.permute.xlu0 %4189 }
 0x7b2   : > { %v3892_v20 = vpop.permute.xlu1 %3891 }
 0x7b3   : > { %3909 = vst.msk [vmem:[#allocation3 + $0xe0] sm:$0xff] %vm3460_vm9, %v3892_v20  ;;  %v5490_v20 = vld [vmem:[%s11953_s17 + $0x18] sm:$0xff] }
 0x7b5   : > { %v3894_v5 = vpop.permute.xlu0 %3893 }
 0x7b6   : > { %v4042_v4 = vpop.permute.xlu1 %4041  ;;  %v4286_v9 = vld [vmem:[#allocation3 + $0xc0] sm:$0xff]  ;;  %3910 = vst.msk [vmem:[#allocation3 + $0xf0] sm:$0xff] %vm3460_vm9, %v3894_v5  ;;  %v5491_v5 = vld [vmem:[%s11953_s17 + $0x20] sm:$0xff] }
 0x7b7   : > { %4485 = vmatmul.mubr.f32.gmra.mrb[42].mxu1 %v4286_v9 }
 0x7b8   : > { %7194 = vmatprep.mubr.msk.f32.mxu1 %vm742_vm0, %v4289_v2  ;;  %v5492_v2 = vld [vmem:[%s11953_s17 + $0x28] sm:$0xff] }
 0x7b9   : > { %v4107_v25 = vpop.permute.xlu0 %4106 }
 0x7ba   : > { %v4192_v21 = vpop.permute.xlu1 %4191  ;;  %4125 = vst.msk [vmem:[#allocation3 + $0xd0] sm:$0xff] %vm3681_vm11, %v4107_v25 }
 0x7bb   : > { %4173 = vst.msk [vmem:[#allocation3 + $0xd0] sm:$0xff] %vm3730_vm15, %v4155_v19 }
 0x7bc   : > { %4208 = vst.msk [vmem:[#allocation3 + $0xd0] sm:$0xff] %vm3766_vm1, %v4190_v58  ;;  %v5489_v58 = vld [vmem:[%s11953_s17 + $0x10] sm:$0xff] }
 0x7bd   : > { %v4044_v27 = vpop.permute.xlu0 %4043  ;;  %v7503_v9 = vpack.c.bf16 %v5490_v20, %v5489_v58 }
 0x7be   : > { %v3959_v51 = vpop.permute.xlu1 %3958 }
 0x7bf   : > { %3976 = vst.msk [vmem:[#allocation3 + $0xe0] sm:$0xff] %vm3528_vm10, %v3959_v51  ;;  %v10314_v51 = vld [vmem:[#allocation2 + $0x58] sm:$0xff] }
 0x7c0   : > { %4024 = vst.msk [vmem:[#allocation3 + $0xe0] sm:$0xff] %vm3577_vm12, %v4007_v34 }
 0x7c1   : > { %4059 = vst.msk [vmem:[#allocation3 + $0xe0] sm:$0xff] %vm3613_vm6, %v4042_v4  ;;  %v3961_v22 = vpop.permute.xlu0 %3960 }
 0x7c2   : > { %v4109_v3 = vpop.permute.xlu1 %4108  ;;  %3977 = vst.msk [vmem:[#allocation3 + $0xf0] sm:$0xff] %vm3528_vm10, %v3961_v22 }
 0x7c3   : > { %4126 = vst.msk [vmem:[#allocation3 + $0xe0] sm:$0xff] %vm3681_vm11, %v4109_v3  ;;  %v4288_v0 = vld [vmem:[#allocation3 + $0xd0] sm:$0xff] }
 0x7c4   : > { %4025 = vst.msk [vmem:[#allocation3 + $0xf0] sm:$0xff] %vm3577_vm12, %v4009_v41  ;;  %4490 = vmatmul.mubr.f32.gmra.mrb[44].mxu1 %v4288_v0  ;;  %v5487_v41 = vld [vmem:[%s11953_s17] sm:$0xff]  ;;  %v7506_v0 = vpack.c.bf16 %v5492_v2, %v5491_v5 }
 0x7c5   : > { %4174 = vst.msk [vmem:[#allocation3 + $0xe0] sm:$0xff] %vm3730_vm15, %v4157_v60  ;;  %v4159_v56 = vpop.permute.xlu0 %4158  ;;  %7195 = vmatprep.mubr.msk.f32.mxu1 %vm742_vm0, %v4291_v43  ;;  %v5488_v60 = vld [vmem:[%s11953_s17 + $0x8] sm:$0xff]  ;;  %v5030_v43 = vmul.f32 %v8232_v50, %v10314_v51 }
 0x7c6   : > { %4060 = vst.msk [vmem:[#allocation3 + $0xf0] sm:$0xff] %vm3613_vm6, %v4044_v27  ;;  %v4111_v23 = vpop.permute.xlu1 %4110  ;;  %v7500_v10 = vpack.c.bf16 %v5488_v60, %v5487_v41  ;;  %v5502_v41 = vld [vmem:[%s11953_s17 + $0x78] sm:$0xff] }
 0x7c7   : > { %4209 = vst.msk [vmem:[#allocation3 + $0xe0] sm:$0xff] %vm3766_vm1, %v4192_v21 }
 0x7c8   : > { %4127 = vst.msk [vmem:[#allocation3 + $0xf0] sm:$0xff] %vm3681_vm11, %v4111_v23  ;;  %7501 = vmatpush1.bf16.msra.mxu0 %v7500_v10  ;;  %v5494_v23 = vld [vmem:[%s11953_s17 + $0x38] sm:$0xff] }
 0x7c9   : > { %4175 = vst.msk [vmem:[#allocation3 + $0xf0] sm:$0xff] %vm3730_vm15, %v4159_v56  ;;  %7502 = vmatprep.subr.bf16.mxu0 %v12048_v52  ;;  %v5493_v56 = vld [vmem:[%s11953_s17 + $0x30] sm:$0xff] }
 0x7ca   : > { %v4194_v17 = vpop.permute.xlu1 %4193  ;;  %5038 = vst.msk [vmem:[#allocation3 + $0x80] sm:$0xff] %vm742_vm0, %v5030_v43 }
 0x7cb   : > { %4210 = vst.msk [vmem:[#allocation3 + $0xf0] sm:$0xff] %vm3766_vm1, %v4194_v17 }
 0x7cc   : > { %7504 = vmatpush1.bf16.msra.mxu0 %v7503_v9 }
 0x7cd   : > { %7505 = vmatprep.subr.bf16.mxu0 %v12048_v52 }
 0x7ce   : > { %v4290_v1 = vld [vmem:[#allocation3 + $0xe0] sm:$0xff] }
 0x7cf   : > { %4495 = vmatmul.mubr.f32.gmra.mrb[46].mxu1 %v4290_v1 }
 0x7d0   : > { %7196 = vmatprep.mubr.msk.f32.mxu1 %vm742_vm0, %v4293_v36  ;;  %7507 = vmatpush1.bf16.msra.mxu0 %v7506_v0 }
 0x7d1   : > { %7508 = vmatprep.subr.bf16.mxu0 %v12048_v52 }
 0x7d2   : > { %v4292_v24 = vld [vmem:[#allocation3 + $0xf0] sm:$0xff] }
 0x7d3   : > { %4500 = vmatmul.mubr.f32.gmra.mrb[48].mxu1 %v4292_v24 }
 0x7d4   : > { %v4426_v33 = vpop.f32.mrb[18].mxu1 }
 0x7d5   : > { %v4512_v14 = vmul.f32 %v10260_v15, %v4426_v33  ;;  %v4428_v26 = vpop.f32.mrb[19].mxu1 }
 0x7d6   : > { %v5495_v26 = vld [vmem:[%s11953_s17 + $0x40] sm:$0xff] }
 0x7d7   : > { %v4535_v53 = vadd.f32 %v10265_v37, %v4512_v14  ;;  %v7509_v14 = vpack.c.bf16 %v5494_v23, %v5493_v56 }
 0x7d9   : > { %v4551_v28 = vmax.f32 %v4535_v53, 0.0  ;;  %v5496_v53 = vld [vmem:[%s11953_s17 + $0x48] sm:$0xff]  ;;  %7510 = vmatpush1.bf16.msra.mxu0 %v7509_v14  ;;  %v5503_v14 = vld [vmem:[%s11953_s17 + $0x80] sm:$0xff] }
 0x7da   : > { %7511 = vmatprep.subr.bf16.mxu0 %v12048_v52 }
 0x7db   : > { %4567 = vst.msk [vmem:[#allocation2 + $0x9] sm:$0xff] %vm742_vm0, %v4551_v28 }
 0x7e2   : > { %v4584_v55 = vld [vmem:[#allocation2 + $0x8] sm:$0xff] }
 0x7e3   : > { %v4735_v16 = vmul.f32 %v8232_v50, %v4584_v55  ;;  %v10274_v32 = vmul.f32 %v4584_v55, %v8274_v39  ;;  %v4620_v47 = vrot.slane %v4584_v55, 1  ;;  %v4595_v18 = vmul.f32 %v8270_v38, %v4584_v55 }
 0x7e4   : > { %v4818_v17 = vmul.f32 %v4584_v55, %v8264_v31 }
 0x7e5   : > { %4751 = vrot.lane.b32.xlu0 %v4735_v16, %s11994_s24  ;;  %v4687_v42 = vrot.slane %v10274_v32, 2  ;;  %4603 = vst.msk [vmem:[#allocation3 + $0x10] sm:$0xff] %vm742_vm0, %v4595_v18  ;;  %v4621_v30 = vsel %vm1509_vm13, %v4619_v54, %v4620_v47  ;;  %v7512_v54 = vpack.c.bf16 %v5496_v53, %v5495_v26  ;;  %v5504_v26 = vld [vmem:[%s11953_s17 + $0x88] sm:$0xff] }
 0x7e6   : > { %v4836_v61 = vrot.slane %v4818_v17, 2 }
 0x7e7   : > { %v4431_v29 = vpop.f32.mrb[20].mxu1  ;;  %v4688_v19 = vsel %vm1611_vm14, %v4686_v59, %v4687_v42  ;;  %7513 = vmatpush1.bf16.msra.mxu0 %v7512_v54 }
 0x7e8   : > { %v4513_v34 = vmul.f32 %v10260_v15, %v4431_v29  ;;  %v4433_v35 = vpop.f32.mrb[21].mxu1  ;;  %4703 = vrot.lane.b32.xlu1 %v4688_v19, %s11986_s23  ;;  %v5497_v29 = vld [vmem:[%s11953_s17 + $0x50] sm:$0xff]  ;;  %7514 = vmatprep.subr.bf16.mxu0 %v12048_v52 }
 0x7e9   : > { %4636 = vrot.lane.b32.xlu0 %v4621_v30, %s11990_s25  ;;  %s12052_s25 = smov 96   ;;  %v5500_v35 = vld [vmem:[%s11953_s17 + $0x68] sm:$0xff] }
 0x7ea   : > { %v4536_v13 = vadd.f32 %v10265_v37, %v4513_v34  ;;  %v5499_v34 = vld [vmem:[%s11953_s17 + $0x60] sm:$0xff] }
 0x7eb   : > { %v7518_v30 = vpack.c.bf16 %v5500_v35, %v5499_v34 }
 0x7ec   : > { %v4552_v6 = vmax.f32 %v4536_v13, 0.0  ;;  %v5501_v13 = vld [vmem:[%s11953_s17 + $0x70] sm:$0xff] }
 0x7ed   : > { %v7521_v58 = vpack.c.bf16 %v5502_v41, %v5501_v13 }
 0x7ee   : > { %4568 = vst.msk [vmem:[#allocation2 + $0x11] sm:$0xff] %vm742_vm0, %v4552_v6 }
 0x7f5   : > { %v10304_v4 = vld [vmem:[#allocation2 + $0x10] sm:$0xff] }
 0x7f6   : > { %v4736_v25 = vmul.f32 %v8270_v38, %v10304_v4  ;;  %v4885_v21 = vmul.f32 %v8232_v50, %v10304_v4  ;;  %v4622_v27 = vrot.slane %v10304_v4, 1  ;;  %v10318_v22 = vmul.f32 %v10304_v4, %v8295_v57 }
 0x7f7   : > { %v10322_v3 = vmul.f32 %v10304_v4, %v8274_v39  ;;  %v4596_v1 = vmul.f32 %v8304_v63, %v10304_v4  ;;  %v4968_v6 = vmul.f32 %v10304_v4, %v8264_v31 }
 0x7f8   : > { %4753 = vrot.lane.b32.xlu0 %v4736_v25, %s11994_s24  ;;  %4901 = vrot.lane.b32.xlu1 %v4885_v21, %s12052_s25  ;;  %v4623_v36 = vsel %vm1509_vm13, %v4620_v47, %v4622_v27  ;;  %v4689_v24 = vrot.slane %v10318_v22, 2  ;;  %s7241_s24 = sshll.u32 %s7971_s2, 10  ;;  %s7825_s2 = smov [#allocation8]  }
 0x7f9   : > { %v4837_v33 = vrot.slane %v10322_v3, 2  ;;  %4604 = vst.msk [vmem:[#allocation3 + $0x20] sm:$0xff] %vm742_vm0, %v4596_v1  ;;  %v4986_v23 = vrot.slane %v4968_v6, 2  ;;  %s11886_s12 = scalar_lea.hbm %s12058_s11, %s7241_s24 }
 0x7fa   : > { %v4690_v32 = vsel %vm1611_vm14, %v4687_v42, %v4689_v24  ;;  %v5498_v42 = vld [vmem:[%s11953_s17 + $0x58] sm:$0xff] }
 0x7fb   : > { %v4838_v59 = vsel %vm1611_vm14, %v4836_v61, %v4837_v33  ;;  %v7515_v19 = vpack.c.bf16 %v5498_v42, %v5497_v29 }
 0x7fc   : > { %4638 = vrot.lane.b32.xlu0 %v4623_v36, %s12053_s6  ;;  %4786 = vrot.lane.b32.xlu1 %v4623_v36, %s12054_s7 }
 0x7fd   : > { %7516 = vmatpush1.bf16.msra.mxu0 %v7515_v19 }
 0x7fe   : > { %v4436_v28 = vpop.f32.mrb[22].mxu1  ;;  %7517 = vmatprep.subr.bf16.mxu0 %v12048_v52 }
 0x7ff   : > { %v4514_v55 = vmul.f32 %v10260_v15, %v4436_v28  ;;  %v4438_v16 = vpop.f32.mrb[23].mxu1 }
 0x800   : > { %4705 = vrot.lane.b32.xlu0 %v4690_v32, %s12055_s1  ;;  %4853 = vrot.lane.b32.xlu1 %v4838_v59, %s12051_s0 }
 0x801   : > { %v4537_v47 = vadd.f32 %v10265_v37, %v4514_v55  ;;  %7519 = vmatpush1.bf16.msra.mxu0 %v7518_v30  ;;  %v7524_v55 = vpack.c.bf16 %v5504_v26, %v5503_v14 }
 0x802   : > { %7520 = vmatprep.subr.bf16.mxu0 %v12048_v52 }
 0x803   : > { %v4553_v18 = vmax.f32 %v4537_v47, 0.0 }
 0x805   : > { %4569 = vst.msk [vmem:[#allocation2 + $0x19] sm:$0xff] %vm742_vm0, %v4553_v18  ;;  %7522 = vmatpush1.bf16.msra.mxu0 %v7521_v58 }
 0x806   : > { %7523 = vmatprep.subr.bf16.mxu0 %v12048_v52 }
 0x809   : > { %7525 = vmatpush1.bf16.msra.mxu0 %v7524_v55 }
 0x80c   : > { %v4586_v10 = vld [vmem:[#allocation2 + $0x18] sm:$0xff] }
 0x80d   : > { %v4441_v60 = vpop.f32.mrb[24].mxu1  ;;  %v4886_v9 = vmul.f32 %v8270_v38, %v4586_v10  ;;  %v4737_v2 = vmul.f32 %v8304_v63, %v4586_v10  ;;  %v4624_v25 = vrot.slane %v4586_v10, 1  ;;  %v4820_v21 = vmul.f32 %v4586_v10, %v8295_v57 }
 0x80e   : > { %v4515_v20 = vmul.f32 %v10260_v15, %v4441_v60  ;;  %v4443_v5 = vpop.f32.mrb[25].mxu1  ;;  %v4969_v0 = vmul.f32 %v4586_v10, %v8274_v39  ;;  %v4597_v43 = vmul.f32 %v8359_v44, %v4586_v10  ;;  %v4671_v36 = vmul.f32 %v4586_v10, %v8429_v8 }
 0x80f   : > { %4903 = vrot.lane.b32.xlu0 %v4886_v9, %s12052_s25  ;;  %4755 = vrot.lane.b32.xlu1 %v4737_v2, %s12056_s8  ;;  %v4625_v53 = vsel %vm1509_vm13, %v4622_v27, %v4624_v25  ;;  %v4839_v28 = vrot.slane %v4820_v21, 2 }
 0x810   : > { %v4538_v56 = vadd.f32 %v10265_v37, %v4515_v20  ;;  %v4987_v17 = vrot.slane %v4969_v0, 2  ;;  %4605 = vst.msk [vmem:[#allocation3 + $0x30] sm:$0xff] %vm742_vm0, %v4597_v43  ;;  %v4691_v4 = vrot.slane %v4671_v36, 2 }
 0x811   : > { %v4840_v16 = vsel %vm1611_vm14, %v4837_v33, %v4839_v28 }
 0x812   : > { %v4554_v1 = vmax.f32 %v4538_v56, 0.0  ;;  %v4988_v61 = vsel %vm1611_vm14, %v4986_v23, %v4987_v17  ;;  %v4692_v32 = vsel %vm1611_vm14, %v4689_v24, %v4691_v4 }
 0x813   : > { %4788 = vrot.lane.b32.xlu0 %v4625_v53, %s12054_s7  ;;  %4936 = vrot.lane.b32.xlu1 %v4625_v53, %s12057_s4  ;;  %5011 = vst.msk [vmem:[#allocation3 + $0x8] sm:$0xff] %vm742_vm0, %v4988_v61 }
 0x814   : > { %4570 = vst.msk [vmem:[#allocation2 + $0x21] sm:$0xff] %vm742_vm0, %v4554_v1 }
 0x817   : > { %4855 = vrot.lane.b32.xlu0 %v4840_v16, %s12051_s0  ;;  %4640 = vrot.lane.b32.xlu1 %v4625_v53, %s12053_s6 }
 0x81a   : > { %v5456_v27 = vld [vmem:[#allocation3 + $0x8] sm:$0xff] }
 0x81b   : > { %v4587_v59 = vld [vmem:[#allocation2 + $0x20] sm:$0xff]  ;;  %7199 = vmatprep.mubr.msk.f32.mxu0 %vm742_vm0, %v5456_v27  ;;  %4707 = vrot.lane.b32.xlu1 %v4692_v32, %s12055_s1 }
 0x81c   : > { %v4738_v54 = vmul.f32 %v8359_v44, %v4587_v59  ;;  %v4626_v3 = vrot.slane %v4587_v59, 1  ;;  %v4970_v33 = vmul.f32 %v4587_v59, %v8295_v57  ;;  %v4598_v47 = vmul.f32 %v8368_v62, %v4587_v59 }
 0x81d   : > { %v4887_v18 = vmul.f32 %v8304_v63, %v4587_v59  ;;  %v4821_v22 = vmul.f32 %v4587_v59, %v8429_v8  ;;  %v4672_v42 = vmul.f32 %v4587_v59, %v8464_v49 }
 0x81e   : > { %4757 = vrot.lane.b32.xlu0 %v4738_v54, %s12056_s8  ;;  %v4989_v29 = vrot.slane %v4970_v33, 2  ;;  %4606 = vst.msk [vmem:[#allocation3 + $0x40] sm:$0xff] %vm742_vm0, %v4598_v47  ;;  %v4627_v24 = vsel %vm1509_vm13, %v4624_v25, %v4626_v3 }
 0x81f   : > { %4905 = vrot.lane.b32.xlu1 %v4887_v18, %s12052_s25  ;;  %v4841_v35 = vrot.slane %v4821_v22, 2  ;;  %v4693_v41 = vrot.slane %v4672_v42, 2 }
 0x820   : > { %v4990_v19 = vsel %vm1611_vm14, %v4987_v17, %v4989_v29 }
 0x821   : > { %5012 = vst.msk [vmem:[#allocation3 + $0x18] sm:$0xff] %vm742_vm0, %v4990_v19  ;;  %v4842_v10 = vsel %vm1611_vm14, %v4839_v28, %v4841_v35  ;;  %v4694_v58 = vsel %vm1611_vm14, %v4691_v4, %v4693_v41 }
 0x822   : > { %4938 = vrot.lane.b32.xlu0 %v4627_v24, %s12057_s4  ;;  %v4446_v34 = vpop.f32.mrb[26].mxu1 }
 0x823   : > { %v4516_v30 = vmul.f32 %v10260_v15, %v4446_v34  ;;  %4790 = vrot.lane.b32.xlu1 %v4627_v24, %s12054_s7  ;;  %v4448_v13 = vpop.f32.mrb[27].mxu1 }
 0x825   : > { %v4539_v60 = vadd.f32 %v10265_v37, %v4516_v30 }
 0x826   : > { %4642 = vrot.lane.b32.xlu0 %v4627_v24, %s12053_s6 }
 0x827   : > { %v4555_v6 = vmax.f32 %v4539_v60, 0.0  ;;  %4857 = vrot.lane.b32.xlu1 %v4842_v10, %s12051_s0 }
 0x829   : > { %4571 = vst.msk [vmem:[#allocation2 + $0x29] sm:$0xff] %vm742_vm0, %v4555_v6  ;;  %v10497_v6 = vld [vmem:[#allocation2 + $0x50] sm:$0x3] }
 0x82a   : > { %4709 = vrot.lane.b32.xlu0 %v4694_v58, %s12055_s1 }
 0x82b   : > { %v4451_v20 = vpop.f32.mrb[28].mxu1 }
 0x82c   : > { %v4517_v5 = vmul.f32 %v10260_v15, %v4451_v20  ;;  %v4453_v9 = vpop.f32.mrb[29].mxu1 }
 0x82e   : > { %v4540_v2 = vadd.f32 %v10265_v37, %v4517_v5 }
 0x830   : > { %v4588_v25 = vld [vmem:[#allocation2 + $0x28] sm:$0xff]  ;;  %v4556_v21 = vmax.f32 %v4540_v2, 0.0  ;;  %v4976_v2 = vmul.f32 %v10497_v6, %v8697_v11 }
 0x831   : > { %v4888_v0 = vmul.f32 %v8359_v44, %v4588_v25  ;;  %v4739_v43 = vmul.f32 %v8368_v62, %v4588_v25  ;;  %v4628_v56 = vrot.slane %v4588_v25, 1  ;;  %v4822_v23 = vmul.f32 %v4588_v25, %v8464_v49 }
 0x832   : > { %v4971_v17 = vmul.f32 %v4588_v25, %v8429_v8  ;;  %v4599_v1 = vmul.f32 %v8480_v45, %v4588_v25  ;;  %4572 = vst.msk [vmem:[#allocation2 + $0x31] sm:$0xff] %vm742_vm0, %v4556_v21  ;;  %v4673_v53 = vmul.f32 %v4588_v25, %v8613_v48 }
 0x833   : > { %4907 = vrot.lane.b32.xlu0 %v4888_v0, %s12052_s25  ;;  %4759 = vrot.lane.b32.xlu1 %v4739_v43, %s12056_s8  ;;  %v4629_v14 = vsel %vm1509_vm13, %v4626_v3, %v4628_v56  ;;  %v4843_v26 = vrot.slane %v4822_v23, 2 }
 0x834   : > { %v4991_v36 = vrot.slane %v4971_v17, 2  ;;  %4607 = vst.msk [vmem:[#allocation3 + $0x50] sm:$0xff] %vm742_vm0, %v4599_v1  ;;  %v4695_v27 = vrot.slane %v4673_v53, 2  ;;  %v5001_v17 = vrot.slane %v4976_v2, 2 }
 0x835   : > { %v4844_v4 = vsel %vm1611_vm14, %v4841_v35, %v4843_v26 }
 0x836   : > { %v4992_v28 = vsel %vm1611_vm14, %v4989_v29, %v4991_v36  ;;  %v4696_v24 = vsel %vm1611_vm14, %v4693_v41, %v4695_v27 }
 0x837   : > { %4792 = vrot.lane.b32.xlu0 %v4629_v14, %s12054_s7  ;;  %4940 = vrot.lane.b32.xlu1 %v4629_v14, %s12057_s4  ;;  %5013 = vst.msk [vmem:[#allocation3 + $0x28] sm:$0xff] %vm742_vm0, %v4992_v28  ;;  %v4456_v61 = vpop.f32.mrb[30].mxu1 }
 0x838   : > { %v4518_v55 = vmul.f32 %v10260_v15, %v4456_v61  ;;  %v4458_v16 = vpop.f32.mrb[31].mxu1 }
 0x839   : > { %v10466_v32 = vld [vmem:[#allocation2 + $0x30] sm:$0xff] }
 0x83a   : > { %v4541_v59 = vadd.f32 %v10265_v37, %v4518_v55  ;;  %v4972_v3 = vmul.f32 %v10466_v32, %v8464_v49  ;;  %v4600_v33 = vmul.f32 %v8511_v46, %v10466_v32  ;;  %v4740_v29 = vmul.f32 %v8480_v45, %v10466_v32 }
 0x83b   : > { %4859 = vrot.lane.b32.xlu0 %v4844_v4, %s12051_s0  ;;  %4644 = vrot.lane.b32.xlu1 %v4629_v14, %s12053_s6  ;;  %v4630_v42 = vrot.slane %v10466_v32, 1  ;;  %v4889_v13 = vmul.f32 %v8368_v62, %v10466_v32  ;;  %v4674_v60 = vmul.f32 %v10466_v32, %v8621_v7  ;;  %v4823_v10 = vmul.f32 %v10466_v32, %v8613_v48 }
 0x83c   : > { %v4461_v54 = vpop.f32.mrb[32].mxu1  ;;  %v4557_v47 = vmax.f32 %v4541_v59, 0.0  ;;  %v4993_v19 = vrot.slane %v4972_v3, 2  ;;  %4608 = vst.msk [vmem:[#allocation3 + $0x60] sm:$0xff] %vm742_vm0, %v4600_v33 }
 0x83d   : > { %v4519_v18 = vmul.f32 %v10260_v15, %v4461_v54  ;;  %v4463_v22 = vpop.f32.mrb[33].mxu1  ;;  %v4631_v41 = vsel %vm1509_vm13, %v4628_v56, %v4630_v42  ;;  %v4697_v58 = vrot.slane %v4674_v60, 2  ;;  %v4845_v20 = vrot.slane %v4823_v10, 2 }
 0x83e   : > { %4573 = vst.msk [vmem:[#allocation2 + $0x39] sm:$0xff] %vm742_vm0, %v4557_v47  ;;  %v4994_v35 = vsel %vm1611_vm14, %v4991_v36, %v4993_v19 }
 0x83f   : > { %v4542_v34 = vadd.f32 %v10265_v37, %v4519_v18  ;;  %4711 = vrot.lane.b32.xlu1 %v4696_v24, %s12055_s1  ;;  %4761 = vrot.lane.b32.xlu0 %v4740_v29, %s12056_s8  ;;  %5014 = vst.msk [vmem:[#allocation3 + $0x38] sm:$0xff] %vm742_vm0, %v4994_v35  ;;  %v4698_v21 = vsel %vm1611_vm14, %v4695_v27, %v4697_v58 }
 0x840   : > { %v4846_v0 = vsel %vm1611_vm14, %v4843_v26, %v4845_v20 }
 0x841   : > { %v4558_v30 = vmax.f32 %v4542_v34, 0.0 }
 0x843   : > { %4574 = vst.msk [vmem:[#allocation2 + $0x41] sm:$0xff] %vm742_vm0, %v4558_v30  ;;  %4909 = vrot.lane.b32.xlu1 %v4889_v13, %s12052_s25  ;;  %4942 = vrot.lane.b32.xlu0 %v4631_v41, %s12057_s4 }
 0x845   : > { %v4590_v5 = vld [vmem:[#allocation2 + $0x38] sm:$0xff] }
 0x846   : > { %v4973_v9 = vmul.f32 %v4590_v5, %v8613_v48  ;;  %v4601_v25 = vmul.f32 %v8549_v40, %v4590_v5  ;;  %v4890_v1 = vmul.f32 %v8480_v45, %v4590_v5  ;;  %v4741_v36 = vmul.f32 %v8511_v46, %v4590_v5 }
 0x847   : > { %4646 = vrot.lane.b32.xlu0 %v4631_v41, %s12053_s6  ;;  %4794 = vrot.lane.b32.xlu1 %v4631_v41, %s12054_s7  ;;  %v4632_v53 = vrot.slane %v4590_v5, 1  ;;  %v10521_v28 = vmul.f32 %v4590_v5, %v8621_v7  ;;  %v4675_v33 = vmul.f32 %v4590_v5, %v8709_v12 }
 0x848   : > { %4609 = vst.msk [vmem:[#allocation3 + $0x70] sm:$0xff] %vm742_vm0, %v4601_v25  ;;  %v4995_v23 = vrot.slane %v4973_v9, 2 }
 0x849   : > { %v4633_v54 = vsel %vm1509_vm13, %v4630_v42, %v4632_v53  ;;  %v4847_v3 = vrot.slane %v10521_v28, 2  ;;  %v4699_v24 = vrot.slane %v4675_v33, 2 }
 0x84a   : > { %v10507_v43 = vld [vmem:[#allocation2 + $0x40] sm:$0xff]  ;;  %v10509_v56 = vld [vmem:[#allocation2 + $0x48] sm:$0xff]  ;;  %v4996_v16 = vsel %vm1611_vm14, %v4993_v19, %v4995_v23 }
 0x84b   : > { %4713 = vrot.lane.b32.xlu0 %v4698_v21, %s12055_s1  ;;  %4861 = vrot.lane.b32.xlu1 %v4846_v0, %s12051_s0  ;;  %v4974_v14 = vmul.f32 %v10507_v43, %v8621_v7  ;;  %v4975_v26 = vmul.f32 %v10509_v56, %v8709_v12  ;;  %5015 = vst.msk [vmem:[#allocation3 + $0x48] sm:$0xff] %vm742_vm0, %v4996_v16  ;;  %v4634_v30 = vrot.slane %v10507_v43, 1  ;;  %v4784_v25 = vrot.slane %v10509_v56, 1 }
 0x84c   : > { %v4848_v29 = vsel %vm1611_vm14, %v4845_v20, %v4847_v3  ;;  %v4742_v34 = vmul.f32 %v8549_v40, %v10507_v43  ;;  %v4700_v35 = vsel %vm1611_vm14, %v4697_v58, %v4699_v24  ;;  %v4891_v60 = vmul.f32 %v8511_v46, %v10507_v43 }
 0x84d   : > { %v4997_v61 = vrot.slane %v4974_v14, 2  ;;  %v4999_v55 = vrot.slane %v4975_v26, 2  ;;  %v4635_v10 = vsel %vm1509_vm13, %v4632_v53, %v4634_v30  ;;  %v4892_v2 = vmul.f32 %v8549_v40, %v10509_v56 }
 0x84e   : > { %v4676_v21 = vmul.f32 %v10507_v43, %v8697_v11  ;;  %v4934_v14 = vrot.slane %v10497_v6, 1  ;;  %v4825_v53 = vmul.f32 %v10507_v43, %v8709_v12  ;;  %v5104_v6 = vmul.f32 %v10314_v51, %v8264_v31 }
 0x84f   : > { %4911 = vrot.lane.b32.xlu0 %v4890_v1, %s12052_s25  ;;  %4763 = vrot.lane.b32.xlu1 %v4741_v36, %s12056_s8  ;;  %v4998_v4 = vsel %vm1611_vm14, %v4995_v23, %v4997_v61  ;;  %v5000_v27 = vsel %vm1611_vm14, %v4997_v61, %v4999_v55  ;;  %v5002_v32 = vsel %vm1611_vm14, %v4999_v55, %v5001_v17 }
 0x850   : > { %5017 = vst.msk [vmem:[#allocation3 + $0x68] sm:$0xff] %vm742_vm0, %v5000_v27  ;;  %5018 = vst.msk [vmem:[#allocation3 + $0x78] sm:$0xff] %vm742_vm0, %v5002_v32  ;;  %v4785_v1 = vsel %vm1509_vm13, %v4634_v30, %v4784_v25  ;;  %v4701_v36 = vrot.slane %v4676_v21, 2  ;;  %v4935_v16 = vsel %vm1509_vm13, %v4784_v25, %v4934_v14  ;;  %v5055_v27 = vrot.slane %v10314_v51, 1 }
 0x851   : > { %5016 = vst.msk [vmem:[#allocation3 + $0x58] sm:$0xff] %vm742_vm0, %v4998_v4  ;;  %v4849_v43 = vrot.slane %v4825_v53, 2  ;;  %v4826_v33 = vmul.f32 %v10509_v56, %v8697_v11 }
 0x852   : > { %v4466_v59 = vpop.f32.mrb[34].mxu1  ;;  %v4702_v26 = vsel %vm1611_vm14, %v4699_v24, %v4701_v36 }
 0x853   : > { %v4520_v47 = vmul.f32 %v10260_v15, %v4466_v59  ;;  %4796 = vrot.lane.b32.xlu0 %v4633_v54, %s12054_s7  ;;  %4944 = vrot.lane.b32.xlu1 %v4633_v54, %s12057_s4  ;;  %v4468_v18 = vpop.f32.mrb[35].mxu1  ;;  %v4851_v30 = vrot.slane %v4826_v33, 2 }
 0x855   : > { %v4543_v22 = vadd.f32 %v10265_v37, %v4520_v47 }
 0x857   : > { %v4559_v42 = vmax.f32 %v4543_v22, 0.0  ;;  %4863 = vrot.lane.b32.xlu0 %v4848_v29, %s12051_s0  ;;  %4648 = vrot.lane.b32.xlu1 %v4633_v54, %s12053_s6  ;;  %v4752_v19 = vpop.permute.xlu0 %4751 }
 0x859   : > { %4575 = vst.msk [vmem:[#allocation2 + $0x61] sm:$0xff] %vm742_vm0, %v4559_v42  ;;  %v5122_v42 = vrot.slane %v5104_v6, 2 }
 0x85a   : > { %v4704_v41 = vpop.permute.xlu1 %4703 }
 0x85b   : > { %4765 = vrot.lane.b32.xlu0 %v4742_v34, %s12056_s8  ;;  %4715 = vrot.lane.b32.xlu1 %v4700_v35, %s12055_s1  ;;  %v4637_v13 = vpop.permute.xlu0 %4636  ;;  %v4850_v34 = vsel %vm1611_vm14, %v4847_v3, %v4849_v43  ;;  %v4852_v3 = vsel %vm1611_vm14, %v4849_v43, %v4851_v30 }
 0x85c   : > { %4660 = vst.msk [vmem:[#allocation3] sm:$0xff] %vm3460_vm9, %v4637_v13 }
 0x85d   : > { %4727 = vst.msk [vmem:[#allocation3] sm:$0xff] %vm3528_vm10, %v4704_v41 }
 0x85e   : > { %4775 = vst.msk [vmem:[#allocation3] sm:$0xff] %vm3577_vm12, %v4752_v19 }
 0x85f   : > { %4946 = vrot.lane.b32.xlu0 %v4635_v10, %s12057_s4  ;;  %4913 = vrot.lane.b32.xlu1 %v4891_v60, %s12052_s25 }
 0x860   : > { %v10560_v20 = vld [vmem:[#allocation2 + $0x60] sm:$0xff] }
 0x861   : > { %v4471_v58 = vpop.f32.mrb[36].mxu1  ;;  %v5031_v0 = vmul.f32 %v8270_v38, %v10560_v20  ;;  %v5171_v4 = vmul.f32 %v8232_v50, %v10560_v20  ;;  %v5056_v59 = vrot.slane %v10560_v20, 1  ;;  %v10593_v54 = vmul.f32 %v10560_v20, %v8274_v39 }
 0x862   : > { %v4521_v5 = vmul.f32 %v10260_v15, %v4471_v58  ;;  %v4473_v9 = vpop.f32.mrb[37].mxu1  ;;  %v5254_v21 = vmul.f32 %v10560_v20, %v8264_v31 }
 0x863   : > { %4650 = vrot.lane.b32.xlu0 %v4635_v10, %s12053_s6  ;;  %4915 = vrot.lane.b32.xlu1 %v4892_v2, %s12052_s25  ;;  %5039 = vst.msk [vmem:[#allocation3 + $0x90] sm:$0xff] %vm742_vm0, %v5031_v0  ;;  %v5057_v19 = vsel %vm1509_vm13, %v5055_v27, %v5056_v59  ;;  %v5123_v35 = vrot.slane %v10593_v54, 2 }
 0x864   : > { %v4544_v23 = vadd.f32 %v10265_v37, %v4521_v5 }
 0x865   : > { %v5124_v28 = vsel %vm1611_vm14, %v5122_v42, %v5123_v35 }
 0x866   : > { %v4560_v17 = vmax.f32 %v4544_v23, 0.0 }
 0x867   : > { %4800 = vrot.lane.b32.xlu0 %v4785_v1, %s12054_s7  ;;  %4798 = vrot.lane.b32.xlu1 %v4635_v10, %s12054_s7 }
 0x868   : > { %4576 = vst.msk [vmem:[#allocation2 + $0x69] sm:$0xff] %vm742_vm0, %v4560_v17 }
 0x86a   : > { %v4754_v61 = vpop.permute.xlu0 %4753  ;;  %v4902_v55 = vpop.permute.xlu1 %4901 }
 0x86b   : > { %4717 = vrot.lane.b32.xlu0 %v4702_v26, %s12055_s1  ;;  %4948 = vrot.lane.b32.xlu1 %v4785_v1, %s12057_s4 }
 0x86e   : > { %v4476_v32 = vpop.f32.mrb[38].mxu1  ;;  %v4639_v18 = vpop.permute.xlu0 %4638 }
 0x86f   : > { %v10597_v47 = vld [vmem:[#allocation2 + $0x68] sm:$0xff]  ;;  %v4522_v22 = vmul.f32 %v10260_v15, %v4476_v32  ;;  %v4787_v29 = vpop.permute.xlu1 %4786  ;;  %4950 = vrot.lane.b32.xlu1 %v4935_v16, %s12057_s4  ;;  %5187 = vrot.lane.b32.xlu0 %v5171_v4, %s12056_s8  ;;  %4661 = vst.msk [vmem:[#allocation3 + $0x10] sm:$0xff] %vm3460_vm9, %v4639_v18  ;;  %v4478_v51 = vpop.f32.mrb[39].mxu1 }
 0x870   : > { %4810 = vst.msk [vmem:[#allocation3] sm:$0xff] %vm3613_vm6, %v4787_v29  ;;  %v5032_v24 = vmul.f32 %v8304_v63, %v10597_v47  ;;  %v5172_v10 = vmul.f32 %v8270_v38, %v10597_v47  ;;  %v5321_v58 = vmul.f32 %v8232_v50, %v10597_v47  ;;  %v5058_v5 = vrot.slane %v10597_v47, 1 }
 0x871   : > { %v4545_v56 = vadd.f32 %v10265_v37, %v4522_v22  ;;  %v10631_v9 = vmul.f32 %v10597_v47, %v8295_v57  ;;  %v10635_v2 = vmul.f32 %v10597_v47, %v8274_v39  ;;  %v5404_v23 = vmul.f32 %v10597_v47, %v8264_v31 }
 0x872   : > { %5040 = vst.msk [vmem:[#allocation3 + $0xa0] sm:$0xff] %vm742_vm0, %v5032_v24  ;;  %v4706_v41 = vpop.permute.xlu0 %4705  ;;  %v5059_v36 = vsel %vm1509_vm13, %v5056_v59, %v5058_v5 }
 0x873   : > { %v4561_v13 = vmax.f32 %v4545_v56, 0.0  ;;  %v4854_v60 = vpop.permute.xlu1 %4853  ;;  %5072 = vrot.lane.b32.xlu0 %v5057_v19, %s12053_s6  ;;  %4865 = vrot.lane.b32.xlu1 %v4850_v34, %s12051_s0  ;;  %4728 = vst.msk [vmem:[#allocation3 + $0x10] sm:$0xff] %vm3528_vm10, %v4706_v41  ;;  %v5125_v14 = vrot.slane %v10631_v9, 2  ;;  %v5273_v26 = vrot.slane %v10635_v2, 2  ;;  %v5422_v16 = vrot.slane %v5404_v23, 2  ;;  %v5458_v23 = vld [vmem:[#allocation3 + $0x18] sm:$0xff] }
 0x874   : > { %4877 = vst.msk [vmem:[#allocation3] sm:$0xff] %vm3681_vm11, %v4854_v60 }
 0x875   : > { %4577 = vst.msk [vmem:[#allocation2 + $0x71] sm:$0xff] %vm742_vm0, %v4561_v13  ;;  %v5126_v59 = vsel %vm1611_vm14, %v5123_v35, %v5125_v14 }
 0x876   : > { %4776 = vst.msk [vmem:[#allocation3 + $0x10] sm:$0xff] %vm3577_vm12, %v4754_v61 }
 0x877   : > { %4925 = vst.msk [vmem:[#allocation3] sm:$0xff] %vm3730_vm15, %v4902_v55  ;;  %5139 = vrot.lane.b32.xlu0 %v5124_v28, %s12055_s1  ;;  %4867 = vrot.lane.b32.xlu1 %v4852_v3, %s12051_s0  ;;  %v5272_v55 = vrot.slane %v5254_v21, 2 }
 0x879   : > { %v5274_v43 = vsel %vm1611_vm14, %v5272_v55, %v5273_v26 }
 0x87b   : > { %5189 = vrot.lane.b32.xlu0 %v5172_v10, %s12056_s8  ;;  %5337 = vrot.lane.b32.xlu1 %v5321_v58, %s12052_s25 }
 0x87c   : > { %v10641_v0 = vld [vmem:[#allocation2 + $0x70] sm:$0xff] }
 0x87d   : > { %v4481_v25 = vpop.f32.mrb[40].mxu1  ;;  %v10651_v53 = vmul.f32 %v10641_v0, %v8274_v39  ;;  %v5033_v20 = vmul.f32 %v8359_v44, %v10641_v0  ;;  %v5322_v18 = vmul.f32 %v8270_v38, %v10641_v0  ;;  %v5173_v22 = vmul.f32 %v8304_v63, %v10641_v0 }
 0x87e   : > { %v4523_v17 = vmul.f32 %v10260_v15, %v4481_v25  ;;  %v4483_v1 = vpop.f32.mrb[41].mxu1  ;;  %v5060_v29 = vrot.slane %v10641_v0, 1  ;;  %v10678_v51 = vmul.f32 %v10641_v0, %v8295_v57  ;;  %v10690_v30 = vmul.f32 %v10641_v0, %v8429_v8 }
 0x87f   : > { %5074 = vrot.lane.b32.xlu0 %v5059_v36, %s12053_s6  ;;  %5222 = vrot.lane.b32.xlu1 %v5059_v36, %s12054_s7  ;;  %v5423_v4 = vrot.slane %v10651_v53, 2  ;;  %5041 = vst.msk [vmem:[#allocation3 + $0xb0] sm:$0xff] %vm742_vm0, %v5033_v20 }
 0x880   : > { %v4546_v61 = vadd.f32 %v10265_v37, %v4523_v17  ;;  %v5061_v19 = vsel %vm1509_vm13, %v5058_v5, %v5060_v29  ;;  %v5275_v34 = vrot.slane %v10678_v51, 2  ;;  %v5127_v2 = vrot.slane %v10690_v30, 2 }
 0x881   : > { %v4904_v6 = vpop.permute.xlu0 %4903  ;;  %v4756_v32 = vpop.permute.xlu1 %4755  ;;  %v5424_v54 = vsel %vm1611_vm14, %v5422_v16, %v5423_v4 }
 0x882   : > { %v4562_v27 = vmax.f32 %v4546_v61, 0.0  ;;  %5447 = vst.msk [vmem:[#allocation3 + $0x88] sm:$0xff] %vm742_vm0, %v5424_v54  ;;  %v5276_v5 = vsel %vm1611_vm14, %v5273_v26, %v5275_v34  ;;  %v5128_v26 = vsel %vm1611_vm14, %v5125_v14, %v5127_v2 }
 0x883   : > { %5141 = vrot.lane.b32.xlu0 %v5126_v59, %s12055_s1  ;;  %5289 = vrot.lane.b32.xlu1 %v5274_v43, %s12051_s0 }
 0x884   : > { %4578 = vst.msk [vmem:[#allocation2 + $0x79] sm:$0xff] %vm742_vm0, %v4562_v27 }
 0x885   : > { %v4789_v33 = vpop.permute.xlu0 %4788  ;;  %v4937_v47 = vpop.permute.xlu1 %4936 }
 0x886   : > { %4811 = vst.msk [vmem:[#allocation3 + $0x10] sm:$0xff] %vm3613_vm6, %v4789_v33 }
 0x887   : > { %4960 = vst.msk [vmem:[#allocation3] sm:$0xff] %vm3766_vm1, %v4937_v47  ;;  %5339 = vrot.lane.b32.xlu0 %v5322_v18, %s12052_s25  ;;  %5191 = vrot.lane.b32.xlu1 %v5173_v22, %s12056_s8 }
 0x889   : > { %v4856_v24 = vpop.permute.xlu0 %4855  ;;  %v4641_v56 = vpop.permute.xlu1 %4640 }
 0x88a   : > { %4878 = vst.msk [vmem:[#allocation3 + $0x10] sm:$0xff] %vm3681_vm11, %v4856_v24  ;;  %v4486_v42 = vpop.f32.mrb[42].mxu1 }
 0x88b   : > { %4662 = vst.msk [vmem:[#allocation3 + $0x20] sm:$0xff] %vm3460_vm9, %v4641_v56  ;;  %v10686_v35 = vld [vmem:[#allocation2 + $0x78] sm:$0xff]  ;;  %v4524_v13 = vmul.f32 %v10260_v15, %v4486_v42  ;;  %5224 = vrot.lane.b32.xlu0 %v5061_v19, %s12054_s7  ;;  %5372 = vrot.lane.b32.xlu1 %v5061_v19, %s12057_s4  ;;  %v4488_v41 = vpop.f32.mrb[43].mxu1 }
 0x88c   : > { %4926 = vst.msk [vmem:[#allocation3 + $0x10] sm:$0xff] %vm3730_vm15, %v4904_v6  ;;  %v10698_v60 = vmul.f32 %v10686_v35, %v8295_v57  ;;  %v5034_v28 = vmul.f32 %v8368_v62, %v10686_v35  ;;  %v5174_v36 = vmul.f32 %v8359_v44, %v10686_v35  ;;  %v5062_v53 = vrot.slane %v10686_v35, 1  ;;  %v5460_v56 = vld [vmem:[#allocation3 + $0x28] sm:$0xff] }
 0x88d   : > { %v4547_v3 = vadd.f32 %v10265_v37, %v4524_v13  ;;  %v4708_v10 = vpop.permute.xlu1 %4707  ;;  %v5323_v55 = vmul.f32 %v8304_v63, %v10686_v35  ;;  %v10732_v9 = vmul.f32 %v10686_v35, %v8464_v49  ;;  %v10736_v14 = vmul.f32 %v10686_v35, %v8429_v8 }
 0x88e   : > { %v5455_v58 = vld [vmem:[#allocation3] sm:$0xff]  ;;  %4729 = vst.msk [vmem:[#allocation3 + $0x20] sm:$0xff] %vm3528_vm10, %v4708_v10  ;;  %v5425_v25 = vrot.slane %v10698_v60, 2  ;;  %v5063_v16 = vsel %vm1509_vm13, %v5060_v29, %v5062_v53 }
 0x88f   : > { %5618 = vmatmul.mubr.f32.vlgmr.msra.gmra.mrb[50].mxu0 %v5455_v58  ;;  %5042 = vst.msk [vmem:[#allocation3 + $0xc0] sm:$0xff] %vm742_vm0, %v5034_v28  ;;  %v4563_v21 = vmax.f32 %v4547_v3, 0.0  ;;  %5291 = vrot.lane.b32.xlu0 %v5276_v5, %s12051_s0  ;;  %v5129_v54 = vrot.slane %v10732_v9, 2  ;;  %v5277_v33 = vrot.slane %v10736_v14, 2 }
 0x890   : > { %4777 = vst.msk [vmem:[#allocation3 + $0x20] sm:$0xff] %vm3577_vm12, %v4756_v32  ;;  %v4758_v0 = vpop.permute.xlu0 %4757  ;;  %5076 = vrot.lane.b32.xlu1 %v5061_v19, %s12053_s6  ;;  %7200 = vmatprep.mubr.msk.f32.mxu0 %vm742_vm0, %v5458_v23  ;;  %v5426_v17 = vsel %vm1611_vm14, %v5423_v4, %v5425_v25 }
 0x891   : > { %4579 = vst.msk [vmem:[#allocation2 + $0x81] sm:$0xff] %vm742_vm0, %v4563_v21  ;;  %v4906_v1 = vpop.permute.xlu1 %4905  ;;  %5448 = vst.msk [vmem:[#allocation3 + $0x98] sm:$0xff] %vm742_vm0, %v5426_v17  ;;  %v5130_v35 = vsel %vm1611_vm14, %v5127_v2, %v5129_v54  ;;  %v5278_v30 = vsel %vm1611_vm14, %v5275_v34, %v5277_v33 }
 0x893   : > { %5193 = vrot.lane.b32.xlu0 %v5174_v36, %s12056_s8 }
 0x894   : > { %v4939_v20 = vpop.permute.xlu0 %4938  ;;  %5143 = vrot.lane.b32.xlu1 %v5128_v26, %s12055_s1 }
 0x895   : > { %4961 = vst.msk [vmem:[#allocation3 + $0x10] sm:$0xff] %vm3766_vm1, %v4939_v20  ;;  %v4791_v61 = vpop.permute.xlu1 %4790 }
 0x896   : > { %4812 = vst.msk [vmem:[#allocation3 + $0x20] sm:$0xff] %vm3613_vm6, %v4791_v61 }
 0x897   : > { %5374 = vrot.lane.b32.xlu0 %v5063_v16, %s12057_s4  ;;  %v4491_v27 = vpop.f32.mrb[44].mxu1 }
 0x898   : > { %v4643_v4 = vpop.permute.xlu0 %4642  ;;  %5341 = vrot.lane.b32.xlu1 %v5323_v55, %s12052_s25  ;;  %v10741_v6 = vld [vmem:[#allocation2 + $0x80] sm:$0xff]  ;;  %v4525_v32 = vmul.f32 %v10260_v15, %v4491_v27  ;;  %v4493_v59 = vpop.f32.mrb[45].mxu1 }
 0x899   : > { %4663 = vst.msk [vmem:[#allocation3 + $0x30] sm:$0xff] %vm3460_vm9, %v4643_v4  ;;  %v4858_v43 = vpop.permute.xlu1 %4857  ;;  %v5407_v47 = vmul.f32 %v10741_v6, %v8429_v8  ;;  %v5035_v18 = vmul.f32 %v8480_v45, %v10741_v6  ;;  %v5324_v3 = vmul.f32 %v8359_v44, %v10741_v6  ;;  %v5175_v51 = vmul.f32 %v8368_v62, %v10741_v6 }
 0x89a   : > { %4879 = vst.msk [vmem:[#allocation3 + $0x20] sm:$0xff] %vm3681_vm11, %v4858_v43  ;;  %v4548_v22 = vadd.f32 %v10265_v37, %v4525_v32  ;;  %v5064_v34 = vrot.slane %v10741_v6, 1  ;;  %v10778_v10 = vmul.f32 %v10741_v6, %v8464_v49 }
 0x89b   : > { %4927 = vst.msk [vmem:[#allocation3 + $0x20] sm:$0xff] %vm3730_vm15, %v4906_v1  ;;  %5078 = vrot.lane.b32.xlu0 %v5063_v16, %s12053_s6  ;;  %v5427_v42 = vrot.slane %v5407_v47, 2  ;;  %v10789_v1 = vmul.f32 %v10741_v6, %v8613_v48 }
 0x89c   : > { %v4710_v29 = vpop.permute.xlu0 %4709  ;;  %5226 = vrot.lane.b32.xlu1 %v5063_v16, %s12054_s7  ;;  %v5457_v24 = vld [vmem:[#allocation3 + $0x10] sm:$0xff]  ;;  %5043 = vst.msk [vmem:[#allocation3 + $0xd0] sm:$0xff] %vm742_vm0, %v5035_v18  ;;  %v4564_v19 = vmax.f32 %v4548_v22, 0.0  ;;  %v5279_v23 = vrot.slane %v10778_v10, 2 }
 0x89d   : > { %4730 = vst.msk [vmem:[#allocation3 + $0x30] sm:$0xff] %vm3528_vm10, %v4710_v29  ;;  %5623 = vmatmul.mubr.f32.gmra.mrb[52].mxu0 %v5457_v24  ;;  %v5428_v13 = vsel %vm1611_vm14, %v5425_v25, %v5427_v42  ;;  %v5131_v14 = vrot.slane %v10789_v1, 2 }
 0x89e   : > { %4778 = vst.msk [vmem:[#allocation3 + $0x30] sm:$0xff] %vm3577_vm12, %v4758_v0  ;;  %7201 = vmatprep.mubr.msk.f32.mxu0 %vm742_vm0, %v5460_v56  ;;  %v5065_v0 = vsel %vm1509_vm13, %v5062_v53, %v5064_v34 }
 0x89f   : > { %4580 = vst.msk [vmem:[#allocation2 + $0x89] sm:$0xff] %vm742_vm0, %v4564_v19  ;;  %5145 = vrot.lane.b32.xlu0 %v5130_v35, %s12055_s1  ;;  %5449 = vst.msk [vmem:[#allocation3 + $0xa8] sm:$0xff] %vm742_vm0, %v5428_v13  ;;  %v5132_v43 = vsel %vm1611_vm14, %v5129_v54, %v5131_v14  ;;  %v10843_v35 = vld [vmem:[#allocation2 + $0xa8] sm:$0x3] }
 0x8a0   : > { %5293 = vrot.lane.b32.xlu1 %v5278_v30, %s12051_s0  ;;  %v5462_v13 = vld [vmem:[#allocation3 + $0x38] sm:$0xff] }
 0x8a2   : > { %v4496_v41 = vpop.f32.mrb[46].mxu1 }
 0x8a3   : > { %v4526_v60 = vmul.f32 %v10260_v15, %v4496_v41  ;;  %v4498_v28 = vpop.f32.mrb[47].mxu1  ;;  %5343 = vrot.lane.b32.xlu0 %v5324_v3, %s12052_s25 }
 0x8a4   : > { %5195 = vrot.lane.b32.xlu1 %v5175_v51, %s12056_s8  ;;  %v5412_v51 = vmul.f32 %v10843_v35, %v8697_v11 }
 0x8a5   : > { %v4549_v58 = vadd.f32 %v10265_v37, %v4526_v60  ;;  %v4908_v2 = vpop.permute.xlu0 %4907  ;;  %v4760_v25 = vpop.permute.xlu1 %4759 }
 0x8a6   : > { %v4501_v21 = vpop.f32.mrb[48].mxu1  ;;  %v10785_v17 = vld [vmem:[#allocation2 + $0x88] sm:$0xff]  ;;  %v5437_v1 = vrot.slane %v5412_v51, 2 }
 0x8a7   : > { %v4565_v5 = vmax.f32 %v4549_v58, 0.0  ;;  %v4527_v36 = vmul.f32 %v10260_v15, %v4501_v21  ;;  %5228 = vrot.lane.b32.xlu0 %v5065_v0, %s12054_s7  ;;  %v4503_v26 = vpop.f32.mrb[49].mxu1  ;;  %v5408_v53 = vmul.f32 %v10785_v17, %v8464_v49  ;;  %v5036_v20 = vmul.f32 %v8511_v46, %v10785_v17 }
 0x8a8   : > { %5376 = vrot.lane.b32.xlu1 %v5065_v0, %s12057_s4  ;;  %v5280_v15 = vsel %vm1611_vm14, %v5277_v33, %v5279_v23  ;;  %v5176_v59 = vmul.f32 %v8480_v45, %v10785_v17  ;;  %v5066_v33 = vrot.slane %v10785_v17, 1  ;;  %v5325_v54 = vmul.f32 %v8368_v62, %v10785_v17 }
 0x8a9   : > { %4581 = vst.msk [vmem:[#allocation2 + $0x91] sm:$0xff] %vm742_vm0, %v4565_v5  ;;  %v4550_v61 = vadd.f32 %v10265_v37, %v4527_v36  ;;  %v4793_v55 = vpop.permute.xlu0 %4792  ;;  %v4941_v16 = vpop.permute.xlu1 %4940  ;;  %v5429_v4 = vrot.slane %v5408_v53, 2  ;;  %5044 = vst.msk [vmem:[#allocation3 + $0xe0] sm:$0xff] %vm742_vm0, %v5036_v20  ;;  %v10841_v19 = vmul.f32 %v10785_v17, %v8613_v48 }
 0x8aa   : > { %4813 = vst.msk [vmem:[#allocation3 + $0x30] sm:$0xff] %vm3613_vm6, %v4793_v55  ;;  %v5067_v56 = vsel %vm1509_vm13, %v5064_v34, %v5066_v33 }
 0x8ab   : > { %4962 = vst.msk [vmem:[#allocation3 + $0x20] sm:$0xff] %vm3766_vm1, %v4941_v16  ;;  %v4566_v27 = vmax.f32 %v4550_v61, 0.0  ;;  %5295 = vrot.lane.b32.xlu0 %v5280_v15, %s12051_s0  ;;  %v5430_v37 = vsel %vm1611_vm14, %v5427_v42, %v5429_v4  ;;  %v10837_v42 = vmul.f32 %v10785_v17, %v8621_v7  ;;  %v5281_v58 = vrot.slane %v10841_v19, 2 }
 0x8ac   : > { %5080 = vrot.lane.b32.xlu1 %v5065_v0, %s12053_s6  ;;  %5450 = vst.msk [vmem:[#allocation3 + $0xb8] sm:$0xff] %vm742_vm0, %v5430_v37 }
 0x8ad   : > { %4582 = vst.msk [vmem:[#allocation2 + $0x99] sm:$0xff] %vm742_vm0, %v4566_v27  ;;  %v4860_v6 = vpop.permute.xlu0 %4859  ;;  %v4645_v32 = vpop.permute.xlu1 %4644  ;;  %v5133_v34 = vrot.slane %v10837_v42, 2  ;;  %v5282_v26 = vsel %vm1611_vm14, %v5279_v23, %v5281_v58 }
 0x8ae   : > { %4880 = vst.msk [vmem:[#allocation3 + $0x30] sm:$0xff] %vm3681_vm11, %v4860_v6  ;;  %v5464_v6 = vld [vmem:[#allocation3 + $0x48] sm:$0xff] }
 0x8af   : > { %4664 = vst.msk [vmem:[#allocation3 + $0x40] sm:$0xff] %vm3460_vm9, %v4645_v32  ;;  %5197 = vrot.lane.b32.xlu0 %v5176_v59, %s12056_s8  ;;  %v5134_v36 = vsel %vm1611_vm14, %v5131_v14, %v5133_v34 }
 0x8b0   : > { %v10820_v47 = vld [vmem:[#allocation2 + $0x90] sm:$0xff]  ;;  %4928 = vst.msk [vmem:[#allocation3 + $0x30] sm:$0xff] %vm3730_vm15, %v4908_v2  ;;  %5147 = vrot.lane.b32.xlu1 %v5132_v43, %s12055_s1 }
 0x8b1   : > { %v5409_v18 = vmul.f32 %v10820_v47, %v8613_v48  ;;  %v5037_v22 = vmul.f32 %v8549_v40, %v10820_v47  ;;  %v4762_v29 = vpop.permute.xlu0 %4761  ;;  %v4712_v9 = vpop.permute.xlu1 %4711  ;;  %v5177_v14 = vmul.f32 %v8511_v46, %v10820_v47  ;;  %v5068_v27 = vrot.slane %v10820_v47, 1 }
 0x8b2   : > { %v5459_v24 = vld [vmem:[#allocation3 + $0x20] sm:$0xff]  ;;  %4731 = vst.msk [vmem:[#allocation3 + $0x40] sm:$0xff] %vm3528_vm10, %v4712_v9  ;;  %v10888_v37 = vmul.f32 %v10820_v47, %v8621_v7 }
 0x8b3   : > { %5628 = vmatmul.mubr.f32.gmra.mrb[54].mxu0 %v5459_v24  ;;  %v5431_v30 = vrot.slane %v5409_v18, 2  ;;  %5045 = vst.msk [vmem:[#allocation3 + $0xf0] sm:$0xff] %vm742_vm0, %v5037_v22  ;;  %5378 = vrot.lane.b32.xlu0 %v5067_v56, %s12057_s4  ;;  %v5069_v43 = vsel %vm1509_vm13, %v5066_v33, %v5068_v27  ;;  %v5111_v22 = vmul.f32 %v10820_v47, %v8709_v12 }
 0x8b4   : > { %4779 = vst.msk [vmem:[#allocation3 + $0x40] sm:$0xff] %vm3577_vm12, %v4760_v25  ;;  %5345 = vrot.lane.b32.xlu1 %v5325_v54, %s12052_s25  ;;  %7202 = vmatprep.mubr.msk.f32.mxu0 %vm742_vm0, %v5462_v13  ;;  %v10851_v3 = vld [vmem:[#allocation2 + $0x98] sm:$0xff]  ;;  %v10859_v5 = vld [vmem:[#allocation2 + $0xa0] sm:$0xff]  ;;  %v5283_v18 = vrot.slane %v10888_v37, 2  ;;  %v5370_v37 = vrot.slane %v10843_v35, 1 }
 0x8b5   : > { %v5432_v41 = vsel %vm1611_vm14, %v5429_v4, %v5431_v30  ;;  %v4943_v60 = vpop.permute.xlu0 %4942  ;;  %v4910_v28 = vpop.permute.xlu1 %4909  ;;  %v5410_v2 = vmul.f32 %v10851_v3, %v8621_v7  ;;  %v5411_v0 = vmul.f32 %v10859_v5, %v8709_v12  ;;  %v5326_v4 = vmul.f32 %v8480_v45, %v10820_v47 }
 0x8b6   : > { %5451 = vst.msk [vmem:[#allocation3 + $0xc8] sm:$0xff] %vm742_vm0, %v5432_v41  ;;  %v5284_v24 = vsel %vm1611_vm14, %v5281_v58, %v5283_v18  ;;  %v5135_v17 = vrot.slane %v5111_v22, 2  ;;  %v5178_v47 = vmul.f32 %v8549_v40, %v10851_v3  ;;  %v5070_v42 = vrot.slane %v10851_v3, 1 }
 0x8b7   : > { %4963 = vst.msk [vmem:[#allocation3 + $0x30] sm:$0xff] %vm3766_vm1, %v4943_v60  ;;  %5082 = vrot.lane.b32.xlu0 %v5067_v56, %s12053_s6  ;;  %v5433_v53 = vrot.slane %v5410_v2, 2  ;;  %v5435_v20 = vrot.slane %v5411_v0, 2  ;;  %v5327_v41 = vmul.f32 %v8511_v46, %v10851_v3  ;;  %v5220_v58 = vrot.slane %v10859_v5, 1 }
 0x8b8   : > { %5230 = vrot.lane.b32.xlu1 %v5067_v56, %s12054_s7  ;;  %v5136_v56 = vsel %vm1611_vm14, %v5133_v34, %v5135_v17  ;;  %v5071_v60 = vsel %vm1509_vm13, %v5068_v27, %v5070_v42  ;;  %v5112_v2 = vmul.f32 %v10851_v3, %v8697_v11 }
 0x8b9   : > { %v4647_v25 = vpop.permute.xlu0 %4646  ;;  %v4795_v21 = vpop.permute.xlu1 %4794  ;;  %v5434_v61 = vsel %vm1611_vm14, %v5431_v30, %v5433_v53  ;;  %v5436_v10 = vsel %vm1611_vm14, %v5433_v53, %v5435_v20  ;;  %v5438_v23 = vsel %vm1611_vm14, %v5435_v20, %v5437_v1  ;;  %v5221_v1 = vsel %vm1509_vm13, %v5070_v42, %v5220_v58 }
 0x8ba   : > { %4665 = vst.msk [vmem:[#allocation3 + $0x50] sm:$0xff] %vm3460_vm9, %v4647_v25  ;;  %v5261_v25 = vmul.f32 %v10851_v3, %v8709_v12  ;;  %v5262_v53 = vmul.f32 %v10859_v5, %v8697_v11 }
 0x8bb   : > { %4814 = vst.msk [vmem:[#allocation3 + $0x40] sm:$0xff] %vm3613_vm6, %v4795_v21  ;;  %5149 = vrot.lane.b32.xlu0 %v5134_v36, %s12055_s1  ;;  %v5137_v36 = vrot.slane %v5112_v2, 2 }
 0x8bc   : > { %5297 = vrot.lane.b32.xlu1 %v5282_v26, %s12051_s0  ;;  %5452 = vst.msk [vmem:[#allocation3 + $0xd8] sm:$0xff] %vm742_vm0, %v5434_v61  ;;  %5453 = vst.msk [vmem:[#allocation3 + $0xe8] sm:$0xff] %vm742_vm0, %v5436_v10  ;;  %v5285_v26 = vrot.slane %v5261_v25, 2 }
 0x8bd   : > { %v4714_v55 = vpop.permute.xlu0 %4713  ;;  %v4862_v16 = vpop.permute.xlu1 %4861  ;;  %5454 = vst.msk [vmem:[#allocation3 + $0xf8] sm:$0xff] %vm742_vm0, %v5438_v23  ;;  %v5328_v23 = vmul.f32 %v8549_v40, %v10859_v5 }
 0x8be   : > { %v5461_v15 = vld [vmem:[#allocation3 + $0x30] sm:$0xff]  ;;  %4732 = vst.msk [vmem:[#allocation3 + $0x50] sm:$0xff] %vm3528_vm10, %v4714_v55  ;;  %v5138_v55 = vsel %vm1611_vm14, %v5135_v17, %v5137_v36 }
 0x8bf   : > { %4881 = vst.msk [vmem:[#allocation3 + $0x40] sm:$0xff] %vm3681_vm11, %v4862_v16  ;;  %5633 = vmatmul.mubr.f32.gmra.mrb[56].mxu0 %v5461_v15  ;;  %5347 = vrot.lane.b32.xlu0 %v5326_v4, %s12052_s25  ;;  %v5286_v16 = vsel %vm1611_vm14, %v5283_v18, %v5285_v26  ;;  %v5287_v15 = vrot.slane %v5262_v53, 2  ;;  %v5468_v4 = vld [vmem:[#allocation3 + $0x68] sm:$0xff] }
 0x8c0   : > { %4780 = vst.msk [vmem:[#allocation3 + $0x50] sm:$0xff] %vm3577_vm12, %v4762_v29  ;;  %5199 = vrot.lane.b32.xlu1 %v5177_v14, %s12056_s8  ;;  %7203 = vmatprep.mubr.msk.f32.mxu0 %vm742_vm0, %v5464_v6 }
 0x8c1   : > { %4929 = vst.msk [vmem:[#allocation3 + $0x40] sm:$0xff] %vm3730_vm15, %v4910_v28  ;;  %v4912_v32 = vpop.permute.xlu0 %4911  ;;  %v4764_v59 = vpop.permute.xlu1 %4763  ;;  %v5466_v28 = vld [vmem:[#allocation3 + $0x58] sm:$0xff]  ;;  %v5288_v27 = vsel %vm1611_vm14, %v5285_v26, %v5287_v15 }
 0x8c3   : > { %5232 = vrot.lane.b32.xlu0 %v5069_v43, %s12054_s7 }
 0x8c4   : > { %5380 = vrot.lane.b32.xlu1 %v5069_v43, %s12057_s4 }
 0x8c5   : > { %v4797_v29 = vpop.permute.xlu0 %4796  ;;  %v4945_v9 = vpop.permute.xlu1 %4944 }
 0x8c6   : > { %4815 = vst.msk [vmem:[#allocation3 + $0x50] sm:$0xff] %vm3613_vm6, %v4797_v29 }
 0x8c7   : > { %4964 = vst.msk [vmem:[#allocation3 + $0x40] sm:$0xff] %vm3766_vm1, %v4945_v9  ;;  %5299 = vrot.lane.b32.xlu0 %v5284_v24, %s12051_s0  ;;  %v5470_v24 = vld [vmem:[#allocation3 + $0x78] sm:$0xff] }
 0x8c8   : > { %5084 = vrot.lane.b32.xlu1 %v5069_v43, %s12053_s6 }
 0x8c9   : > { %v4864_v33 = vpop.permute.xlu0 %4863  ;;  %v4649_v54 = vpop.permute.xlu1 %4648 }
 0x8ca   : > { %4882 = vst.msk [vmem:[#allocation3 + $0x50] sm:$0xff] %vm3681_vm11, %v4864_v33 }
 0x8cb   : > { %4666 = vst.msk [vmem:[#allocation3 + $0x60] sm:$0xff] %vm3460_vm9, %v4649_v54  ;;  %5201 = vrot.lane.b32.xlu0 %v5178_v47, %s12056_s8  ;;  %v5472_v47 = vld [vmem:[#allocation3 + $0x88] sm:$0xff] }
 0x8cc   : > { %4930 = vst.msk [vmem:[#allocation3 + $0x50] sm:$0xff] %vm3730_vm15, %v4912_v32  ;;  %5151 = vrot.lane.b32.xlu1 %v5136_v56, %s12055_s1 }
 0x8cd   : > { %v4766_v19 = vpop.permute.xlu0 %4765  ;;  %v4716_v30 = vpop.permute.xlu1 %4715 }
 0x8ce   : > { %v5463_v13 = vld [vmem:[#allocation3 + $0x40] sm:$0xff]  ;;  %4733 = vst.msk [vmem:[#allocation3 + $0x60] sm:$0xff] %vm3528_vm10, %v4716_v30 }
 0x8cf   : > { %5638 = vmatmul.mubr.f32.gmra.mrb[58].mxu0 %v5463_v13  ;;  %4781 = vst.msk [vmem:[#allocation3 + $0x60] sm:$0xff] %vm3577_vm12, %v4764_v59  ;;  %5382 = vrot.lane.b32.xlu0 %v5071_v60, %s12057_s4  ;;  %v5371_v59 = vsel %vm1509_vm13, %v5220_v58, %v5370_v37 }
 0x8d0   : > { %5349 = vrot.lane.b32.xlu1 %v5327_v41, %s12052_s25  ;;  %7204 = vmatprep.mubr.msk.f32.mxu0 %vm742_vm0, %v5466_v28 }
 0x8d1   : > { %v4947_v51 = vpop.permute.xlu0 %4946  ;;  %v4914_v34 = vpop.permute.xlu1 %4913 }
 0x8d2   : > { %4965 = vst.msk [vmem:[#allocation3 + $0x50] sm:$0xff] %vm3766_vm1, %v4947_v51 }
 0x8d3   : > { %5086 = vrot.lane.b32.xlu0 %v5071_v60, %s12053_s6 }
 0x8d4   : > { %5234 = vrot.lane.b32.xlu1 %v5071_v60, %s12054_s7 }
 0x8d5   : > { %v4651_v21 = vpop.permute.xlu0 %4650  ;;  %v4916_v0 = vpop.permute.xlu1 %4915 }
 0x8d6   : > { %4667 = vst.msk [vmem:[#allocation3 + $0x70] sm:$0xff] %vm3460_vm9, %v4651_v21  ;;  %v5474_v21 = vld [vmem:[#allocation3 + $0x98] sm:$0xff] }
 0x8d7   : > { %5236 = vrot.lane.b32.xlu0 %v5221_v1, %s12054_s7 }
 0x8d8   : > { %5384 = vrot.lane.b32.xlu1 %v5221_v1, %s12057_s4 }
 0x8d9   : > { %v4801_v3 = vpop.permute.xlu0 %4800  ;;  %v4799_v20 = vpop.permute.xlu1 %4798  ;;  %v5465_v61 = vld [vmem:[#allocation3 + $0x50] sm:$0xff] }
 0x8da   : > { %4816 = vst.msk [vmem:[#allocation3 + $0x60] sm:$0xff] %vm3613_vm6, %v4799_v20  ;;  %5643 = vmatmul.mubr.f32.gmra.mrb[60].mxu0 %v5465_v61  ;;  %v5476_v61 = vld [vmem:[#allocation3 + $0xa8] sm:$0xff] }
 0x8db   : > { %5153 = vrot.lane.b32.xlu0 %v5138_v55, %s12055_s1  ;;  %7205 = vmatprep.mubr.msk.f32.mxu0 %vm742_vm0, %v5468_v4 }
 0x8dc   : > { %5301 = vrot.lane.b32.xlu1 %v5286_v16, %s12051_s0 }
 0x8dd   : > { %v4718_v14 = vpop.permute.xlu0 %4717  ;;  %v4949_v10 = vpop.permute.xlu1 %4948 }
 0x8de   : > { %4734 = vst.msk [vmem:[#allocation3 + $0x70] sm:$0xff] %vm3528_vm10, %v4718_v14 }
 0x8df   : > { %4782 = vst.msk [vmem:[#allocation3 + $0x70] sm:$0xff] %vm3577_vm12, %v4766_v19  ;;  %5351 = vrot.lane.b32.xlu0 %v5328_v23, %s12052_s25  ;;  %v10973_v19 = vld [vmem:[#allocation2] sm:$0xff] }
 0x8e0   : > { %5303 = vrot.lane.b32.xlu1 %v5288_v27, %s12051_s0  ;;  %4817 = vst.msk [vmem:[#allocation3 + $0x70] sm:$0xff] %vm3613_vm6, %v4801_v3  ;;  %v5787_v30 = vmul.f32 %v8232_v50, %v10973_v19 }
 0x8e1   : > { %v5188_v6 = vpop.permute.xlu0 %5187  ;;  %v4951_v32 = vpop.permute.xlu1 %4950 }
 0x8e2   : > { %5795 = vst.msk [vmem:[#allocation3] sm:$0xff] %vm742_vm0, %v5787_v30 }
 0x8e4   : > { %5386 = vrot.lane.b32.xlu1 %v5371_v59, %s12057_s4 }
 0x8e5   : > { %v5073_v5 = vpop.permute.xlu0 %5072  ;;  %v4866_v43 = vpop.permute.xlu1 %4865 }
 0x8e6   : > { %5096 = vst.msk [vmem:[#allocation3 + $0x80] sm:$0xff] %vm3460_vm9, %v5073_v5 }
 0x8e7   : > { %4883 = vst.msk [vmem:[#allocation3 + $0x60] sm:$0xff] %vm3681_vm11, %v4866_v43 }
 0x8e8   : > { %4931 = vst.msk [vmem:[#allocation3 + $0x60] sm:$0xff] %vm3730_vm15, %v4914_v34 }
 0x8e9   : > { %4966 = vst.msk [vmem:[#allocation3 + $0x60] sm:$0xff] %vm3766_vm1, %v4949_v10  ;;  %v5140_v35 = vpop.permute.xlu0 %5139  ;;  %v4868_v18 = vpop.permute.xlu1 %4867 }
 0x8ea   : > { %5163 = vst.msk [vmem:[#allocation3 + $0x80] sm:$0xff] %vm3528_vm10, %v5140_v35 }
 0x8eb   : > { %4884 = vst.msk [vmem:[#allocation3 + $0x70] sm:$0xff] %vm3681_vm11, %v4868_v18 }
 0x8ec   : > { %5211 = vst.msk [vmem:[#allocation3 + $0x80] sm:$0xff] %vm3577_vm12, %v5188_v6  ;;  %v5478_v6 = vld [vmem:[#allocation3 + $0xb8] sm:$0xff] }
 0x8ed   : > { %4932 = vst.msk [vmem:[#allocation3 + $0x70] sm:$0xff] %vm3730_vm15, %v4916_v0  ;;  %v5190_v22 = vpop.permute.xlu0 %5189  ;;  %v5338_v29 = vpop.permute.xlu1 %5337 }
 0x8ee   : > { %4967 = vst.msk [vmem:[#allocation3 + $0x70] sm:$0xff] %vm3766_vm1, %v4951_v32 }
 0x8f0   : > { %v5467_v9 = vld [vmem:[#allocation3 + $0x60] sm:$0xff] }
 0x8f1   : > { %5648 = vmatmul.mubr.f32.gmra.mrb[62].mxu0 %v5467_v9  ;;  %v5075_v17 = vpop.permute.xlu0 %5074  ;;  %v5223_v33 = vpop.permute.xlu1 %5222 }
 0x8f2   : > { %7206 = vmatprep.mubr.msk.f32.mxu0 %vm742_vm0, %v5470_v24  ;;  %5097 = vst.msk [vmem:[#allocation3 + $0x90] sm:$0xff] %vm3460_vm9, %v5075_v17 }
 0x8f3   : > { %5246 = vst.msk [vmem:[#allocation3 + $0x80] sm:$0xff] %vm3613_vm6, %v5223_v33 }
 0x8f5   : > { %v5469_v54 = vld [vmem:[#allocation3 + $0x70] sm:$0xff]  ;;  %v5142_v56 = vpop.permute.xlu0 %5141  ;;  %v5290_v42 = vpop.permute.xlu1 %5289 }
 0x8f6   : > { %5653 = vmatmul.mubr.f32.gmra.mrb[64].mxu0 %v5469_v54  ;;  %5164 = vst.msk [vmem:[#allocation3 + $0x90] sm:$0xff] %vm3528_vm10, %v5142_v56 }
 0x8f7   : > { %7207 = vmatprep.mubr.msk.f32.mxu0 %vm742_vm0, %v5472_v47  ;;  %5313 = vst.msk [vmem:[#allocation3 + $0x80] sm:$0xff] %vm3681_vm11, %v5290_v42 }
 0x8f8   : > { %5212 = vst.msk [vmem:[#allocation3 + $0x90] sm:$0xff] %vm3577_vm12, %v5190_v22 }
 0x8f9   : > { %5361 = vst.msk [vmem:[#allocation3 + $0x80] sm:$0xff] %vm3730_vm15, %v5338_v29  ;;  %v5340_v13 = vpop.permute.xlu0 %5339  ;;  %v5192_v41 = vpop.permute.xlu1 %5191  ;;  %v5480_v29 = vld [vmem:[#allocation3 + $0xc8] sm:$0xff] }
 0x8fd   : > { %v5225_v60 = vpop.permute.xlu0 %5224  ;;  %v5373_v28 = vpop.permute.xlu1 %5372 }
 0x8fe   : > { %5247 = vst.msk [vmem:[#allocation3 + $0x90] sm:$0xff] %vm3613_vm6, %v5225_v60 }
 0x8ff   : > { %5396 = vst.msk [vmem:[#allocation3 + $0x80] sm:$0xff] %vm3766_vm1, %v5373_v28 }
 0x901   : > { %v5292_v51 = vpop.permute.xlu0 %5291 }
 0x902   : > { %v5077_v34 = vpop.permute.xlu1 %5076  ;;  %5314 = vst.msk [vmem:[#allocation3 + $0x90] sm:$0xff] %vm3681_vm11, %v5292_v51 }
 0x903   : > { %5098 = vst.msk [vmem:[#allocation3 + $0xa0] sm:$0xff] %vm3460_vm9, %v5077_v34 }
 0x904   : > { %5362 = vst.msk [vmem:[#allocation3 + $0x90] sm:$0xff] %vm3730_vm15, %v5340_v13  ;;  %v5482_v13 = vld [vmem:[#allocation3 + $0xd8] sm:$0xff] }
 0x905   : > { %v5194_v58 = vpop.permute.xlu0 %5193 }
 0x906   : > { %v5144_v2 = vpop.permute.xlu1 %5143  ;;  %v5471_v25 = vld [vmem:[#allocation3 + $0x80] sm:$0xff] }
 0x907   : > { %5165 = vst.msk [vmem:[#allocation3 + $0xa0] sm:$0xff] %vm3528_vm10, %v5144_v2  ;;  %5658 = vmatmul.mubr.f32.gmra.mrb[66].mxu0 %v5471_v25  ;;  %v5484_v25 = vld [vmem:[#allocation3 + $0xe8] sm:$0xff] }
 0x908   : > { %5213 = vst.msk [vmem:[#allocation3 + $0xa0] sm:$0xff] %vm3577_vm12, %v5192_v41  ;;  %7208 = vmatprep.mubr.msk.f32.mxu0 %vm742_vm0, %v5474_v21 }
 0x909   : > { %v5375_v0 = vpop.permute.xlu0 %5374 }
 0x90a   : > { %v5342_v1 = vpop.permute.xlu1 %5341  ;;  %5397 = vst.msk [vmem:[#allocation3 + $0x90] sm:$0xff] %vm3766_vm1, %v5375_v0 }
 0x90d   : > { %v5079_v36 = vpop.permute.xlu0 %5078 }
 0x90e   : > { %v5227_v26 = vpop.permute.xlu1 %5226  ;;  %5099 = vst.msk [vmem:[#allocation3 + $0xb0] sm:$0xff] %vm3460_vm9, %v5079_v36 }
 0x90f   : > { %5248 = vst.msk [vmem:[#allocation3 + $0xa0] sm:$0xff] %vm3613_vm6, %v5227_v26 }
 0x911   : > { %v5146_v53 = vpop.permute.xlu0 %5145  ;;  %v5473_v20 = vld [vmem:[#allocation3 + $0x90] sm:$0xff] }
 0x912   : > { %v5294_v3 = vpop.permute.xlu1 %5293  ;;  %5166 = vst.msk [vmem:[#allocation3 + $0xb0] sm:$0xff] %vm3528_vm10, %v5146_v53  ;;  %5663 = vmatmul.mubr.f32.gmra.mrb[68].mxu0 %v5473_v20 }
 0x913   : > { %5315 = vst.msk [vmem:[#allocation3 + $0xa0] sm:$0xff] %vm3681_vm11, %v5294_v3  ;;  %7209 = vmatprep.mubr.msk.f32.mxu0 %vm742_vm0, %v5476_v61  ;;  %v5486_v3 = vld [vmem:[#allocation3 + $0xf8] sm:$0xff]  ;;  %v11037_v61 = vld [vmem:[%s11954_s18] ss:$0 sm:$0xff] }
 0x914   : > { %5214 = vst.msk [vmem:[#allocation3 + $0xb0] sm:$0xff] %vm3577_vm12, %v5194_v58 }
 0x915   : > { %5363 = vst.msk [vmem:[#allocation3 + $0xa0] sm:$0xff] %vm3730_vm15, %v5342_v1  ;;  %v5344_v55 = vpop.permute.xlu0 %5343 }
 0x916   : > { %v5196_v16 = vpop.permute.xlu1 %5195 }
 0x919   : > { %v5229_v15 = vpop.permute.xlu0 %5228 }
 0x91a   : > { %v5377_v4 = vpop.permute.xlu1 %5376  ;;  %5249 = vst.msk [vmem:[#allocation3 + $0xb0] sm:$0xff] %vm3613_vm6, %v5229_v15 }
 0x91b   : > { %5398 = vst.msk [vmem:[#allocation3 + $0xa0] sm:$0xff] %vm3766_vm1, %v5377_v4 }
 0x91d   : > { %v5296_v14 = vpop.permute.xlu0 %5295 }
 0x91e   : > { %v5081_v10 = vpop.permute.xlu1 %5080  ;;  %5316 = vst.msk [vmem:[#allocation3 + $0xb0] sm:$0xff] %vm3681_vm11, %v5296_v14 }
 0x91f   : > { %5100 = vst.msk [vmem:[#allocation3 + $0xc0] sm:$0xff] %vm3460_vm9, %v5081_v10 }
 0x920   : > { %5364 = vst.msk [vmem:[#allocation3 + $0xb0] sm:$0xff] %vm3730_vm15, %v5344_v55 }
 0x921   : > { %v5198_v23 = vpop.permute.xlu0 %5197 }
 0x922   : > { %v5148_v27 = vpop.permute.xlu1 %5147  ;;  %v5475_v37 = vld [vmem:[#allocation3 + $0xa0] sm:$0xff] }
 0x923   : > { %5167 = vst.msk [vmem:[#allocation3 + $0xc0] sm:$0xff] %vm3528_vm10, %v5148_v27  ;;  %5668 = vmatmul.mubr.f32.gmra.mrb[70].mxu0 %v5475_v37 }
 0x924   : > { %5215 = vst.msk [vmem:[#allocation3 + $0xc0] sm:$0xff] %vm3577_vm12, %v5196_v16  ;;  %7210 = vmatprep.mubr.msk.f32.mxu0 %vm742_vm0, %v5478_v6  ;;  %v11042_v16 = vld [vmem:[%s11955_s19] ss:$0 sm:$0xff] }
 0x925   : > { %v5379_v32 = vpop.permute.xlu0 %5378 }
 0x926   : > { %v5346_v59 = vpop.permute.xlu1 %5345  ;;  %5399 = vst.msk [vmem:[#allocation3 + $0xb0] sm:$0xff] %vm3766_vm1, %v5379_v32 }
 0x929   : > { %v5083_v5 = vpop.permute.xlu0 %5082 }
 0x92a   : > { %v5231_v43 = vpop.permute.xlu1 %5230  ;;  %5101 = vst.msk [vmem:[#allocation3 + $0xd0] sm:$0xff] %vm3460_vm9, %v5083_v5 }
 0x92b   : > { %5250 = vst.msk [vmem:[#allocation3 + $0xc0] sm:$0xff] %vm3613_vm6, %v5231_v43 }
 0x92d   : > { %v5150_v35 = vpop.permute.xlu0 %5149  ;;  %v5477_v22 = vld [vmem:[#allocation3 + $0xb0] sm:$0xff] }
 0x92e   : > { %v5298_v18 = vpop.permute.xlu1 %5297  ;;  %5168 = vst.msk [vmem:[#allocation3 + $0xd0] sm:$0xff] %vm3528_vm10, %v5150_v35  ;;  %5673 = vmatmul.mubr.f32.gmra.mrb[72].mxu0 %v5477_v22  ;;  %v6680_v35 = vld [vmem:[%s11956_s20] sm:$0xff]  ;;  %v5812_v22 = vrot.slane %v10973_v19, 1 }
 0x92f   : > { %5317 = vst.msk [vmem:[#allocation3 + $0xc0] sm:$0xff] %vm3681_vm11, %v5298_v18  ;;  %7211 = vmatprep.mubr.msk.f32.mxu0 %vm742_vm0, %v5480_v29  ;;  %v6681_v18 = vld [vmem:[%s11956_s20 + $0x8] sm:$0xff] }
 0x930   : > { %5216 = vst.msk [vmem:[#allocation3 + $0xd0] sm:$0xff] %vm3577_vm12, %v5198_v23  ;;  %v5861_v23 = vmul.f32 %v10973_v19, %v8264_v31 }
 0x931   : > { %5365 = vst.msk [vmem:[#allocation3 + $0xc0] sm:$0xff] %vm3730_vm15, %v5346_v59  ;;  %v5348_v9 = vpop.permute.xlu0 %5347 }
 0x932   : > { %v5200_v24 = vpop.permute.xlu1 %5199  ;;  %v5879_v43 = vrot.slane %v5861_v23, 2 }
 0x935   : > { %v5233_v17 = vpop.permute.xlu0 %5232 }
 0x936   : > { %v5381_v33 = vpop.permute.xlu1 %5380  ;;  %5251 = vst.msk [vmem:[#allocation3 + $0xd0] sm:$0xff] %vm3613_vm6, %v5233_v17 }
 0x937   : > { %5400 = vst.msk [vmem:[#allocation3 + $0xc0] sm:$0xff] %vm3766_vm1, %v5381_v33 }
 0x939   : > { %v5300_v54 = vpop.permute.xlu0 %5299 }
 0x93a   : > { %v5085_v47 = vpop.permute.xlu1 %5084  ;;  %5318 = vst.msk [vmem:[#allocation3 + $0xd0] sm:$0xff] %vm3681_vm11, %v5300_v54 }
 0x93b   : > { %5102 = vst.msk [vmem:[#allocation3 + $0xe0] sm:$0xff] %vm3460_vm9, %v5085_v47 }
 0x93c   : > { %5366 = vst.msk [vmem:[#allocation3 + $0xd0] sm:$0xff] %vm3730_vm15, %v5348_v9  ;;  %v7527_v9 = vpack.c.bf16 %v6681_v18, %v6680_v35  ;;  %v6691_v35 = vld [vmem:[%s11956_s20 + $0x58] sm:$0xff] }
 0x93d   : > { %v5202_v56 = vpop.permute.xlu0 %5201 }
 0x93e   : > { %v5152_v42 = vpop.permute.xlu1 %5151  ;;  %v5479_v30 = vld [vmem:[#allocation3 + $0xc0] sm:$0xff]  ;;  %7528 = vmatpush1.bf16.msra.mxu1 %v7527_v9  ;;  %v6693_v9 = vld [vmem:[%s11956_s20 + $0x68] sm:$0xff] }
 0x93f   : > { %5169 = vst.msk [vmem:[#allocation3 + $0xe0] sm:$0xff] %vm3528_vm10, %v5152_v42  ;;  %5678 = vmatmul.mubr.f32.gmra.mrb[74].mxu0 %v5479_v30  ;;  %7529 = vmatprep.subr.bf16.mxu1 %v12048_v52  ;;  %v6683_v42 = vld [vmem:[%s11956_s20 + $0x18] sm:$0xff] }
 0x940   : > { %5217 = vst.msk [vmem:[#allocation3 + $0xe0] sm:$0xff] %vm3577_vm12, %v5200_v24  ;;  %7212 = vmatprep.mubr.msk.f32.mxu0 %vm742_vm0, %v5482_v13  ;;  %v11075_v30 = vld [vmem:[#allocation2 + $0x58] sm:$0xff] }
 0x941   : > { %v5383_v41 = vpop.permute.xlu0 %5382 }
 0x942   : > { %v5350_v60 = vpop.permute.xlu1 %5349  ;;  %5401 = vst.msk [vmem:[#allocation3 + $0xd0] sm:$0xff] %vm3766_vm1, %v5383_v41 }
 0x945   : > { %v5087_v28 = vpop.permute.xlu0 %5086 }
 0x946   : > { %v5235_v51 = vpop.permute.xlu1 %5234  ;;  %5103 = vst.msk [vmem:[#allocation3 + $0xf0] sm:$0xff] %vm3460_vm9, %v5087_v28  ;;  %v6684_v28 = vld [vmem:[%s11956_s20 + $0x20] sm:$0xff] }
 0x947   : > { %5252 = vst.msk [vmem:[#allocation3 + $0xe0] sm:$0xff] %vm3613_vm6, %v5235_v51  ;;  %v6685_v51 = vld [vmem:[%s11956_s20 + $0x28] sm:$0xff] }
 0x949   : > { %v5237_v34 = vpop.permute.xlu0 %5236  ;;  %v5481_v2 = vld [vmem:[#allocation3 + $0xd0] sm:$0xff] }
 0x94a   : > { %v5385_v58 = vpop.permute.xlu1 %5384  ;;  %5683 = vmatmul.mubr.f32.gmra.mrb[76].mxu0 %v5481_v2 }
 0x94b   : > { %7213 = vmatprep.mubr.msk.f32.mxu0 %vm742_vm0, %v5484_v25 }
 0x94d   : > { %v5154_v21 = vpop.permute.xlu0 %5153 }
 0x94e   : > { %v5302_v0 = vpop.permute.xlu1 %5301  ;;  %5170 = vst.msk [vmem:[#allocation3 + $0xf0] sm:$0xff] %vm3528_vm10, %v5154_v21 }
 0x94f   : > { %5319 = vst.msk [vmem:[#allocation3 + $0xe0] sm:$0xff] %vm3681_vm11, %v5302_v0  ;;  %v7533_v0 = vpack.c.bf16 %v6685_v51, %v6684_v28 }
 0x950   : > { %5218 = vst.msk [vmem:[#allocation3 + $0xf0] sm:$0xff] %vm3577_vm12, %v5202_v56  ;;  %v6682_v56 = vld [vmem:[%s11956_s20 + $0x10] sm:$0xff] }
 0x951   : > { %5367 = vst.msk [vmem:[#allocation3 + $0xe0] sm:$0xff] %vm3730_vm15, %v5350_v60  ;;  %v5352_v1 = vpop.permute.xlu0 %5351  ;;  %v7530_v41 = vpack.c.bf16 %v6683_v42, %v6682_v56  ;;  %v6223_v60 = vmul.f32 %v8232_v50, %v11075_v30 }
 0x952   : > { %5253 = vst.msk [vmem:[#allocation3 + $0xf0] sm:$0xff] %vm3613_vm6, %v5237_v34  ;;  %v5304_v36 = vpop.permute.xlu1 %5303 }
 0x953   : > { %5402 = vst.msk [vmem:[#allocation3 + $0xe0] sm:$0xff] %vm3766_vm1, %v5385_v58  ;;  %7531 = vmatpush1.bf16.msra.mxu1 %v7530_v41 }
 0x954   : > { %5320 = vst.msk [vmem:[#allocation3 + $0xf0] sm:$0xff] %vm3681_vm11, %v5304_v36  ;;  %v6687_v36 = vld [vmem:[%s11956_s20 + $0x38] sm:$0xff]  ;;  %7532 = vmatprep.subr.bf16.mxu1 %v12048_v52 }
 0x955   : > { %5368 = vst.msk [vmem:[#allocation3 + $0xf0] sm:$0xff] %vm3730_vm15, %v5352_v1  ;;  %v6686_v1 = vld [vmem:[%s11956_s20 + $0x30] sm:$0xff] }
 0x956   : > { %v5387_v26 = vpop.permute.xlu1 %5386  ;;  %6231 = vst.msk [vmem:[#allocation3 + $0x80] sm:$0xff] %vm742_vm0, %v6223_v60 }
 0x957   : > { %5403 = vst.msk [vmem:[#allocation3 + $0xf0] sm:$0xff] %vm3766_vm1, %v5387_v26  ;;  %7534 = vmatpush1.bf16.msra.mxu1 %v7533_v0 }
 0x958   : > { %7535 = vmatprep.subr.bf16.mxu1 %v12048_v52 }
 0x95a   : > { %v5483_v53 = vld [vmem:[#allocation3 + $0xe0] sm:$0xff] }
 0x95b   : > { %5688 = vmatmul.mubr.f32.gmra.mrb[78].mxu0 %v5483_v53 }
 0x95c   : > { %7214 = vmatprep.mubr.msk.f32.mxu0 %vm742_vm0, %v5486_v3 }
 0x95e   : > { %v5485_v20 = vld [vmem:[#allocation3 + $0xf0] sm:$0xff] }
 0x95f   : > { %5693 = vmatmul.mubr.f32.gmra.mrb[80].mxu0 %v5485_v20 }
 0x962   : > { %v5619_v55 = vpop.f32.mrb[50].mxu0 }
 0x963   : > { %v5705_v15 = vmul.f32 %v11037_v61, %v5619_v55  ;;  %v5621_v4 = vpop.f32.mrb[51].mxu0 }
 0x965   : > { %v5728_v14 = vadd.f32 %v11042_v16, %v5705_v15  ;;  %v7536_v15 = vpack.c.bf16 %v6687_v36, %v6686_v1 }
 0x967   : > { %v5744_v10 = vmax.f32 %v5728_v14, 0.0  ;;  %7537 = vmatpush1.bf16.msra.mxu1 %v7536_v15  ;;  %v6696_v15 = vld [vmem:[%s11956_s20 + $0x80] sm:$0xff] }
 0x968   : > { %7538 = vmatprep.subr.bf16.mxu1 %v12048_v52 }
 0x969   : > { %5760 = vst.msk [vmem:[#allocation2 + $0x9] sm:$0xff] %vm742_vm0, %v5744_v10 }
 0x970   : > { %v5624_v27 = vpop.f32.mrb[52].mxu0  ;;  %v5777_v37 = vld [vmem:[#allocation2 + $0x8] sm:$0xff] }
 0x971   : > { %v5706_v6 = vmul.f32 %v11037_v61, %v5624_v27  ;;  %v5626_v32 = vpop.f32.mrb[53].mxu0  ;;  %v5928_v59 = vmul.f32 %v8232_v50, %v5777_v37  ;;  %v5862_v5 = vmul.f32 %v5777_v37, %v8274_v39  ;;  %v5813_v29 = vrot.slane %v5777_v37, 1 }
 0x972   : > { %v5788_v24 = vmul.f32 %v8270_v38, %v5777_v37  ;;  %v6011_v53 = vmul.f32 %v5777_v37, %v8264_v31  ;;  %v6688_v32 = vld [vmem:[%s11956_s20 + $0x40] sm:$0xff] }
 0x973   : > { %v5729_v17 = vadd.f32 %v11042_v16, %v5706_v6  ;;  %5944 = vrot.lane.b32.xlu0 %v5928_v59, %s12056_s8  ;;  %v5880_v33 = vrot.slane %v5862_v5, 2  ;;  %v5814_v19 = vsel %vm1509_vm13, %v5812_v22, %v5813_v29  ;;  %v6689_v59 = vld [vmem:[%s11956_s20 + $0x48] sm:$0xff] }
 0x974   : > { %5796 = vst.msk [vmem:[#allocation3 + $0x10] sm:$0xff] %vm742_vm0, %v5788_v24  ;;  %v6029_v14 = vrot.slane %v6011_v53, 2  ;;  %v7539_v5 = vpack.c.bf16 %v6689_v59, %v6688_v32 }
 0x975   : > { %v5745_v54 = vmax.f32 %v5729_v17, 0.0  ;;  %v5881_v47 = vsel %vm1611_vm14, %v5879_v43, %v5880_v33  ;;  %v6690_v43 = vld [vmem:[%s11956_s20 + $0x50] sm:$0xff] }
 0x976   : > { %5896 = vrot.lane.b32.xlu1 %v5881_v47, %s12055_s1  ;;  %7540 = vmatpush1.bf16.msra.mxu1 %v7539_v5  ;;  %v7542_v22 = vpack.c.bf16 %v6691_v35, %v6690_v43  ;;  %v6694_v17 = vld [vmem:[%s11956_s20 + $0x70] sm:$0xff] }
 0x977   : > { %5761 = vst.msk [vmem:[#allocation2 + $0x11] sm:$0xff] %vm742_vm0, %v5745_v54  ;;  %5829 = vrot.lane.b32.xlu0 %v5814_v19, %s12053_s6  ;;  %7541 = vmatprep.subr.bf16.mxu1 %v12048_v52 }
 0x97a   : > { %7543 = vmatpush1.bf16.msra.mxu1 %v7542_v22 }
 0x97b   : > { %7544 = vmatprep.subr.bf16.mxu1 %v12048_v52 }
 0x97e   : > { %v11077_v13 = vld [vmem:[#allocation2 + $0x10] sm:$0xff] }
 0x97f   : > { %v5929_v34 = vmul.f32 %v8270_v38, %v11077_v13  ;;  %v6078_v58 = vmul.f32 %v8232_v50, %v11077_v13  ;;  %v5815_v2 = vrot.slane %v11077_v13, 1  ;;  %v11094_v25 = vmul.f32 %v11077_v13, %v8295_v57 }
 0x980   : > { %v11098_v21 = vmul.f32 %v11077_v13, %v8274_v39  ;;  %v5789_v26 = vmul.f32 %v8304_v63, %v11077_v13  ;;  %v6161_v47 = vmul.f32 %v11077_v13, %v8264_v31 }
 0x981   : > { %5946 = vrot.lane.b32.xlu0 %v5929_v34, %s12056_s8  ;;  %6094 = vrot.lane.b32.xlu1 %v6078_v58, %s12052_s25  ;;  %v5816_v3 = vsel %vm1509_vm13, %v5813_v29, %v5815_v2  ;;  %v5882_v20 = vrot.slane %v11094_v25, 2  ;;  %v6692_v29 = vld [vmem:[%s11956_s20 + $0x60] sm:$0xff] }
 0x982   : > { %5797 = vst.msk [vmem:[#allocation3 + $0x20] sm:$0xff] %vm742_vm0, %v5789_v26  ;;  %v6030_v55 = vrot.slane %v11098_v21, 2  ;;  %v7545_v24 = vpack.c.bf16 %v6693_v9, %v6692_v29  ;;  %v6179_v36 = vrot.slane %v6161_v47, 2 }
 0x983   : > { %v5883_v27 = vsel %vm1611_vm14, %v5880_v33, %v5882_v20  ;;  %v6695_v33 = vld [vmem:[%s11956_s20 + $0x78] sm:$0xff] }
 0x984   : > { %v6031_v37 = vsel %vm1611_vm14, %v6029_v14, %v6030_v55  ;;  %7546 = vmatpush1.bf16.msra.mxu1 %v7545_v24  ;;  %v7548_v41 = vpack.c.bf16 %v6695_v33, %v6694_v17 }
 0x985   : > { %5831 = vrot.lane.b32.xlu0 %v5816_v3, %s12053_s6  ;;  %5979 = vrot.lane.b32.xlu1 %v5816_v3, %s12054_s7 }
 0x986   : > { %v5629_v4 = vpop.f32.mrb[54].mxu0  ;;  %7547 = vmatprep.subr.bf16.mxu1 %v12048_v52 }
 0x987   : > { %v5707_v10 = vmul.f32 %v11037_v61, %v5629_v4  ;;  %v5631_v23 = vpop.f32.mrb[55].mxu0  ;;  %v6697_v4 = vld [vmem:[%s11956_s20 + $0x88] sm:$0xff] }
 0x988   : > { %7549 = vmatpush1.bf16.msra.mxu1 %v7548_v41 }
 0x989   : > { %v5730_v6 = vadd.f32 %v11042_v16, %v5707_v10  ;;  %5898 = vrot.lane.b32.xlu0 %v5883_v27, %s12055_s1  ;;  %6046 = vrot.lane.b32.xlu1 %v6031_v37, %s12051_s0  ;;  %v7551_v27 = vpack.c.bf16 %v6697_v4, %v6696_v15 }
 0x98a   : > { %7550 = vmatprep.subr.bf16.mxu1 %v12048_v52 }
 0x98b   : > { %v5746_v18 = vmax.f32 %v5730_v6, 0.0 }
 0x98c   : > { %7552 = vmatpush1.bf16.msra.mxu1 %v7551_v27 }
 0x98d   : > { %5762 = vst.msk [vmem:[#allocation2 + $0x19] sm:$0xff] %vm742_vm0, %v5746_v18 }
 0x992   : > { %v5634_v54 = vpop.f32.mrb[56].mxu0 }
 0x993   : > { %v5708_v19 = vmul.f32 %v11037_v61, %v5634_v54  ;;  %v5636_v56 = vpop.f32.mrb[57].mxu0 }
 0x994   : > { %v5779_v42 = vld [vmem:[#allocation2 + $0x18] sm:$0xff] }
 0x995   : > { %v5731_v60 = vadd.f32 %v11042_v16, %v5708_v19  ;;  %v6079_v28 = vmul.f32 %v8270_v38, %v5779_v42  ;;  %v6162_v51 = vmul.f32 %v5779_v42, %v8274_v39  ;;  %v5930_v34 = vmul.f32 %v8304_v63, %v5779_v42 }
 0x996   : > { %v5817_v58 = vrot.slane %v5779_v42, 1  ;;  %v6013_v0 = vmul.f32 %v5779_v42, %v8295_v57  ;;  %v5790_v1 = vmul.f32 %v8359_v44, %v5779_v42  ;;  %v5864_v23 = vmul.f32 %v5779_v42, %v8429_v8 }
 0x997   : > { %v5747_v26 = vmax.f32 %v5731_v60, 0.0  ;;  %v6180_v53 = vrot.slane %v6162_v51, 2  ;;  %6096 = vrot.lane.b32.xlu0 %v6079_v28, %s12052_s25  ;;  %5948 = vrot.lane.b32.xlu1 %v5930_v34, %s12056_s8 }
 0x998   : > { %5798 = vst.msk [vmem:[#allocation3 + $0x30] sm:$0xff] %vm742_vm0, %v5790_v1  ;;  %v5818_v14 = vsel %vm1509_vm13, %v5815_v2, %v5817_v58  ;;  %v6032_v10 = vrot.slane %v6013_v0, 2  ;;  %v5884_v37 = vrot.slane %v5864_v23, 2 }
 0x999   : > { %5763 = vst.msk [vmem:[#allocation2 + $0x21] sm:$0xff] %vm742_vm0, %v5747_v26  ;;  %v6181_v3 = vsel %vm1611_vm14, %v6179_v36, %v6180_v53 }
 0x99a   : > { %6204 = vst.msk [vmem:[#allocation3 + $0x8] sm:$0xff] %vm742_vm0, %v6181_v3  ;;  %v6033_v52 = vsel %vm1611_vm14, %v6030_v55, %v6032_v10  ;;  %v5885_v21 = vsel %vm1611_vm14, %v5882_v20, %v5884_v37 }
 0x99b   : > { %5981 = vrot.lane.b32.xlu0 %v5818_v14, %s12054_s7  ;;  %6129 = vrot.lane.b32.xlu1 %v5818_v14, %s12057_s4 }
 0x99f   : > { %6048 = vrot.lane.b32.xlu0 %v6033_v52, %s12051_s0  ;;  %5833 = vrot.lane.b32.xlu1 %v5818_v14, %s12053_s6 }
 0x9a0   : > { %v5780_v13 = vld [vmem:[#allocation2 + $0x20] sm:$0xff] }
 0x9a1   : > { %v6649_v2 = vld [vmem:[#allocation3 + $0x8] sm:$0xff]  ;;  %v5931_v6 = vmul.f32 %v8359_v44, %v5780_v13  ;;  %v6163_v32 = vmul.f32 %v5780_v13, %v8295_v57  ;;  %v5819_v5 = vrot.slane %v5780_v13, 1  ;;  %v5791_v55 = vmul.f32 %v8368_v62, %v5780_v13 }
 0x9a2   : > { %v5639_v59 = vpop.f32.mrb[58].mxu0  ;;  %7217 = vmatprep.mubr.msk.f32.mxu1 %vm742_vm0, %v6649_v2  ;;  %v6080_v25 = vmul.f32 %v8304_v63, %v5780_v13  ;;  %v5865_v9 = vmul.f32 %v5780_v13, %v8464_v49  ;;  %v6014_v24 = vmul.f32 %v5780_v13, %v8429_v8 }
 0x9a3   : > { %v5709_v43 = vmul.f32 %v11037_v61, %v5639_v59  ;;  %v6182_v35 = vrot.slane %v6163_v32, 2  ;;  %5950 = vrot.lane.b32.xlu0 %v5931_v6, %s12056_s8  ;;  %5900 = vrot.lane.b32.xlu1 %v5885_v21, %s12055_s1  ;;  %v5641_v18 = vpop.f32.mrb[59].mxu0  ;;  %5799 = vst.msk [vmem:[#allocation3 + $0x40] sm:$0xff] %vm742_vm0, %v5791_v55  ;;  %v5820_v20 = vsel %vm1509_vm13, %v5817_v58, %v5819_v5 }
 0x9a4   : > { %v5886_v33 = vrot.slane %v5865_v9, 2  ;;  %v6034_v54 = vrot.slane %v6014_v24, 2 }
 0x9a5   : > { %v5732_v22 = vadd.f32 %v11042_v16, %v5709_v43  ;;  %v6183_v29 = vsel %vm1611_vm14, %v6180_v53, %v6182_v35 }
 0x9a6   : > { %6205 = vst.msk [vmem:[#allocation3 + $0x18] sm:$0xff] %vm742_vm0, %v6183_v29  ;;  %v5887_v19 = vsel %vm1611_vm14, %v5884_v37, %v5886_v33  ;;  %v6035_v56 = vsel %vm1611_vm14, %v6032_v10, %v6034_v54 }
 0x9a7   : > { %v5748_v17 = vmax.f32 %v5732_v22, 0.0  ;;  %6131 = vrot.lane.b32.xlu0 %v5820_v20, %s12057_s4  ;;  %6098 = vrot.lane.b32.xlu1 %v6080_v25, %s12052_s25 }
 0x9a9   : > { %5764 = vst.msk [vmem:[#allocation2 + $0x29] sm:$0xff] %vm742_vm0, %v5748_v17 }
 0x9ab   : > { %5835 = vrot.lane.b32.xlu0 %v5820_v20, %s12053_s6  ;;  %5983 = vrot.lane.b32.xlu1 %v5820_v20, %s12054_s7 }
 0x9ad   : > { %v5644_v47 = vpop.f32.mrb[60].mxu0 }
 0x9ae   : > { %v5710_v42 = vmul.f32 %v11037_v61, %v5644_v47  ;;  %v5646_v41 = vpop.f32.mrb[61].mxu0 }
 0x9af   : > { %5902 = vrot.lane.b32.xlu0 %v5887_v19, %s12055_s1  ;;  %6050 = vrot.lane.b32.xlu1 %v6035_v56, %s12051_s0 }
 0x9b0   : > { %v5781_v60 = vld [vmem:[#allocation2 + $0x28] sm:$0xff]  ;;  %v5733_v28 = vadd.f32 %v11042_v16, %v5710_v42 }
 0x9b1   : > { %v6081_v51 = vmul.f32 %v8359_v44, %v5781_v60  ;;  %v6164_v34 = vmul.f32 %v5781_v60, %v8429_v8  ;;  %v5932_v58 = vmul.f32 %v8368_v62, %v5781_v60  ;;  %v5821_v0 = vrot.slane %v5781_v60, 1 }
 0x9b2   : > { %v6015_v1 = vmul.f32 %v5781_v60, %v8464_v49  ;;  %v5792_v36 = vmul.f32 %v8480_v45, %v5781_v60  ;;  %v5749_v26 = vmax.f32 %v5733_v28, 0.0  ;;  %v5866_v14 = vmul.f32 %v5781_v60, %v8613_v48 }
 0x9b3   : > { %v6184_v53 = vrot.slane %v6164_v34, 2  ;;  %6100 = vrot.lane.b32.xlu0 %v6081_v51, %s12052_s25  ;;  %5952 = vrot.lane.b32.xlu1 %v5932_v58, %s12056_s8  ;;  %v5822_v15 = vsel %vm1509_vm13, %v5819_v5, %v5821_v0  ;;  %v11274_v51 = vld [vmem:[#allocation2 + $0x50] sm:$0x3] }
 0x9b4   : > { %5800 = vst.msk [vmem:[#allocation3 + $0x50] sm:$0xff] %vm742_vm0, %v5792_v36  ;;  %5765 = vst.msk [vmem:[#allocation2 + $0x31] sm:$0xff] %vm742_vm0, %v5749_v26  ;;  %v6036_v4 = vrot.slane %v6015_v1, 2  ;;  %v5888_v23 = vrot.slane %v5866_v14, 2 }
 0x9b5   : > { %v6185_v3 = vsel %vm1611_vm14, %v6182_v35, %v6184_v53 }
 0x9b6   : > { %6206 = vst.msk [vmem:[#allocation3 + $0x28] sm:$0xff] %vm742_vm0, %v6185_v3  ;;  %v6037_v10 = vsel %vm1611_vm14, %v6034_v54, %v6036_v4  ;;  %v5889_v13 = vsel %vm1611_vm14, %v5886_v33, %v5888_v23 }
 0x9b7   : > { %5985 = vrot.lane.b32.xlu0 %v5822_v15, %s12054_s7  ;;  %6133 = vrot.lane.b32.xlu1 %v5822_v15, %s12057_s4 }
 0x9bb   : > { %6052 = vrot.lane.b32.xlu0 %v6037_v10, %s12051_s0  ;;  %5837 = vrot.lane.b32.xlu1 %v5822_v15, %s12053_s6  ;;  %v5782_v27 = vld [vmem:[#allocation2 + $0x30] sm:$0xff] }
 0x9bc   : > { %v5933_v52 = vmul.f32 %v8480_v45, %v5782_v27  ;;  %v6165_v37 = vmul.f32 %v5782_v27, %v8464_v49  ;;  %v5823_v2 = vrot.slane %v5782_v27, 1  ;;  %v5793_v6 = vmul.f32 %v8511_v46, %v5782_v27 }
 0x9bd   : > { %v6082_v21 = vmul.f32 %v8368_v62, %v5782_v27  ;;  %v11253_v55 = vmul.f32 %v5782_v27, %v8621_v7  ;;  %v6016_v43 = vmul.f32 %v5782_v27, %v8613_v48 }
 0x9be   : > { %v6186_v32 = vrot.slane %v6165_v37, 2  ;;  %5801 = vst.msk [vmem:[#allocation3 + $0x60] sm:$0xff] %vm742_vm0, %v5793_v6  ;;  %v5824_v5 = vsel %vm1509_vm13, %v5821_v0, %v5823_v2 }
 0x9bf   : > { %5954 = vrot.lane.b32.xlu0 %v5933_v52, %s12056_s8  ;;  %5904 = vrot.lane.b32.xlu1 %v5889_v13, %s12055_s1  ;;  %v5890_v29 = vrot.slane %v11253_v55, 2  ;;  %v6038_v25 = vrot.slane %v6016_v43, 2 }
 0x9c0   : > { %v6187_v59 = vsel %vm1611_vm14, %v6184_v53, %v6186_v32  ;;  %v6169_v53 = vmul.f32 %v11274_v51, %v8697_v11 }
 0x9c1   : > { %6207 = vst.msk [vmem:[#allocation3 + $0x38] sm:$0xff] %vm742_vm0, %v6187_v59  ;;  %v5891_v54 = vsel %vm1611_vm14, %v5888_v23, %v5890_v29  ;;  %v6039_v47 = vsel %vm1611_vm14, %v6036_v4, %v6038_v25 }
 0x9c2   : > { %v6194_v37 = vrot.slane %v6169_v53, 2 }
 0x9c3   : > { %6135 = vrot.lane.b32.xlu0 %v5824_v5, %s12057_s4  ;;  %6102 = vrot.lane.b32.xlu1 %v6082_v21, %s12052_s25 }
 0x9c4   : > { %v5649_v35 = vpop.f32.mrb[62].mxu0 }
 0x9c5   : > { %v5711_v18 = vmul.f32 %v11037_v61, %v5649_v35  ;;  %v5651_v22 = vpop.f32.mrb[63].mxu0 }
 0x9c7   : > { %v5734_v20 = vadd.f32 %v11042_v16, %v5711_v18  ;;  %5839 = vrot.lane.b32.xlu0 %v5824_v5, %s12053_s6  ;;  %5987 = vrot.lane.b32.xlu1 %v5824_v5, %s12054_s7 }
 0x9c9   : > { %v5654_v9 = vpop.f32.mrb[64].mxu0  ;;  %v5750_v24 = vmax.f32 %v5734_v20, 0.0 }
 0x9ca   : > { %v5712_v17 = vmul.f32 %v11037_v61, %v5654_v9  ;;  %v5656_v33 = vpop.f32.mrb[65].mxu0 }
 0x9cb   : > { %5766 = vst.msk [vmem:[#allocation2 + $0x39] sm:$0xff] %vm742_vm0, %v5750_v24  ;;  %5906 = vrot.lane.b32.xlu0 %v5891_v54, %s12055_s1  ;;  %6054 = vrot.lane.b32.xlu1 %v6039_v47, %s12051_s0 }
 0x9cc   : > { %v5735_v19 = vadd.f32 %v11042_v16, %v5712_v17 }
 0x9ce   : > { %v5751_v56 = vmax.f32 %v5735_v19, 0.0 }
 0x9d0   : > { %5767 = vst.msk [vmem:[#allocation2 + $0x41] sm:$0xff] %vm742_vm0, %v5751_v56 }
 0x9d2   : > { %v5783_v42 = vld [vmem:[#allocation2 + $0x38] sm:$0xff] }
 0x9d3   : > { %v6083_v41 = vmul.f32 %v8480_v45, %v5783_v42  ;;  %v6166_v60 = vmul.f32 %v5783_v42, %v8613_v48  ;;  %v5934_v28 = vmul.f32 %v8511_v46, %v5783_v42  ;;  %v5825_v34 = vrot.slane %v5783_v42, 1 }
 0x9d4   : > { %v11277_v58 = vmul.f32 %v5783_v42, %v8621_v7  ;;  %v5794_v0 = vmul.f32 %v8549_v40, %v5783_v42  ;;  %v5868_v14 = vmul.f32 %v5783_v42, %v8709_v12 }
 0x9d5   : > { %v6188_v1 = vrot.slane %v6166_v60, 2  ;;  %6104 = vrot.lane.b32.xlu0 %v6083_v41, %s12052_s25  ;;  %5956 = vrot.lane.b32.xlu1 %v5934_v28, %s12056_s8  ;;  %v5826_v15 = vsel %vm1509_vm13, %v5823_v2, %v5825_v34 }
 0x9d6   : > { %5802 = vst.msk [vmem:[#allocation3 + $0x70] sm:$0xff] %vm742_vm0, %v5794_v0  ;;  %v6040_v4 = vrot.slane %v11277_v58, 2  ;;  %v5892_v59 = vrot.slane %v5868_v14, 2 }
 0x9d7   : > { %v11282_v36 = vld [vmem:[#allocation2 + $0x40] sm:$0xff]  ;;  %v11284_v26 = vld [vmem:[#allocation2 + $0x48] sm:$0xff]  ;;  %v6189_v3 = vsel %vm1611_vm14, %v6186_v32, %v6188_v1 }
 0x9d8   : > { %6208 = vst.msk [vmem:[#allocation3 + $0x48] sm:$0xff] %vm742_vm0, %v6189_v3  ;;  %v6167_v10 = vmul.f32 %v11282_v36, %v8621_v7  ;;  %v6168_v23 = vmul.f32 %v11284_v26, %v8709_v12  ;;  %v6041_v32 = vsel %vm1611_vm14, %v6038_v25, %v6040_v4  ;;  %v5935_v18 = vmul.f32 %v8549_v40, %v11282_v36 }
 0x9d9   : > { %5989 = vrot.lane.b32.xlu0 %v5826_v15, %s12054_s7  ;;  %6137 = vrot.lane.b32.xlu1 %v5826_v15, %s12057_s4  ;;  %v5893_v22 = vsel %vm1611_vm14, %v5890_v29, %v5892_v59  ;;  %v5827_v25 = vrot.slane %v11282_v36, 1  ;;  %v6084_v20 = vmul.f32 %v8511_v46, %v11282_v36  ;;  %v6085_v54 = vmul.f32 %v8549_v40, %v11284_v26 }
 0x9da   : > { %v5659_v27 = vpop.f32.mrb[66].mxu0  ;;  %v6190_v52 = vrot.slane %v6167_v10, 2  ;;  %v6192_v6 = vrot.slane %v6168_v23, 2  ;;  %v5977_v47 = vrot.slane %v11284_v26, 1  ;;  %v5869_v19 = vmul.f32 %v11282_v36, %v8697_v11 }
 0x9db   : > { %v5713_v13 = vmul.f32 %v11037_v61, %v5659_v27  ;;  %v5661_v2 = vpop.f32.mrb[67].mxu0  ;;  %v5828_v9 = vsel %vm1509_vm13, %v5825_v34, %v5827_v25  ;;  %v6127_v3 = vrot.slane %v11274_v51, 1  ;;  %v6248_v27 = vrot.slane %v11075_v30, 1 }
 0x9dc   : > { %v6191_v21 = vsel %vm1611_vm14, %v6188_v1, %v6190_v52  ;;  %v6193_v55 = vsel %vm1611_vm14, %v6190_v52, %v6192_v6  ;;  %v6195_v43 = vsel %vm1611_vm14, %v6192_v6, %v6194_v37  ;;  %v5978_v0 = vsel %vm1509_vm13, %v5827_v25, %v5977_v47 }
 0x9dd   : > { %v5736_v5 = vadd.f32 %v11042_v16, %v5713_v13  ;;  %6056 = vrot.lane.b32.xlu0 %v6041_v32, %s12051_s0  ;;  %5841 = vrot.lane.b32.xlu1 %v5826_v15, %s12053_s6  ;;  %6209 = vst.msk [vmem:[#allocation3 + $0x58] sm:$0xff] %vm742_vm0, %v6191_v21  ;;  %6210 = vst.msk [vmem:[#allocation3 + $0x68] sm:$0xff] %vm742_vm0, %v6193_v55  ;;  %v5894_v1 = vrot.slane %v5869_v19, 2  ;;  %v6018_v15 = vmul.f32 %v11282_v36, %v8709_v12 }
 0x9de   : > { %6211 = vst.msk [vmem:[#allocation3 + $0x78] sm:$0xff] %vm742_vm0, %v6195_v43  ;;  %v6297_v52 = vmul.f32 %v11075_v30, %v8264_v31  ;;  %v6019_v51 = vmul.f32 %v11284_v26, %v8697_v11  ;;  %v6128_v37 = vsel %vm1509_vm13, %v5977_v47, %v6127_v3 }
 0x9df   : > { %v5752_v35 = vmax.f32 %v5736_v5, 0.0  ;;  %v5895_v53 = vsel %vm1611_vm14, %v5892_v59, %v5894_v1  ;;  %v6042_v13 = vrot.slane %v6018_v15, 2 }
 0x9e0   : > { %v6315_v5 = vrot.slane %v6297_v52, 2 }
 0x9e1   : > { %5768 = vst.msk [vmem:[#allocation2 + $0x61] sm:$0xff] %vm742_vm0, %v5752_v35  ;;  %5958 = vrot.lane.b32.xlu0 %v5935_v18, %s12056_s8  ;;  %5908 = vrot.lane.b32.xlu1 %v5893_v22, %s12055_s1  ;;  %v6043_v35 = vsel %vm1611_vm14, %v6040_v4, %v6042_v13  ;;  %v6044_v22 = vrot.slane %v6019_v51, 2 }
 0x9e3   : > { %v6045_v4 = vsel %vm1611_vm14, %v6042_v13, %v6044_v22 }
 0x9e5   : > { %v5945_v24 = vpop.permute.xlu0 %5944  ;;  %6139 = vrot.lane.b32.xlu0 %v5828_v9, %s12057_s4  ;;  %6106 = vrot.lane.b32.xlu1 %v6084_v20, %s12052_s25  ;;  %v5664_v17 = vpop.f32.mrb[68].mxu0 }
 0x9e6   : > { %v5714_v29 = vmul.f32 %v11037_v61, %v5664_v17  ;;  %v5666_v33 = vpop.f32.mrb[69].mxu0 }
 0x9e8   : > { %v11331_v56 = vld [vmem:[#allocation2 + $0x60] sm:$0xff]  ;;  %v5737_v42 = vadd.f32 %v11042_v16, %v5714_v29  ;;  %v5897_v60 = vpop.permute.xlu1 %5896 }
 0x9e9   : > { %v5830_v41 = vpop.permute.xlu0 %5829  ;;  %5843 = vrot.lane.b32.xlu0 %v5828_v9, %s12053_s6  ;;  %6108 = vrot.lane.b32.xlu1 %v6085_v54, %s12052_s25  ;;  %v6224_v28 = vmul.f32 %v8270_v38, %v11331_v56  ;;  %v6364_v23 = vmul.f32 %v8232_v50, %v11331_v56  ;;  %v6249_v36 = vrot.slane %v11331_v56, 1  ;;  %v6298_v2 = vmul.f32 %v11331_v56, %v8274_v39 }
 0x9ea   : > { %5853 = vst.msk [vmem:[#allocation3] sm:$0xff] %vm3460_vm9, %v5830_v41  ;;  %v5753_v34 = vmax.f32 %v5737_v42, 0.0  ;;  %v6447_v42 = vmul.f32 %v11331_v56, %v8264_v31 }
 0x9eb   : > { %5920 = vst.msk [vmem:[#allocation3] sm:$0xff] %vm3528_vm10, %v5897_v60  ;;  %v6250_v43 = vsel %vm1509_vm13, %v6248_v27, %v6249_v36  ;;  %v6316_v18 = vrot.slane %v6298_v2, 2 }
 0x9ec   : > { %5968 = vst.msk [vmem:[#allocation3] sm:$0xff] %vm3577_vm12, %v5945_v24 }
 0x9ed   : > { %6232 = vst.msk [vmem:[#allocation3 + $0x90] sm:$0xff] %vm742_vm0, %v6224_v28  ;;  %5769 = vst.msk [vmem:[#allocation2 + $0x69] sm:$0xff] %vm742_vm0, %v5753_v34  ;;  %5993 = vrot.lane.b32.xlu0 %v5978_v0, %s12054_s7  ;;  %5991 = vrot.lane.b32.xlu1 %v5828_v9, %s12054_s7  ;;  %v6317_v58 = vsel %vm1611_vm14, %v6315_v5, %v6316_v18 }
 0x9f1   : > { %5910 = vrot.lane.b32.xlu0 %v5895_v53, %s12055_s1  ;;  %6141 = vrot.lane.b32.xlu1 %v5978_v0, %s12057_s4 }
 0x9f3   : > { %v5947_v14 = vpop.permute.xlu0 %5946  ;;  %v6095_v10 = vpop.permute.xlu1 %6094 }
 0x9f4   : > { %v11363_v6 = vld [vmem:[#allocation2 + $0x68] sm:$0xff] }
 0x9f5   : > { %6380 = vrot.lane.b32.xlu0 %v6364_v23, %s12056_s8  ;;  %6143 = vrot.lane.b32.xlu1 %v6128_v37, %s12057_s4  ;;  %v6225_v30 = vmul.f32 %v8304_v63, %v11363_v6  ;;  %v6365_v17 = vmul.f32 %v8270_v38, %v11363_v6  ;;  %v6514_v29 = vmul.f32 %v8232_v50, %v11363_v6  ;;  %v6251_v33 = vrot.slane %v11363_v6, 1 }
 0x9f6   : > { %v5669_v32 = vpop.f32.mrb[70].mxu0  ;;  %v11396_v54 = vmul.f32 %v11363_v6, %v8295_v57  ;;  %v6448_v47 = vmul.f32 %v11363_v6, %v8274_v39  ;;  %v6597_v50 = vmul.f32 %v11363_v6, %v8264_v31  ;;  %v6465_v31 = vrot.slane %v6447_v42, 2 }
 0x9f7   : > { %v5715_v26 = vmul.f32 %v11037_v61, %v5669_v32  ;;  %v5832_v59 = vpop.permute.xlu0 %5831  ;;  %v5671_v21 = vpop.f32.mrb[71].mxu0  ;;  %6233 = vst.msk [vmem:[#allocation3 + $0xa0] sm:$0xff] %vm742_vm0, %v6225_v30  ;;  %v6252_v28 = vsel %vm1509_vm13, %v6249_v36, %v6251_v33 }
 0x9f8   : > { %5854 = vst.msk [vmem:[#allocation3 + $0x10] sm:$0xff] %vm3460_vm9, %v5832_v59  ;;  %v5980_v55 = vpop.permute.xlu1 %5979  ;;  %v6318_v34 = vrot.slane %v11396_v54, 2  ;;  %v6466_v0 = vrot.slane %v6448_v47, 2  ;;  %v6615_v15 = vrot.slane %v6597_v50, 2 }
 0x9f9   : > { %v5738_v25 = vadd.f32 %v11042_v16, %v5715_v26  ;;  %6003 = vst.msk [vmem:[#allocation3] sm:$0xff] %vm3613_vm6, %v5980_v55  ;;  %6265 = vrot.lane.b32.xlu0 %v6250_v43, %s12053_s6  ;;  %6058 = vrot.lane.b32.xlu1 %v6043_v35, %s12051_s0 }
 0x9fa   : > { %v6319_v23 = vsel %vm1611_vm14, %v6316_v18, %v6318_v34  ;;  %v6467_v27 = vsel %vm1611_vm14, %v6465_v31, %v6466_v0 }
 0x9fb   : > { %v5754_v20 = vmax.f32 %v5738_v25, 0.0  ;;  %v5899_v9 = vpop.permute.xlu0 %5898 }
 0x9fc   : > { %5921 = vst.msk [vmem:[#allocation3 + $0x10] sm:$0xff] %vm3528_vm10, %v5899_v9  ;;  %v6047_v24 = vpop.permute.xlu1 %6046 }
 0x9fd   : > { %5770 = vst.msk [vmem:[#allocation2 + $0x71] sm:$0xff] %vm742_vm0, %v5754_v20  ;;  %6332 = vrot.lane.b32.xlu0 %v6317_v58, %s12055_s1  ;;  %6060 = vrot.lane.b32.xlu1 %v6045_v4, %s12051_s0 }
 0x9fe   : > { %5969 = vst.msk [vmem:[#allocation3 + $0x10] sm:$0xff] %vm3577_vm12, %v5947_v14 }
 0x9ff   : > { %6070 = vst.msk [vmem:[#allocation3] sm:$0xff] %vm3681_vm11, %v6047_v24 }
 0xa00   : > { %6118 = vst.msk [vmem:[#allocation3] sm:$0xff] %vm3730_vm15, %v6095_v10 }
 0xa01   : > { %6382 = vrot.lane.b32.xlu0 %v6365_v17, %s12056_s8  ;;  %6530 = vrot.lane.b32.xlu1 %v6514_v29, %s12052_s25  ;;  %v5674_v19 = vpop.f32.mrb[72].mxu0  ;;  %v6651_v29 = vld [vmem:[#allocation3 + $0x18] sm:$0xff] }
 0xa02   : > { %v5716_v41 = vmul.f32 %v11037_v61, %v5674_v19  ;;  %v5676_v60 = vpop.f32.mrb[73].mxu0 }
 0xa04   : > { %v11409_v1 = vld [vmem:[#allocation2 + $0x70] sm:$0xff]  ;;  %v5739_v53 = vadd.f32 %v11042_v16, %v5716_v41 }
 0xa05   : > { %6267 = vrot.lane.b32.xlu0 %v6252_v28, %s12053_s6  ;;  %6415 = vrot.lane.b32.xlu1 %v6252_v28, %s12054_s7  ;;  %v6598_v56 = vmul.f32 %v11409_v1, %v8274_v39  ;;  %v6226_v3 = vmul.f32 %v8359_v44, %v11409_v1  ;;  %v6515_v37 = vmul.f32 %v8270_v38, %v11409_v1  ;;  %v6253_v13 = vrot.slane %v11409_v1, 1 }
 0xa06   : > { %v5755_v14 = vmax.f32 %v5739_v53, 0.0  ;;  %v6366_v36 = vmul.f32 %v8304_v63, %v11409_v1  ;;  %v11435_v2 = vmul.f32 %v11409_v1, %v8295_v57  ;;  %v11447_v59 = vmul.f32 %v11409_v1, %v8429_v8 }
 0xa07   : > { %v6616_v10 = vrot.slane %v6598_v56, 2  ;;  %6234 = vst.msk [vmem:[#allocation3 + $0xb0] sm:$0xff] %vm742_vm0, %v6226_v3  ;;  %v6254_v38 = vsel %vm1509_vm13, %v6251_v33, %v6253_v13 }
 0xa08   : > { %5771 = vst.msk [vmem:[#allocation2 + $0x79] sm:$0xff] %vm742_vm0, %v5755_v14  ;;  %v6468_v30 = vrot.slane %v11435_v2, 2  ;;  %v6320_v20 = vrot.slane %v11447_v59, 2 }
 0xa09   : > { %v6097_v52 = vpop.permute.xlu0 %6096  ;;  %6334 = vrot.lane.b32.xlu0 %v6319_v23, %s12055_s1  ;;  %6482 = vrot.lane.b32.xlu1 %v6467_v27, %s12051_s0  ;;  %v5949_v39 = vpop.permute.xlu1 %5948  ;;  %v6617_v51 = vsel %vm1611_vm14, %v6615_v15, %v6616_v10 }
 0xa0a   : > { %6640 = vst.msk [vmem:[#allocation3 + $0x88] sm:$0xff] %vm742_vm0, %v6617_v51  ;;  %v6321_v19 = vsel %vm1611_vm14, %v6318_v34, %v6320_v20 }
 0xa0d   : > { %v5982_v6 = vpop.permute.xlu0 %5981  ;;  %6532 = vrot.lane.b32.xlu0 %v6515_v37, %s12052_s25  ;;  %6384 = vrot.lane.b32.xlu1 %v6366_v36, %s12056_s8  ;;  %v6130_v32 = vpop.permute.xlu1 %6129 }
 0xa0e   : > { %6004 = vst.msk [vmem:[#allocation3 + $0x10] sm:$0xff] %vm3613_vm6, %v5982_v6 }
 0xa0f   : > { %6153 = vst.msk [vmem:[#allocation3] sm:$0xff] %vm3766_vm1, %v6130_v32  ;;  %v11443_v26 = vld [vmem:[#allocation2 + $0x78] sm:$0xff] }
 0xa10   : > { %v11453_v55 = vmul.f32 %v11443_v26, %v8295_v57  ;;  %v6227_v35 = vmul.f32 %v8368_v62, %v11443_v26  ;;  %v6469_v57 = vsel %vm1611_vm14, %v6466_v0, %v6468_v30  ;;  %v6367_v47 = vmul.f32 %v8359_v44, %v11443_v26 }
 0xa11   : > { %v6049_v21 = vpop.permute.xlu0 %6048  ;;  %6417 = vrot.lane.b32.xlu0 %v6254_v38, %s12054_s7  ;;  %6565 = vrot.lane.b32.xlu1 %v6254_v38, %s12057_s4  ;;  %v5834_v5 = vpop.permute.xlu1 %5833  ;;  %v6255_v42 = vrot.slane %v11443_v26, 1  ;;  %v6516_v60 = vmul.f32 %v8304_v63, %v11443_v26  ;;  %v11492_v54 = vmul.f32 %v11443_v26, %v8464_v49  ;;  %v11496_v34 = vmul.f32 %v11443_v26, %v8429_v8 }
 0xa12   : > { %6071 = vst.msk [vmem:[#allocation3 + $0x10] sm:$0xff] %vm3681_vm11, %v6049_v21  ;;  %v5679_v43 = vpop.f32.mrb[74].mxu0  ;;  %v6618_v25 = vrot.slane %v11453_v55, 2 }
 0xa13   : > { %5855 = vst.msk [vmem:[#allocation3 + $0x20] sm:$0xff] %vm3460_vm9, %v5834_v5  ;;  %v5717_v18 = vmul.f32 %v11037_v61, %v5679_v43  ;;  %v5681_v22 = vpop.f32.mrb[75].mxu0  ;;  %v6256_v28 = vsel %vm1509_vm13, %v6253_v13, %v6255_v42  ;;  %v6322_v31 = vrot.slane %v11492_v54, 2  ;;  %v6470_v3 = vrot.slane %v11496_v34, 2 }
 0xa14   : > { %6119 = vst.msk [vmem:[#allocation3 + $0x10] sm:$0xff] %vm3730_vm15, %v6097_v52  ;;  %v6619_v17 = vsel %vm1611_vm14, %v6616_v10, %v6618_v25 }
 0xa15   : > { %6235 = vst.msk [vmem:[#allocation3 + $0xc0] sm:$0xff] %vm742_vm0, %v6227_v35  ;;  %v5740_v9 = vadd.f32 %v11042_v16, %v5717_v18  ;;  %v5951_v24 = vpop.permute.xlu0 %5950  ;;  %6484 = vrot.lane.b32.xlu0 %v6469_v57, %s12051_s0  ;;  %6269 = vrot.lane.b32.xlu1 %v6254_v38, %s12053_s6  ;;  %v5901_v58 = vpop.permute.xlu1 %5900  ;;  %6641 = vst.msk [vmem:[#allocation3 + $0x98] sm:$0xff] %vm742_vm0, %v6619_v17  ;;  %v6471_v13 = vsel %vm1611_vm14, %v6468_v30, %v6470_v3 }
 0xa16   : > { %v6648_v4 = vld [vmem:[#allocation3] sm:$0xff]  ;;  %5922 = vst.msk [vmem:[#allocation3 + $0x20] sm:$0xff] %vm3528_vm10, %v5901_v58 }
 0xa17   : > { %6811 = vmatmul.mubr.f32.vlgmr.msra.gmra.mrb[50].mxu1 %v6648_v4  ;;  %v5756_v33 = vmax.f32 %v5740_v9, 0.0  ;;  %5970 = vst.msk [vmem:[#allocation3 + $0x20] sm:$0xff] %vm3577_vm12, %v5949_v39  ;;  %v6653_v39 = vld [vmem:[#allocation3 + $0x28] sm:$0xff] }
 0xa18   : > { %7218 = vmatprep.mubr.msk.f32.mxu1 %vm742_vm0, %v6651_v29 }
 0xa19   : > { %5772 = vst.msk [vmem:[#allocation2 + $0x81] sm:$0xff] %vm742_vm0, %v5756_v33  ;;  %v6132_v50 = vpop.permute.xlu0 %6131  ;;  %6386 = vrot.lane.b32.xlu0 %v6367_v47, %s12056_s8  ;;  %6336 = vrot.lane.b32.xlu1 %v6321_v19, %s12055_s1  ;;  %v6099_v41 = vpop.permute.xlu1 %6098 }
 0xa1a   : > { %6154 = vst.msk [vmem:[#allocation3 + $0x10] sm:$0xff] %vm3766_vm1, %v6132_v50  ;;  %v7707_v50 = vld [vmem:[%s11954_s18] ss:$0 sm:$0xff] }
 0xa1d   : > { %v5836_v0 = vpop.permute.xlu0 %5835  ;;  %6567 = vrot.lane.b32.xlu0 %v6256_v28, %s12057_s4  ;;  %6534 = vrot.lane.b32.xlu1 %v6516_v60, %s12052_s25  ;;  %v5984_v1 = vpop.permute.xlu1 %5983 }
 0xa1e   : > { %5856 = vst.msk [vmem:[#allocation3 + $0x30] sm:$0xff] %vm3460_vm9, %v5836_v0  ;;  %v5684_v63 = vpop.f32.mrb[76].mxu0 }
 0xa1f   : > { %6005 = vst.msk [vmem:[#allocation3 + $0x20] sm:$0xff] %vm3613_vm6, %v5984_v1  ;;  %v5718_v53 = vmul.f32 %v11037_v61, %v5684_v63  ;;  %v5686_v56 = vpop.f32.mrb[77].mxu0  ;;  %v7708_v1 = vld [vmem:[%s11955_s19] ss:$0 sm:$0xff] }
 0xa20   : > { %v11505_v15 = vld [vmem:[#allocation2 + $0x80] sm:$0xff] }
 0xa21   : > { %v5741_v14 = vadd.f32 %v11042_v16, %v5718_v53  ;;  %v5903_v10 = vpop.permute.xlu0 %5902  ;;  %6271 = vrot.lane.b32.xlu0 %v6256_v28, %s12053_s6  ;;  %6419 = vrot.lane.b32.xlu1 %v6256_v28, %s12054_s7  ;;  %v6051_v23 = vpop.permute.xlu1 %6050  ;;  %v6650_v27 = vld [vmem:[#allocation3 + $0x10] sm:$0xff]  ;;  %v6600_v52 = vmul.f32 %v11505_v15, %v8429_v8  ;;  %v6228_v51 = vmul.f32 %v8480_v45, %v11505_v15  ;;  %v6257_v26 = vrot.slane %v11505_v15, 1 }
 0xa22   : > { %5923 = vst.msk [vmem:[#allocation3 + $0x30] sm:$0xff] %vm3528_vm10, %v5903_v10  ;;  %6816 = vmatmul.mubr.f32.gmra.mrb[52].mxu1 %v6650_v27  ;;  %v6323_v8 = vsel %vm1611_vm14, %v6320_v20, %v6322_v31  ;;  %v6517_v2 = vmul.f32 %v8359_v44, %v11505_v15  ;;  %v6368_v30 = vmul.f32 %v8368_v62, %v11505_v15 }
 0xa23   : > { %6072 = vst.msk [vmem:[#allocation3 + $0x20] sm:$0xff] %vm3681_vm11, %v6051_v23  ;;  %v5757_v37 = vmax.f32 %v5741_v14, 0.0  ;;  %7219 = vmatprep.mubr.msk.f32.mxu1 %vm742_vm0, %v6653_v39  ;;  %v6620_v36 = vrot.slane %v6600_v52, 2  ;;  %v11540_v59 = vmul.f32 %v11505_v15, %v8464_v49  ;;  %v6258_v55 = vsel %vm1509_vm13, %v6255_v42, %v6257_v26  ;;  %v6655_v42 = vld [vmem:[#allocation3 + $0x38] sm:$0xff] }
 0xa24   : > { %5971 = vst.msk [vmem:[#allocation3 + $0x30] sm:$0xff] %vm3577_vm12, %v5951_v24  ;;  %v11552_v18 = vmul.f32 %v11505_v15, %v8613_v48  ;;  %v11622_v52 = vld [vmem:[#allocation2 + $0xa8] sm:$0x3] }
 0xa25   : > { %6120 = vst.msk [vmem:[#allocation3 + $0x20] sm:$0xff] %vm3730_vm15, %v6099_v41  ;;  %v6101_v6 = vpop.permute.xlu0 %6100  ;;  %6338 = vrot.lane.b32.xlu0 %v6323_v8, %s12055_s1  ;;  %6486 = vrot.lane.b32.xlu1 %v6471_v13, %s12051_s0  ;;  %v5953_v32 = vpop.permute.xlu1 %5952  ;;  %v6621_v38 = vsel %vm1611_vm14, %v6618_v25, %v6620_v36  ;;  %v6472_v43 = vrot.slane %v11540_v59, 2 }
 0xa26   : > { %6236 = vst.msk [vmem:[#allocation3 + $0xd0] sm:$0xff] %vm742_vm0, %v6228_v51  ;;  %5773 = vst.msk [vmem:[#allocation2 + $0x89] sm:$0xff] %vm742_vm0, %v5757_v37 }
 0xa27   : > { %6642 = vst.msk [vmem:[#allocation3 + $0xa8] sm:$0xff] %vm742_vm0, %v6621_v38  ;;  %v6473_v4 = vsel %vm1611_vm14, %v6470_v3, %v6472_v43 }
 0xa29   : > { %v5986_v21 = vpop.permute.xlu0 %5985  ;;  %6536 = vrot.lane.b32.xlu0 %v6517_v2, %s12052_s25  ;;  %6388 = vrot.lane.b32.xlu1 %v6368_v30, %s12056_s8  ;;  %v6134_v5 = vpop.permute.xlu1 %6133 }
 0xa2a   : > { %6006 = vst.msk [vmem:[#allocation3 + $0x30] sm:$0xff] %vm3613_vm6, %v5986_v21 }
 0xa2b   : > { %6155 = vst.msk [vmem:[#allocation3 + $0x20] sm:$0xff] %vm3766_vm1, %v6134_v5 }
 0xa2d   : > { %v11548_v35 = vld [vmem:[#allocation2 + $0x88] sm:$0xff]  ;;  %v6053_v25 = vpop.permute.xlu0 %6052  ;;  %6421 = vrot.lane.b32.xlu0 %v6258_v55, %s12054_s7  ;;  %6569 = vrot.lane.b32.xlu1 %v6258_v55, %s12057_s4  ;;  %v5838_v9 = vpop.permute.xlu1 %5837 }
 0xa2e   : > { %v5689_v44 = vpop.f32.mrb[78].mxu0  ;;  %v11559_v20 = vmul.f32 %v11548_v35, %v8464_v49  ;;  %6073 = vst.msk [vmem:[#allocation3 + $0x30] sm:$0xff] %vm3681_vm11, %v6053_v25  ;;  %v6229_v24 = vmul.f32 %v8511_v46, %v11548_v35  ;;  %v6324_v49 = vrot.slane %v11552_v18, 2  ;;  %v6369_v28 = vmul.f32 %v8480_v45, %v11548_v35 }
 0xa2f   : > { %v5719_v22 = vmul.f32 %v11037_v61, %v5689_v44  ;;  %v5691_v57 = vpop.f32.mrb[79].mxu0  ;;  %6121 = vst.msk [vmem:[#allocation3 + $0x30] sm:$0xff] %vm3730_vm15, %v6101_v6  ;;  %v6259_v0 = vrot.slane %v11548_v35, 1  ;;  %v6518_v54 = vmul.f32 %v8368_v62, %v11548_v35  ;;  %v11607_v15 = vmul.f32 %v11548_v35, %v8621_v7 }
 0xa30   : > { %5857 = vst.msk [vmem:[#allocation3 + $0x40] sm:$0xff] %vm3460_vm9, %v5838_v9  ;;  %v6622_v61 = vrot.slane %v11559_v20, 2  ;;  %v6325_v34 = vsel %vm1611_vm14, %v6322_v31, %v6324_v49  ;;  %v11611_v14 = vmul.f32 %v11548_v35, %v8613_v48 }
 0xa31   : > { %v5742_v58 = vadd.f32 %v11042_v16, %v5719_v22  ;;  %6237 = vst.msk [vmem:[#allocation3 + $0xe0] sm:$0xff] %vm742_vm0, %v6229_v24  ;;  %v5955_v29 = vpop.permute.xlu0 %5954  ;;  %6488 = vrot.lane.b32.xlu0 %v6473_v4, %s12051_s0  ;;  %6273 = vrot.lane.b32.xlu1 %v6258_v55, %s12053_s6  ;;  %v5905_v47 = vpop.permute.xlu1 %5904  ;;  %v6260_v31 = vsel %vm1509_vm13, %v6257_v26, %v6259_v0  ;;  %v6326_v39 = vrot.slane %v11607_v15, 2 }
 0xa32   : > { %v6652_v16 = vld [vmem:[#allocation3 + $0x20] sm:$0xff]  ;;  %v6623_v33 = vsel %vm1611_vm14, %v6620_v36, %v6622_v61  ;;  %v5694_v19 = vpop.f32.mrb[80].mxu0  ;;  %5924 = vst.msk [vmem:[#allocation3 + $0x40] sm:$0xff] %vm3528_vm10, %v5905_v47  ;;  %v6474_v51 = vrot.slane %v11611_v14, 2 }
 0xa33   : > { %v5758_v17 = vmax.f32 %v5742_v58, 0.0  ;;  %6821 = vmatmul.mubr.f32.gmra.mrb[54].mxu1 %v6652_v16  ;;  %6643 = vst.msk [vmem:[#allocation3 + $0xb8] sm:$0xff] %vm742_vm0, %v6623_v33  ;;  %v5720_v41 = vmul.f32 %v7707_v50, %v5694_v19  ;;  %v5696_v60 = vpop.f32.mrb[81].mxu0  ;;  %v6327_v2 = vsel %vm1611_vm14, %v6324_v49, %v6326_v39 }
 0xa34   : > { %7220 = vmatprep.mubr.msk.f32.mxu1 %vm742_vm0, %v6655_v42  ;;  %5972 = vst.msk [vmem:[#allocation3 + $0x40] sm:$0xff] %vm3577_vm12, %v5953_v32  ;;  %v6605_v32 = vmul.f32 %v11622_v52, %v8697_v11  ;;  %v6475_v30 = vsel %vm1611_vm14, %v6472_v43, %v6474_v51 }
 0xa35   : > { %5774 = vst.msk [vmem:[#allocation2 + $0x91] sm:$0xff] %vm742_vm0, %v5758_v17  ;;  %v5743_v63 = vadd.f32 %v7708_v1, %v5720_v41  ;;  %v6136_v53 = vpop.permute.xlu0 %6135  ;;  %6390 = vrot.lane.b32.xlu0 %v6369_v28, %s12056_s8  ;;  %6340 = vrot.lane.b32.xlu1 %v6325_v34, %s12055_s1  ;;  %v6103_v56 = vpop.permute.xlu1 %6102 }
 0xa36   : > { %6156 = vst.msk [vmem:[#allocation3 + $0x30] sm:$0xff] %vm3766_vm1, %v6136_v53  ;;  %v6630_v55 = vrot.slane %v6605_v32, 2 }
 0xa37   : > { %v5759_v3 = vmax.f32 %v5743_v63, 0.0 }
 0xa39   : > { %5775 = vst.msk [vmem:[#allocation2 + $0x99] sm:$0xff] %vm742_vm0, %v5759_v3  ;;  %v5840_v10 = vpop.permute.xlu0 %5839  ;;  %6571 = vrot.lane.b32.xlu0 %v6260_v31, %s12057_s4  ;;  %6538 = vrot.lane.b32.xlu1 %v6518_v54, %s12052_s25  ;;  %v5988_v62 = vpop.permute.xlu1 %5987 }
 0xa3a   : > { %5858 = vst.msk [vmem:[#allocation3 + $0x50] sm:$0xff] %vm3460_vm9, %v5840_v10 }
 0xa3b   : > { %6007 = vst.msk [vmem:[#allocation3 + $0x40] sm:$0xff] %vm3613_vm6, %v5988_v62 }
 0xa3c   : > { %v11617_v23 = vld [vmem:[#allocation2 + $0x90] sm:$0xff] }
 0xa3d   : > { %v6602_v27 = vmul.f32 %v11617_v23, %v8613_v48  ;;  %v6230_v37 = vmul.f32 %v8549_v40, %v11617_v23  ;;  %v5907_v36 = vpop.permute.xlu0 %5906  ;;  %6275 = vrot.lane.b32.xlu0 %v6260_v31, %s12053_s6  ;;  %6423 = vrot.lane.b32.xlu1 %v6260_v31, %s12054_s7  ;;  %v6654_v8 = vld [vmem:[#allocation3 + $0x30] sm:$0xff]  ;;  %v6055_v6 = vpop.permute.xlu1 %6054  ;;  %v6657_v48 = vld [vmem:[#allocation3 + $0x48] sm:$0xff]  ;;  %v6519_v59 = vmul.f32 %v8480_v45, %v11617_v23  ;;  %v6261_v22 = vrot.slane %v11617_v23, 1 }
 0xa3e   : > { %5925 = vst.msk [vmem:[#allocation3 + $0x50] sm:$0xff] %vm3528_vm10, %v5907_v36  ;;  %6826 = vmatmul.mubr.f32.gmra.mrb[56].mxu1 %v6654_v8  ;;  %v6370_v43 = vmul.f32 %v8511_v46, %v11617_v23  ;;  %v11667_v25 = vmul.f32 %v11617_v23, %v8621_v7  ;;  %v6304_v4 = vmul.f32 %v11617_v23, %v8709_v12 }
 0xa3f   : > { %v6624_v13 = vrot.slane %v6602_v27, 2  ;;  %6238 = vst.msk [vmem:[#allocation3 + $0xf0] sm:$0xff] %vm742_vm0, %v6230_v37  ;;  %7221 = vmatprep.mubr.msk.f32.mxu1 %vm742_vm0, %v6657_v48 }
 0xa40   : > { %5973 = vst.msk [vmem:[#allocation3 + $0x50] sm:$0xff] %vm3577_vm12, %v5955_v29  ;;  %v11650_v26 = vld [vmem:[#allocation2 + $0x98] sm:$0xff]  ;;  %v11652_v21 = vld [vmem:[#allocation2 + $0xa0] sm:$0xff]  ;;  %v6328_v35 = vrot.slane %v6304_v4, 2 }
 0xa41   : > { %6074 = vst.msk [vmem:[#allocation3 + $0x40] sm:$0xff] %vm3681_vm11, %v6055_v6  ;;  %v6625_v38 = vsel %vm1611_vm14, %v6622_v61, %v6624_v13  ;;  %6342 = vrot.lane.b32.xlu0 %v6327_v2, %s12055_s1  ;;  %6490 = vrot.lane.b32.xlu1 %v6475_v30, %s12051_s0  ;;  %v6603_v5 = vmul.f32 %v11650_v26, %v8621_v7  ;;  %v6476_v61 = vrot.slane %v11667_v25, 2  ;;  %v6263_v42 = vrot.slane %v11650_v26, 1 }
 0xa42   : > { %6122 = vst.msk [vmem:[#allocation3 + $0x40] sm:$0xff] %vm3730_vm15, %v6103_v56  ;;  %v6604_v44 = vmul.f32 %v11652_v21, %v8709_v12  ;;  %v6262_v7 = vsel %vm1509_vm13, %v6259_v0, %v6261_v22  ;;  %v6371_v47 = vmul.f32 %v8549_v40, %v11650_v26  ;;  %v6329_v19 = vsel %vm1611_vm14, %v6326_v39, %v6328_v35  ;;  %v6659_v0 = vld [vmem:[#allocation3 + $0x58] sm:$0xff] }
 0xa43   : > { %6644 = vst.msk [vmem:[#allocation3 + $0xc8] sm:$0xff] %vm742_vm0, %v6625_v38  ;;  %v6626_v18 = vrot.slane %v6603_v5, 2  ;;  %v6477_v29 = vsel %vm1611_vm14, %v6474_v51, %v6476_v61  ;;  %v6520_v28 = vmul.f32 %v8511_v46, %v11650_v26  ;;  %v6264_v34 = vsel %vm1509_vm13, %v6261_v22, %v6263_v42 }
 0xa44   : > { %v6628_v57 = vrot.slane %v6604_v44, 2  ;;  %v6413_v46 = vrot.slane %v11652_v21, 1  ;;  %v6305_v53 = vmul.f32 %v11650_v26, %v8697_v11  ;;  %v6454_v56 = vmul.f32 %v11650_v26, %v8709_v12  ;;  %v6663_v44 = vld [vmem:[#allocation3 + $0x78] sm:$0xff] }
 0xa45   : > { %6540 = vrot.lane.b32.xlu0 %v6519_v59, %s12052_s25  ;;  %6392 = vrot.lane.b32.xlu1 %v6370_v43, %s12056_s8  ;;  %v6627_v20 = vsel %vm1611_vm14, %v6624_v13, %v6626_v18  ;;  %v6455_v10 = vmul.f32 %v11652_v21, %v8697_v11  ;;  %v6661_v11 = vld [vmem:[#allocation3 + $0x68] sm:$0xff]  ;;  %v6521_v8 = vmul.f32 %v8549_v40, %v11652_v21  ;;  %v6563_v6 = vrot.slane %v11622_v52, 1 }
 0xa46   : > { %v6629_v9 = vsel %vm1611_vm14, %v6626_v18, %v6628_v57  ;;  %6645 = vst.msk [vmem:[#allocation3 + $0xd8] sm:$0xff] %vm742_vm0, %v6627_v20  ;;  %v6631_v45 = vsel %vm1611_vm14, %v6628_v57, %v6630_v55  ;;  %v6414_v31 = vsel %vm1509_vm13, %v6263_v42, %v6413_v46  ;;  %v6330_v15 = vrot.slane %v6305_v53, 2  ;;  %v6665_v18 = vld [vmem:[#allocation3 + $0x88] sm:$0xff]  ;;  %v6671_v53 = vld [vmem:[#allocation3 + $0xb8] sm:$0xff] }
 0xa47   : > { %v6105_v24 = vpop.permute.xlu0 %6104  ;;  %v5957_v58 = vpop.permute.xlu1 %5956  ;;  %6646 = vst.msk [vmem:[#allocation3 + $0xe8] sm:$0xff] %vm742_vm0, %v6629_v9  ;;  %6647 = vst.msk [vmem:[#allocation3 + $0xf8] sm:$0xff] %vm742_vm0, %v6631_v45  ;;  %v6478_v14 = vrot.slane %v6454_v56, 2  ;;  %v6480_v51 = vrot.slane %v6455_v10, 2  ;;  %v6564_v38 = vsel %vm1509_vm13, %v6413_v46, %v6563_v6  ;;  %v6669_v42 = vld [vmem:[#allocation3 + $0xa8] sm:$0xff] }
 0xa48   : > { %v6331_v27 = vsel %vm1611_vm14, %v6328_v35, %v6330_v15 }
 0xa49   : > { %6425 = vrot.lane.b32.xlu0 %v6262_v7, %s12054_s7  ;;  %6573 = vrot.lane.b32.xlu1 %v6262_v7, %s12057_s4  ;;  %v6479_v39 = vsel %vm1611_vm14, %v6476_v61, %v6478_v14  ;;  %v6481_v13 = vsel %vm1611_vm14, %v6478_v14, %v6480_v51 }
 0xa4b   : > { %v5990_v49 = vpop.permute.xlu0 %5989  ;;  %v6138_v17 = vpop.permute.xlu1 %6137 }
 0xa4c   : > { %6008 = vst.msk [vmem:[#allocation3 + $0x50] sm:$0xff] %vm3613_vm6, %v5990_v49  ;;  %v6667_v49 = vld [vmem:[#allocation3 + $0x98] sm:$0xff] }
 0xa4d   : > { %6157 = vst.msk [vmem:[#allocation3 + $0x40] sm:$0xff] %vm3766_vm1, %v6138_v17  ;;  %6492 = vrot.lane.b32.xlu0 %v6477_v29, %s12051_s0  ;;  %6277 = vrot.lane.b32.xlu1 %v6262_v7, %s12053_s6 }
 0xa4f   : > { %v6057_v16 = vpop.permute.xlu0 %6056  ;;  %v5842_v33 = vpop.permute.xlu1 %5841 }
 0xa50   : > { %6075 = vst.msk [vmem:[#allocation3 + $0x50] sm:$0xff] %vm3681_vm11, %v6057_v16 }
 0xa51   : > { %5859 = vst.msk [vmem:[#allocation3 + $0x60] sm:$0xff] %vm3460_vm9, %v5842_v33  ;;  %6394 = vrot.lane.b32.xlu0 %v6371_v47, %s12056_s8  ;;  %6344 = vrot.lane.b32.xlu1 %v6329_v19, %s12055_s1 }
 0xa52   : > { %6123 = vst.msk [vmem:[#allocation3 + $0x50] sm:$0xff] %vm3730_vm15, %v6105_v24 }
 0xa53   : > { %v5959_v50 = vpop.permute.xlu0 %5958  ;;  %v5909_v41 = vpop.permute.xlu1 %5908 }
 0xa54   : > { %v6656_v60 = vld [vmem:[#allocation3 + $0x40] sm:$0xff]  ;;  %5926 = vst.msk [vmem:[#allocation3 + $0x60] sm:$0xff] %vm3528_vm10, %v5909_v41 }
 0xa55   : > { %6831 = vmatmul.mubr.f32.gmra.mrb[58].mxu1 %v6656_v60  ;;  %5974 = vst.msk [vmem:[#allocation3 + $0x60] sm:$0xff] %vm3577_vm12, %v5957_v58  ;;  %6575 = vrot.lane.b32.xlu0 %v6264_v34, %s12057_s4 }
 0xa56   : > { %6542 = vrot.lane.b32.xlu1 %v6520_v28, %s12052_s25  ;;  %7222 = vmatprep.mubr.msk.f32.mxu1 %vm742_vm0, %v6659_v0 }
 0xa57   : > { %v6140_v1 = vpop.permute.xlu0 %6139  ;;  %v6107_v63 = vpop.permute.xlu1 %6106 }
 0xa58   : > { %6158 = vst.msk [vmem:[#allocation3 + $0x50] sm:$0xff] %vm3766_vm1, %v6140_v1 }
 0xa59   : > { %6279 = vrot.lane.b32.xlu0 %v6264_v34, %s12053_s6 }
 0xa5a   : > { %6427 = vrot.lane.b32.xlu1 %v6264_v34, %s12054_s7 }
 0xa5b   : > { %v5844_v3 = vpop.permute.xlu0 %5843  ;;  %v6109_v54 = vpop.permute.xlu1 %6108 }
 0xa5c   : > { %5860 = vst.msk [vmem:[#allocation3 + $0x70] sm:$0xff] %vm3460_vm9, %v5844_v3 }
 0xa5d   : > { %6429 = vrot.lane.b32.xlu0 %v6414_v31, %s12054_s7 }
 0xa5e   : > { %6577 = vrot.lane.b32.xlu1 %v6414_v31, %s12057_s4 }
 0xa5f   : > { %v5994_v12 = vpop.permute.xlu0 %5993  ;;  %v5992_v62 = vpop.permute.xlu1 %5991  ;;  %v6658_v23 = vld [vmem:[#allocation3 + $0x50] sm:$0xff] }
 0xa60   : > { %6009 = vst.msk [vmem:[#allocation3 + $0x60] sm:$0xff] %vm3613_vm6, %v5992_v62  ;;  %6836 = vmatmul.mubr.f32.gmra.mrb[60].mxu1 %v6658_v23 }
 0xa61   : > { %6346 = vrot.lane.b32.xlu0 %v6331_v27, %s12055_s1  ;;  %7223 = vmatprep.mubr.msk.f32.mxu1 %vm742_vm0, %v6661_v11  ;;  %s718_s1 = sand.u32 1, %s7795_s5  }
 0xa62   : > { %6494 = vrot.lane.b32.xlu1 %v6479_v39, %s12051_s0  ;;  %s7071_s8 = sshll.u32 %s718_s1, 6  ;;  %s11894_s9 = scalar_lea.sflag [#allocation7], %s718_s1 }
 0xa63   : > { %v5911_v37 = vpop.permute.xlu0 %5910  ;;  %v6142_v36 = vpop.permute.xlu1 %6141 }
 0xa64   : > { %5927 = vst.msk [vmem:[#allocation3 + $0x70] sm:$0xff] %vm3528_vm10, %v5911_v37 }
 0xa65   : > { %5975 = vst.msk [vmem:[#allocation3 + $0x70] sm:$0xff] %vm3577_vm12, %v5959_v50  ;;  %6544 = vrot.lane.b32.xlu0 %v6521_v8, %s12052_s25 }
 0xa66   : > { %6496 = vrot.lane.b32.xlu1 %v6481_v13, %s12051_s0  ;;  %6010 = vst.msk [vmem:[#allocation3 + $0x70] sm:$0xff] %vm3613_vm6, %v5994_v12  ;;  %v6673_v12 = vld [vmem:[#allocation3 + $0xc8] sm:$0xff]  ;;  %v6675_v13 = vld [vmem:[#allocation3 + $0xd8] sm:$0xff]  ;;  %s7741_s0 = sshll.u32 %s7825_s2, 4  ;;  %s7742_s0 = int_to_ptr.vmem [resolvable:$false] %s7741_s0 }
 0xa67   : > { %v6381_v48 = vpop.permute.xlu0 %6380  ;;  %v6144_v32 = vpop.permute.xlu1 %6143  ;;  %s7743_s25 = scalar_lea.vmem %s7742_s0, 2048 }
 0xa6a   : > { %6579 = vrot.lane.b32.xlu1 %v6564_v38, %s12057_s4  ;;  %s11835_s4 = scalar_lea.vmem [#allocation8], %s7071_s8 }
 0xa6b   : > { %v6266_v40 = vpop.permute.xlu0 %6265  ;;  %v6059_v2 = vpop.permute.xlu1 %6058  ;;  %s6991_s28 = sshll.u32 %s11835_s4, 4  ;;  %s11888_s28 = int_to_ptr.vmem [resolvable:$true] %s6991_s28 }
 0xa6c   : > { %6289 = vst.msk [vmem:[#allocation3 + $0x80] sm:$0xff] %vm3460_vm9, %v6266_v40  ;;  %s7737_s10 = scalar_lea.vmem %s11888_s28, 1024  ;;  %p7744_p2 = scmp.lt.s32.totalorder %s11888_s28, %s7742_s0 }
 0xa6d   : > { %6076 = vst.msk [vmem:[#allocation3 + $0x60] sm:$0xff] %vm3681_vm11, %v6059_v2  ;;  %p7738_p6 = scmp.ne.s32.totalorder %s11888_s28, %s7737_s10  ;;  %p7745_p3 = scmp.lt.s32.totalorder %s7743_s25, %s7737_s10 }
 0xa6e   : > { %6124 = vst.msk [vmem:[#allocation3 + $0x60] sm:$0xff] %vm3730_vm15, %v6107_v63 }
 0xa6f   : > { %6159 = vst.msk [vmem:[#allocation3 + $0x60] sm:$0xff] %vm3766_vm1, %v6142_v36  ;;  %v6333_v52 = vpop.permute.xlu0 %6332  ;;  %v6061_v30 = vpop.permute.xlu1 %6060  ;;  %p7739_p10 = pnand %p7738_p6, %p12059_p9  ;;  %p7746_p4 = por %p7745_p3, %p7744_p2 }
 0xa70   : > { %6356 = vst.msk [vmem:[#allocation3 + $0x80] sm:$0xff] %vm3528_vm10, %v6333_v52 }
 0xa71   : > { %6077 = vst.msk [vmem:[#allocation3 + $0x70] sm:$0xff] %vm3681_vm11, %v6061_v30  ;;  %v6677_v30 = vld [vmem:[#allocation3 + $0xe8] sm:$0xff]  ;;  %p7740_p12 = pneg %p7739_p10 }
 0xa72   : > { %6404 = vst.msk [vmem:[#allocation3 + $0x80] sm:$0xff] %vm3577_vm12, %v6381_v48 }
 0xa73   : > { %6125 = vst.msk [vmem:[#allocation3 + $0x70] sm:$0xff] %vm3730_vm15, %v6109_v54  ;;  %v6383_v26 = vpop.permute.xlu0 %6382  ;;  %v6531_v21 = vpop.permute.xlu1 %6530  ;;  %p7747_p7 = pnand %p7746_p4, %p7740_p12 }
 0xa74   : > { %6160 = vst.msk [vmem:[#allocation3 + $0x70] sm:$0xff] %vm3766_vm1, %v6144_v32 }
 0xa76   : > { %v6660_v5 = vld [vmem:[#allocation3 + $0x60] sm:$0xff] }
 0xa77   : > { %6841 = vmatmul.mubr.f32.gmra.mrb[62].mxu1 %v6660_v5  ;;  %v6268_v55 = vpop.permute.xlu0 %6267  ;;  %v6416_v59 = vpop.permute.xlu1 %6415 }
 0xa78   : > { %7224 = vmatprep.mubr.msk.f32.mxu1 %vm742_vm0, %v6663_v44  ;;  %6290 = vst.msk [vmem:[#allocation3 + $0x90] sm:$0xff] %vm3460_vm9, %v6268_v55 }
 0xa79   : > { %6439 = vst.msk [vmem:[#allocation3 + $0x80] sm:$0xff] %vm3613_vm6, %v6416_v59 }
 0xa7b   : > { %v6662_v43 = vld [vmem:[#allocation3 + $0x70] sm:$0xff]  ;;  %v6335_v22 = vpop.permute.xlu0 %6334  ;;  %v6483_v25 = vpop.permute.xlu1 %6482 }
 0xa7c   : > { %6846 = vmatmul.mubr.f32.gmra.mrb[64].mxu1 %v6662_v43  ;;  %6357 = vst.msk [vmem:[#allocation3 + $0x90] sm:$0xff] %vm3528_vm10, %v6335_v22  ;;  %v6679_v43 = vld [vmem:[#allocation3 + $0xf8] sm:$0xff] }
 0xa7d   : > { %7225 = vmatprep.mubr.msk.f32.mxu1 %vm742_vm0, %v6665_v18  ;;  %6506 = vst.msk [vmem:[#allocation3 + $0x80] sm:$0xff] %vm3681_vm11, %v6483_v25 }
 0xa7e   : > { %6405 = vst.msk [vmem:[#allocation3 + $0x90] sm:$0xff] %vm3577_vm12, %v6383_v26 }
 0xa7f   : > { %6554 = vst.msk [vmem:[#allocation3 + $0x80] sm:$0xff] %vm3730_vm15, %v6531_v21  ;;  %v6533_v57 = vpop.permute.xlu0 %6532  ;;  %v6385_v20 = vpop.permute.xlu1 %6384 }
 0xa83   : > { %v6418_v9 = vpop.permute.xlu0 %6417  ;;  %v6566_v45 = vpop.permute.xlu1 %6565 }
 0xa84   : > { %6440 = vst.msk [vmem:[#allocation3 + $0x90] sm:$0xff] %vm3613_vm6, %v6418_v9 }
 0xa85   : > { %6589 = vst.msk [vmem:[#allocation3 + $0x80] sm:$0xff] %vm3766_vm1, %v6566_v45 }
 0xa87   : > { %v6485_v24 = vpop.permute.xlu0 %6484  ;;  %v6270_v58 = vpop.permute.xlu1 %6269 }
 0xa88   : > { %6507 = vst.msk [vmem:[#allocation3 + $0x90] sm:$0xff] %vm3681_vm11, %v6485_v24 }
 0xa89   : > { %6291 = vst.msk [vmem:[#allocation3 + $0xa0] sm:$0xff] %vm3460_vm9, %v6270_v58 }
 0xa8a   : > { %6555 = vst.msk [vmem:[#allocation3 + $0x90] sm:$0xff] %vm3730_vm15, %v6533_v57 }
 0xa8b   : > { %v6387_v7 = vpop.permute.xlu0 %6386  ;;  %v6337_v61 = vpop.permute.xlu1 %6336 }
 0xa8c   : > { %v6664_v4 = vld [vmem:[#allocation3 + $0x80] sm:$0xff]  ;;  %6358 = vst.msk [vmem:[#allocation3 + $0xa0] sm:$0xff] %vm3528_vm10, %v6337_v61 }
 0xa8d   : > { %6851 = vmatmul.mubr.f32.gmra.mrb[66].mxu1 %v6664_v4  ;;  %6406 = vst.msk [vmem:[#allocation3 + $0xa0] sm:$0xff] %vm3577_vm12, %v6385_v20 }
 0xa8e   : > { %7226 = vmatprep.mubr.msk.f32.mxu1 %vm742_vm0, %v6667_v49 }
 0xa8f   : > { %v6568_v17 = vpop.permute.xlu0 %6567  ;;  %v6535_v29 = vpop.permute.xlu1 %6534 }
 0xa90   : > { %6590 = vst.msk [vmem:[#allocation3 + $0x90] sm:$0xff] %vm3766_vm1, %v6568_v17 }
 0xa93   : > { %v6272_v35 = vpop.permute.xlu0 %6271  ;;  %v6420_v16 = vpop.permute.xlu1 %6419 }
 0xa94   : > { %6292 = vst.msk [vmem:[#allocation3 + $0xb0] sm:$0xff] %vm3460_vm9, %v6272_v35 }
 0xa95   : > { %6441 = vst.msk [vmem:[#allocation3 + $0xa0] sm:$0xff] %vm3613_vm6, %v6420_v16 }
 0xa97   : > { %v6339_v33 = vpop.permute.xlu0 %6338  ;;  %v6487_v47 = vpop.permute.xlu1 %6486  ;;  %v6666_v19 = vld [vmem:[#allocation3 + $0x90] sm:$0xff] }
 0xa98   : > { %6359 = vst.msk [vmem:[#allocation3 + $0xb0] sm:$0xff] %vm3528_vm10, %v6339_v33  ;;  %6856 = vmatmul.mubr.f32.gmra.mrb[68].mxu1 %v6666_v19  ;;  %v11820_v33 = vld [vmem:[%s11957_s21] ss:$0 sm:$0xff] }
 0xa99   : > { %6508 = vst.msk [vmem:[#allocation3 + $0xa0] sm:$0xff] %vm3681_vm11, %v6487_v47  ;;  %7227 = vmatprep.mubr.msk.f32.mxu1 %vm742_vm0, %v6669_v42  ;;  %v11826_v19 = vld [vmem:[%s11958_s22] ss:$0 sm:$0xff] }
 0xa9a   : > { %6407 = vst.msk [vmem:[#allocation3 + $0xb0] sm:$0xff] %vm3577_vm12, %v6387_v7 }
 0xa9b   : > { %6556 = vst.msk [vmem:[#allocation3 + $0xa0] sm:$0xff] %vm3730_vm15, %v6535_v29  ;;  %v6537_v50 = vpop.permute.xlu0 %6536  ;;  %v6389_v41 = vpop.permute.xlu1 %6388 }
 0xa9f   : > { %v6422_v60 = vpop.permute.xlu0 %6421  ;;  %v6570_v28 = vpop.permute.xlu1 %6569 }
 0xaa0   : > { %6442 = vst.msk [vmem:[#allocation3 + $0xb0] sm:$0xff] %vm3613_vm6, %v6422_v60 }
 0xaa1   : > { %6591 = vst.msk [vmem:[#allocation3 + $0xa0] sm:$0xff] %vm3766_vm1, %v6570_v28 }
 0xaa3   : > { %v6489_v34 = vpop.permute.xlu0 %6488  ;;  %v6274_v0 = vpop.permute.xlu1 %6273 }
 0xaa4   : > { %6509 = vst.msk [vmem:[#allocation3 + $0xb0] sm:$0xff] %vm3681_vm11, %v6489_v34 }
 0xaa5   : > { %6293 = vst.msk [vmem:[#allocation3 + $0xc0] sm:$0xff] %vm3460_vm9, %v6274_v0 }
 0xaa6   : > { %6557 = vst.msk [vmem:[#allocation3 + $0xb0] sm:$0xff] %vm3730_vm15, %v6537_v50 }
 0xaa7   : > { %v6391_v1 = vpop.permute.xlu0 %6390  ;;  %v6341_v63 = vpop.permute.xlu1 %6340 }
 0xaa8   : > { %v6668_v46 = vld [vmem:[#allocation3 + $0xa0] sm:$0xff]  ;;  %6360 = vst.msk [vmem:[#allocation3 + $0xc0] sm:$0xff] %vm3528_vm10, %v6341_v63 }
 0xaa9   : > { %6861 = vmatmul.mubr.f32.gmra.mrb[70].mxu1 %v6668_v46  ;;  %6408 = vst.msk [vmem:[#allocation3 + $0xc0] sm:$0xff] %vm3577_vm12, %v6389_v41 }
 0xaaa   : > { %7228 = vmatprep.mubr.msk.f32.mxu1 %vm742_vm0, %v6671_v53 }
 0xaab   : > { %v6572_v56 = vpop.permute.xlu0 %6571  ;;  %v6539_v3 = vpop.permute.xlu1 %6538 }
 0xaac   : > { %6592 = vst.msk [vmem:[#allocation3 + $0xb0] sm:$0xff] %vm3766_vm1, %v6572_v56 }
 0xaaf   : > { %v6276_v54 = vpop.permute.xlu0 %6275  ;;  %v6424_v31 = vpop.permute.xlu1 %6423 }
 0xab0   : > { %6294 = vst.msk [vmem:[#allocation3 + $0xd0] sm:$0xff] %vm3460_vm9, %v6276_v54 }
 0xab1   : > { %6443 = vst.msk [vmem:[#allocation3 + $0xc0] sm:$0xff] %vm3613_vm6, %v6424_v31 }
 0xab3   : > { %v6343_v15 = vpop.permute.xlu0 %6342  ;;  %v6491_v14 = vpop.permute.xlu1 %6490  ;;  %v6670_v10 = vld [vmem:[#allocation3 + $0xb0] sm:$0xff] }
 0xab4   : > { %6361 = vst.msk [vmem:[#allocation3 + $0xd0] sm:$0xff] %vm3528_vm10, %v6343_v15  ;;  %6866 = vmatmul.mubr.f32.gmra.mrb[72].mxu1 %v6670_v10 }
 0xab5   : > { %6510 = vst.msk [vmem:[#allocation3 + $0xc0] sm:$0xff] %vm3681_vm11, %v6491_v14  ;;  %7229 = vmatprep.mubr.msk.f32.mxu1 %vm742_vm0, %v6673_v12 }
 0xab6   : > { %6409 = vst.msk [vmem:[#allocation3 + $0xd0] sm:$0xff] %vm3577_vm12, %v6391_v1 }
 0xab7   : > { %6558 = vst.msk [vmem:[#allocation3 + $0xc0] sm:$0xff] %vm3730_vm15, %v6539_v3  ;;  %v6541_v62 = vpop.permute.xlu0 %6540  ;;  %v6393_v23 = vpop.permute.xlu1 %6392 }
 0xabb   : > { %v6426_v27 = vpop.permute.xlu0 %6425  ;;  %v6574_v39 = vpop.permute.xlu1 %6573 }
 0xabc   : > { %6444 = vst.msk [vmem:[#allocation3 + $0xd0] sm:$0xff] %vm3613_vm6, %v6426_v27 }
 0xabd   : > { %6593 = vst.msk [vmem:[#allocation3 + $0xc0] sm:$0xff] %vm3766_vm1, %v6574_v39 }
 0xabf   : > { %v6493_v51 = vpop.permute.xlu0 %6492  ;;  %v6278_v11 = vpop.permute.xlu1 %6277 }
 0xac0   : > { %6511 = vst.msk [vmem:[#allocation3 + $0xd0] sm:$0xff] %vm3681_vm11, %v6493_v51 }
 0xac1   : > { %6295 = vst.msk [vmem:[#allocation3 + $0xe0] sm:$0xff] %vm3460_vm9, %v6278_v11 }
 0xac2   : > { %6559 = vst.msk [vmem:[#allocation3 + $0xd0] sm:$0xff] %vm3730_vm15, %v6541_v62 }
 0xac3   : > { %v6395_v37 = vpop.permute.xlu0 %6394  ;;  %v6345_v36 = vpop.permute.xlu1 %6344 }
 0xac4   : > { %v6672_v8 = vld [vmem:[#allocation3 + $0xc0] sm:$0xff]  ;;  %6362 = vst.msk [vmem:[#allocation3 + $0xe0] sm:$0xff] %vm3528_vm10, %v6345_v36 }
 0xac5   : > { %6871 = vmatmul.mubr.f32.gmra.mrb[74].mxu1 %v6672_v8  ;;  %6410 = vst.msk [vmem:[#allocation3 + $0xe0] sm:$0xff] %vm3577_vm12, %v6393_v23 }
 0xac6   : > { %7230 = vmatprep.mubr.msk.f32.mxu1 %vm742_vm0, %v6675_v13 }
 0xac7   : > { %v6576_v6 = vpop.permute.xlu0 %6575 }
 0xac8   : > { %v6543_v48 = vpop.permute.xlu1 %6542  ;;  %6594 = vst.msk [vmem:[#allocation3 + $0xd0] sm:$0xff] %vm3766_vm1, %v6576_v6 }
 0xacb   : > { %v6280_v32 = vpop.permute.xlu0 %6279 }
 0xacc   : > { %v6428_v38 = vpop.permute.xlu1 %6427  ;;  %6296 = vst.msk [vmem:[#allocation3 + $0xf0] sm:$0xff] %vm3460_vm9, %v6280_v32 }
 0xacd   : > { %6445 = vst.msk [vmem:[#allocation3 + $0xe0] sm:$0xff] %vm3613_vm6, %v6428_v38 }
 0xacf   : > { %v6430_v40 = vpop.permute.xlu0 %6429  ;;  %v6674_v52 = vld [vmem:[#allocation3 + $0xd0] sm:$0xff] }
 0xad0   : > { %v6578_v2 = vpop.permute.xlu1 %6577  ;;  %6876 = vmatmul.mubr.f32.gmra.mrb[76].mxu1 %v6674_v52 }
 0xad1   : > { %7231 = vmatprep.mubr.msk.f32.mxu1 %vm742_vm0, %v6677_v30 }
 0xad3   : > { %v6347_v26 = vpop.permute.xlu0 %6346 }
 0xad4   : > { %v6495_v21 = vpop.permute.xlu1 %6494  ;;  %6363 = vst.msk [vmem:[#allocation3 + $0xf0] sm:$0xff] %vm3528_vm10, %v6347_v26 }
 0xad5   : > { %6512 = vst.msk [vmem:[#allocation3 + $0xe0] sm:$0xff] %vm3681_vm11, %v6495_v21 }
 0xad6   : > { %6411 = vst.msk [vmem:[#allocation3 + $0xf0] sm:$0xff] %vm3577_vm12, %v6395_v37 }
 0xad7   : > { %6560 = vst.msk [vmem:[#allocation3 + $0xe0] sm:$0xff] %vm3730_vm15, %v6543_v48  ;;  %v6545_v5 = vpop.permute.xlu0 %6544 }
 0xad8   : > { %6446 = vst.msk [vmem:[#allocation3 + $0xf0] sm:$0xff] %vm3613_vm6, %v6430_v40  ;;  %v6497_v44 = vpop.permute.xlu1 %6496 }
 0xad9   : > { %6595 = vst.msk [vmem:[#allocation3 + $0xe0] sm:$0xff] %vm3766_vm1, %v6578_v2 }
 0xada   : > { %6513 = vst.msk [vmem:[#allocation3 + $0xf0] sm:$0xff] %vm3681_vm11, %v6497_v44 }
 0xadb   : > { %6561 = vst.msk [vmem:[#allocation3 + $0xf0] sm:$0xff] %vm3730_vm15, %v6545_v5 }
 0xadc   : > { %v6580_v55 = vpop.permute.xlu1 %6579 }
 0xadd   : > { %6596 = vst.msk [vmem:[#allocation3 + $0xf0] sm:$0xff] %vm3766_vm1, %v6580_v55 }
 0xae0   : > { %v6676_v59 = vld [vmem:[#allocation3 + $0xe0] sm:$0xff] }
 0xae1   : > { %6881 = vmatmul.mubr.f32.gmra.mrb[78].mxu1 %v6676_v59 }
 0xae2   : > { %7232 = vmatprep.mubr.msk.f32.mxu1 %vm742_vm0, %v6679_v43 }
 0xae4   : > { %v6678_v18 = vld [vmem:[#allocation3 + $0xf0] sm:$0xff] }
 0xae5   : > { %6886 = vmatmul.mubr.f32.gmra.mrb[80].mxu1 %v6678_v18 }
 0xaea   : > { %v6812_v22 = vpop.f32.mrb[50].mxu1 }
 0xaeb   : > { %v6814_v25 = vpop.f32.mrb[51].mxu1  ;;  %v6898_v47 = vmul.f32 %v11820_v33, %v6812_v22 }
 0xaed   : > { %v6921_v50 = vadd.f32 %v11826_v19, %v6898_v47 }
 0xaef   : > { %v6937_v34 = vmax.f32 %v6921_v50, 0.0 }
 0xaf5   : > { %v6817_v57 = vpop.f32.mrb[52].mxu1 }
 0xaf6   : > { %v6819_v20 = vpop.f32.mrb[53].mxu1  ;;  %v6899_v63 = vmul.f32 %v11820_v33, %v6817_v57 }
 0xaf8   : > { %v6922_v56 = vadd.f32 %v11826_v19, %v6899_v63 }
 0xafa   : > { %v6938_v15 = vmax.f32 %v6922_v56, 0.0 }
 0xb06   : > { %v6822_v9 = vpop.f32.mrb[54].mxu1 }
 0xb07   : > { %v6824_v45 = vpop.f32.mrb[55].mxu1  ;;  %v6900_v62 = vmul.f32 %v11820_v33, %v6822_v9 }
 0xb09   : > { %v6923_v27 = vadd.f32 %v11826_v19, %v6900_v62 }
 0xb0b   : > { %v6939_v37 = vmax.f32 %v6923_v27, 0.0 }
 0xb11   : > { %v6827_v24 = vpop.f32.mrb[56].mxu1 }
 0xb12   : > { %v6829_v58 = vpop.f32.mrb[57].mxu1  ;;  %v6901_v13 = vmul.f32 %v11820_v33, %v6827_v24 }
 0xb14   : > { %v6924_v32 = vadd.f32 %v11826_v19, %v6901_v13 }
 0xb16   : > { %v6940_v52 = vmax.f32 %v6924_v32, 0.0 }
 0xb28   : > { %v6832_v7 = vpop.f32.mrb[58].mxu1 }
 0xb29   : > { %v6834_v61 = vpop.f32.mrb[59].mxu1  ;;  %v6902_v5 = vmul.f32 %v11820_v33, %v6832_v7 }
 0xb2b   : > { %v6925_v55 = vadd.f32 %v11826_v19, %v6902_v5 }
 0xb2d   : > { %v6941_v22 = vmax.f32 %v6925_v55, 0.0 }
 0xb33   : > { %v11811_v4 = vpop.f32.mrb[60].mxu1 }
 0xb34   : > { %v6839_v49 = vpop.f32.mrb[61].mxu1  ;;  %v6903_v20 = vmul.f32 %v11820_v33, %v11811_v4 }
 0xb36   : > { %v6926_v24 = vadd.f32 %v11826_v19, %v6903_v20 }
 0xb38   : > { %v6942_v49 = vmax.f32 %v6926_v24, 0.0 }
 0xb4a   : > { %v11813_v17 = vpop.f32.mrb[62].mxu1 }
 0xb4b   : > { %v6844_v29 = vpop.f32.mrb[63].mxu1 }
 0xb4f   : > { %v11815_v35 = vpop.f32.mrb[64].mxu1 }
 0xb50   : > { %v6849_v16 = vpop.f32.mrb[65].mxu1 }
 0xb60   : > { %v6852_v42 = vpop.f32.mrb[66].mxu1 }
 0xb61   : > { %v6906_v41 = vmul.f32 %v11820_v33, %v6852_v42  ;;  %v6854_v60 = vpop.f32.mrb[67].mxu1  ;;  %v6904_v42 = vmul.f32 %v11820_v33, %v11813_v17 }
 0xb63   : > { %v6929_v28 = vadd.f32 %v11826_v19, %v6906_v41  ;;  %v6927_v50 = vadd.f32 %v11826_v19, %v6904_v42 }
 0xb65   : > { %v6945_v0 = vmax.f32 %v6929_v28, 0.0  ;;  %v6905_v28 = vmul.f32 %v11820_v33, %v11815_v35 }
 0xb67   : > { %v6953_v1 = vsub.f32 %v6937_v34, %v6945_v0  ;;  %v6943_v0 = vmax.f32 %v6927_v50, 0.0  ;;  %v6928_v17 = vadd.f32 %v11826_v19, %v6905_v28 }
 0xb69   : > { %v6961_v46 = vand.u32 2147483647, %v6953_v1 }
 0xb6b   : > { %6969 = vst.msk [vmem:[%s11835_s4] sm:$0xff] %vm742_vm0, %v6961_v46  ;;  %v6857_v53 = vpop.f32.mrb[68].mxu1 }
 0xb6c   : > { %v6907_v3 = vmul.f32 %v11820_v33, %v6857_v53  ;;  %v6859_v54 = vpop.f32.mrb[69].mxu1 }
 0xb6e   : > { %v6930_v31 = vadd.f32 %v11826_v19, %v6907_v3 }
 0xb70   : > { %v6946_v14 = vmax.f32 %v6930_v31, 0.0  ;;  %v6944_v31 = vmax.f32 %v6928_v17, 0.0 }
 0xb72   : > { %v6954_v10 = vsub.f32 %v6938_v15, %v6946_v14 }
 0xb74   : > { %v6962_v12 = vand.u32 2147483647, %v6954_v10 }
 0xb76   : > { %6970 = vst.msk [vmem:[%s11835_s4 + $0x8] sm:$0xff] %vm742_vm0, %v6962_v12 }
 0xb7c   : > { %v6862_v23 = vpop.f32.mrb[70].mxu1 }
 0xb7d   : > { %v6908_v39 = vmul.f32 %v11820_v33, %v6862_v23  ;;  %v6864_v51 = vpop.f32.mrb[71].mxu1 }
 0xb7f   : > { %v6931_v11 = vadd.f32 %v11826_v19, %v6908_v39 }
 0xb81   : > { %v6947_v36 = vmax.f32 %v6931_v11, 0.0 }
 0xb83   : > { %v6955_v8 = vsub.f32 %v6939_v37, %v6947_v36 }
 0xb85   : > { %v6963_v6 = vand.u32 2147483647, %v6955_v8 }
 0xb87   : > { %6971 = vst.msk [vmem:[%s11835_s4 + $0x10] sm:$0xff] %vm742_vm0, %v6963_v6  ;;  %v6867_v48 = vpop.f32.mrb[72].mxu1 }
 0xb88   : > { %v6909_v38 = vmul.f32 %v11820_v33, %v6867_v48  ;;  %v6869_v40 = vpop.f32.mrb[73].mxu1 }
 0xb8a   : > { %v6932_v2 = vadd.f32 %v11826_v19, %v6909_v38 }
 0xb8c   : > { %v6948_v30 = vmax.f32 %v6932_v2, 0.0 }
 0xb8e   : > { %v6956_v26 = vsub.f32 %v6940_v52, %v6948_v30 }
 0xb90   : > { %v6964_v21 = vand.u32 2147483647, %v6956_v26 }
 0xb92   : > { %6972 = vst.msk [vmem:[%s11835_s4 + $0x18] sm:$0xff] %vm742_vm0, %v6964_v21 }
 0xb98   : > { %v6872_v44 = vpop.f32.mrb[74].mxu1 }
 0xb99   : > { %v6910_v59 = vmul.f32 %v11820_v33, %v6872_v44  ;;  %v6874_v43 = vpop.f32.mrb[75].mxu1 }
 0xb9b   : > { %v6933_v18 = vadd.f32 %v11826_v19, %v6910_v59 }
 0xb9d   : > { %v6949_v25 = vmax.f32 %v6933_v18, 0.0 }
 0xb9f   : > { %v6957_v57 = vsub.f32 %v6941_v22, %v6949_v25 }
 0xba1   : > { %v6965_v9 = vand.u32 2147483647, %v6957_v57 }
 0xba3   : > { %6973 = vst.msk [vmem:[%s11835_s4 + $0x20] sm:$0xff] %vm742_vm0, %v6965_v9  ;;  %v6877_v45 = vpop.f32.mrb[76].mxu1 }
 0xba4   : > { %v6911_v58 = vmul.f32 %v11820_v33, %v6877_v45  ;;  %v6879_v7 = vpop.f32.mrb[77].mxu1 }
 0xba6   : > { %v6934_v61 = vadd.f32 %v11826_v19, %v6911_v58 }
 0xba8   : > { %v6950_v29 = vmax.f32 %v6934_v61, 0.0 }
 0xbaa   : > { %v6958_v16 = vsub.f32 %v6942_v49, %v6950_v29 }
 0xbac   : > { %v6966_v47 = vand.u32 2147483647, %v6958_v16 }
 0xbae   : > { %6974 = vst.msk [vmem:[%s11835_s4 + $0x28] sm:$0xff] %vm742_vm0, %v6966_v47 }
 0xbb4   : > { %v6882_v4 = vpop.f32.mrb[78].mxu1 }
 0xbb5   : > { %v6912_v41 = vmul.f32 %v11820_v33, %v6882_v4  ;;  %v6884_v60 = vpop.f32.mrb[79].mxu1 }
 0xbb7   : > { %v6935_v34 = vadd.f32 %v11826_v19, %v6912_v41 }
 0xbb8   : > { %v6887_v63 = vpop.f32.mrb[80].mxu1 }
 0xbb9   : > { %v6951_v1 = vmax.f32 %v6935_v34, 0.0  ;;  %v6913_v53 = vmul.f32 %v11820_v33, %v6887_v63  ;;  %v6889_v56 = vpop.f32.mrb[81].mxu1 }
 0xbbb   : > { %v6959_v46 = vsub.f32 %v6943_v0, %v6951_v1  ;;  %v6936_v54 = vadd.f32 %v11826_v19, %v6913_v53 }
 0xbbd   : > { %v6967_v3 = vand.u32 2147483647, %v6959_v46  ;;  %v6952_v35 = vmax.f32 %v6936_v54, 0.0 }
 0xbbf   : > { %6975 = vst.msk [vmem:[%s11835_s4 + $0x30] sm:$0xff] %vm742_vm0, %v6967_v3  ;;  %v6960_v15 = vsub.f32 %v6944_v31, %v6952_v35 }
 0xbc1   : > { %v6968_v14 = vand.u32 2147483647, %v6960_v15 }
 0xbc3   : > { %6976 = vst.msk [vmem:[%s11835_s4 + $0x38] sm:$0xff] %vm742_vm0, %v6968_v14 }
 0xbc4   : > { %7750 = shalt.err (!%p7747_p7)
}
 0xbc5   : > { %s7751_s6 = scalar_lea.hbm %s11886_s12, 1024  ;;  %s7755_s8 = scalar_lea.hbm %s12058_s11, 2048 }
 0xbc6   : > { %p7752_p8 = scmp.ne.s32.totalorder %s11886_s12, %s7751_s6  ;;  %p7756_p1 = scmp.lt.u32.totalorder %s11886_s12, %s12058_s11 }
 0xbc7   : > { %p7757_p0 = scmp.lt.u32.totalorder %s7755_s8, %s7751_s6  ;;  %p7759_p6 = scmp.lt.u32.totalorder %s7751_s6, %s11886_s12 }
 0xbc8   : > { %p7753_p11 = pnand %p7752_p8, %p12059_p9 }
 0xbc9   : > { %p7758_p5 = por %p7757_p0, %p7756_p1 }
 0xbca   : > { %p7754_p13 = pneg %p7753_p11 }
 0xbcb   : > { %p7760_p10 = por %p7759_p6, %p7758_p5 }
 0xbcd   : > { %p7761_p12 = pnand %p7760_p10, %p7754_p13 }
 0xbcf   : > { %7764 = shalt.err (!%p7761_p12)
}
 0xbd0   : > { %s7826_s26 = smov 128   ;;  %s12060_s23 = smov 8  }
 0xbd1   : > { %7557 = dma.vmem_to_hbm [thread:$0]  (%p12059_p9), %s11888_s28, 1024, %s11886_s12, %s11894_s9, %s7826_s26, %s7826_s26, %s12060_s23  }
 0xbd2 PF: > { %s12061_s10 = sld [smem:[#allocation13_spill]]  ;;  %s12062_s2 = sld [smem:[#allocation11_spill]] }
 0xbd3   : > { %s12063_s0 = sld [smem:[#allocation16_spill]] }
 0xbd8   : > { %p7569_p2 = scmp.ge.s32.totalorder %s12061_s10, 2  ;;  %s7006_s25 = sand.u32 1, %s12062_s2  }
 0xbd9   : > { %p12064_p3 = scmp.ne.s32.totalorder %s12063_s0, 0  ;;  %s7007_s6 = scalar_lea.sflag [#allocation7], %s7006_s25 }
 0xbdb   : > { %p7564_p4 = pnand %p7569_p2, %p12064_p3 }
 0xbdd   : > { %7786 = dma.done.wait (!%p7564_p4), %s7007_s6, 1024  }
 0xbde   : > { %7788 = vsyncadd (!%p7564_p4), %s7007_s6, 4294966272  ;;  %s12065_s26 = sld [smem:[#allocation14_spill]]  ;;  %s12066_s7 = sld [smem:[#allocation12_spill]] }
 0xbdf   : > { %s12067_s1 = sld [smem:[#allocation15_spill]]  ;;  %s12068_s25 = smov %s7795_s5 }
 0xbe4   : > { %p36_p7 = scmp.ge.s32.totalorder %s12065_s26, 4   ;;  %s12069_s5 = smov %s12066_s7 }
 0xbe6   :  { %38 = sbr.rel (!%p36_p7) target bundleno = 21 (0x15), region = 153 }
 0xbed   :  { %7012 = vsyncpa [#allocation6], 1 }
 0xbee   :  { %7014 = vsyncpa [#allocation6 + $0x1], 1 }
 0xbef   :  { %7015 = vsyncpa [#allocation7], 1 }
 0xbf0   :  { %7017 = vsyncpa [#allocation7 + $0x1], 1 }

</bundles_post_ra>
